<compile_context>
chip_gen: v5e
topology: v5e:2x2
jax: 0.10.0
libtpu: 0.0.40
codegen_flags: <defaults>
</compile_context>

<pallas_src>
from functools import partial

import jax
import jax.numpy as jnp
from jax.experimental import pallas as pl
from jax.experimental.pallas import tpu as pltpu

LANE = 128


# ----------------------------------------------------------------------------- kernels


def _conv3x3_2d(x2d, w_ref, acc_ref, *, W):
    """'Same' 3x3 conv of a flattened tile x2d:(H*W, Cin) against w_ref:(3, 3, Cin, Cout),
    accumulated in f32 into acc_ref:(H*W, Cout).

    All shifting happens on the read-only input:
      * dw=+/-1 column shifts: one sublane shift each of the (bf16) input + a column
        validity mask (intra-row wrap is masked to zero),
      * dh=+/-1 row shifts: leading-dim offsets that are multiples of W, so both the
        matmul operand slice and the accumulator update are aligned and unmasked.
    """
    HW, Cin = x2d.shape
    dt = x2d.dtype
    zero = jnp.zeros((), dt)
    zrow = jnp.zeros((1, Cin), dt)

    # Column index of each flattened row (static W); used to mask the dw=+/-1 wrap.
    col = jax.lax.broadcasted_iota(jnp.int32, (HW, 1), 0) % W
    # dw = +1 : xs_p[r] = x[h, w+1]  (valid where w <= W-2)
    xs_p = jnp.where(col <= W - 2,
                     jnp.concatenate([x2d[1:, :], zrow], axis=0), zero)
    # dw = -1 : xs_m[r] = x[h, w-1]  (valid where w >= 1)
    xs_m = jnp.where(col >= 1,
                     jnp.concatenate([zrow, x2d[:HW - 1, :]], axis=0), zero)
    shifted = (xs_m, x2d, xs_p)                       # indexed by kw = dw + 1

    # dh = 0 taps: full-tile matmuls + full-tile f32 adds.  The center tap doubles as the
    # accumulator init (no separate zero-fill pass over the scratch).
    acc_ref[...] = jnp.dot(x2d, w_ref[1, 1], preferred_element_type=jnp.float32)
    acc_ref[...] += jnp.dot(xs_m, w_ref[1, 0], preferred_element_type=jnp.float32)
    acc_ref[...] += jnp.dot(xs_p, w_ref[1, 2], preferred_element_type=jnp.float32)

    # dh = +/-1 taps: out[h,w] += x[h+dh, w+dw] @ w[dh+1, dw+1].  The row offset is a
    # multiple of W on the leading dim of both operand and accumulator (aligned stores).
    for kw in range(3):
        xsw = shifted[kw]
        # dh = +1 (kh = 2): output rows [0, HW-W), input rows [W, HW)
        acc_ref[0:HW - W, :] += jnp.dot(xsw[W:HW, :], w_ref[2, kw],
                                        preferred_element_type=jnp.float32)
        # dh = -1 (kh = 0): output rows [W, HW), input rows [0, HW-W)
        acc_ref[W:HW, :] += jnp.dot(xsw[0:HW - W, :], w_ref[0, kw],
                                    preferred_element_type=jnp.float32)


def _write_stats(y_f32, sum_ref, sumsq_ref):
    # Per-tile BN partials from the f32 accumulator (before any downcast); reduced
    # across tiles in the wrapper so the grid stays "parallel".
    sum_ref[0] = jnp.sum(y_f32, axis=0, keepdims=True)
    sumsq_ref[0] = jnp.sum(y_f32 * y_f32, axis=0, keepdims=True)


def _conv1_kernel(x_ref, w_ref, y_ref, sum_ref, sumsq_ref, acc_ref, *, W):
    # conv bias b1 intentionally omitted: a constant per-channel shift is a no-op in
    # front of training-mode BatchNorm.
    _conv3x3_2d(x_ref[0], w_ref, acc_ref, W=W)
    y = acc_ref[...]
    y_ref[0] = y.astype(y_ref.dtype)          # bf16 HBM round-trip by default
    _write_stats(y, sum_ref, sumsq_ref)


def _bn_relu_conv2_kernel(y1_ref, scale_ref, shift_ref, w_ref,
                          y_ref, sum_ref, sumsq_ref, acc_ref, *, W):
    # Fused BN1 affine (scale/shift precomputed from global stats) + ReLU in f32,
    # then conv2 on the compute-dtype operand (conv bias b2 omitted: BN no-op).
    h = jnp.maximum(y1_ref[0].astype(jnp.float32) * scale_ref[...] + shift_ref[...], 0.0)
    _conv3x3_2d(h.astype(w_ref.dtype), w_ref, acc_ref, W=W)
    y = acc_ref[...]
    y_ref[0] = y.astype(y_ref.dtype)
    _write_stats(y, sum_ref, sumsq_ref)


def _finalize_proj_kernel(y2_ref, scale_ref, shift_ref, x_ref, ws_ref, bs_ref, o_ref):
    # BN2 affine + 1x1 projection skip + residual add + ReLU (all 2-D, lane-dense).
    skip = jnp.dot(x_ref[0], ws_ref[...], preferred_element_type=jnp.float32) + bs_ref[...]
    out = y2_ref[0].astype(jnp.float32) * scale_ref[...] + shift_ref[...] + skip
    o_ref[0] = jnp.maximum(out, 0.0)


def _finalize_identity_kernel(y2_ref, scale_ref, shift_ref, x_ref, o_ref):
    # Identity skip: add the (bf16) x operand directly, upcast in-kernel.
    out = (y2_ref[0].astype(jnp.float32) * scale_ref[...] + shift_ref[...]
           + x_ref[0].astype(jnp.float32))
    o_ref[0] = jnp.maximum(out, 0.0)


# ----------------------------------------------------------------------------- wrapper


def _round_up(v, m):
    return ((v + m - 1) // m) * m


def _pad_axis(a, axis, target):
    pad = target - a.shape[axis]
    if pad == 0:
        return a
    widths = [(0, 0)] * a.ndim
    widths[axis] = (0, pad)
    return jnp.pad(a, widths)


def _bn_affine(sum_nc, sumsq_nc, gamma, beta, count, eps=1e-5):
    """Fold global training-mode BN stats into a fused per-channel scale/shift."""
    s = jnp.sum(sum_nc[:, 0, :], axis=0)
    ss = jnp.sum(sumsq_nc[:, 0, :], axis=0)
    mean = s / count
    var = jnp.maximum(ss / count - mean * mean, 0.0)      # biased variance (PyTorch BN)
    inv = jax.lax.rsqrt(var + eps)
    scale = gamma[0] * inv
    shift = beta[0] - mean * scale
    return scale[None, :], shift[None, :]                 # (1, C)


@partial(jax.jit, static_argnames=("compute_dtype",))
def residual_block(x_nchw, params, compute_dtype=jnp.bfloat16):
    """x_nchw: (N, Cin, H, W) f32 (PyTorch layout). Returns (N, Cout, H, W) f32."""
    N, Cin, H, W = x_nchw.shape
    Cout = params["w1"].shape[-1]
    Cinp = _round_up(Cin, LANE)     # lane-dense input channels
    Cp = _round_up(Cout, LANE)      # lane-dense output channels
    HW = H * W
    count = N * HW                  # BN reduces over batch and spatial dims
    eps = 1e-5

    # NCHW -> flattened NHWC (N, H*W, C); pad channels to the 128-lane width.
    x_nhwc = jnp.transpose(x_nchw, (0, 2, 3, 1)).astype(jnp.float32)
    x_flat = _pad_axis(x_nhwc.reshape(N, HW, Cin), 2, Cinp)
    x_mx = x_flat.astype(compute_dtype)                   # single HBM copy of x

    w1 = _pad_axis(_pad_axis(params["w1"], 2, Cinp), 3, Cp).astype(compute_dtype)
    w2 = _pad_axis(_pad_axis(params["w2"], 2, Cp), 3, Cp).astype(compute_dtype)
    g1 = _pad_axis(params["g1"], 1, Cp)
    be1 = _pad_axis(params["beta1"], 1, Cp)
    g2 = _pad_axis(params["g2"], 1, Cp)
    be2 = _pad_axis(params["beta2"], 1, Cp)

    cparams = pltpu.CompilerParams(
        dimension_semantics=("parallel",),
        vmem_limit_bytes=48 * 1024 * 1024,   # valid on v7x (64 MiB), raises v5e's default
    )
    tile = lambda C: pl.BlockSpec((1, HW, C), lambda n: (n, 0, 0))
    vec = pl.BlockSpec((1, Cp), lambda n: (0, 0))
    stat = pl.BlockSpec((1, 1, Cp), lambda n: (n, 0, 0))
    acc_scratch = pltpu.VMEM((HW, Cp), jnp.float32)

    # ---- pass 1: conv1 per batch tile + per-tile BN1 partial stats ----
    y1, s1, ss1 = pl.pallas_call(
        partial(_conv1_kernel, W=W),
        grid=(N,),
        in_specs=[tile(Cinp),
                  pl.BlockSpec((3, 3, Cinp, Cp), lambda n: (0, 0, 0, 0))],
        out_specs=[tile(Cp), stat, stat],
        out_shape=[jax.ShapeDtypeStruct((N, HW, Cp), compute_dtype),
                   jax.ShapeDtypeStruct((N, 1, Cp), jnp.float32),
                   jax.ShapeDtypeStruct((N, 1, Cp), jnp.float32)],
        scratch_shapes=[acc_scratch],
        compiler_params=cparams,
    )(x_mx, w1)
    scale1, shift1 = _bn_affine(s1, ss1, g1, be1, count, eps)

    # ---- pass 2: BN1 + ReLU + conv2 per batch tile + per-tile BN2 partial stats ----
    y2, s2, ss2 = pl.pallas_call(
        partial(_bn_relu_conv2_kernel, W=W),
        grid=(N,),
        in_specs=[tile(Cp), vec, vec,
                  pl.BlockSpec((3, 3, Cp, Cp), lambda n: (0, 0, 0, 0))],
        out_specs=[tile(Cp), stat, stat],
        out_shape=[jax.ShapeDtypeStruct((N, HW, Cp), compute_dtype),
                   jax.ShapeDtypeStruct((N, 1, Cp), jnp.float32),
                   jax.ShapeDtypeStruct((N, 1, Cp), jnp.float32)],
        scratch_shapes=[acc_scratch],
        compiler_params=cparams,
    )(y1, scale1, shift1, w2)
    scale2, shift2 = _bn_affine(s2, ss2, g2, be2, count, eps)

    # ---- pass 3: BN2 + skip + residual add + ReLU ----
    if "ws" in params:       # 1x1 projection skip (in_channels != out_channels)
        ws = _pad_axis(_pad_axis(params["ws"], 0, Cinp), 1, Cp).astype(compute_dtype)
        bs = _pad_axis(params["bs"], 1, Cp)
        out_p = pl.pallas_call(
            _finalize_proj_kernel,
            grid=(N,),
            in_specs=[tile(Cp), vec, vec, tile(Cinp),
                      pl.BlockSpec((Cinp, Cp), lambda n: (0, 0)), vec],
            out_specs=tile(Cp),
            out_shape=jax.ShapeDtypeStruct((N, HW, Cp), jnp.float32),
            compiler_params=cparams,
        )(y2, scale2, shift2, x_mx, ws, bs)
    else:                    # identity skip (in_channels == out_channels)
        out_p = pl.pallas_call(
            _finalize_identity_kernel,
            grid=(N,),
            in_specs=[tile(Cp), vec, vec, tile(Cp)],
            out_specs=tile(Cp),
            out_shape=jax.ShapeDtypeStruct((N, HW, Cp), jnp.float32),
            compiler_params=cparams,
        )(y2, scale2, shift2, x_mx)

    # Drop channel padding, restore spatial dims, back to NCHW.
    out = out_p[..., :Cout].reshape(N, H, W, Cout)
    return jnp.transpose(out, (0, 3, 1, 2))


# ----------------------------------------------------------------------- params / reference


def make_params(key, in_channels, out_channels):
    """Parameters mirroring the module (conv weights stored as (KH, KW, Cin, Cout))."""
    ks = jax.random.split(key, 8)
    C_in, C = in_channels, out_channels
    params = dict(
        w1=0.1 * jax.random.normal(ks[0], (3, 3, C_in, C), jnp.float32),
        b1=0.1 * jax.random.normal(ks[1], (1, C), jnp.float32),   # cancelled by BN1
        g1=1.0 + 0.1 * jax.random.normal(ks[2], (1, C), jnp.float32),
        beta1=0.1 * jax.random.normal(ks[3], (1, C), jnp.float32),
        w2=0.1 * jax.random.normal(ks[4], (3, 3, C, C), jnp.float32),
        b2=0.1 * jax.random.normal(ks[5], (1, C), jnp.float32),   # cancelled by BN2
        g2=1.0 + 0.1 * jax.random.normal(ks[6], (1, C), jnp.float32),
        beta2=0.1 * jax.random.normal(ks[7], (1, C), jnp.float32),
    )
    if in_channels != out_channels:
        kws, kbs = jax.random.split(ks[1])
        params["ws"] = 0.1 * jax.random.normal(kws, (C_in, C), jnp.float32)
        params["bs"] = 0.1 * jax.random.normal(kbs, (1, C), jnp.float32)
    return params


def residual_block_reference(x_nchw, params):
    """Pure-JAX f32 reference with the full PyTorch math (incl. conv biases b1/b2)."""
    x = jnp.transpose(x_nchw, (0, 2, 3, 1)).astype(jnp.float32)
    hp = jax.lax.Precision.HIGHEST

    def conv3x3(a, w, b):
        H, W = a.shape[1], a.shape[2]
        ap = jnp.pad(a, ((0, 0), (1, 1), (1, 1), (0, 0)))
        out = jnp.zeros(a.shape[:3] + (w.shape[-1],), jnp.float32)
        for kh in range(3):
            for kw in range(3):
                out = out + jnp.einsum('nhwc,cd->nhwd',
                                       ap[:, kh:kh + H, kw:kw + W, :],
                                       w[kh, kw], precision=hp)
        return out + b[0]

    def bn(a, g, be):
        m = jnp.mean(a, axis=(0, 1, 2), keepdims=True)
        v = jnp.mean(jnp.square(a - m), axis=(0, 1, 2), keepdims=True)
        return (a - m) * jax.lax.rsqrt(v + 1e-5) * g[0] + be[0]

    h = jax.nn.relu(bn(conv3x3(x, params["w1"], params["b1"]),
                       params["g1"], params["beta1"]))
    o = bn(conv3x3(h, params["w2"], params["b2"]),
           params["g2"], params["beta2"])
    if "ws" in params:
        skip = jnp.einsum('nhwc,cd->nhwd', x, params["ws"], precision=hp) + params["bs"][0]
    else:
        skip = x
    return jnp.transpose(jax.nn.relu(o + skip), (0, 3, 1, 2))


if __name__ == "__main__":
    key = jax.random.PRNGKey(0)
    kx, kp, kx2, kp2 = jax.random.split(key, 4)

    # Projection-skip case (in_channels != out_channels).
    N, C_in, C_out, H, W = 2, 4, 8, 16, 16
    x = jax.random.normal(kx, (N, C_in, H, W), jnp.float32)
    params = make_params(kp, C_in, C_out)

    ref = jax.block_until_ready(residual_block_reference(x, params))

    # bf16 path (default): loose tolerance accounts for bf16 matmul operands and the
    # bf16 y1/y2 HBM round-trips.
    out = jax.block_until_ready(residual_block(x, params))
    assert out.shape == (N, C_out, H, W)
    assert jnp.allclose(out, ref, atol=5e-2, rtol=5e-2), \
        f"bf16 path: max abs err = {jnp.max(jnp.abs(out - ref))}"

    # Exact-f32 path: tight tolerance (intermediates stay f32 when compute_dtype is f32).
    out_f32 = jax.block_until_ready(residual_block(x, params, compute_dtype=jnp.float32))
    assert jnp.allclose(out_f32, ref, atol=1e-3, rtol=1e-3), \
        f"f32 path: max abs err = {jnp.max(jnp.abs(out_f32 - ref))}"

    # Identity-skip case (in_channels == out_channels) exercises the other finalize kernel.
    x2 = jax.random.normal(kx2, (N, 8, H, W), jnp.float32)
    params2 = make_params(kp2, 8, 8)
    out2 = jax.block_until_ready(residual_block(x2, params2))
    ref2 = jax.block_until_ready(residual_block_reference(x2, params2))
    assert jnp.allclose(out2, ref2, atol=5e-2, rtol=5e-2), \
        f"identity path: max abs err = {jnp.max(jnp.abs(out2 - ref2))}"

    print("KERNEL_OK")
</pallas_src>

<mosaic_0001>
module attributes {stable_mosaic.version = 11 : i64} {
  func.func @_conv1_kernel(%arg0: i32, %arg1: memref<1x256x128xbf16, #tpu.memory_space<vmem>>, %arg2: memref<3x3x128x128xbf16, #tpu.memory_space<vmem>>, %arg3: memref<1x256x128xbf16, #tpu.memory_space<vmem>>, %arg4: memref<1x1x128xf32, #tpu.memory_space<vmem>>, %arg5: memref<1x1x128xf32, #tpu.memory_space<vmem>>, %arg6: memref<256x128xf32, #tpu.memory_space<vmem>>) attributes {dimension_semantics = [#tpu.dimension_semantics<parallel>], iteration_bounds = array<i64: 2>, scalar_prefetch = 0 : i64, scratch_operands = 1 : i64, tpu.core_type = #tpu.core_type<tc>, window_params = [{transform_indices = @transform_0, window_bounds = array<i64: 1, 256, 128>}, {pipeline_mode = #tpu.pipeline_mode<synchronous>, transform_indices = @transform_1, window_bounds = array<i64: 3, 3, 128, 128>}, {transform_indices = @transform_2, window_bounds = array<i64: 1, 256, 128>}, {transform_indices = @transform_3, window_bounds = array<i64: 1, 1, 128>}, {transform_indices = @transform_4, window_bounds = array<i64: 1, 1, 128>}]} {
    %c0 = arith.constant 0 : index
    %c0_0 = arith.constant 0 : index
    %c0_1 = arith.constant 0 : index
    %0 = vector.load %arg1[%c0, %c0_0, %c0_1] : memref<1x256x128xbf16, #tpu.memory_space<vmem>>, vector<1x256x128xbf16>
    %1 = vector.shape_cast %0 : vector<1x256x128xbf16> to vector<256x128xbf16>
    %cst = arith.constant 0.000000e+00 : bf16
    %2 = vector.broadcast %cst : bf16 to vector<1x128xbf16>
    %3 = tpu.iota {dimensions = array<i32: 0>} : vector<256x1xi32>
    %c16_i32 = arith.constant 16 : i32
    %c0_i32 = arith.constant 0 : i32
    %4 = arith.cmpi eq, %c16_i32, %c0_i32 : i32
    %c1_i32 = arith.constant 1 : i32
    %5 = arith.select %4, %c1_i32, %c16_i32 : i32
    %6 = vector.broadcast %5 : i32 to vector<256x1xi32>
    %7 = arith.remsi %3, %6 : vector<256x1xi32>
    %c0_i32_2 = arith.constant 0 : i32
    %8 = vector.broadcast %c0_i32_2 : i32 to vector<256x1xi32>
    %9 = arith.cmpi ne, %7, %8 : vector<256x1xi32>
    %c0_i32_3 = arith.constant 0 : i32
    %10 = vector.broadcast %c0_i32_3 : i32 to vector<256x1xi32>
    %11 = arith.cmpi slt, %7, %10 : vector<256x1xi32>
    %c0_i32_4 = arith.constant 0 : i32
    %12 = arith.cmpi slt, %5, %c0_i32_4 : i32
    %13 = vector.broadcast %12 : i1 to vector<256x1xi1>
    %14 = vector.broadcast %13 : vector<256x1xi1> to vector<256x1xi1>
    %15 = arith.xori %11, %14 : vector<256x1xi1>
    %16 = arith.andi %15, %9 : vector<256x1xi1>
    %17 = vector.broadcast %5 : i32 to vector<256x1xi32>
    %18 = arith.addi %7, %17 : vector<256x1xi32>
    %19 = arith.select %16, %18, %7 : vector<256x1xi1>, vector<256x1xi32>
    %c14_i32 = arith.constant 14 : i32
    %20 = vector.broadcast %c14_i32 : i32 to vector<256x1xi32>
    %21 = arith.cmpi sle, %19, %20 : vector<256x1xi32>
    %22 = vector.extract_strided_slice %1 {offsets = [1, 0], sizes = [255, 128], strides = [1, 1]} : vector<256x128xbf16> to vector<255x128xbf16>
    %23 = tpu.concatenate %22, %2 in 0 : vector<255x128xbf16>, vector<1x128xbf16> -> vector<256x128xbf16>
    %cst_5 = arith.constant 0.000000e+00 : bf16
    %24 = vector.shape_cast %21 : vector<256x1xi1> to vector<256x1xi1>
    %25 = vector.broadcast %24 : vector<256x1xi1> to vector<256x128xi1>
    %26 = vector.broadcast %cst_5 : bf16 to vector<256x128xbf16>
    %27 = arith.select %25, %23, %26 : vector<256x128xi1>, vector<256x128xbf16>
    %c1_i32_6 = arith.constant 1 : i32
    %28 = vector.broadcast %c1_i32_6 : i32 to vector<256x1xi32>
    %29 = arith.cmpi sge, %19, %28 : vector<256x1xi32>
    %30 = vector.extract_strided_slice %1 {offsets = [0, 0], sizes = [255, 128], strides = [1, 1]} : vector<256x128xbf16> to vector<255x128xbf16>
    %31 = tpu.concatenate %2, %30 in 0 : vector<1x128xbf16>, vector<255x128xbf16> -> vector<256x128xbf16>
    %cst_7 = arith.constant 0.000000e+00 : bf16
    %32 = vector.shape_cast %29 : vector<256x1xi1> to vector<256x1xi1>
    %33 = vector.broadcast %32 : vector<256x1xi1> to vector<256x128xi1>
    %34 = vector.broadcast %cst_7 : bf16 to vector<256x128xbf16>
    %35 = arith.select %33, %31, %34 : vector<256x128xi1>, vector<256x128xbf16>
    %c1 = arith.constant 1 : index
    %c1_8 = arith.constant 1 : index
    %c0_9 = arith.constant 0 : index
    %c0_10 = arith.constant 0 : index
    %36 = vector.load %arg2[%c1, %c1_8, %c0_9, %c0_10] : memref<3x3x128x128xbf16, #tpu.memory_space<vmem>>, vector<1x1x128x128xbf16>
    %37 = vector.shape_cast %36 : vector<1x1x128x128xbf16> to vector<128x128xbf16>
    %cst_11 = arith.constant dense<0.000000e+00> : vector<256x128xf32>
    %38 = tpu.matmul %1, %37, %cst_11 {dimension_numbers = #tpu.dot_dimension_numbers<[1], [0], [0], [1], [0, 0, 1, 1], [], []>} : vector<256x128xbf16>, vector<128x128xbf16>, vector<256x128xf32> -> vector<256x128xf32>
    %c0_12 = arith.constant 0 : index
    %c0_13 = arith.constant 0 : index
    %39 = vector.load %arg6[%c0_12, %c0_13] : memref<256x128xf32, #tpu.memory_space<vmem>>, vector<256x128xf32>
    tpu.vector_store %arg6[%c0_12, %c0_13], %38 {strides = array<i32>} : memref<256x128xf32, #tpu.memory_space<vmem>>, vector<256x128xf32>,
    %c0_14 = arith.constant 0 : index
    %c0_15 = arith.constant 0 : index
    %40 = vector.load %arg6[%c0_14, %c0_15] : memref<256x128xf32, #tpu.memory_space<vmem>>, vector<256x128xf32>
    %c1_16 = arith.constant 1 : index
    %c0_17 = arith.constant 0 : index
    %c0_18 = arith.constant 0 : index
    %c0_19 = arith.constant 0 : index
    %41 = vector.load %arg2[%c1_16, %c0_17, %c0_18, %c0_19] : memref<3x3x128x128xbf16, #tpu.memory_space<vmem>>, vector<1x1x128x128xbf16>
    %42 = vector.shape_cast %41 : vector<1x1x128x128xbf16> to vector<128x128xbf16>
    %cst_20 = arith.constant dense<0.000000e+00> : vector<256x128xf32>
    %43 = tpu.matmul %35, %42, %cst_20 {dimension_numbers = #tpu.dot_dimension_numbers<[1], [0], [0], [1], [0, 0, 1, 1], [], []>} : vector<256x128xbf16>, vector<128x128xbf16>, vector<256x128xf32> -> vector<256x128xf32>
    %44 = arith.addf %40, %43 : vector<256x128xf32>
    %c0_21 = arith.constant 0 : index
    %c0_22 = arith.constant 0 : index
    %45 = vector.load %arg6[%c0_21, %c0_22] : memref<256x128xf32, #tpu.memory_space<vmem>>, vector<256x128xf32>
    tpu.vector_store %arg6[%c0_21, %c0_22], %44 {strides = array<i32>} : memref<256x128xf32, #tpu.memory_space<vmem>>, vector<256x128xf32>,
    %c0_23 = arith.constant 0 : index
    %c0_24 = arith.constant 0 : index
    %46 = vector.load %arg6[%c0_23, %c0_24] : memref<256x128xf32, #tpu.memory_space<vmem>>, vector<256x128xf32>
    %c1_25 = arith.constant 1 : index
    %c2 = arith.constant 2 : index
    %c0_26 = arith.constant 0 : index
    %c0_27 = arith.constant 0 : index
    %47 = vector.load %arg2[%c1_25, %c2, %c0_26, %c0_27] : memref<3x3x128x128xbf16, #tpu.memory_space<vmem>>, vector<1x1x128x128xbf16>
    %48 = vector.shape_cast %47 : vector<1x1x128x128xbf16> to vector<128x128xbf16>
    %cst_28 = arith.constant dense<0.000000e+00> : vector<256x128xf32>
    %49 = tpu.matmul %27, %48, %cst_28 {dimension_numbers = #tpu.dot_dimension_numbers<[1], [0], [0], [1], [0, 0, 1, 1], [], []>} : vector<256x128xbf16>, vector<128x128xbf16>, vector<256x128xf32> -> vector<256x128xf32>
    %50 = arith.addf %46, %49 : vector<256x128xf32>
    %c0_29 = arith.constant 0 : index
    %c0_30 = arith.constant 0 : index
    %51 = vector.load %arg6[%c0_29, %c0_30] : memref<256x128xf32, #tpu.memory_space<vmem>>, vector<256x128xf32>
    tpu.vector_store %arg6[%c0_29, %c0_30], %50 {strides = array<i32>} : memref<256x128xf32, #tpu.memory_space<vmem>>, vector<256x128xf32>,
    %c0_31 = arith.constant 0 : index
    %c0_32 = arith.constant 0 : index
    %52 = vector.load %arg6[%c0_31, %c0_32] : memref<256x128xf32, #tpu.memory_space<vmem>>, vector<240x128xf32>
    %53 = vector.extract_strided_slice %35 {offsets = [16, 0], sizes = [240, 128], strides = [1, 1]} : vector<256x128xbf16> to vector<240x128xbf16>
    %c2_33 = arith.constant 2 : index
    %c0_34 = arith.constant 0 : index
    %c0_35 = arith.constant 0 : index
    %c0_36 = arith.constant 0 : index
    %54 = vector.load %arg2[%c2_33, %c0_34, %c0_35, %c0_36] : memref<3x3x128x128xbf16, #tpu.memory_space<vmem>>, vector<1x1x128x128xbf16>
    %55 = vector.shape_cast %54 : vector<1x1x128x128xbf16> to vector<128x128xbf16>
    %cst_37 = arith.constant dense<0.000000e+00> : vector<240x128xf32>
    %56 = tpu.matmul %53, %55, %cst_37 {dimension_numbers = #tpu.dot_dimension_numbers<[1], [0], [0], [1], [0, 0, 1, 1], [], []>} : vector<240x128xbf16>, vector<128x128xbf16>, vector<240x128xf32> -> vector<240x128xf32>
    %57 = arith.addf %52, %56 : vector<240x128xf32>
    %c0_38 = arith.constant 0 : index
    %c0_39 = arith.constant 0 : index
    %58 = vector.load %arg6[%c0_38, %c0_39] : memref<256x128xf32, #tpu.memory_space<vmem>>, vector<240x128xf32>
    tpu.vector_store %arg6[%c0_38, %c0_39], %57 {strides = array<i32>} : memref<256x128xf32, #tpu.memory_space<vmem>>, vector<240x128xf32>,
    %c16 = arith.constant 16 : index
    %c0_40 = arith.constant 0 : index
    %59 = vector.load %arg6[%c16, %c0_40] : memref<256x128xf32, #tpu.memory_space<vmem>>, vector<240x128xf32>
    %60 = vector.extract_strided_slice %35 {offsets = [0, 0], sizes = [240, 128], strides = [1, 1]} : vector<256x128xbf16> to vector<240x128xbf16>
    %c0_41 = arith.constant 0 : index
    %c0_42 = arith.constant 0 : index
    %c0_43 = arith.constant 0 : index
    %c0_44 = arith.constant 0 : index
    %61 = vector.load %arg2[%c0_41, %c0_42, %c0_43, %c0_44] : memref<3x3x128x128xbf16, #tpu.memory_space<vmem>>, vector<1x1x128x128xbf16>
    %62 = vector.shape_cast %61 : vector<1x1x128x128xbf16> to vector<128x128xbf16>
    %cst_45 = arith.constant dense<0.000000e+00> : vector<240x128xf32>
    %63 = tpu.matmul %60, %62, %cst_45 {dimension_numbers = #tpu.dot_dimension_numbers<[1], [0], [0], [1], [0, 0, 1, 1], [], []>} : vector<240x128xbf16>, vector<128x128xbf16>, vector<240x128xf32> -> vector<240x128xf32>
    %64 = arith.addf %59, %63 : vector<240x128xf32>
    %c16_46 = arith.constant 16 : index
    %c0_47 = arith.constant 0 : index
    %65 = vector.load %arg6[%c16_46, %c0_47] : memref<256x128xf32, #tpu.memory_space<vmem>>, vector<240x128xf32>
    tpu.vector_store %arg6[%c16_46, %c0_47], %64 {strides = array<i32>} : memref<256x128xf32, #tpu.memory_space<vmem>>, vector<240x128xf32>,
    %c0_48 = arith.constant 0 : index
    %c0_49 = arith.constant 0 : index
    %66 = vector.load %arg6[%c0_48, %c0_49] : memref<256x128xf32, #tpu.memory_space<vmem>>, vector<240x128xf32>
    %67 = vector.extract_strided_slice %1 {offsets = [16, 0], sizes = [240, 128], strides = [1, 1]} : vector<256x128xbf16> to vector<240x128xbf16>
    %c2_50 = arith.constant 2 : index
    %c1_51 = arith.constant 1 : index
    %c0_52 = arith.constant 0 : index
    %c0_53 = arith.constant 0 : index
    %68 = vector.load %arg2[%c2_50, %c1_51, %c0_52, %c0_53] : memref<3x3x128x128xbf16, #tpu.memory_space<vmem>>, vector<1x1x128x128xbf16>
    %69 = vector.shape_cast %68 : vector<1x1x128x128xbf16> to vector<128x128xbf16>
    %cst_54 = arith.constant dense<0.000000e+00> : vector<240x128xf32>
    %70 = tpu.matmul %67, %69, %cst_54 {dimension_numbers = #tpu.dot_dimension_numbers<[1], [0], [0], [1], [0, 0, 1, 1], [], []>} : vector<240x128xbf16>, vector<128x128xbf16>, vector<240x128xf32> -> vector<240x128xf32>
    %71 = arith.addf %66, %70 : vector<240x128xf32>
    %c0_55 = arith.constant 0 : index
    %c0_56 = arith.constant 0 : index
    %72 = vector.load %arg6[%c0_55, %c0_56] : memref<256x128xf32, #tpu.memory_space<vmem>>, vector<240x128xf32>
    tpu.vector_store %arg6[%c0_55, %c0_56], %71 {strides = array<i32>} : memref<256x128xf32, #tpu.memory_space<vmem>>, vector<240x128xf32>,
    %c16_57 = arith.constant 16 : index
    %c0_58 = arith.constant 0 : index
    %73 = vector.load %arg6[%c16_57, %c0_58] : memref<256x128xf32, #tpu.memory_space<vmem>>, vector<240x128xf32>
    %74 = vector.extract_strided_slice %1 {offsets = [0, 0], sizes = [240, 128], strides = [1, 1]} : vector<256x128xbf16> to vector<240x128xbf16>
    %c0_59 = arith.constant 0 : index
    %c1_60 = arith.constant 1 : index
    %c0_61 = arith.constant 0 : index
    %c0_62 = arith.constant 0 : index
    %75 = vector.load %arg2[%c0_59, %c1_60, %c0_61, %c0_62] : memref<3x3x128x128xbf16, #tpu.memory_space<vmem>>, vector<1x1x128x128xbf16>
    %76 = vector.shape_cast %75 : vector<1x1x128x128xbf16> to vector<128x128xbf16>
    %cst_63 = arith.constant dense<0.000000e+00> : vector<240x128xf32>
    %77 = tpu.matmul %74, %76, %cst_63 {dimension_numbers = #tpu.dot_dimension_numbers<[1], [0], [0], [1], [0, 0, 1, 1], [], []>} : vector<240x128xbf16>, vector<128x128xbf16>, vector<240x128xf32> -> vector<240x128xf32>
    %78 = arith.addf %73, %77 : vector<240x128xf32>
    %c16_64 = arith.constant 16 : index
    %c0_65 = arith.constant 0 : index
    %79 = vector.load %arg6[%c16_64, %c0_65] : memref<256x128xf32, #tpu.memory_space<vmem>>, vector<240x128xf32>
    tpu.vector_store %arg6[%c16_64, %c0_65], %78 {strides = array<i32>} : memref<256x128xf32, #tpu.memory_space<vmem>>, vector<240x128xf32>,
    %c0_66 = arith.constant 0 : index
    %c0_67 = arith.constant 0 : index
    %80 = vector.load %arg6[%c0_66, %c0_67] : memref<256x128xf32, #tpu.memory_space<vmem>>, vector<240x128xf32>
    %81 = vector.extract_strided_slice %27 {offsets = [16, 0], sizes = [240, 128], strides = [1, 1]} : vector<256x128xbf16> to vector<240x128xbf16>
    %c2_68 = arith.constant 2 : index
    %c2_69 = arith.constant 2 : index
    %c0_70 = arith.constant 0 : index
    %c0_71 = arith.constant 0 : index
    %82 = vector.load %arg2[%c2_68, %c2_69, %c0_70, %c0_71] : memref<3x3x128x128xbf16, #tpu.memory_space<vmem>>, vector<1x1x128x128xbf16>
    %83 = vector.shape_cast %82 : vector<1x1x128x128xbf16> to vector<128x128xbf16>
    %cst_72 = arith.constant dense<0.000000e+00> : vector<240x128xf32>
    %84 = tpu.matmul %81, %83, %cst_72 {dimension_numbers = #tpu.dot_dimension_numbers<[1], [0], [0], [1], [0, 0, 1, 1], [], []>} : vector<240x128xbf16>, vector<128x128xbf16>, vector<240x128xf32> -> vector<240x128xf32>
    %85 = arith.addf %80, %84 : vector<240x128xf32>
    %c0_73 = arith.constant 0 : index
    %c0_74 = arith.constant 0 : index
    %86 = vector.load %arg6[%c0_73, %c0_74] : memref<256x128xf32, #tpu.memory_space<vmem>>, vector<240x128xf32>
    tpu.vector_store %arg6[%c0_73, %c0_74], %85 {strides = array<i32>} : memref<256x128xf32, #tpu.memory_space<vmem>>, vector<240x128xf32>,
    %c16_75 = arith.constant 16 : index
    %c0_76 = arith.constant 0 : index
    %87 = vector.load %arg6[%c16_75, %c0_76] : memref<256x128xf32, #tpu.memory_space<vmem>>, vector<240x128xf32>
    %88 = vector.extract_strided_slice %27 {offsets = [0, 0], sizes = [240, 128], strides = [1, 1]} : vector<256x128xbf16> to vector<240x128xbf16>
    %c0_77 = arith.constant 0 : index
    %c2_78 = arith.constant 2 : index
    %c0_79 = arith.constant 0 : index
    %c0_80 = arith.constant 0 : index
    %89 = vector.load %arg2[%c0_77, %c2_78, %c0_79, %c0_80] : memref<3x3x128x128xbf16, #tpu.memory_space<vmem>>, vector<1x1x128x128xbf16>
    %90 = vector.shape_cast %89 : vector<1x1x128x128xbf16> to vector<128x128xbf16>
    %cst_81 = arith.constant dense<0.000000e+00> : vector<240x128xf32>
    %91 = tpu.matmul %88, %90, %cst_81 {dimension_numbers = #tpu.dot_dimension_numbers<[1], [0], [0], [1], [0, 0, 1, 1], [], []>} : vector<240x128xbf16>, vector<128x128xbf16>, vector<240x128xf32> -> vector<240x128xf32>
    %92 = arith.addf %87, %91 : vector<240x128xf32>
    %c16_82 = arith.constant 16 : index
    %c0_83 = arith.constant 0 : index
    %93 = vector.load %arg6[%c16_82, %c0_83] : memref<256x128xf32, #tpu.memory_space<vmem>>, vector<240x128xf32>
    tpu.vector_store %arg6[%c16_82, %c0_83], %92 {strides = array<i32>} : memref<256x128xf32, #tpu.memory_space<vmem>>, vector<240x128xf32>,
    %c0_84 = arith.constant 0 : index
    %c0_85 = arith.constant 0 : index
    %94 = vector.load %arg6[%c0_84, %c0_85] : memref<256x128xf32, #tpu.memory_space<vmem>>, vector<256x128xf32>
    %95 = arith.truncf %94 : vector<256x128xf32> to vector<256x128xbf16>
    %c0_86 = arith.constant 0 : index
    %c0_87 = arith.constant 0 : index
    %c0_88 = arith.constant 0 : index
    %96 = vector.load %arg3[%c0_86, %c0_87, %c0_88] : memref<1x256x128xbf16, #tpu.memory_space<vmem>>, vector<1x256x128xbf16>
    %97 = vector.shape_cast %96 : vector<1x256x128xbf16> to vector<256x128xbf16>
    %98 = vector.shape_cast %95 : vector<256x128xbf16> to vector<1x256x128xbf16>
    tpu.vector_store %arg3[%c0_86, %c0_87, %c0_88], %98 {strides = array<i32>} : memref<1x256x128xbf16, #tpu.memory_space<vmem>>, vector<1x256x128xbf16>,
    %cst_89 = arith.constant dense<0.000000e+00> : vector<128xf32>
    %99 = vector.multi_reduction <add>, %94, %cst_89 [0] : vector<256x128xf32> to vector<128xf32>
    %100 = vector.shape_cast %99 : vector<128xf32> to vector<1x128xf32>
    %c0_90 = arith.constant 0 : index
    %c0_91 = arith.constant 0 : index
    %c0_92 = arith.constant 0 : index
    %101 = vector.load %arg4[%c0_90, %c0_91, %c0_92] : memref<1x1x128xf32, #tpu.memory_space<vmem>>, vector<1x1x128xf32>
    %102 = vector.shape_cast %101 : vector<1x1x128xf32> to vector<1x128xf32>
    %103 = vector.shape_cast %100 : vector<1x128xf32> to vector<1x1x128xf32>
    tpu.vector_store %arg4[%c0_90, %c0_91, %c0_92], %103 {strides = array<i32>} : memref<1x1x128xf32, #tpu.memory_space<vmem>>, vector<1x1x128xf32>,
    %104 = arith.mulf %94, %94 : vector<256x128xf32>
    %cst_93 = arith.constant dense<0.000000e+00> : vector<128xf32>
    %105 = vector.multi_reduction <add>, %104, %cst_93 [0] : vector<256x128xf32> to vector<128xf32>
    %106 = vector.shape_cast %105 : vector<128xf32> to vector<1x128xf32>
    %c0_94 = arith.constant 0 : index
    %c0_95 = arith.constant 0 : index
    %c0_96 = arith.constant 0 : index
    %107 = vector.load %arg5[%c0_94, %c0_95, %c0_96] : memref<1x1x128xf32, #tpu.memory_space<vmem>>, vector<1x1x128xf32>
    %108 = vector.shape_cast %107 : vector<1x1x128xf32> to vector<1x128xf32>
    %109 = vector.shape_cast %106 : vector<1x128xf32> to vector<1x1x128xf32>
    tpu.vector_store %arg5[%c0_94, %c0_95, %c0_96], %109 {strides = array<i32>} : memref<1x1x128xf32, #tpu.memory_space<vmem>>, vector<1x1x128xf32>,
    return
  }
  func.func @transform_0(%arg0: i32) -> (i32, i32, i32) {
    %c0_i32 = arith.constant 0 : i32
    %c0_i32_0 = arith.constant 0 : i32
    %c0_i32_1 = arith.constant 0 : i32
    return %arg0, %c0_i32, %c0_i32_0 : i32, i32, i32
  }
  func.func @transform_1(%arg0: i32) -> (i32, i32, i32, i32) {
    %c0_i32 = arith.constant 0 : i32
    %c0_i32_0 = arith.constant 0 : i32
    %c0_i32_1 = arith.constant 0 : i32
    %c0_i32_2 = arith.constant 0 : i32
    %c0_i32_3 = arith.constant 0 : i32
    return %c0_i32, %c0_i32_0, %c0_i32_1, %c0_i32_2 : i32, i32, i32, i32
  }
  func.func @transform_2(%arg0: i32) -> (i32, i32, i32) {
    %c0_i32 = arith.constant 0 : i32
    %c0_i32_0 = arith.constant 0 : i32
    %c0_i32_1 = arith.constant 0 : i32
    return %arg0, %c0_i32, %c0_i32_0 : i32, i32, i32
  }
  func.func @transform_3(%arg0: i32) -> (i32, i32, i32) {
    %c0_i32 = arith.constant 0 : i32
    %c0_i32_0 = arith.constant 0 : i32
    %c0_i32_1 = arith.constant 0 : i32
    return %arg0, %c0_i32, %c0_i32_0 : i32, i32, i32
  }
  func.func @transform_4(%arg0: i32) -> (i32, i32, i32) {
    %c0_i32 = arith.constant 0 : i32
    %c0_i32_0 = arith.constant 0 : i32
    %c0_i32_1 = arith.constant 0 : i32
    return %arg0, %c0_i32, %c0_i32_0 : i32, i32, i32
  }
}

module attributes {stable_mosaic.version = 11 : i64} {
  func.func @_bn_relu_conv2_kernel(%arg0: i32, %arg1: memref<1x256x128xbf16, #tpu.memory_space<vmem>>, %arg2: memref<1x128xf32, #tpu.memory_space<vmem>>, %arg3: memref<1x128xf32, #tpu.memory_space<vmem>>, %arg4: memref<3x3x128x128xbf16, #tpu.memory_space<vmem>>, %arg5: memref<1x256x128xbf16, #tpu.memory_space<vmem>>, %arg6: memref<1x1x128xf32, #tpu.memory_space<vmem>>, %arg7: memref<1x1x128xf32, #tpu.memory_space<vmem>>, %arg8: memref<256x128xf32, #tpu.memory_space<vmem>>) attributes {dimension_semantics = [#tpu.dimension_semantics<parallel>], iteration_bounds = array<i64: 2>, scalar_prefetch = 0 : i64, scratch_operands = 1 : i64, tpu.core_type = #tpu.core_type<tc>, window_params = [{transform_indices = @transform_0, window_bounds = array<i64: 1, 256, 128>}, {pipeline_mode = #tpu.pipeline_mode<synchronous>, transform_indices = @transform_1, window_bounds = array<i64: 1, 128>}, {pipeline_mode = #tpu.pipeline_mode<synchronous>, transform_indices = @transform_2, window_bounds = array<i64: 1, 128>}, {pipeline_mode = #tpu.pipeline_mode<synchronous>, transform_indices = @transform_3, window_bounds = array<i64: 3, 3, 128, 128>}, {transform_indices = @transform_4, window_bounds = array<i64: 1, 256, 128>}, {transform_indices = @transform_5, window_bounds = array<i64: 1, 1, 128>}, {transform_indices = @transform_6, window_bounds = array<i64: 1, 1, 128>}]} {
    %c0 = arith.constant 0 : index
    %c0_0 = arith.constant 0 : index
    %c0_1 = arith.constant 0 : index
    %0 = vector.load %arg1[%c0, %c0_0, %c0_1] : memref<1x256x128xbf16, #tpu.memory_space<vmem>>, vector<1x256x128xbf16>
    %1 = vector.shape_cast %0 : vector<1x256x128xbf16> to vector<256x128xbf16>
    %2 = arith.extf %1 : vector<256x128xbf16> to vector<256x128xf32>
    %c0_2 = arith.constant 0 : index
    %c0_3 = arith.constant 0 : index
    %3 = vector.load %arg2[%c0_2, %c0_3] : memref<1x128xf32, #tpu.memory_space<vmem>>, vector<1x128xf32>
    %4 = vector.broadcast %3 : vector<1x128xf32> to vector<256x128xf32>
    %5 = arith.mulf %2, %4 : vector<256x128xf32>
    %c0_4 = arith.constant 0 : index
    %c0_5 = arith.constant 0 : index
    %6 = vector.load %arg3[%c0_4, %c0_5] : memref<1x128xf32, #tpu.memory_space<vmem>>, vector<1x128xf32>
    %7 = vector.broadcast %6 : vector<1x128xf32> to vector<256x128xf32>
    %8 = arith.addf %5, %7 : vector<256x128xf32>
    %cst = arith.constant 0.000000e+00 : f32
    %9 = vector.broadcast %cst : f32 to vector<256x128xf32>
    %10 = arith.maximumf %8, %9 : vector<256x128xf32>
    %11 = arith.truncf %10 : vector<256x128xf32> to vector<256x128xbf16>
    %cst_6 = arith.constant 0.000000e+00 : bf16
    %12 = vector.broadcast %cst_6 : bf16 to vector<1x128xbf16>
    %13 = tpu.iota {dimensions = array<i32: 0>} : vector<256x1xi32>
    %c16_i32 = arith.constant 16 : i32
    %c0_i32 = arith.constant 0 : i32
    %14 = arith.cmpi eq, %c16_i32, %c0_i32 : i32
    %c1_i32 = arith.constant 1 : i32
    %15 = arith.select %14, %c1_i32, %c16_i32 : i32
    %16 = vector.broadcast %15 : i32 to vector<256x1xi32>
    %17 = arith.remsi %13, %16 : vector<256x1xi32>
    %c0_i32_7 = arith.constant 0 : i32
    %18 = vector.broadcast %c0_i32_7 : i32 to vector<256x1xi32>
    %19 = arith.cmpi ne, %17, %18 : vector<256x1xi32>
    %c0_i32_8 = arith.constant 0 : i32
    %20 = vector.broadcast %c0_i32_8 : i32 to vector<256x1xi32>
    %21 = arith.cmpi slt, %17, %20 : vector<256x1xi32>
    %c0_i32_9 = arith.constant 0 : i32
    %22 = arith.cmpi slt, %15, %c0_i32_9 : i32
    %23 = vector.broadcast %22 : i1 to vector<256x1xi1>
    %24 = vector.broadcast %23 : vector<256x1xi1> to vector<256x1xi1>
    %25 = arith.xori %21, %24 : vector<256x1xi1>
    %26 = arith.andi %25, %19 : vector<256x1xi1>
    %27 = vector.broadcast %15 : i32 to vector<256x1xi32>
    %28 = arith.addi %17, %27 : vector<256x1xi32>
    %29 = arith.select %26, %28, %17 : vector<256x1xi1>, vector<256x1xi32>
    %c14_i32 = arith.constant 14 : i32
    %30 = vector.broadcast %c14_i32 : i32 to vector<256x1xi32>
    %31 = arith.cmpi sle, %29, %30 : vector<256x1xi32>
    %32 = vector.extract_strided_slice %11 {offsets = [1, 0], sizes = [255, 128], strides = [1, 1]} : vector<256x128xbf16> to vector<255x128xbf16>
    %33 = tpu.concatenate %32, %12 in 0 : vector<255x128xbf16>, vector<1x128xbf16> -> vector<256x128xbf16>
    %cst_10 = arith.constant 0.000000e+00 : bf16
    %34 = vector.shape_cast %31 : vector<256x1xi1> to vector<256x1xi1>
    %35 = vector.broadcast %34 : vector<256x1xi1> to vector<256x128xi1>
    %36 = vector.broadcast %cst_10 : bf16 to vector<256x128xbf16>
    %37 = arith.select %35, %33, %36 : vector<256x128xi1>, vector<256x128xbf16>
    %c1_i32_11 = arith.constant 1 : i32
    %38 = vector.broadcast %c1_i32_11 : i32 to vector<256x1xi32>
    %39 = arith.cmpi sge, %29, %38 : vector<256x1xi32>
    %40 = vector.extract_strided_slice %11 {offsets = [0, 0], sizes = [255, 128], strides = [1, 1]} : vector<256x128xbf16> to vector<255x128xbf16>
    %41 = tpu.concatenate %12, %40 in 0 : vector<1x128xbf16>, vector<255x128xbf16> -> vector<256x128xbf16>
    %cst_12 = arith.constant 0.000000e+00 : bf16
    %42 = vector.shape_cast %39 : vector<256x1xi1> to vector<256x1xi1>
    %43 = vector.broadcast %42 : vector<256x1xi1> to vector<256x128xi1>
    %44 = vector.broadcast %cst_12 : bf16 to vector<256x128xbf16>
    %45 = arith.select %43, %41, %44 : vector<256x128xi1>, vector<256x128xbf16>
    %c1 = arith.constant 1 : index
    %c1_13 = arith.constant 1 : index
    %c0_14 = arith.constant 0 : index
    %c0_15 = arith.constant 0 : index
    %46 = vector.load %arg4[%c1, %c1_13, %c0_14, %c0_15] : memref<3x3x128x128xbf16, #tpu.memory_space<vmem>>, vector<1x1x128x128xbf16>
    %47 = vector.shape_cast %46 : vector<1x1x128x128xbf16> to vector<128x128xbf16>
    %cst_16 = arith.constant dense<0.000000e+00> : vector<256x128xf32>
    %48 = tpu.matmul %11, %47, %cst_16 {dimension_numbers = #tpu.dot_dimension_numbers<[1], [0], [0], [1], [0, 0, 1, 1], [], []>} : vector<256x128xbf16>, vector<128x128xbf16>, vector<256x128xf32> -> vector<256x128xf32>
    %c0_17 = arith.constant 0 : index
    %c0_18 = arith.constant 0 : index
    %49 = vector.load %arg8[%c0_17, %c0_18] : memref<256x128xf32, #tpu.memory_space<vmem>>, vector<256x128xf32>
    tpu.vector_store %arg8[%c0_17, %c0_18], %48 {strides = array<i32>} : memref<256x128xf32, #tpu.memory_space<vmem>>, vector<256x128xf32>,
    %c0_19 = arith.constant 0 : index
    %c0_20 = arith.constant 0 : index
    %50 = vector.load %arg8[%c0_19, %c0_20] : memref<256x128xf32, #tpu.memory_space<vmem>>, vector<256x128xf32>
    %c1_21 = arith.constant 1 : index
    %c0_22 = arith.constant 0 : index
    %c0_23 = arith.constant 0 : index
    %c0_24 = arith.constant 0 : index
    %51 = vector.load %arg4[%c1_21, %c0_22, %c0_23, %c0_24] : memref<3x3x128x128xbf16, #tpu.memory_space<vmem>>, vector<1x1x128x128xbf16>
    %52 = vector.shape_cast %51 : vector<1x1x128x128xbf16> to vector<128x128xbf16>
    %cst_25 = arith.constant dense<0.000000e+00> : vector<256x128xf32>
    %53 = tpu.matmul %45, %52, %cst_25 {dimension_numbers = #tpu.dot_dimension_numbers<[1], [0], [0], [1], [0, 0, 1, 1], [], []>} : vector<256x128xbf16>, vector<128x128xbf16>, vector<256x128xf32> -> vector<256x128xf32>
    %54 = arith.addf %50, %53 : vector<256x128xf32>
    %c0_26 = arith.constant 0 : index
    %c0_27 = arith.constant 0 : index
    %55 = vector.load %arg8[%c0_26, %c0_27] : memref<256x128xf32, #tpu.memory_space<vmem>>, vector<256x128xf32>
    tpu.vector_store %arg8[%c0_26, %c0_27], %54 {strides = array<i32>} : memref<256x128xf32, #tpu.memory_space<vmem>>, vector<256x128xf32>,
    %c0_28 = arith.constant 0 : index
    %c0_29 = arith.constant 0 : index
    %56 = vector.load %arg8[%c0_28, %c0_29] : memref<256x128xf32, #tpu.memory_space<vmem>>, vector<256x128xf32>
    %c1_30 = arith.constant 1 : index
    %c2 = arith.constant 2 : index
    %c0_31 = arith.constant 0 : index
    %c0_32 = arith.constant 0 : index
    %57 = vector.load %arg4[%c1_30, %c2, %c0_31, %c0_32] : memref<3x3x128x128xbf16, #tpu.memory_space<vmem>>, vector<1x1x128x128xbf16>
    %58 = vector.shape_cast %57 : vector<1x1x128x128xbf16> to vector<128x128xbf16>
    %cst_33 = arith.constant dense<0.000000e+00> : vector<256x128xf32>
    %59 = tpu.matmul %37, %58, %cst_33 {dimension_numbers = #tpu.dot_dimension_numbers<[1], [0], [0], [1], [0, 0, 1, 1], [], []>} : vector<256x128xbf16>, vector<128x128xbf16>, vector<256x128xf32> -> vector<256x128xf32>
    %60 = arith.addf %56, %59 : vector<256x128xf32>
    %c0_34 = arith.constant 0 : index
    %c0_35 = arith.constant 0 : index
    %61 = vector.load %arg8[%c0_34, %c0_35] : memref<256x128xf32, #tpu.memory_space<vmem>>, vector<256x128xf32>
    tpu.vector_store %arg8[%c0_34, %c0_35], %60 {strides = array<i32>} : memref<256x128xf32, #tpu.memory_space<vmem>>, vector<256x128xf32>,
    %c0_36 = arith.constant 0 : index
    %c0_37 = arith.constant 0 : index
    %62 = vector.load %arg8[%c0_36, %c0_37] : memref<256x128xf32, #tpu.memory_space<vmem>>, vector<240x128xf32>
    %63 = vector.extract_strided_slice %45 {offsets = [16, 0], sizes = [240, 128], strides = [1, 1]} : vector<256x128xbf16> to vector<240x128xbf16>
    %c2_38 = arith.constant 2 : index
    %c0_39 = arith.constant 0 : index
    %c0_40 = arith.constant 0 : index
    %c0_41 = arith.constant 0 : index
    %64 = vector.load %arg4[%c2_38, %c0_39, %c0_40, %c0_41] : memref<3x3x128x128xbf16, #tpu.memory_space<vmem>>, vector<1x1x128x128xbf16>
    %65 = vector.shape_cast %64 : vector<1x1x128x128xbf16> to vector<128x128xbf16>
    %cst_42 = arith.constant dense<0.000000e+00> : vector<240x128xf32>
    %66 = tpu.matmul %63, %65, %cst_42 {dimension_numbers = #tpu.dot_dimension_numbers<[1], [0], [0], [1], [0, 0, 1, 1], [], []>} : vector<240x128xbf16>, vector<128x128xbf16>, vector<240x128xf32> -> vector<240x128xf32>
    %67 = arith.addf %62, %66 : vector<240x128xf32>
    %c0_43 = arith.constant 0 : index
    %c0_44 = arith.constant 0 : index
    %68 = vector.load %arg8[%c0_43, %c0_44] : memref<256x128xf32, #tpu.memory_space<vmem>>, vector<240x128xf32>
    tpu.vector_store %arg8[%c0_43, %c0_44], %67 {strides = array<i32>} : memref<256x128xf32, #tpu.memory_space<vmem>>, vector<240x128xf32>,
    %c16 = arith.constant 16 : index
    %c0_45 = arith.constant 0 : index
    %69 = vector.load %arg8[%c16, %c0_45] : memref<256x128xf32, #tpu.memory_space<vmem>>, vector<240x128xf32>
    %70 = vector.extract_strided_slice %45 {offsets = [0, 0], sizes = [240, 128], strides = [1, 1]} : vector<256x128xbf16> to vector<240x128xbf16>
    %c0_46 = arith.constant 0 : index
    %c0_47 = arith.constant 0 : index
    %c0_48 = arith.constant 0 : index
    %c0_49 = arith.constant 0 : index
    %71 = vector.load %arg4[%c0_46, %c0_47, %c0_48, %c0_49] : memref<3x3x128x128xbf16, #tpu.memory_space<vmem>>, vector<1x1x128x128xbf16>
    %72 = vector.shape_cast %71 : vector<1x1x128x128xbf16> to vector<128x128xbf16>
    %cst_50 = arith.constant dense<0.000000e+00> : vector<240x128xf32>
    %73 = tpu.matmul %70, %72, %cst_50 {dimension_numbers = #tpu.dot_dimension_numbers<[1], [0], [0], [1], [0, 0, 1, 1], [], []>} : vector<240x128xbf16>, vector<128x128xbf16>, vector<240x128xf32> -> vector<240x128xf32>
    %74 = arith.addf %69, %73 : vector<240x128xf32>
    %c16_51 = arith.constant 16 : index
    %c0_52 = arith.constant 0 : index
    %75 = vector.load %arg8[%c16_51, %c0_52] : memref<256x128xf32, #tpu.memory_space<vmem>>, vector<240x128xf32>
    tpu.vector_store %arg8[%c16_51, %c0_52], %74 {strides = array<i32>} : memref<256x128xf32, #tpu.memory_space<vmem>>, vector<240x128xf32>,
    %c0_53 = arith.constant 0 : index
    %c0_54 = arith.constant 0 : index
    %76 = vector.load %arg8[%c0_53, %c0_54] : memref<256x128xf32, #tpu.memory_space<vmem>>, vector<240x128xf32>
    %77 = vector.extract_strided_slice %11 {offsets = [16, 0], sizes = [240, 128], strides = [1, 1]} : vector<256x128xbf16> to vector<240x128xbf16>
    %c2_55 = arith.constant 2 : index
    %c1_56 = arith.constant 1 : index
    %c0_57 = arith.constant 0 : index
    %c0_58 = arith.constant 0 : index
    %78 = vector.load %arg4[%c2_55, %c1_56, %c0_57, %c0_58] : memref<3x3x128x128xbf16, #tpu.memory_space<vmem>>, vector<1x1x128x128xbf16>
    %79 = vector.shape_cast %78 : vector<1x1x128x128xbf16> to vector<128x128xbf16>
    %cst_59 = arith.constant dense<0.000000e+00> : vector<240x128xf32>
    %80 = tpu.matmul %77, %79, %cst_59 {dimension_numbers = #tpu.dot_dimension_numbers<[1], [0], [0], [1], [0, 0, 1, 1], [], []>} : vector<240x128xbf16>, vector<128x128xbf16>, vector<240x128xf32> -> vector<240x128xf32>
    %81 = arith.addf %76, %80 : vector<240x128xf32>
    %c0_60 = arith.constant 0 : index
    %c0_61 = arith.constant 0 : index
    %82 = vector.load %arg8[%c0_60, %c0_61] : memref<256x128xf32, #tpu.memory_space<vmem>>, vector<240x128xf32>
    tpu.vector_store %arg8[%c0_60, %c0_61], %81 {strides = array<i32>} : memref<256x128xf32, #tpu.memory_space<vmem>>, vector<240x128xf32>,
    %c16_62 = arith.constant 16 : index
    %c0_63 = arith.constant 0 : index
    %83 = vector.load %arg8[%c16_62, %c0_63] : memref<256x128xf32, #tpu.memory_space<vmem>>, vector<240x128xf32>
    %84 = vector.extract_strided_slice %11 {offsets = [0, 0], sizes = [240, 128], strides = [1, 1]} : vector<256x128xbf16> to vector<240x128xbf16>
    %c0_64 = arith.constant 0 : index
    %c1_65 = arith.constant 1 : index
    %c0_66 = arith.constant 0 : index
    %c0_67 = arith.constant 0 : index
    %85 = vector.load %arg4[%c0_64, %c1_65, %c0_66, %c0_67] : memref<3x3x128x128xbf16, #tpu.memory_space<vmem>>, vector<1x1x128x128xbf16>
    %86 = vector.shape_cast %85 : vector<1x1x128x128xbf16> to vector<128x128xbf16>
    %cst_68 = arith.constant dense<0.000000e+00> : vector<240x128xf32>
    %87 = tpu.matmul %84, %86, %cst_68 {dimension_numbers = #tpu.dot_dimension_numbers<[1], [0], [0], [1], [0, 0, 1, 1], [], []>} : vector<240x128xbf16>, vector<128x128xbf16>, vector<240x128xf32> -> vector<240x128xf32>
    %88 = arith.addf %83, %87 : vector<240x128xf32>
    %c16_69 = arith.constant 16 : index
    %c0_70 = arith.constant 0 : index
    %89 = vector.load %arg8[%c16_69, %c0_70] : memref<256x128xf32, #tpu.memory_space<vmem>>, vector<240x128xf32>
    tpu.vector_store %arg8[%c16_69, %c0_70], %88 {strides = array<i32>} : memref<256x128xf32, #tpu.memory_space<vmem>>, vector<240x128xf32>,
    %c0_71 = arith.constant 0 : index
    %c0_72 = arith.constant 0 : index
    %90 = vector.load %arg8[%c0_71, %c0_72] : memref<256x128xf32, #tpu.memory_space<vmem>>, vector<240x128xf32>
    %91 = vector.extract_strided_slice %37 {offsets = [16, 0], sizes = [240, 128], strides = [1, 1]} : vector<256x128xbf16> to vector<240x128xbf16>
    %c2_73 = arith.constant 2 : index
    %c2_74 = arith.constant 2 : index
    %c0_75 = arith.constant 0 : index
    %c0_76 = arith.constant 0 : index
    %92 = vector.load %arg4[%c2_73, %c2_74, %c0_75, %c0_76] : memref<3x3x128x128xbf16, #tpu.memory_space<vmem>>, vector<1x1x128x128xbf16>
    %93 = vector.shape_cast %92 : vector<1x1x128x128xbf16> to vector<128x128xbf16>
    %cst_77 = arith.constant dense<0.000000e+00> : vector<240x128xf32>
    %94 = tpu.matmul %91, %93, %cst_77 {dimension_numbers = #tpu.dot_dimension_numbers<[1], [0], [0], [1], [0, 0, 1, 1], [], []>} : vector<240x128xbf16>, vector<128x128xbf16>, vector<240x128xf32> -> vector<240x128xf32>
    %95 = arith.addf %90, %94 : vector<240x128xf32>
    %c0_78 = arith.constant 0 : index
    %c0_79 = arith.constant 0 : index
    %96 = vector.load %arg8[%c0_78, %c0_79] : memref<256x128xf32, #tpu.memory_space<vmem>>, vector<240x128xf32>
    tpu.vector_store %arg8[%c0_78, %c0_79], %95 {strides = array<i32>} : memref<256x128xf32, #tpu.memory_space<vmem>>, vector<240x128xf32>,
    %c16_80 = arith.constant 16 : index
    %c0_81 = arith.constant 0 : index
    %97 = vector.load %arg8[%c16_80, %c0_81] : memref<256x128xf32, #tpu.memory_space<vmem>>, vector<240x128xf32>
    %98 = vector.extract_strided_slice %37 {offsets = [0, 0], sizes = [240, 128], strides = [1, 1]} : vector<256x128xbf16> to vector<240x128xbf16>
    %c0_82 = arith.constant 0 : index
    %c2_83 = arith.constant 2 : index
    %c0_84 = arith.constant 0 : index
    %c0_85 = arith.constant 0 : index
    %99 = vector.load %arg4[%c0_82, %c2_83, %c0_84, %c0_85] : memref<3x3x128x128xbf16, #tpu.memory_space<vmem>>, vector<1x1x128x128xbf16>
    %100 = vector.shape_cast %99 : vector<1x1x128x128xbf16> to vector<128x128xbf16>
    %cst_86 = arith.constant dense<0.000000e+00> : vector<240x128xf32>
    %101 = tpu.matmul %98, %100, %cst_86 {dimension_numbers = #tpu.dot_dimension_numbers<[1], [0], [0], [1], [0, 0, 1, 1], [], []>} : vector<240x128xbf16>, vector<128x128xbf16>, vector<240x128xf32> -> vector<240x128xf32>
    %102 = arith.addf %97, %101 : vector<240x128xf32>
    %c16_87 = arith.constant 16 : index
    %c0_88 = arith.constant 0 : index
    %103 = vector.load %arg8[%c16_87, %c0_88] : memref<256x128xf32, #tpu.memory_space<vmem>>, vector<240x128xf32>
    tpu.vector_store %arg8[%c16_87, %c0_88], %102 {strides = array<i32>} : memref<256x128xf32, #tpu.memory_space<vmem>>, vector<240x128xf32>,
    %c0_89 = arith.constant 0 : index
    %c0_90 = arith.constant 0 : index
    %104 = vector.load %arg8[%c0_89, %c0_90] : memref<256x128xf32, #tpu.memory_space<vmem>>, vector<256x128xf32>
    %105 = arith.truncf %104 : vector<256x128xf32> to vector<256x128xbf16>
    %c0_91 = arith.constant 0 : index
    %c0_92 = arith.constant 0 : index
    %c0_93 = arith.constant 0 : index
    %106 = vector.load %arg5[%c0_91, %c0_92, %c0_93] : memref<1x256x128xbf16, #tpu.memory_space<vmem>>, vector<1x256x128xbf16>
    %107 = vector.shape_cast %106 : vector<1x256x128xbf16> to vector<256x128xbf16>
    %108 = vector.shape_cast %105 : vector<256x128xbf16> to vector<1x256x128xbf16>
    tpu.vector_store %arg5[%c0_91, %c0_92, %c0_93], %108 {strides = array<i32>} : memref<1x256x128xbf16, #tpu.memory_space<vmem>>, vector<1x256x128xbf16>,
    %cst_94 = arith.constant dense<0.000000e+00> : vector<128xf32>
    %109 = vector.multi_reduction <add>, %104, %cst_94 [0] : vector<256x128xf32> to vector<128xf32>
    %110 = vector.shape_cast %109 : vector<128xf32> to vector<1x128xf32>
    %c0_95 = arith.constant 0 : index
    %c0_96 = arith.constant 0 : index
    %c0_97 = arith.constant 0 : index
    %111 = vector.load %arg6[%c0_95, %c0_96, %c0_97] : memref<1x1x128xf32, #tpu.memory_space<vmem>>, vector<1x1x128xf32>
    %112 = vector.shape_cast %111 : vector<1x1x128xf32> to vector<1x128xf32>
    %113 = vector.shape_cast %110 : vector<1x128xf32> to vector<1x1x128xf32>
    tpu.vector_store %arg6[%c0_95, %c0_96, %c0_97], %113 {strides = array<i32>} : memref<1x1x128xf32, #tpu.memory_space<vmem>>, vector<1x1x128xf32>,
    %114 = arith.mulf %104, %104 : vector<256x128xf32>
    %cst_98 = arith.constant dense<0.000000e+00> : vector<128xf32>
    %115 = vector.multi_reduction <add>, %114, %cst_98 [0] : vector<256x128xf32> to vector<128xf32>
    %116 = vector.shape_cast %115 : vector<128xf32> to vector<1x128xf32>
    %c0_99 = arith.constant 0 : index
    %c0_100 = arith.constant 0 : index
    %c0_101 = arith.constant 0 : index
    %117 = vector.load %arg7[%c0_99, %c0_100, %c0_101] : memref<1x1x128xf32, #tpu.memory_space<vmem>>, vector<1x1x128xf32>
    %118 = vector.shape_cast %117 : vector<1x1x128xf32> to vector<1x128xf32>
    %119 = vector.shape_cast %116 : vector<1x128xf32> to vector<1x1x128xf32>
    tpu.vector_store %arg7[%c0_99, %c0_100, %c0_101], %119 {strides = array<i32>} : memref<1x1x128xf32, #tpu.memory_space<vmem>>, vector<1x1x128xf32>,
    return
  }
  func.func @transform_0(%arg0: i32) -> (i32, i32, i32) {
    %c0_i32 = arith.constant 0 : i32
    %c0_i32_0 = arith.constant 0 : i32
    %c0_i32_1 = arith.constant 0 : i32
    return %arg0, %c0_i32, %c0_i32_0 : i32, i32, i32
  }
  func.func @transform_1(%arg0: i32) -> (i32, i32) {
    %c0_i32 = arith.constant 0 : i32
    %c0_i32_0 = arith.constant 0 : i32
    %c0_i32_1 = arith.constant 0 : i32
    return %c0_i32, %c0_i32_0 : i32, i32
  }
  func.func @transform_2(%arg0: i32) -> (i32, i32) {
    %c0_i32 = arith.constant 0 : i32
    %c0_i32_0 = arith.constant 0 : i32
    %c0_i32_1 = arith.constant 0 : i32
    return %c0_i32, %c0_i32_0 : i32, i32
  }
  func.func @transform_3(%arg0: i32) -> (i32, i32, i32, i32) {
    %c0_i32 = arith.constant 0 : i32
    %c0_i32_0 = arith.constant 0 : i32
    %c0_i32_1 = arith.constant 0 : i32
    %c0_i32_2 = arith.constant 0 : i32
    %c0_i32_3 = arith.constant 0 : i32
    return %c0_i32, %c0_i32_0, %c0_i32_1, %c0_i32_2 : i32, i32, i32, i32
  }
  func.func @transform_4(%arg0: i32) -> (i32, i32, i32) {
    %c0_i32 = arith.constant 0 : i32
    %c0_i32_0 = arith.constant 0 : i32
    %c0_i32_1 = arith.constant 0 : i32
    return %arg0, %c0_i32, %c0_i32_0 : i32, i32, i32
  }
  func.func @transform_5(%arg0: i32) -> (i32, i32, i32) {
    %c0_i32 = arith.constant 0 : i32
    %c0_i32_0 = arith.constant 0 : i32
    %c0_i32_1 = arith.constant 0 : i32
    return %arg0, %c0_i32, %c0_i32_0 : i32, i32, i32
  }
  func.func @transform_6(%arg0: i32) -> (i32, i32, i32) {
    %c0_i32 = arith.constant 0 : i32
    %c0_i32_0 = arith.constant 0 : i32
    %c0_i32_1 = arith.constant 0 : i32
    return %arg0, %c0_i32, %c0_i32_0 : i32, i32, i32
  }
}

module attributes {stable_mosaic.version = 11 : i64} {
  func.func @_finalize_proj_kernel(%arg0: i32, %arg1: memref<1x256x128xbf16, #tpu.memory_space<vmem>>, %arg2: memref<1x128xf32, #tpu.memory_space<vmem>>, %arg3: memref<1x128xf32, #tpu.memory_space<vmem>>, %arg4: memref<1x256x128xbf16, #tpu.memory_space<vmem>>, %arg5: memref<128x128xbf16, #tpu.memory_space<vmem>>, %arg6: memref<1x128xf32, #tpu.memory_space<vmem>>, %arg7: memref<1x256x128xf32, #tpu.memory_space<vmem>>) attributes {dimension_semantics = [#tpu.dimension_semantics<parallel>], iteration_bounds = array<i64: 2>, scalar_prefetch = 0 : i64, scratch_operands = 0 : i64, tpu.core_type = #tpu.core_type<tc>, window_params = [{transform_indices = @transform_0, window_bounds = array<i64: 1, 256, 128>}, {pipeline_mode = #tpu.pipeline_mode<synchronous>, transform_indices = @transform_1, window_bounds = array<i64: 1, 128>}, {pipeline_mode = #tpu.pipeline_mode<synchronous>, transform_indices = @transform_2, window_bounds = array<i64: 1, 128>}, {transform_indices = @transform_3, window_bounds = array<i64: 1, 256, 128>}, {pipeline_mode = #tpu.pipeline_mode<synchronous>, transform_indices = @transform_4, window_bounds = array<i64: 128, 128>}, {pipeline_mode = #tpu.pipeline_mode<synchronous>, transform_indices = @transform_5, window_bounds = array<i64: 1, 128>}, {transform_indices = @transform_6, window_bounds = array<i64: 1, 256, 128>}]} {
    %c0 = arith.constant 0 : index
    %c0_0 = arith.constant 0 : index
    %c0_1 = arith.constant 0 : index
    %0 = vector.load %arg4[%c0, %c0_0, %c0_1] : memref<1x256x128xbf16, #tpu.memory_space<vmem>>, vector<1x256x128xbf16>
    %1 = vector.shape_cast %0 : vector<1x256x128xbf16> to vector<256x128xbf16>
    %c0_2 = arith.constant 0 : index
    %c0_3 = arith.constant 0 : index
    %2 = vector.load %arg5[%c0_2, %c0_3] : memref<128x128xbf16, #tpu.memory_space<vmem>>, vector<128x128xbf16>
    %cst = arith.constant dense<0.000000e+00> : vector<256x128xf32>
    %3 = tpu.matmul %1, %2, %cst {dimension_numbers = #tpu.dot_dimension_numbers<[1], [0], [0], [1], [0, 0, 1, 1], [], []>} : vector<256x128xbf16>, vector<128x128xbf16>, vector<256x128xf32> -> vector<256x128xf32>
    %c0_4 = arith.constant 0 : index
    %c0_5 = arith.constant 0 : index
    %4 = vector.load %arg6[%c0_4, %c0_5] : memref<1x128xf32, #tpu.memory_space<vmem>>, vector<1x128xf32>
    %5 = vector.broadcast %4 : vector<1x128xf32> to vector<256x128xf32>
    %6 = arith.addf %3, %5 : vector<256x128xf32>
    %c0_6 = arith.constant 0 : index
    %c0_7 = arith.constant 0 : index
    %c0_8 = arith.constant 0 : index
    %7 = vector.load %arg1[%c0_6, %c0_7, %c0_8] : memref<1x256x128xbf16, #tpu.memory_space<vmem>>, vector<1x256x128xbf16>
    %8 = vector.shape_cast %7 : vector<1x256x128xbf16> to vector<256x128xbf16>
    %9 = arith.extf %8 : vector<256x128xbf16> to vector<256x128xf32>
    %c0_9 = arith.constant 0 : index
    %c0_10 = arith.constant 0 : index
    %10 = vector.load %arg2[%c0_9, %c0_10] : memref<1x128xf32, #tpu.memory_space<vmem>>, vector<1x128xf32>
    %11 = vector.broadcast %10 : vector<1x128xf32> to vector<256x128xf32>
    %12 = arith.mulf %9, %11 : vector<256x128xf32>
    %c0_11 = arith.constant 0 : index
    %c0_12 = arith.constant 0 : index
    %13 = vector.load %arg3[%c0_11, %c0_12] : memref<1x128xf32, #tpu.memory_space<vmem>>, vector<1x128xf32>
    %14 = vector.broadcast %13 : vector<1x128xf32> to vector<256x128xf32>
    %15 = arith.addf %12, %14 : vector<256x128xf32>
    %16 = arith.addf %15, %6 : vector<256x128xf32>
    %cst_13 = arith.constant 0.000000e+00 : f32
    %17 = vector.broadcast %cst_13 : f32 to vector<256x128xf32>
    %18 = arith.maximumf %16, %17 : vector<256x128xf32>
    %c0_14 = arith.constant 0 : index
    %c0_15 = arith.constant 0 : index
    %c0_16 = arith.constant 0 : index
    %19 = vector.load %arg7[%c0_14, %c0_15, %c0_16] : memref<1x256x128xf32, #tpu.memory_space<vmem>>, vector<1x256x128xf32>
    %20 = vector.shape_cast %19 : vector<1x256x128xf32> to vector<256x128xf32>
    %21 = vector.shape_cast %18 : vector<256x128xf32> to vector<1x256x128xf32>
    tpu.vector_store %arg7[%c0_14, %c0_15, %c0_16], %21 {strides = array<i32>} : memref<1x256x128xf32, #tpu.memory_space<vmem>>, vector<1x256x128xf32>,
    return
  }
  func.func @transform_0(%arg0: i32) -> (i32, i32, i32) {
    %c0_i32 = arith.constant 0 : i32
    %c0_i32_0 = arith.constant 0 : i32
    %c0_i32_1 = arith.constant 0 : i32
    return %arg0, %c0_i32, %c0_i32_0 : i32, i32, i32
  }
  func.func @transform_1(%arg0: i32) -> (i32, i32) {
    %c0_i32 = arith.constant 0 : i32
    %c0_i32_0 = arith.constant 0 : i32
    %c0_i32_1 = arith.constant 0 : i32
    return %c0_i32, %c0_i32_0 : i32, i32
  }
  func.func @transform_2(%arg0: i32) -> (i32, i32) {
    %c0_i32 = arith.constant 0 : i32
    %c0_i32_0 = arith.constant 0 : i32
    %c0_i32_1 = arith.constant 0 : i32
    return %c0_i32, %c0_i32_0 : i32, i32
  }
  func.func @transform_3(%arg0: i32) -> (i32, i32, i32) {
    %c0_i32 = arith.constant 0 : i32
    %c0_i32_0 = arith.constant 0 : i32
    %c0_i32_1 = arith.constant 0 : i32
    return %arg0, %c0_i32, %c0_i32_0 : i32, i32, i32
  }
  func.func @transform_4(%arg0: i32) -> (i32, i32) {
    %c0_i32 = arith.constant 0 : i32
    %c0_i32_0 = arith.constant 0 : i32
    %c0_i32_1 = arith.constant 0 : i32
    return %c0_i32, %c0_i32_0 : i32, i32
  }
  func.func @transform_5(%arg0: i32) -> (i32, i32) {
    %c0_i32 = arith.constant 0 : i32
    %c0_i32_0 = arith.constant 0 : i32
    %c0_i32_1 = arith.constant 0 : i32
    return %c0_i32, %c0_i32_0 : i32, i32
  }
  func.func @transform_6(%arg0: i32) -> (i32, i32, i32) {
    %c0_i32 = arith.constant 0 : i32
    %c0_i32_0 = arith.constant 0 : i32
    %c0_i32_1 = arith.constant 0 : i32
    return %arg0, %c0_i32, %c0_i32_0 : i32, i32, i32
  }
}

</mosaic_0001>

<bundles_post_ra>
// kernel: residual_block.5
= control target key start
LH: loop header
LB: loop body
LE: loop exit
PB: predicated region body
PF: predicated region fallthrough
CT: control target
= control target key end

     0   :  { %s1149_s21 = smov 0   ;;  %s1440_s0 = inlined_call_operand.vmem [shape: bf16[2,256,128], index: 0, kind: input, shape index: {}]   ;;  %s1441_s1 = inlined_call_operand.vmem [shape: f32[1,128], index: 1, kind: input, shape index: {}]   ;;  %s1442_s2 = inlined_call_operand.vmem [shape: f32[1,128], index: 2, kind: input, shape index: {}]   ;;  %s1443_s3 = inlined_call_operand.vmem [shape: bf16[2,256,128], index: 3, kind: input, shape index: {}]   ;;  %s1444_s4 = inlined_call_operand.vmem [shape: bf16[128,128], index: 4, kind: input, shape index: {}]   ;;  %s1445_s5 = inlined_call_operand.vmem [shape: f32[1,128], index: 5, kind: input, shape index: {}]   ;;  %s1446_s6 = inlined_call_operand.vmem [shape: f32[2,256,128], index: 6, kind: output, shape index: {}]  }
   0x1 LB: > { %s856_s22 = sadd.s32 4294967295, %s1112_s21   ;;  %p860_p0 = scmp.ge.s32.totalorder %s1112_s21, 1  ;;  %s1112_s21 = sphi %s1149_s21, %s16_s21  }
   0x2   : > { %p222_p1 = scmp.lt.s32.totalorder %s1112_s21, 3 }
   0x4   : > { %p223_p2 = pnand %p860_p0, %p222_p1 }
   0x5   : > { %p257_p3 = scmp.lt.s32.totalorder (!%p223_p2), %s856_s22, 1 }
   0x6   : > { %226 = sbr.rel (%p223_p2) target bundleno = 240 (0xf0), region = 44 }
   0xb   : > { %v991_v0 = vld [vmem:[%s1444_s4 + $0x38] sm:$0xff]  ;;  %v990_v1 = vld [vmem:[%s1444_s4 + $0x30] sm:$0xff]  ;;  %v989_v2 = vld [vmem:[%s1444_s4 + $0x28] sm:$0xff]  ;;  %s1448_s22 = smov (!%p257_p3, %s856_s22), 1 }
   0xc   : > { %468 = vmatpush.bf16.msra.mxu0 %v991_v0  ;;  %1071 = vmatpush.bf16.msra.mxu1 %v991_v0  ;;  %v988_v3 = vld [vmem:[%s1444_s4 + $0x20] sm:$0xff]  ;;  %v987_v4 = vld [vmem:[%s1444_s4 + $0x18] sm:$0xff]  ;;  %v986_v5 = vld [vmem:[%s1444_s4 + $0x10] sm:$0xff]  ;;  %s965_s13 = sshll.u32 %s1448_s22, 7  ;;  %s967_s30 = sshll.u32 %s1448_s22, 8 }
   0xd   : > { %1072 = vmatpush.bf16.msra.mxu2 %v991_v0  ;;  %1073 = vmatpush.bf16.msra.mxu3 %v991_v0  ;;  %v985_v6 = vld [vmem:[%s1444_s4 + $0x8] sm:$0xff]  ;;  %v984_v7 = vld [vmem:[%s1444_s4] sm:$0xff]  ;;  %s1193_s18 = scalar_lea.vmem %s1443_s3, %s965_s13  ;;  %s1216_s23 = scalar_lea.vmem %s1440_s0, %s965_s13 }
   0xe   : > { %v968_v8 = vld [vmem:[%s1193_s18] sm:$0xff]  ;;  %v969_v12 = vld [vmem:[%s1193_s18 + $0x8] sm:$0xff]  ;;  %v970_v16 = vld [vmem:[%s1193_s18 + $0x10] sm:$0xff]  ;;  %s1251_s9 = scalar_lea.vmem %s1446_s6, %s967_s30 }
   0xf   : > { %v972_v9 = vld [vmem:[%s1193_s18 + $0x20] sm:$0xff]  ;;  %v973_v13 = vld [vmem:[%s1193_s18 + $0x28] sm:$0xff]  ;;  %v974_v17 = vld [vmem:[%s1193_s18 + $0x30] sm:$0xff] }
  0x10   : > { %469 = vmatpush.bf16.msra.mxu0 %v990_v1  ;;  %1074 = vmatpush.bf16.msra.mxu1 %v990_v1  ;;  %v976_v10 = vld [vmem:[%s1193_s18 + $0x40] sm:$0xff]  ;;  %v977_v14 = vld [vmem:[%s1193_s18 + $0x48] sm:$0xff]  ;;  %v978_v18 = vld [vmem:[%s1193_s18 + $0x50] sm:$0xff] }
  0x11   : > { %1075 = vmatpush.bf16.msra.mxu2 %v990_v1  ;;  %1076 = vmatpush.bf16.msra.mxu3 %v990_v1  ;;  %v980_v11 = vld [vmem:[%s1193_s18 + $0x60] sm:$0xff]  ;;  %v981_v15 = vld [vmem:[%s1193_s18 + $0x68] sm:$0xff]  ;;  %v982_v19 = vld [vmem:[%s1193_s18 + $0x70] sm:$0xff] }
  0x12   : > { %v971_v20 = vld [vmem:[%s1193_s18 + $0x18] sm:$0xff]  ;;  %v993_v24 = vld [vmem:[%s1216_s23] sm:$0xff]   ;;  %v1254_v51 = vld [vmem:[%s1216_s23 + $0x8] sm:$0xff]  }
  0x13   : > { %v975_v21 = vld [vmem:[%s1193_s18 + $0x38] sm:$0xff]  ;;  %v1059_v25 = vld [vmem:[%s1216_s23 + $0x20] sm:$0xff]   ;;  %v994_v26 = vunpack.c.l.bf16 %v993_v24  ;;  %v995_v39 = vunpack.c.h.bf16 %v993_v24  ;;  %v1257_v52 = vld [vmem:[%s1216_s23 + $0x28] sm:$0xff]   ;;  %v998_v63 = vunpack.c.l.bf16 %v1254_v51 }
  0x14   : > { %470 = vmatpush.bf16.msra.mxu0 %v989_v2  ;;  %1077 = vmatpush.bf16.msra.mxu1 %v989_v2  ;;  %v979_v22 = vld [vmem:[%s1193_s18 + $0x58] sm:$0xff]  ;;  %v1223_v27 = vld [vmem:[%s1441_s1] ss:$0 sm:$0xff]  ;;  %v1010_v28 = vunpack.c.l.bf16 %v1059_v25  ;;  %v1011_v40 = vunpack.c.h.bf16 %v1059_v25  ;;  %v1014_v0 = vunpack.c.l.bf16 %v1257_v52 }
  0x15   : > { %1078 = vmatpush.bf16.msra.mxu2 %v989_v2  ;;  %1079 = vmatpush.bf16.msra.mxu3 %v989_v2  ;;  %v983_v23 = vld [vmem:[%s1193_s18 + $0x78] sm:$0xff]  ;;  %v625_v29 = vmul.f32 %v1223_v27, %v994_v26  ;;  %v1229_v30 = vld [vmem:[%s1442_s2] ss:$0 sm:$0xff]  ;;  %v626_v49 = vmul.f32 %v1223_v27, %v995_v39 }
  0x16   : > { %v633_v31 = vmul.f32 %v1223_v27, %v1010_v28  ;;  %v1063_v32 = vld [vmem:[%s1216_s23 + $0x40] sm:$0xff]   ;;  %v634_v50 = vmul.f32 %v1223_v27, %v1011_v40 }
  0x17   : > { %v1067_v33 = vld [vmem:[%s1216_s23 + $0x60] sm:$0xff]   ;;  %v1026_v35 = vunpack.c.l.bf16 %v1063_v32  ;;  %v661_v37 = vadd.f32 %v1229_v30, %v625_v29  ;;  %v1027_v57 = vunpack.c.h.bf16 %v1063_v32  ;;  %v662_v61 = vadd.f32 %v1229_v30, %v626_v49 }
  0x18   : > { %471 = vmatpush.bf16.msra.mxu0 %v988_v3  ;;  %1080 = vmatpush.bf16.msra.mxu1 %v988_v3  ;;  %v1237_v34 = vld [vmem:[%s1445_s5] ss:$0 sm:$0xff]  ;;  %v1042_v36 = vunpack.c.l.bf16 %v1067_v33  ;;  %v669_v38 = vadd.f32 %v1229_v30, %v633_v31  ;;  %v1043_v58 = vunpack.c.h.bf16 %v1067_v33  ;;  %v670_v62 = vadd.f32 %v1229_v30, %v634_v50  ;;  %v1302_v50 = vld [vmem:[%s1216_s23 + $0x10] sm:$0xff]  }
  0x19   : > { %1081 = vmatpush.bf16.msra.mxu2 %v988_v3  ;;  %1082 = vmatpush.bf16.msra.mxu3 %v988_v3  ;;  %v641_v45 = vmul.f32 %v1223_v27, %v1026_v35  ;;  %v999_v31 = vunpack.c.h.bf16 %v1254_v51  ;;  %v1015_v32 = vunpack.c.h.bf16 %v1257_v52  ;;  %v1305_v51 = vld [vmem:[%s1216_s23 + $0x30] sm:$0xff]  }
  0x1a   : > { %v649_v46 = vmul.f32 %v1223_v27, %v1042_v36 }
  0x1b   : > { %v677_v55 = vadd.f32 %v1229_v30, %v641_v45 }
  0x1c   : > { %472 = vmatpush.bf16.msra.mxu0 %v987_v4  ;;  %1083 = vmatpush.bf16.msra.mxu1 %v987_v4  ;;  %v685_v56 = vadd.f32 %v1229_v30, %v649_v46  ;;  %v628_v46 = vmul.f32 %v1223_v27, %v999_v31 }
  0x1d   : > { %1084 = vmatpush.bf16.msra.mxu2 %v987_v4  ;;  %1085 = vmatpush.bf16.msra.mxu3 %v987_v4 }
  0x20   : > { %473 = vmatpush.bf16.msra.mxu0 %v986_v5  ;;  %1086 = vmatpush.bf16.msra.mxu1 %v986_v5 }
  0x21   : > { %1087 = vmatpush.bf16.msra.mxu2 %v986_v5  ;;  %1088 = vmatpush.bf16.msra.mxu3 %v986_v5 }
  0x24   : > { %474 = vmatpush.bf16.msra.mxu0 %v985_v6  ;;  %1089 = vmatpush.bf16.msra.mxu1 %v985_v6 }
  0x25   : > { %1090 = vmatpush.bf16.msra.mxu2 %v985_v6  ;;  %1091 = vmatpush.bf16.msra.mxu3 %v985_v6 }
  0x28   : > { %475 = vmatpush.bf16.msra.mxu0 %v984_v7  ;;  %1092 = vmatpush.bf16.msra.mxu1 %v984_v7 }
  0x29   : > { %1093 = vmatpush.bf16.msra.mxu2 %v984_v7  ;;  %1094 = vmatpush.bf16.msra.mxu3 %v984_v7 }
  0x2b   : > { %476 = vmatmul.bf16.vlgmr.msra.gmra.mxu0 %v968_v8  ;;  %496 = vmatmul.bf16.vlgmr.msra.gmra.mxu1 %v972_v9  ;;  %v642_v9 = vmul.f32 %v1223_v27, %v1027_v57 }
  0x2c   : > { %516 = vmatmul.bf16.vlgmr.msra.gmra.mxu2 %v976_v10  ;;  %536 = vmatmul.bf16.vlgmr.msra.gmra.mxu3 %v980_v11  ;;  %v650_v10 = vmul.f32 %v1223_v27, %v1043_v58 }
  0x3b   : > { %481 = vmatmul.bf16.gmra.mxu0 %v969_v12  ;;  %501 = vmatmul.bf16.gmra.mxu1 %v973_v13  ;;  %v627_v13 = vmul.f32 %v1223_v27, %v998_v63  ;;  %v1018_v63 = vunpack.c.l.bf16 %v1305_v51 }
  0x3c   : > { %521 = vmatmul.bf16.gmra.mxu2 %v977_v14  ;;  %541 = vmatmul.bf16.gmra.mxu3 %v981_v15  ;;  %v635_v14 = vmul.f32 %v1223_v27, %v1014_v0  ;;  %v1276_v15 = vld [vmem:[%s1216_s23 + $0x48] sm:$0xff]  }
  0x3d   : > { %v663_v28 = vadd.f32 %v1229_v30, %v627_v13 }
  0x3e   : > { %v671_v29 = vadd.f32 %v1229_v30, %v635_v14 }
  0x4b   : > { %486 = vmatmul.bf16.gmra.mxu0 %v970_v16  ;;  %506 = vmatmul.bf16.gmra.mxu1 %v974_v17  ;;  %v1279_v16 = vld [vmem:[%s1216_s23 + $0x68] sm:$0xff]  }
  0x4c   : > { %526 = vmatmul.bf16.gmra.mxu2 %v978_v18  ;;  %546 = vmatmul.bf16.gmra.mxu3 %v982_v19  ;;  %v1046_v24 = vunpack.c.l.bf16 %v1279_v16  ;;  %v1047_v57 = vunpack.c.h.bf16 %v1279_v16 }
  0x5b   : > { %491 = vmatmul.bf16.gmra.mxu0 %v971_v20  ;;  %511 = vmatmul.bf16.gmra.mxu1 %v975_v21  ;;  %v678_v21 = vadd.f32 %v1229_v30, %v642_v9  ;;  %v652_v9 = vmul.f32 %v1223_v27, %v1047_v57  ;;  %v1370_v57 = vld [vmem:[%s1216_s23 + $0x18] sm:$0xff]  }
  0x5c   : > { %531 = vmatmul.bf16.gmra.mxu2 %v979_v22  ;;  %551 = vmatmul.bf16.gmra.mxu3 %v983_v23  ;;  %v686_v22 = vadd.f32 %v1229_v30, %v650_v10  ;;  %v1030_v23 = vunpack.c.l.bf16 %v1276_v15  ;;  %v1326_v10 = vld [vmem:[%s1216_s23 + $0x50] sm:$0xff]  }
  0xa8   : > { %v477_v41 = vpop.f32.mrf.mxu0  ;;  %v497_v42 = vpop.f32.mrf.mxu1 }
  0xa9   : > { %v478_v43 = vadd.f32 %v1237_v34, %v477_v41  ;;  %v498_v44 = vadd.f32 %v1237_v34, %v497_v42  ;;  %v643_v42 = vmul.f32 %v1223_v27, %v1030_v23  ;;  %v1339_v23 = vld [vmem:[%s1216_s23 + $0x78] sm:$0xff]  }
  0xab   : > { %v693_v47 = vadd.f32 %v661_v37, %v478_v43  ;;  %v701_v48 = vadd.f32 %v669_v38, %v498_v44  ;;  %v651_v43 = vmul.f32 %v1223_v27, %v1046_v24 }
  0xad   : > { %v725_v53 = vmax.f32 %v693_v47, 0.0  ;;  %v733_v54 = vmax.f32 %v701_v48, 0.0  ;;  %v636_v47 = vmul.f32 %v1223_v27, %v1015_v32 }
  0xaf   : > { %757 = vst [vmem:[%s1251_s9] sm:$0xff] %v725_v53  ;;  %v517_v59 = vpop.f32.mrf.mxu2  ;;  %v537_v60 = vpop.f32.mrf.mxu3 }
  0xb0   : > { %765 = vst [vmem:[%s1251_s9 + $0x40] sm:$0xff] %v733_v54  ;;  %v518_v1 = vadd.f32 %v1237_v34, %v517_v59  ;;  %v538_v2 = vadd.f32 %v1237_v34, %v537_v60  ;;  %v479_v3 = vpop.f32.mrf.mxu0  ;;  %v499_v4 = vpop.f32.mrf.mxu1  ;;  %v679_v54 = vadd.f32 %v1229_v30, %v643_v42  ;;  %v664_v60 = vadd.f32 %v1229_v30, %v628_v46 }
  0xb1   : > { %v480_v5 = vadd.f32 %v1237_v34, %v479_v3  ;;  %v500_v6 = vadd.f32 %v1237_v34, %v499_v4 }
  0xb2   : > { %v709_v7 = vadd.f32 %v677_v55, %v518_v1  ;;  %v717_v8 = vadd.f32 %v685_v56, %v538_v2  ;;  %v687_v55 = vadd.f32 %v1229_v30, %v651_v43  ;;  %v1031_v56 = vunpack.c.h.bf16 %v1276_v15 }
  0xb3   : > { %v694_v11 = vadd.f32 %v662_v61, %v480_v5  ;;  %v702_v12 = vadd.f32 %v670_v62, %v500_v6  ;;  %v672_v61 = vadd.f32 %v1229_v30, %v636_v47  ;;  %v1002_v62 = vunpack.c.l.bf16 %v1302_v50 }
  0xb4   : > { %v741_v17 = vmax.f32 %v709_v7, 0.0  ;;  %v749_v18 = vmax.f32 %v717_v8, 0.0  ;;  %v644_v8 = vmul.f32 %v1223_v27, %v1031_v56  ;;  %v637_v15 = vmul.f32 %v1223_v27, %v1018_v63 }
  0xb5   : > { %v726_v19 = vmax.f32 %v694_v11, 0.0  ;;  %v734_v20 = vmax.f32 %v702_v12, 0.0  ;;  %v1329_v11 = vld [vmem:[%s1216_s23 + $0x70] sm:$0xff]   ;;  %v629_v14 = vmul.f32 %v1223_v27, %v1002_v62  ;;  %v1035_v63 = vunpack.c.h.bf16 %v1326_v10 }
  0xb6   : > { %773 = vst [vmem:[%s1251_s9 + $0x80] sm:$0xff] %v741_v17  ;;  %v680_v24 = vadd.f32 %v1229_v30, %v644_v8 }
  0xb7   : > { %781 = vst [vmem:[%s1251_s9 + $0xc0] sm:$0xff] %v749_v18  ;;  %v519_v25 = vpop.f32.mrf.mxu2  ;;  %v539_v26 = vpop.f32.mrf.mxu3  ;;  %v665_v32 = vadd.f32 %v1229_v30, %v629_v14 }
  0xb8   : > { %758 = vst [vmem:[%s1251_s9 + $0x8] sm:$0xff] %v726_v19  ;;  %v520_v33 = vadd.f32 %v1237_v34, %v519_v25  ;;  %v540_v35 = vadd.f32 %v1237_v34, %v539_v26  ;;  %v482_v36 = vpop.f32.mrf.mxu0  ;;  %v502_v37 = vpop.f32.mrf.mxu1  ;;  %v688_v25 = vadd.f32 %v1229_v30, %v652_v9 }
  0xb9   : > { %766 = vst [vmem:[%s1251_s9 + $0x48] sm:$0xff] %v734_v20  ;;  %v483_v38 = vadd.f32 %v1237_v34, %v482_v36  ;;  %v503_v39 = vadd.f32 %v1237_v34, %v502_v37  ;;  %v1034_v20 = vunpack.c.l.bf16 %v1326_v10  ;;  %v1019_v36 = vunpack.c.h.bf16 %v1305_v51 }
  0xba   : > { %v710_v40 = vadd.f32 %v678_v21, %v520_v33  ;;  %v718_v41 = vadd.f32 %v686_v22, %v540_v35  ;;  %v1050_v21 = vunpack.c.l.bf16 %v1329_v11  ;;  %v1336_v22 = vld [vmem:[%s1216_s23 + $0x58] sm:$0xff]   ;;  %v673_v33 = vadd.f32 %v1229_v30, %v637_v15 }
  0xbb   : > { %v695_v44 = vadd.f32 %v663_v28, %v483_v38  ;;  %v703_v45 = vadd.f32 %v671_v29, %v503_v39  ;;  %v1039_v26 = vunpack.c.h.bf16 %v1336_v22  ;;  %v1055_v28 = vunpack.c.h.bf16 %v1339_v23 }
  0xbc   : > { %v742_v48 = vmax.f32 %v710_v40, 0.0  ;;  %v750_v49 = vmax.f32 %v718_v41, 0.0  ;;  %v1003_v35 = vunpack.c.h.bf16 %v1302_v50  ;;  %v653_v46 = vmul.f32 %v1223_v27, %v1050_v21 }
  0xbd   : > { %v727_v52 = vmax.f32 %v695_v44, 0.0  ;;  %v735_v53 = vmax.f32 %v703_v45, 0.0  ;;  %v648_v41 = vmul.f32 %v1223_v27, %v1039_v26  ;;  %v656_v42 = vmul.f32 %v1223_v27, %v1055_v28 }
  0xbe   : > { %774 = vst [vmem:[%s1251_s9 + $0x88] sm:$0xff] %v742_v48  ;;  %v645_v45 = vmul.f32 %v1223_v27, %v1034_v20  ;;  %v689_v62 = vadd.f32 %v1229_v30, %v653_v46  ;;  %v646_v15 = vmul.f32 %v1223_v27, %v1035_v63 }
  0xbf   : > { %782 = vst [vmem:[%s1251_s9 + $0xc8] sm:$0xff] %v750_v49  ;;  %v522_v58 = vpop.f32.mrf.mxu2  ;;  %v542_v59 = vpop.f32.mrf.mxu3  ;;  %v1362_v49 = vadd.f32 %v1229_v30, %v648_v41  ;;  %v1365_v50 = vadd.f32 %v1229_v30, %v656_v42 }
  0xc0   : > { %759 = vst [vmem:[%s1251_s9 + $0x10] sm:$0xff] %v727_v52  ;;  %v523_v0 = vadd.f32 %v1237_v34, %v522_v58  ;;  %v543_v1 = vadd.f32 %v1237_v34, %v542_v59  ;;  %v484_v2 = vpop.f32.mrf.mxu0  ;;  %v504_v3 = vpop.f32.mrf.mxu1  ;;  %v1373_v58 = vld [vmem:[%s1216_s23 + $0x38] sm:$0xff]   ;;  %v682_v28 = vadd.f32 %v1229_v30, %v646_v15 }
  0xc1   : > { %767 = vst [vmem:[%s1251_s9 + $0x50] sm:$0xff] %v735_v53  ;;  %v485_v4 = vadd.f32 %v1237_v34, %v484_v2  ;;  %v505_v5 = vadd.f32 %v1237_v34, %v504_v3  ;;  %v630_v53 = vmul.f32 %v1223_v27, %v1003_v35 }
  0xc2   : > { %v711_v6 = vadd.f32 %v679_v54, %v523_v0  ;;  %v719_v7 = vadd.f32 %v687_v55, %v543_v1  ;;  %v638_v54 = vmul.f32 %v1223_v27, %v1019_v36  ;;  %v1051_v0 = vunpack.c.h.bf16 %v1329_v11 }
  0xc3   : > { %v696_v12 = vadd.f32 %v664_v60, %v485_v4  ;;  %v704_v13 = vadd.f32 %v672_v61, %v505_v5  ;;  %v681_v61 = vadd.f32 %v1229_v30, %v645_v45  ;;  %v666_v3 = vadd.f32 %v1229_v30, %v630_v53 }
  0xc4   : > { %v743_v16 = vmax.f32 %v711_v6, 0.0  ;;  %v751_v17 = vmax.f32 %v719_v7, 0.0  ;;  %v674_v4 = vadd.f32 %v1229_v30, %v638_v54  ;;  %v1006_v5 = vunpack.c.l.bf16 %v1370_v57 }
  0xc5   : > { %v728_v18 = vmax.f32 %v696_v12, 0.0  ;;  %v736_v19 = vmax.f32 %v704_v13, 0.0  ;;  %v1022_v6 = vunpack.c.l.bf16 %v1373_v58 }
  0xc6   : > { %775 = vst [vmem:[%s1251_s9 + $0x90] sm:$0xff] %v743_v16  ;;  %v654_v16 = vmul.f32 %v1223_v27, %v1051_v0 }
  0xc7   : > { %783 = vst [vmem:[%s1251_s9 + $0xd0] sm:$0xff] %v751_v17  ;;  %v524_v29 = vpop.f32.mrf.mxu2  ;;  %v544_v31 = vpop.f32.mrf.mxu3  ;;  %v639_v20 = vmul.f32 %v1223_v27, %v1022_v6 }
  0xc8   : > { %760 = vst [vmem:[%s1251_s9 + $0x18] sm:$0xff] %v728_v18  ;;  %v525_v37 = vadd.f32 %v1237_v34, %v524_v29  ;;  %v545_v38 = vadd.f32 %v1237_v34, %v544_v31  ;;  %v487_v39 = vpop.f32.mrf.mxu0  ;;  %v507_v40 = vpop.f32.mrf.mxu1  ;;  %v690_v29 = vadd.f32 %v1229_v30, %v654_v16  ;;  %v1038_v31 = vunpack.c.l.bf16 %v1336_v22 }
  0xc9   : > { %768 = vst [vmem:[%s1251_s9 + $0x58] sm:$0xff] %v736_v19  ;;  %v488_v43 = vadd.f32 %v1237_v34, %v487_v39  ;;  %v508_v44 = vadd.f32 %v1237_v34, %v507_v40  ;;  %v631_v19 = vmul.f32 %v1223_v27, %v1006_v5  ;;  %v1023_v39 = vunpack.c.h.bf16 %v1373_v58 }
  0xca   : > { %v712_v47 = vadd.f32 %v680_v24, %v525_v37  ;;  %v720_v48 = vadd.f32 %v688_v25, %v545_v38  ;;  %v675_v37 = vadd.f32 %v1229_v30, %v639_v20  ;;  %v1007_v38 = vunpack.c.h.bf16 %v1370_v57 }
  0xcb   : > { %v697_v51 = vadd.f32 %v665_v32, %v488_v43  ;;  %v705_v52 = vadd.f32 %v673_v33, %v508_v44  ;;  %v1054_v32 = vunpack.c.l.bf16 %v1339_v23  ;;  %v667_v36 = vadd.f32 %v1229_v30, %v631_v19 }
  0xcc   : > { %v744_v55 = vmax.f32 %v712_v47, 0.0  ;;  %v752_v56 = vmax.f32 %v720_v48, 0.0  ;;  %v647_v46 = vmul.f32 %v1223_v27, %v1038_v31  ;;  %v640_v53 = vmul.f32 %v1223_v27, %v1023_v39 }
  0xcd   : > { %v729_v59 = vmax.f32 %v697_v51, 0.0  ;;  %v737_v60 = vmax.f32 %v705_v52, 0.0  ;;  %v655_v47 = vmul.f32 %v1223_v27, %v1054_v32  ;;  %v632_v52 = vmul.f32 %v1223_v27, %v1007_v38 }
  0xce   : > { %776 = vst [vmem:[%s1251_s9 + $0x98] sm:$0xff] %v744_v55  ;;  %v683_v58 = vadd.f32 %v1229_v30, %v647_v46  ;;  %v676_v63 = vadd.f32 %v1229_v30, %v640_v53 }
  0xcf   : > { %784 = vst [vmem:[%s1251_s9 + $0xd8] sm:$0xff] %v752_v56  ;;  %v527_v1 = vpop.f32.mrf.mxu2  ;;  %v547_v2 = vpop.f32.mrf.mxu3 }
  0xd0   : > { %761 = vst [vmem:[%s1251_s9 + $0x20] sm:$0xff] %v729_v59  ;;  %v528_v7 = vadd.f32 %v1237_v34, %v527_v1  ;;  %v548_v8 = vadd.f32 %v1237_v34, %v547_v2  ;;  %v489_v9 = vpop.f32.mrf.mxu0  ;;  %v509_v10 = vpop.f32.mrf.mxu1  ;;  %v691_v59 = vadd.f32 %v1229_v30, %v655_v47 }
  0xd1   : > { %769 = vst [vmem:[%s1251_s9 + $0x60] sm:$0xff] %v737_v60  ;;  %v490_v11 = vadd.f32 %v1237_v34, %v489_v9  ;;  %v510_v12 = vadd.f32 %v1237_v34, %v509_v10 }
  0xd2   : > { %v713_v13 = vadd.f32 %v681_v61, %v528_v7  ;;  %v721_v14 = vadd.f32 %v689_v62, %v548_v8  ;;  %v668_v62 = vadd.f32 %v1229_v30, %v632_v52 }
  0xd3   : > { %v698_v17 = vadd.f32 %v666_v3, %v490_v11  ;;  %v706_v18 = vadd.f32 %v674_v4, %v510_v12 }
  0xd4   : > { %v745_v21 = vmax.f32 %v713_v13, 0.0  ;;  %v753_v24 = vmax.f32 %v721_v14, 0.0 }
  0xd5   : > { %v730_v25 = vmax.f32 %v698_v17, 0.0  ;;  %v738_v26 = vmax.f32 %v706_v18, 0.0 }
  0xd6   : > { %777 = vst [vmem:[%s1251_s9 + $0xa0] sm:$0xff] %v745_v21 }
  0xd7   : > { %785 = vst [vmem:[%s1251_s9 + $0xe0] sm:$0xff] %v753_v24  ;;  %v529_v33 = vpop.f32.mrf.mxu2  ;;  %v549_v35 = vpop.f32.mrf.mxu3 }
  0xd8   : > { %762 = vst [vmem:[%s1251_s9 + $0x28] sm:$0xff] %v730_v25  ;;  %v530_v40 = vadd.f32 %v1237_v34, %v529_v33  ;;  %v550_v41 = vadd.f32 %v1237_v34, %v549_v35  ;;  %v492_v42 = vpop.f32.mrf.mxu0  ;;  %v512_v22 = vpop.f32.mrf.mxu1 }
  0xd9   : > { %770 = vst [vmem:[%s1251_s9 + $0x68] sm:$0xff] %v738_v26  ;;  %v493_v23 = vadd.f32 %v1237_v34, %v492_v42  ;;  %v513_v43 = vadd.f32 %v1237_v34, %v512_v22 }
  0xda   : > { %v714_v44 = vadd.f32 %v682_v28, %v530_v40  ;;  %v722_v45 = vadd.f32 %v690_v29, %v550_v41 }
  0xdb   : > { %v699_v48 = vadd.f32 %v667_v36, %v493_v23  ;;  %v707_v51 = vadd.f32 %v675_v37, %v513_v43 }
  0xdc   : > { %v746_v54 = vmax.f32 %v714_v44, 0.0  ;;  %v754_v55 = vmax.f32 %v722_v45, 0.0 }
  0xdd   : > { %v731_v56 = vmax.f32 %v699_v48, 0.0  ;;  %v739_v57 = vmax.f32 %v707_v51, 0.0 }
  0xde   : > { %778 = vst [vmem:[%s1251_s9 + $0xa8] sm:$0xff] %v746_v54 }
  0xdf   : > { %786 = vst [vmem:[%s1251_s9 + $0xe8] sm:$0xff] %v754_v55  ;;  %v532_v60 = vpop.f32.mrf.mxu2  ;;  %v552_v61 = vpop.f32.mrf.mxu3 }
  0xe0   : > { %763 = vst [vmem:[%s1251_s9 + $0x30] sm:$0xff] %v731_v56  ;;  %v533_v27 = vadd.f32 %v1237_v34, %v532_v60  ;;  %v553_v0 = vadd.f32 %v1237_v34, %v552_v61  ;;  %v494_v1 = vpop.f32.mrf.mxu0  ;;  %v514_v2 = vpop.f32.mrf.mxu1 }
  0xe1   : > { %771 = vst [vmem:[%s1251_s9 + $0x70] sm:$0xff] %v739_v57  ;;  %v495_v3 = vadd.f32 %v1237_v34, %v494_v1  ;;  %v515_v4 = vadd.f32 %v1237_v34, %v514_v2 }
  0xe2   : > { %v715_v5 = vadd.f32 %v683_v58, %v533_v27  ;;  %v723_v6 = vadd.f32 %v691_v59, %v553_v0 }
  0xe3   : > { %v700_v7 = vadd.f32 %v668_v62, %v495_v3  ;;  %v708_v30 = vadd.f32 %v676_v63, %v515_v4 }
  0xe4   : > { %v747_v8 = vmax.f32 %v715_v5, 0.0  ;;  %v755_v9 = vmax.f32 %v723_v6, 0.0 }
  0xe5   : > { %v732_v10 = vmax.f32 %v700_v7, 0.0  ;;  %v740_v11 = vmax.f32 %v708_v30, 0.0 }
  0xe6   : > { %779 = vst [vmem:[%s1251_s9 + $0xb0] sm:$0xff] %v747_v8 }
  0xe7   : > { %787 = vst [vmem:[%s1251_s9 + $0xf0] sm:$0xff] %v755_v9  ;;  %v534_v12 = vpop.f32.mrf.mxu2  ;;  %v554_v13 = vpop.f32.mrf.mxu3 }
  0xe8   : > { %764 = vst [vmem:[%s1251_s9 + $0x38] sm:$0xff] %v732_v10  ;;  %v535_v14 = vadd.f32 %v1237_v34, %v534_v12  ;;  %v555_v15 = vadd.f32 %v1237_v34, %v554_v13 }
  0xe9   : > { %772 = vst [vmem:[%s1251_s9 + $0x78] sm:$0xff] %v740_v11 }
  0xea   : > { %v716_v16 = vadd.f32 %v1362_v49, %v535_v14  ;;  %v724_v17 = vadd.f32 %v1365_v50, %v555_v15 }
  0xec   : > { %v748_v18 = vmax.f32 %v716_v16, 0.0  ;;  %v756_v19 = vmax.f32 %v724_v17, 0.0 }
  0xee   : > { %780 = vst [vmem:[%s1251_s9 + $0xb8] sm:$0xff] %v748_v18 }
  0xef   : > { %788 = vst [vmem:[%s1251_s9 + $0xf8] sm:$0xff] %v756_v19 }
  0xf0 PF: > { %s16_s21 = sadd.s32 1, %s1112_s21  }
  0xf1   : > { %p13_p4 = scmp.ge.s32.totalorder %s16_s21, 4  }
  0xf3   :  { %15 = sbr.rel (!%p13_p4) target bundleno = 1 (0x1), region = 77 }

// kernel: residual_block.3
= control target key start
LH: loop header
LB: loop body
LE: loop exit
PB: predicated region body
PF: predicated region fallthrough
CT: control target
= control target key end

     0   :  { %s4902_s15 = smov 0   ;;  %s6387_s0 = inlined_call_operand.vmem [shape: bf16[2,256,128], index: 0, kind: input, shape index: {}]   ;;  %s6388_s1 = inlined_call_operand.vmem [shape: bf16[3,3,128,128], index: 1, kind: input, shape index: {}]   ;;  %s6389_s2 = inlined_call_operand.vmem [shape: bf16[2,256,128], index: 2, kind: output, shape index: {0}]   ;;  %s6390_s3 = inlined_call_operand.vmem [shape: f32[2,1,128], index: 3, kind: output, shape index: {1}]   ;;  %s6391_s4 = inlined_call_operand.vmem [shape: f32[2,1,128], index: 4, kind: output, shape index: {2}]  }
   0x1 LB: > { %s4077_s16 = sadd.s32 4294967295, %s4873_s15   ;;  %p4081_p0 = scmp.ge.s32.totalorder %s4873_s15, 1  ;;  %s4873_s15 = sphi %s4902_s15, %s15_s15  }
   0x2   : > { %p167_p1 = scmp.lt.s32.totalorder %s4873_s15, 3 }
   0x4   : > { %p168_p2 = pnand %p4081_p0, %p167_p1 }
   0x6   : > { %171 = sbr.rel (%p168_p2) target bundleno = 753 (0x2f1), region = 28 }
   0xb   : > { %v4657_v0 = vld [vmem:[%s6388_s1 + $0x138] sm:$0xff]  ;;  %p199_p3 = scmp.lt.s32.totalorder %s4077_s16, 1  ;;  %v250_v2 = vlaneseq  ;;  %v4656_v3 = vld [vmem:[%s6388_s1 + $0x130] sm:$0xff]  ;;  %v4655_v7 = vld [vmem:[%s6388_s1 + $0x128] sm:$0xff]  ;;  %vm4875_vm1 = vmmov 1   ;;  %v6404_v15 = vmov 0  }
   0xc   : > { %v4916_v1 = vld [vmem:[%s6388_s1 + $0x1b8] sm:$0xff]  ;;  %1714 = vmatpush.bf16.msra.mxu0 %v4657_v0  ;;  %4817 = vmatpush.bf16.msra.mxu1 %v4657_v0  ;;  %v4929_v5 = vld [vmem:[%s6388_s1 + $0x1b0] sm:$0xff]  ;;  %v4940_v9 = vld [vmem:[%s6388_s1 + $0x1a8] sm:$0xff]  ;;  %v5002_v31 = vunpack.c.l.b16 %v6404_v15  ;;  %v5005_v32 = vunpack.c.h.b16 %v6404_v15  ;;  %vm1262_vm5 = vsmask.f32 256 }
   0xd   : > { %s6554_s16 = smov (!%p199_p3, %s4077_s16), 1  ;;  %v4923_v4 = vshrl.u32 %v250_v2, 7  ;;  %4818 = vmatpush.bf16.msra.mxu2 %v4657_v0  ;;  %4833 = vmatpush.bf16.msra.mxu3 %v4916_v1  ;;  %v4654_v11 = vld [vmem:[%s6388_s1 + $0x120] sm:$0xff]  ;;  %vm990_vm2 = vmpackc.low %vm4875_vm1, %vm4875_vm1  ;;  %v4653_v14 = vld [vmem:[%s6388_s1 + $0x118] sm:$0xff] }
   0xe   : > { %s4632_s27 = sshll.u32 %s6554_s16, 7  ;;  %v4960_v12 = vld [vmem:[%s6388_s1 + $0x1a0] sm:$0xff]  ;;  %v1022_v16 = vsel %vm990_vm2, 65537, %v6404_v15  ;;  %v4977_v18 = vld [vmem:[%s6388_s1 + $0x198] sm:$0xff]  ;;  %v4652_v24 = vld [vmem:[%s6388_s1 + $0x110] sm:$0xff]  ;;  %s211_s10 = scalar_lea.vmem %s6390_s3, %s6554_s16 }
   0xf   : > { %v273_v6 = vadd.s32 176, %v4923_v4  ;;  %s4951_s6 = scalar_lea.vmem %s6387_s0, %s4632_s27  ;;  %v275_v21 = vadd.s32 192, %v4923_v4  ;;  %v1054_v22 = vunpack.c.l.b16 %v1022_v16  ;;  %v4991_v25 = vld [vmem:[%s6388_s1 + $0x190] sm:$0xff]  ;;  %v4651_v34 = vld [vmem:[%s6388_s1 + $0x108] sm:$0xff]  ;;  %v4650_v40 = vld [vmem:[%s6388_s1 + $0x100] sm:$0xff]  ;;  %v277_v53 = vadd.s32 208, %v4923_v4  ;;  %s6248_s9 = scalar_lea.vmem %s6389_s2, %s4632_s27 }
  0x10   : > { %1715 = vmatpush.bf16.msra.mxu0 %v4656_v3  ;;  %4819 = vmatpush.bf16.msra.mxu1 %v4656_v3  ;;  %v4966_v13 = vld [vmem:[%s4951_s6 + $0x58] sm:$0xff]  ;;  %v4980_v19 = vld [vmem:[%s4951_s6 + $0x50] sm:$0xff]  ;;  %v5014_v35 = vld [vmem:[%s6388_s1 + $0x188] sm:$0xff]  ;;  %v287_v55 = vand.u32 15, %v4923_v4  ;;  %s214_s13 = scalar_lea.vmem %s6391_s4, %s6554_s16 }
  0x11   : > { %v441_v8 = vand.u32 15, %v273_v6  ;;  %4820 = vmatpush.bf16.msra.mxu2 %v4656_v3  ;;  %4834 = vmatpush.bf16.msra.mxu3 %v4929_v5  ;;  %v6400_v20 = vshrl.u32 %v4966_v13, 16  ;;  %v6402_v26 = vshrl.u32 %v4980_v19, 16  ;;  %v6401_v27 = vshll.u32 %v4966_v13, 16  ;;  %v5041_v41 = vld [vmem:[%s6388_s1 + $0x180] sm:$0xff]  ;;  %v4673_v42 = vld [vmem:[%s6388_s1 + $0x178] sm:$0xff] }
  0x12   : > { %v455_v29 = vand.u32 15, %v275_v21  ;;  %v4999_v30 = vunpack.i.l.s16 %v1054_v22  ;;  %v4665_v44 = vld [vmem:[%s6388_s1 + $0xf8] sm:$0xff]  ;;  %v5057_v45 = vld [vmem:[%s4951_s6] sm:$0xff]  ;;  %v4664_v50 = vld [vmem:[%s6388_s1 + $0xf0] sm:$0xff]  ;;  %v469_v61 = vand.u32 15, %v277_v53  ;;  %vm5097_vm10 = vcmp.ge.s32.totalorder %v287_v55, 1 }
  0x13   : > { %vm4942_vm0 = vcmp.ge.s32.totalorder %v441_v8, 1  ;;  %v4997_v28 = vrot.slane %v6400_v20, 7  ;;  %v5018_v36 = vrot.slane %v6402_v26, 7  ;;  %v5060_v46 = vld [vmem:[%s4951_s6 + $0x60] sm:$0xff]  ;;  %v4689_v49 = vld [vmem:[%s6388_s1 + $0x38] sm:$0xff]  ;;  %v4672_v51 = vld [vmem:[%s6388_s1 + $0x170] sm:$0xff] }
  0x14   : > { %1716 = vmatpush.bf16.msra.mxu0 %v4655_v7  ;;  %4821 = vmatpush.bf16.msra.mxu1 %v4655_v7  ;;  %vm1415_vm3 = vmpackc.low %vm4942_vm0, %vm4942_vm0  ;;  %vm5023_vm4 = vcmp.ge.s32.totalorder %v455_v29, 1  ;;  %vm5029_vm6 = vcmp.ne.s32.totalorder %v4999_v30, %v5005_v32  ;;  %v6398_v52 = vshrl.u32 %v5060_v46, 16  ;;  %v4688_v56 = vld [vmem:[%s6388_s1 + $0x30] sm:$0xff]  ;;  %v4663_v57 = vld [vmem:[%s6388_s1 + $0xe8] sm:$0xff]  ;;  %v6399_v59 = vshll.u32 %v5060_v46, 16 }
  0x15   : > { %4822 = vmatpush.bf16.msra.mxu2 %v4655_v7  ;;  %4835 = vmatpush.bf16.msra.mxu3 %v4940_v9  ;;  %v1447_v17 = vsel %vm1415_vm3, 65537, %v6404_v15  ;;  %v1296_v37 = vor.u32 %v4997_v28, %v6401_v27  ;;  %vm1417_vm8 = vmpackc.low %vm5023_vm4, %vm5023_vm4  ;;  %v4671_v58 = vld [vmem:[%s6388_s1 + $0x168] sm:$0xff]  ;;  %v4670_v3 = vld [vmem:[%s6388_s1 + $0x160] sm:$0xff]  ;;  %vm5114_vm11 = vcmp.ge.s32.totalorder %v469_v61, 1  ;;  %v781_v22 = vshrl.u32 %v5057_v45, 16 }
  0x16   : > { %v1479_v23 = vunpack.c.l.b16 %v1447_v17  ;;  %v1449_v47 = vsel %vm1417_vm8, 65537, %v6404_v15  ;;  %v5095_v60 = vrot.slane %v6398_v52, 7  ;;  %v4687_v0 = vld [vmem:[%s6388_s1 + $0x28] sm:$0xff]  ;;  %vm1393_vm13 = vmpackc.low %vm5097_vm10, %vm5097_vm10  ;;  %v4686_v6 = vld [vmem:[%s6388_s1 + $0x20] sm:$0xff]  ;;  %v253_v17 = vadd.s32 16, %v4923_v4 }
  0x17   : > { %v1297_v43 = vsel %vm1262_vm5, %v5018_v36, %v1296_v37  ;;  %v1481_v54 = vunpack.c.l.b16 %v1449_v47  ;;  %vm1419_vm14 = vmpackc.low %vm5114_vm11, %vm5114_vm11  ;;  %v4661_v8 = vld [vmem:[%s6388_s1 + $0xd8] sm:$0xff]  ;;  %v1425_v10 = vsel %vm1393_vm13, 65537, %v6404_v15  ;;  %v783_v38 = vshll.u32 %v5057_v45, 16  ;;  %v4658_v55 = vld [vmem:[%s6388_s1 + $0xc0] sm:$0xff] }
  0x18   : > { %1717 = vmatpush.bf16.msra.mxu0 %v4654_v11  ;;  %4823 = vmatpush.bf16.msra.mxu1 %v4654_v11  ;;  %v4204_v33 = vunpack.i.l.s16 %v1479_v23  ;;  %v1299_v2 = vor.u32 %v5095_v60, %v6399_v59  ;;  %v1451_v16 = vsel %vm1419_vm14, 65537, %v6404_v15  ;;  %v1457_v23 = vunpack.c.l.b16 %v1425_v10 }
  0x19   : > { %4824 = vmatpush.bf16.msra.mxu2 %v4654_v11  ;;  %4836 = vmatpush.bf16.msra.mxu3 %v4960_v12  ;;  %v4206_v62 = vunpack.i.l.s16 %v1481_v54  ;;  %v4669_v11 = vld [vmem:[%s6388_s1 + $0x158] sm:$0xff]  ;;  %v1483_v37 = vunpack.c.l.b16 %v1451_v16  ;;  %vm1326_vm0 = vcmask 1040384  }
  0x1a   : > { %vm1586_vm7 = vcmp.ne.s32.totalorder %v4204_v33, %v5002_v31  ;;  %v1300_v7 = vsel %vm1262_vm5, %v4997_v28, %v1299_v2  ;;  %v4660_v28 = vld [vmem:[%s6388_s1 + $0xd0] sm:$0xff]  ;;  %vm5200_vm3 = vmand %vm1326_vm0, %vm1262_vm5 }
  0x1b   : > { %vm1588_vm9 = vmpackc.low %vm5029_vm6, %vm1586_vm7  ;;  %vm1593_vm12 = vcmp.ne.s32.totalorder %v4206_v62, %v5002_v31  ;;  %v4668_v33 = vld [vmem:[%s6388_s1 + $0x150] sm:$0xff]  ;;  %v4208_v53 = vunpack.i.l.s16 %v1483_v37 }
  0x1c   : > { %1718 = vmatpush.bf16.msra.mxu0 %v4653_v14  ;;  %4825 = vmatpush.bf16.msra.mxu1 %v4653_v14  ;;  %v5064_v48 = vsel %vm1588_vm9, %v1297_v43, 0  ;;  %vm1595_vm15 = vmpackc.low %vm5029_vm6, %vm1593_vm12  ;;  %v4684_v43 = vld [vmem:[%s6388_s1 + $0x10] sm:$0xff] }
  0x1d   : > { %4826 = vmatpush.bf16.msra.mxu2 %v4653_v14  ;;  %4837 = vmatpush.bf16.msra.mxu3 %v4977_v18  ;;  %v5141_v14 = vld [vmem:[%s4951_s6 + $0x8] sm:$0xff]  ;;  %v5148_v21 = vsel %vm1595_vm15, %v1300_v7, 0  ;;  %vm1600_vm7 = vcmp.ne.s32.totalorder %v4208_v53, %v5002_v31  ;;  %v5236_v2 = vld [vmem:[%s4951_s6 + $0x70] sm:$0xff] }
  0x1e   : > { %vm1602_vm11 = vmpackc.low %vm5029_vm6, %vm1600_vm7  ;;  %v6395_v37 = vshll.u32 %v5236_v2, 16 }
  0x20   : > { %1719 = vmatpush.bf16.msra.mxu0 %v4652_v24  ;;  %4827 = vmatpush.bf16.msra.mxu1 %v4652_v24 }
  0x21   : > { %4828 = vmatpush.bf16.msra.mxu2 %v4652_v24  ;;  %4838 = vmatpush.bf16.msra.mxu3 %v4991_v25  ;;  %v4685_v24 = vld [vmem:[%s6388_s1 + $0x18] sm:$0xff] }
  0x24   : > { %1720 = vmatpush.bf16.msra.mxu0 %v4651_v34  ;;  %4829 = vmatpush.bf16.msra.mxu1 %v4651_v34 }
  0x25   : > { %4830 = vmatpush.bf16.msra.mxu2 %v4651_v34  ;;  %4839 = vmatpush.bf16.msra.mxu3 %v5014_v35  ;;  %v279_v34 = vadd.s32 224, %v4923_v4 }
  0x28   : > { %1721 = vmatpush.bf16.msra.mxu0 %v4650_v40  ;;  %4831 = vmatpush.bf16.msra.mxu1 %v4650_v40 }
  0x29   : > { %4832 = vmatpush.bf16.msra.mxu2 %v4650_v40  ;;  %4840 = vmatpush.bf16.msra.mxu3 %v5041_v41  ;;  %v5170_v40 = vrot.slane %v781_v22, 7 }
  0x2b   : > { %1722 = vmatmul.bf16.vlgmr.msra.gmra.mxu0 %v5057_v45  ;;  %1772 = vmatmul.bf16.vlgmr.msra.gmra.mxu1 %v4980_v19  ;;  %v1264_v54 = vor.u32 %v5170_v40, %v783_v38 }
  0x2c   : > { %1932 = vmatpush.bf16.msrb.mxu1 %v4665_v44  ;;  %1782 = vmatmul.bf16.vlgmr.msra.gmra.mxu2 %v5060_v46  ;;  %v4659_v44 = vld [vmem:[%s6388_s1 + $0xc8] sm:$0xff] }
  0x2d   : > { %2182 = vmatpush.bf16.msrb.mxu2 %v4673_v42  ;;  %2488 = vmatmul.bf16.vlgmr.msra.gmra.mxu3 %v5064_v48  ;;  %v4182_v42 = vunpack.i.l.s16 %v1457_v23  ;;  %v1328_v61 = vsel %vm5200_vm3, 0, %v1264_v54  ;;  %v4713_v23 = vld [vmem:[%s6388_s1 + $0x238] sm:$0xff] }
  0x2e   : > { %2430 = vmatpush.bf16.msrb.mxu0 %v4916_v1  ;;  %2668 = vmatpush.bf16.msrb.mxu3 %v4689_v49  ;;  %v4662_v1 = vld [vmem:[%s6388_s1 + $0xe0] sm:$0xff] }
  0x2f   : > { %vm1509_vm2 = vcmp.ne.s32.totalorder %v4182_v42, %v5002_v31  ;;  %v785_v42 = vrot.slane %v783_v38, 1 }
  0x30   : > { %1933 = vmatpush.bf16.msrb.mxu1 %v4664_v50  ;;  %v4667_v50 = vld [vmem:[%s6388_s1 + $0x148] sm:$0xff]  ;;  %vm1511_vm9 = vmpackc.low %vm5029_vm6, %vm1509_vm2 }
  0x31   : > { %2183 = vmatpush.bf16.msrb.mxu2 %v4672_v51  ;;  %v483_v51 = vand.u32 15, %v279_v34 }
  0x32   : > { %2669 = vmatpush.bf16.msrb.mxu3 %v4688_v56  ;;  %2431 = vmatpush.bf16.msrb.mxu0 %v4929_v5  ;;  %v252_v5 = vadd.s32 8, %v4923_v4 }
  0x33   : > { %vm5207_vm4 = vcmp.ge.s32.totalorder %v483_v51, 1 }
  0x34   : > { %1934 = vmatpush.bf16.msrb.mxu1 %v4663_v57  ;;  %vm1421_vm10 = vmpackc.low %vm5207_vm4, %vm5207_vm4 }
  0x35   : > { %2184 = vmatpush.bf16.msrb.mxu2 %v4671_v58 }
  0x36   : > { %2670 = vmatpush.bf16.msrb.mxu3 %v4687_v0  ;;  %2432 = vmatpush.bf16.msrb.mxu0 %v4940_v9  ;;  %v5144_v9 = vld [vmem:[%s4951_s6 + $0x68] sm:$0xff]  ;;  %v255_v0 = vadd.s32 32, %v4923_v4 }
  0x37   : > { %v6396_v29 = vshrl.u32 %v5144_v9, 16  ;;  %v6397_v47 = vshll.u32 %v5144_v9, 16 }
  0x38   : > { %1935 = vmatpush.bf16.msrb.mxu1 %v4662_v1  ;;  %v5233_v1 = vld [vmem:[%s4951_s6 + $0x10] sm:$0xff]  ;;  %v315_v10 = vand.u32 15, %v255_v0  ;;  %v257_v0 = vadd.s32 48, %v4923_v4 }
  0x39   : > { %2185 = vmatpush.bf16.msrb.mxu2 %v4670_v3  ;;  %v5182_v49 = vrot.slane %v6396_v29, 7  ;;  %v5238_v3 = vsel %vm1511_vm9, %v1328_v61, 0 }
  0x3a   : > { %2671 = vmatpush.bf16.msrb.mxu3 %v4686_v6  ;;  %2433 = vmatpush.bf16.msrb.mxu0 %v4960_v12  ;;  %v301_v12 = vand.u32 15, %v253_v17  ;;  %v294_v17 = vand.u32 15, %v252_v5  ;;  %vm5271_vm12 = vcmp.ge.s32.totalorder %v315_v10, 1  ;;  %v254_v10 = vadd.s32 24, %v4923_v4 }
  0x3b   : > { %1727 = vmatmul.bf16.gmra.mxu0 %v5141_v14  ;;  %1777 = vmatmul.bf16.gmra.mxu1 %v4966_v13  ;;  %v1302_v57 = vor.u32 %v5182_v49, %v6397_v47  ;;  %vm1397_vm15 = vmpackc.low %vm5271_vm12, %vm5271_vm12 }
  0x3c   : > { %1936 = vmatpush.bf16.msrb.mxu1 %v4661_v8  ;;  %1787 = vmatmul.bf16.gmra.mxu2 %v5144_v9  ;;  %vm5187_vm1 = vcmp.ge.s32.totalorder %v301_v12, 1  ;;  %v6394_v8 = vshrl.u32 %v5236_v2, 16  ;;  %vm5278_vm13 = vcmp.le.s32.totalorder %v294_v17, 14  ;;  %v329_v17 = vand.u32 15, %v257_v0 }
  0x3d   : > { %2186 = vmatpush.bf16.msrb.mxu2 %v4669_v11  ;;  %2493 = vmatmul.bf16.gmra.mxu3 %v5148_v21  ;;  %vm1395_vm8 = vmpackc.low %vm5187_vm1, %vm5187_vm1  ;;  %v1303_v62 = vsel %vm1262_vm5, %v5095_v60, %v1302_v57  ;;  %v792_v60 = vshrl.u32 %v5141_v14, 16  ;;  %v281_v11 = vadd.s32 240, %v4923_v4 }
  0x3e   : > { %2672 = vmatpush.bf16.msrb.mxu3 %v4685_v24  ;;  %2434 = vmatpush.bf16.msrb.mxu0 %v4977_v18  ;;  %v1427_v63 = vsel %vm1395_vm8, 65537, %v6404_v15  ;;  %v5242_v6 = vsel %vm1602_vm11, %v1303_v62, 0  ;;  %v4705_v24 = vld [vmem:[%s6388_s1 + $0x78] sm:$0xff]  ;;  %v5269_v12 = vrot.slane %v6394_v8, 7  ;;  %vm991_vm2 = vmpackc.low %vm5278_vm13, %vm5278_vm13  ;;  %vm5344_vm9 = vcmp.ge.s32.totalorder %v329_v17, 1 }
  0x3f   : > { %v1459_v7 = vunpack.c.l.b16 %v1427_v63  ;;  %v1023_v58 = vsel %vm991_vm2, 65537, %v6404_v15  ;;  %v5317_v62 = vld [vmem:[%s4951_s6 + $0x78] sm:$0xff] }
  0x40   : > { %1937 = vmatpush.bf16.msrb.mxu1 %v4660_v28  ;;  %v788_v28 = vshll.u32 %v5141_v14, 16  ;;  %v1305_v18 = vor.u32 %v5269_v12, %v6395_v37  ;;  %v1055_v5 = vunpack.c.l.b16 %v1023_v58  ;;  %v5382_v58 = vld [vmem:[%s4951_s6 + $0x20] sm:$0xff]  ;;  %v5421_v14 = vld [vmem:[%s4951_s6 + $0x28] sm:$0xff] }
  0x41   : > { %2187 = vmatpush.bf16.msrb.mxu2 %v4668_v33  ;;  %v5264_v33 = vrot.slane %v792_v60, 7  ;;  %v4184_v34 = vunpack.i.l.s16 %v1459_v7  ;;  %v6392_v7 = vshrl.u32 %v5317_v62, 16 }
  0x42   : > { %2673 = vmatpush.bf16.msrb.mxu3 %v4684_v43  ;;  %2435 = vmatpush.bf16.msrb.mxu0 %v4991_v25  ;;  %v4666_v25 = vld [vmem:[%s6388_s1 + $0x140] sm:$0xff]  ;;  %v497_v43 = vand.u32 15, %v281_v11  ;;  %v1306_v57 = vsel %vm1262_vm5, %v5182_v49, %v1305_v18  ;;  %v800_v49 = vshrl.u32 %v5233_v1, 16 }
  0x43   : > { %v1266_v53 = vor.u32 %v5264_v33, %v788_v28  ;;  %vm1516_vm14 = vcmp.ne.s32.totalorder %v4184_v34, %v5002_v31  ;;  %v4151_v34 = vunpack.i.l.s16 %v1055_v5 }
  0x44   : > { %1938 = vmatpush.bf16.msrb.mxu1 %v4659_v44  ;;  %v4682_v44 = vld [vmem:[%s6388_s1] sm:$0xff]  ;;  %vm5292_vm0 = vcmp.ge.s32.totalorder %v497_v43, 1  ;;  %vm1518_vm3 = vmpackc.low %vm5029_vm6, %vm1516_vm14  ;;  %v6393_v43 = vshll.u32 %v5317_v62, 16  ;;  %vm779_vm14 = vsmask.f32 7424 }
  0x45   : > { %2188 = vmatpush.bf16.msrb.mxu2 %v4667_v50  ;;  %v1267_v56 = vsel %vm1262_vm5, %v5170_v40, %v1266_v53  ;;  %vm1423_vm4 = vmpackc.low %vm5292_vm0, %vm5292_vm0  ;;  %vm1107_vm11 = vcmp.ne.s32.totalorder %v4151_v34, %v5005_v32  ;;  %v4704_v34 = vld [vmem:[%s6388_s1 + $0x70] sm:$0xff] }
  0x46   : > { %2436 = vmatpush.bf16.msrb.mxu0 %v5014_v35  ;;  %v1453_v35 = vsel %vm1421_vm10, 65537, %v6404_v15  ;;  %v5319_v63 = vsel %vm1518_vm3, %v1267_v56, 0  ;;  %v1455_v40 = vsel %vm1423_vm4, 65537, %v6404_v15  ;;  %vm5350_vm10 = vcmp.ne.s32.totalorder %v4999_v30, %v5002_v31  ;;  %vm1399_vm0 = vmpackc.low %vm5344_vm9, %vm5344_vm9 }
  0x47   : > { %v1485_v16 = vunpack.c.l.b16 %v1453_v35  ;;  %v790_v56 = vrot.slane %v788_v28, 1 }
  0x48   : > { %1939 = vmatpush.bf16.msrb.mxu1 %v4658_v55  ;;  %v1429_v55 = vsel %vm1397_vm15, 65537, %v6404_v15 }
  0x49   : > { %2189 = vmatpush.bf16.msrb.mxu2 %v4666_v25  ;;  %v4210_v50 = vunpack.i.l.s16 %v1485_v16  ;;  %v5314_v25 = vld [vmem:[%s4951_s6 + $0x18] sm:$0xff]  ;;  %v1461_v61 = vunpack.c.l.b16 %v1429_v55  ;;  %v1487_v16 = vunpack.c.l.b16 %v1455_v40  ;;  %v786_v55 = vor.u32 %v785_v42, %v781_v22 }
  0x4a   : > { %2437 = vmatpush.bf16.msrb.mxu0 %v5041_v41  ;;  %v4683_v41 = vld [vmem:[%s6388_s1 + $0x8] sm:$0xff]  ;;  %v804_v42 = vshll.u32 %v5314_v25, 16  ;;  %v794_v38 = vor.u32 %v792_v60, %v790_v56 }
  0x4b   : > { %1732 = vmatmul.bf16.gmra.mxu0 %v5233_v1  ;;  %1940 = vmatmul.bf16.vlgmr.msrb.gmra.mxu1 %v5238_v3  ;;  %vm1607_vm1 = vcmp.ne.s32.totalorder %v4210_v50, %v5002_v31  ;;  %v4186_v11 = vunpack.i.l.s16 %v1461_v61  ;;  %v308_v50 = vand.u32 15, %v254_v10  ;;  %v4212_v51 = vunpack.i.l.s16 %v1487_v16 }
  0x4c   : > { %1792 = vmatmul.bf16.gmra.mxu2 %v5236_v2  ;;  %2674 = vmatpush.bf16.msrb.mxu3 %v4683_v41  ;;  %vm1609_vm7 = vmpackc.low %vm5029_vm6, %vm1607_vm1  ;;  %v796_v41 = vshll.u32 %v5233_v1, 16  ;;  %v791_v22 = vsel %vm779_vm14, %v786_v55, %v790_v56  ;;  %v261_v56 = vadd.s32 80, %v4923_v4  ;;  %v5453_v1 = vld [vmem:[%s4951_s6 + $0x30] sm:$0xff] }
  0x4d   : > { %2498 = vmatmul.bf16.gmra.mxu3 %v5242_v6  ;;  %3385 = vmatpush.bf16.msra.mxu2 %v4713_v23  ;;  %v5323_v35 = vsel %vm1609_vm7, %v1306_v57, 0  ;;  %v4721_v23 = vld [vmem:[%s6388_s1 + $0xb8] sm:$0xff]  ;;  %vm1523_vm8 = vcmp.ne.s32.totalorder %v4186_v11, %v5002_v31  ;;  %vm670_vm13 = vcmp.le.s32.totalorder %v308_v50, 14  ;;  %vm1614_vm15 = vcmp.ne.s32.totalorder %v4212_v51, %v5002_v31  ;;  %vm1108_vm1 = vmpackc.low %vm1107_vm11, %vm5350_vm10 }
  0x4e   : > { %3146 = vmatpush.bf16.msra.mxu1 %v4705_v24  ;;  %v1268_v24 = vrot.slane %v800_v49, 7  ;;  %vm5357_vm12 = vmpackc.low %vm5029_vm6, %vm1523_vm8  ;;  %v1431_v57 = vsel %vm1399_vm0, 65537, %v6404_v15  ;;  %v5390_v0 = vsel %vm1108_vm1, %v791_v22, 0  ;;  %v256_v11 = vadd.s32 40, %v4923_v4 }
  0x4f   : > { %vm993_vm2 = vmpackc.low %vm670_vm13, %vm670_vm13  ;;  %v1463_v10 = vunpack.c.l.b16 %v1431_v57  ;;  %v798_v55 = vrot.slane %v796_v41, 1 }
  0x50   : > { %2675 = vmatpush.bf16.msrb.mxu3 %v4682_v44  ;;  %v1307_v44 = vrot.slane %v6392_v7, 7  ;;  %v1269_v18 = vor.u32 %v1268_v24, %v796_v41  ;;  %vm1616_vm3 = vmpackc.low %vm5029_vm6, %vm1614_vm15  ;;  %v1025_v40 = vsel %vm993_vm2, 65537, %v6404_v15  ;;  %v322_v51 = vand.u32 15, %v256_v11  ;;  %v4720_v11 = vld [vmem:[%s6388_s1 + $0xb0] sm:$0xff] }
  0x51   : > { %v1057_v16 = vunpack.c.l.b16 %v1025_v40  ;;  %v4188_v50 = vunpack.i.l.s16 %v1463_v10  ;;  %v258_v40 = vadd.s32 56, %v4923_v4  ;;  %v357_v10 = vand.u32 15, %v261_v56 }
  0x52   : > { %v1308_v30 = vor.u32 %v1307_v44, %v6393_v43  ;;  %v1270_v45 = vsel %vm1262_vm5, %v5264_v33, %v1269_v18  ;;  %v259_v33 = vadd.s32 64, %v4923_v4  ;;  %3147 = vmatpush.bf16.msra.mxu1 %v4704_v34  ;;  %vm672_vm8 = vcmp.le.s32.totalorder %v322_v51, 14 }
  0x53   : > { %v5386_v61 = vsel %vm5357_vm12, %v1270_v45, 0  ;;  %v4153_v53 = vunpack.i.l.s16 %v1057_v16  ;;  %vm1530_vm7 = vcmp.ne.s32.totalorder %v4188_v50, %v5002_v31  ;;  %vm995_vm13 = vmpackc.low %vm672_vm8, %vm672_vm8  ;;  %v799_v45 = vsel %vm779_vm14, %v794_v38, %v798_v55 }
  0x54   : > { %3624 = vmatpush.bf16.msra.mxu3 %v4721_v23  ;;  %v1309_v28 = vsel %vm1262_vm5, %v5269_v12, %v1308_v30  ;;  %v808_v12 = vshrl.u32 %v5314_v25, 16  ;;  %v343_v17 = vand.u32 15, %v259_v33  ;;  %v4712_v23 = vld [vmem:[%s6388_s1 + $0x230] sm:$0xff]  ;;  %vm1532_vm12 = vmpackc.low %vm5029_vm6, %vm1530_vm7  ;;  %v1027_v41 = vsel %vm995_vm13, 65537, %v6404_v15 }
  0x55   : > { %v5392_v5 = vsel %vm1616_vm3, %v1309_v28, 0  ;;  %3386 = vmatpush.bf16.msra.mxu2 %v4712_v23  ;;  %vm1114_vm9 = vcmp.ne.s32.totalorder %v4153_v53, %v5005_v32  ;;  %v1059_v33 = vunpack.c.l.b16 %v1027_v41  ;;  %v812_v16 = vshll.u32 %v5382_v58, 16 }
  0x56   : > { %v1271_v44 = vrot.slane %v808_v12, 7  ;;  %vm1238_vm4 = vcmp.ge.s32.totalorder %v343_v17, 1  ;;  %vm1115_vm15 = vmpackc.low %vm1114_vm9, %vm5350_vm10  ;;  %v336_v34 = vand.u32 15, %v258_v40  ;;  %vm1240_vm0 = vcmp.ge.s32.totalorder %v357_v10, 1  ;;  %v4711_v40 = vld [vmem:[%s6388_s1 + $0x228] sm:$0xff] }
  0x57   : > { %vm1401_vm11 = vmpackc.low %vm1238_vm4, %vm1238_vm4  ;;  %v5427_v28 = vsel %vm1115_vm15, %v799_v45, 0  ;;  %v4155_v50 = vunpack.i.l.s16 %v1059_v33  ;;  %v806_v53 = vrot.slane %v804_v42, 1  ;;  %v260_v41 = vadd.s32 72, %v4923_v4 }
  0x58   : > { %v1272_v18 = vor.u32 %v1271_v44, %v804_v42  ;;  %v1433_v22 = vsel %vm1401_vm11, 65537, %v6404_v15  ;;  %3625 = vmatpush.bf16.msra.mxu3 %v4720_v11  ;;  %vm674_vm2 = vcmp.le.s32.totalorder %v336_v34, 14  ;;  %vm1403_vm4 = vmpackc.low %vm1240_vm0, %vm1240_vm0  ;;  %v820_v33 = vshll.u32 %v5421_v14, 16 }
  0x59   : > { %v1465_v57 = vunpack.c.l.b16 %v1433_v22  ;;  %vm1121_vm3 = vcmp.ne.s32.totalorder %v4155_v50, %v5005_v32  ;;  %vm997_vm8 = vmpackc.low %vm674_vm2, %vm674_vm2  ;;  %3387 = vmatpush.bf16.msra.mxu2 %v4711_v40 }
  0x5a   : > { %v1273_v30 = vsel %vm1262_vm5, %v1268_v24, %v1272_v18  ;;  %v816_v24 = vshrl.u32 %v5382_v58, 16  ;;  %vm1122_vm9 = vmpackc.low %vm1121_vm3, %vm5350_vm10  ;;  %v1029_v42 = vsel %vm997_vm8, 65537, %v6404_v15 }
  0x5b   : > { %1737 = vmatmul.bf16.gmra.mxu0 %v5314_v25  ;;  %1945 = vmatmul.bf16.gmra.mxu1 %v5319_v63  ;;  %v5423_v60 = vsel %vm1532_vm12, %v1273_v30, 0  ;;  %v4190_v23 = vunpack.i.l.s16 %v1465_v57  ;;  %v1435_v30 = vsel %vm1403_vm4, 65537, %v6404_v15  ;;  %v1061_v56 = vunpack.c.l.b16 %v1029_v42 }
  0x5c   : > { %1797 = vmatmul.bf16.gmra.mxu2 %v5317_v62  ;;  %v1274_v17 = vrot.slane %v816_v24, 7  ;;  %v1467_v22 = vunpack.c.l.b16 %v1435_v30 }
  0x5d   : > { %2503 = vmatmul.bf16.gmra.mxu3 %v5323_v35  ;;  %vm1537_vm1 = vcmp.ne.s32.totalorder %v4190_v23, %v5002_v31  ;;  %v350_v23 = vand.u32 15, %v260_v41  ;;  %v4157_v34 = vunpack.i.l.s16 %v1061_v56  ;;  %v262_v56 = vadd.s32 88, %v4923_v4 }
  0x5e   : > { %v1275_v51 = vor.u32 %v1274_v17, %v812_v16  ;;  %vm1539_vm7 = vmpackc.low %vm5029_vm6, %vm1537_vm1  ;;  %v4192_v11 = vunpack.i.l.s16 %v1467_v22 }
  0x5f   : > { %vm676_vm13 = vcmp.le.s32.totalorder %v350_v23, 14  ;;  %vm1128_vm15 = vcmp.ne.s32.totalorder %v4157_v34, %v5005_v32  ;;  %v828_v23 = vshll.u32 %v5453_v1, 16 }
  0x60   : > { %v1276_v18 = vsel %vm1262_vm5, %v1271_v44, %v1275_v51  ;;  %v824_v44 = vshrl.u32 %v5421_v14, 16  ;;  %v4703_v51 = vld [vmem:[%s6388_s1 + $0x68] sm:$0xff]  ;;  %vm1544_vm12 = vcmp.ne.s32.totalorder %v4192_v11, %v5002_v31  ;;  %vm999_vm2 = vmpackc.low %vm676_vm13, %vm676_vm13 }
  0x61   : > { %3148 = vmatpush.bf16.msra.mxu1 %v4703_v51  ;;  %vm1546_vm1 = vmpackc.low %vm5029_vm6, %vm1544_vm12  ;;  %v4719_v11 = vld [vmem:[%s6388_s1 + $0xa8] sm:$0xff]  ;;  %v364_v51 = vand.u32 15, %v262_v56 }
  0x62   : > { %v1277_v10 = vrot.slane %v824_v44, 7  ;;  %vm1129_vm3 = vmpackc.low %vm1128_vm15, %vm5350_vm10  ;;  %3626 = vmatpush.bf16.msra.mxu3 %v4719_v11  ;;  %v264_v11 = vadd.s32 104, %v4923_v4 }
  0x63   : > { %vm678_vm8 = vcmp.le.s32.totalorder %v364_v51, 14 }
  0x64   : > { %vm1001_vm13 = vmpackc.low %vm678_vm8, %vm678_vm8 }
  0x6b   : > { %1742 = vmatmul.bf16.gmra.mxu0 %v5382_v58  ;;  %1950 = vmatmul.bf16.gmra.mxu1 %v5386_v61  ;;  %v5527_v58 = vld [vmem:[%s4951_s6 + $0x40] sm:$0xff] }
  0x6c   : > { %2190 = vmatmul.bf16.vlgmr.msrb.gmra.mxu2 %v5390_v0  ;;  %v844_v52 = vshll.u32 %v5527_v58, 16 }
  0x6d   : > { %2508 = vmatmul.bf16.gmra.mxu3 %v5392_v5 }
  0x7b   : > { %1747 = vmatmul.bf16.gmra.mxu0 %v5421_v14  ;;  %1955 = vmatmul.bf16.gmra.mxu1 %v5423_v60 }
  0x7c   : > { %2195 = vmatmul.bf16.gmra.mxu2 %v5427_v28 }
  0x7d   : > { %2676 = vmatmul.bf16.vlgmr.msrb.gmra.mxu3 %v5238_v3  ;;  %v802_v3 = vor.u32 %v800_v49, %v798_v55  ;;  %v5455_v49 = vsel %vm1539_vm7, %v1276_v18, 0  ;;  %v263_v55 = vadd.s32 96, %v4923_v4  ;;  %v810_v18 = vor.u32 %v808_v12, %v806_v53  ;;  %v5495_v12 = vld [vmem:[%s4951_s6 + $0x38] sm:$0xff] }
  0x7f   : > { %v807_v38 = vsel %vm779_vm14, %v802_v3, %v806_v53  ;;  %v371_v57 = vand.u32 15, %v263_v55  ;;  %v1278_v3 = vor.u32 %v1277_v10, %v820_v33  ;;  %v1031_v53 = vsel %vm999_vm2, 65537, %v6404_v15 }
  0x80   : > { %v5459_v45 = vsel %vm1122_vm9, %v807_v38, 0  ;;  %v814_v38 = vrot.slane %v812_v16, 1  ;;  %v265_v55 = vadd.s32 112, %v4923_v4 }
  0x81   : > { %vm5473_vm11 = vcmp.ge.s32.totalorder %v371_v57, 1  ;;  %v1279_v30 = vsel %vm1262_vm5, %v1274_v17, %v1278_v3  ;;  %v6406_v17 = vshrl.u32 %v5453_v1, 16  ;;  %v1063_v57 = vunpack.c.l.b16 %v1031_v53 }
  0x82   : > { %vm1405_vm0 = vmpackc.low %vm5473_vm11, %vm5473_vm11  ;;  %v815_v42 = vsel %vm779_vm14, %v810_v18, %v814_v38  ;;  %v5497_v16 = vsel %vm1546_vm1, %v1279_v30, 0  ;;  %v385_v40 = vand.u32 15, %v265_v55  ;;  %v818_v30 = vor.u32 %v816_v24, %v814_v38 }
  0x83   : > { %v1437_v25 = vsel %vm1405_vm0, 65537, %v6404_v15  ;;  %v5501_v22 = vsel %vm1129_vm3, %v815_v42, 0  ;;  %v1280_v34 = vrot.slane %v6406_v17, 7  ;;  %v4159_v3 = vunpack.i.l.s16 %v1063_v57 }
  0x84   : > { %v1469_v41 = vunpack.c.l.b16 %v1437_v25  ;;  %vm1244_vm4 = vcmp.ge.s32.totalorder %v385_v40, 1  ;;  %v822_v42 = vrot.slane %v820_v33, 1  ;;  %v6403_v57 = vshrl.u32 %v5495_v12, 16 }
  0x85   : > { %v1281_v18 = vor.u32 %v1280_v34, %v828_v23  ;;  %vm1135_vm9 = vcmp.ne.s32.totalorder %v4159_v3, %v5005_v32  ;;  %vm1407_vm11 = vmpackc.low %vm1244_vm4, %vm1244_vm4  ;;  %v4710_v3 = vld [vmem:[%s6388_s1 + $0x220] sm:$0xff] }
  0x86   : > { %v4194_v50 = vunpack.i.l.s16 %v1469_v41  ;;  %v823_v53 = vsel %vm779_vm14, %v818_v30, %v822_v42  ;;  %vm1136_vm15 = vmpackc.low %vm1135_vm9, %vm5350_vm10  ;;  %v1439_v55 = vsel %vm1407_vm11, 65537, %v6404_v15  ;;  %v1033_v41 = vsel %vm1001_vm13, 65537, %v6404_v15  ;;  %3388 = vmatpush.bf16.msra.mxu2 %v4710_v3 }
  0x87   : > { %v1282_v25 = vsel %vm1262_vm5, %v1277_v10, %v1281_v18  ;;  %v267_v10 = vadd.s32 128, %v4923_v4  ;;  %v5537_v56 = vsel %vm1136_vm15, %v823_v53, 0  ;;  %v1471_v40 = vunpack.c.l.b16 %v1439_v55  ;;  %v4697_v18 = vld [vmem:[%s6388_s1 + $0x1f8] sm:$0xff] }
  0x88   : > { %vm1551_vm7 = vcmp.ne.s32.totalorder %v4194_v50, %v5002_v31  ;;  %v1065_v50 = vunpack.c.l.b16 %v1033_v41  ;;  %v836_v30 = vshll.u32 %v5495_v12, 16  ;;  %v378_v55 = vand.u32 15, %v264_v11  ;;  %2907 = vmatpush.bf16.msra.mxu0 %v4697_v18 }
  0x89   : > { %vm1553_vm12 = vmpackc.low %vm5029_vm6, %vm1551_vm7  ;;  %v399_v51 = vand.u32 15, %v267_v10  ;;  %v4196_v53 = vunpack.i.l.s16 %v1471_v40  ;;  %v4702_v40 = vld [vmem:[%s6388_s1 + $0x60] sm:$0xff]  ;;  %v826_v11 = vor.u32 %v824_v44, %v822_v42  ;;  %v266_v3 = vadd.s32 120, %v4923_v4 }
  0x8a   : > { %v5533_v38 = vsel %vm1553_vm12, %v1282_v25, 0  ;;  %v5554_v25 = vrot.slane %v6403_v57, 7  ;;  %v4161_v7 = vunpack.i.l.s16 %v1065_v50  ;;  %v830_v50 = vrot.slane %v828_v23, 1  ;;  %3149 = vmatpush.bf16.msra.mxu1 %v4702_v40  ;;  %v5598_v23 = vld [vmem:[%s4951_s6 + $0x48] sm:$0xff] }
  0x8b   : > { %1752 = vmatmul.bf16.gmra.mxu0 %v5453_v1  ;;  %1960 = vmatmul.bf16.gmra.mxu1 %v5455_v49  ;;  %vm5564_vm0 = vcmp.ge.s32.totalorder %v399_v51, 1  ;;  %vm1558_vm1 = vcmp.ne.s32.totalorder %v4196_v53, %v5002_v31  ;;  %vm5575_vm2 = vcmp.le.s32.totalorder %v378_v55, 14  ;;  %v269_v53 = vadd.s32 144, %v4923_v4 }
  0x8c   : > { %2200 = vmatmul.bf16.gmra.mxu2 %v5459_v45  ;;  %v1284_v29 = vor.u32 %v5554_v25, %v836_v30  ;;  %vm1142_vm3 = vcmp.ne.s32.totalorder %v4161_v7, %v5005_v32  ;;  %vm1409_vm4 = vmpackc.low %vm5564_vm0, %vm5564_vm0  ;;  %v831_v14 = vsel %vm779_vm14, %v826_v11, %v830_v50  ;;  %v6407_v40 = vshrl.u32 %v5527_v58, 16 }
  0x8d   : > { %2681 = vmatmul.bf16.gmra.mxu3 %v5319_v63  ;;  %vm1560_vm7 = vmpackc.low %vm5029_vm6, %vm1558_vm1  ;;  %v1441_v7 = vsel %vm1409_vm4, 65537, %v6404_v15  ;;  %v392_v20 = vand.u32 15, %v266_v3  ;;  %v6466_v3 = vshrl.u32 %v5453_v1, 16 }
  0x8e   : > { %v1285_v51 = vsel %vm1262_vm5, %v1280_v34, %v1284_v29  ;;  %vm1003_vm8 = vmpackc.low %vm5575_vm2, %vm5575_vm2  ;;  %v1473_v11 = vunpack.c.l.b16 %v1441_v7  ;;  %v5622_v7 = vrot.slane %v6407_v40, 7 }
  0x8f   : > { %vm1143_vm9 = vmpackc.low %vm1142_vm3, %vm5350_vm10  ;;  %v5604_v34 = vsel %vm1560_vm7, %v1285_v51, 0  ;;  %v1035_v18 = vsel %vm1003_vm8, 65537, %v6404_v15  ;;  %v413_v51 = vand.u32 15, %v269_v53  ;;  %vm5643_vm13 = vcmp.le.s32.totalorder %v392_v20, 14 }
  0x90   : > { %v5608_v55 = vsel %vm1143_vm9, %v831_v14, 0  ;;  %v1067_v47 = vunpack.c.l.b16 %v1035_v18  ;;  %v4718_v14 = vld [vmem:[%s6388_s1 + $0xa0] sm:$0xff]  ;;  %v4198_v59 = vunpack.i.l.s16 %v1473_v11  ;;  %v1287_v17 = vor.u32 %v5622_v7, %v844_v52  ;;  %v4696_v11 = vld [vmem:[%s6388_s1 + $0x1f0] sm:$0xff]  ;;  %vm1005_vm2 = vmpackc.low %vm5643_vm13, %vm5643_vm13 }
  0x91   : > { %6461 = vst [vmem:[#allocation5_spill] sm:$0xff] %v5608_v55  ;;  %3627 = vmatpush.bf16.msra.mxu3 %v4718_v14  ;;  %vm5632_vm11 = vcmp.ge.s32.totalorder %v413_v51, 1  ;;  %v834_v14 = vor.u32 %v6466_v3, %v830_v50  ;;  %2908 = vmatpush.bf16.msra.mxu0 %v4696_v11 }
  0x92   : > { %v4163_v26 = vunpack.i.l.s16 %v1067_v47  ;;  %vm1565_vm12 = vcmp.ne.s32.totalorder %v4198_v59, %v5002_v31  ;;  %v838_v47 = vrot.slane %v836_v30, 1  ;;  %vm1411_vm0 = vmpackc.low %vm5632_vm11, %vm5632_vm11  ;;  %v1288_v59 = vsel %vm1262_vm5, %v5554_v25, %v1287_v17 }
  0x93   : > { %vm1567_vm1 = vmpackc.low %vm5029_vm6, %vm1565_vm12  ;;  %v271_v25 = vadd.s32 160, %v4923_v4 }
  0x94   : > { %vm1149_vm15 = vcmp.ne.s32.totalorder %v4163_v26, %v5005_v32  ;;  %v839_v20 = vsel %vm779_vm14, %v834_v14, %v838_v47  ;;  %v6469_v26 = vmov 0   ;;  %v5668_v11 = vsel %vm1567_vm1, %v1288_v59, 0 }
  0x95   : > { %vm1150_vm3 = vmpackc.low %vm1149_vm15, %vm5350_vm10  ;;  %v1443_v15 = vsel %vm1411_vm0, 65537, %v6469_v26  ;;  %v1037_v17 = vsel %vm1005_vm2, 65537, %v6469_v26  ;;  %v6412_v14 = vshrl.u32 %v5598_v23, 16 }
  0x96   : > { %v5675_v3 = vsel %vm1150_vm3, %v839_v20, 0  ;;  %v1069_v59 = vunpack.c.l.b16 %v1037_v17  ;;  %v852_v20 = vshll.u32 %v5598_v23, 16 }
  0x97   : > { %6472 = vst [vmem:[#allocation10_spill] sm:$0xff] %v5675_v3 }
  0x9b   : > { %1757 = vmatmul.bf16.gmra.mxu0 %v5495_v12  ;;  %1965 = vmatmul.bf16.gmra.mxu1 %v5497_v16 }
  0x9c   : > { %2205 = vmatmul.bf16.gmra.mxu2 %v5501_v22 }
  0x9d   : > { %2686 = vmatmul.bf16.gmra.mxu3 %v5386_v61 }
  0xa8   : > { %v5529_v24 = vpop.f32.mrf.mxu0  ;;  %v5531_v33 = vpop.f32.mrf.mxu1 }
  0xab   : > { %1762 = vmatmul.bf16.gmra.mxu0 %v5527_v58  ;;  %1970 = vmatmul.bf16.gmra.mxu1 %v5533_v38 }
  0xac   : > { %2210 = vmatmul.bf16.gmra.mxu2 %v5537_v56 }
  0xad   : > { %2691 = vmatmul.bf16.gmra.mxu3 %v5423_v60 }
  0xaf   : > { %v5556_v41 = vpop.f32.mrf.mxu2 }
  0xb0   : > { %6455 = vst [vmem:[#allocation3_spill] sm:$0xff] %v5556_v41  ;;  %v5558_v10 = vpop.f32.mrf.mxu3  ;;  %v5560_v43 = vpop.f32.mrf.mxu0 }
  0xb1   : > { %v5562_v8 = vpop.f32.mrf.mxu1 }
  0xb7   : > { %v5593_v37 = vpop.f32.mrf.mxu2 }
  0xb8   : > { %6460 = vst [vmem:[#allocation4_spill] sm:$0xff] %v5593_v37  ;;  %v5595_v44 = vpop.f32.mrf.mxu3  ;;  %v5600_v42 = vpop.f32.mrf.mxu0  ;;  %v427_v37 = vand.u32 15, %v271_v25 }
  0xb9   : > { %v5602_v29 = vpop.f32.mrf.mxu1 }
  0xba   : > { %vm5697_vm4 = vcmp.ge.s32.totalorder %v427_v37, 1  ;;  %v6476_v37 = vshrl.u32 %v5495_v12, 16 }
  0xbb   : > { %1767 = vmatmul.bf16.gmra.mxu0 %v5598_v23  ;;  %1975 = vmatmul.bf16.gmra.mxu1 %v5604_v34  ;;  %vm1413_vm11 = vmpackc.low %vm5697_vm4, %vm5697_vm4 }
  0xbc   : > { %2215 = vmatmul.bf16.gmra.mxu2 %v5608_v55  ;;  %v1445_v12 = vsel %vm1413_vm11, 65537, %v6469_v26 }
  0xbd   : > { %2696 = vmatmul.bf16.gmra.mxu3 %v5455_v49 }
  0xbf   : > { %v5624_v27 = vpop.f32.mrf.mxu2 }
  0xc0   : > { %6462 = vst [vmem:[#allocation6_spill] sm:$0xff] %v5624_v27  ;;  %v5626_v18 = vpop.f32.mrf.mxu3  ;;  %v5628_v57 = vpop.f32.mrf.mxu0  ;;  %v1475_v27 = vunpack.c.l.b16 %v1443_v15  ;;  %v5689_v15 = vrot.slane %v6412_v14, 7 }
  0xc1   : > { %v5630_v53 = vpop.f32.mrf.mxu1 }
  0xc2   : > { %6463 = vst [vmem:[#allocation7_spill] sm:$0xff] %v5630_v53  ;;  %v1290_v14 = vor.u32 %v5689_v15, %v852_v20 }
  0xc7   : > { %v5662_v1 = vpop.f32.mrf.mxu2 }
  0xc8   : > { %6470 = vst [vmem:[#allocation8_spill] sm:$0xff] %v5662_v1  ;;  %v5664_v30 = vpop.f32.mrf.mxu3  ;;  %v5666_v50 = vpop.f32.mrf.mxu0  ;;  %v268_v1 = vadd.s32 136, %v4923_v4 }
  0xc9   : > { %6471 = vst [vmem:[#allocation9_spill] sm:$0xff] %v5664_v30  ;;  %v1941_v51 = vpop.f32.mrf.mxu1 }
  0xca   : > { %v5673_v40 = vadd.f32 %v1941_v51, %v5529_v24  ;;  %v4709_v24 = vld [vmem:[%s6388_s1 + $0x218] sm:$0xff]  ;;  %v4200_v51 = vunpack.i.l.s16 %v1475_v27  ;;  %v406_v41 = vand.u32 15, %v268_v1  ;;  %v4695_v27 = vld [vmem:[%s6388_s1 + $0x1e8] sm:$0xff] }
  0xcb   : > { %1980 = vmatmul.bf16.gmra.mxu1 %v5668_v11  ;;  %2438 = vmatmul.bf16.vlgmr.msrb.gmra.mxu0 %v5319_v63  ;;  %v4701_v1 = vld [vmem:[%s6388_s1 + $0x58] sm:$0xff] }
  0xcc   : > { %2220 = vmatmul.bf16.gmra.mxu2 %v5675_v3  ;;  %v4165_v3 = vunpack.i.l.s16 %v1069_v59  ;;  %vm1572_vm7 = vcmp.ne.s32.totalorder %v4200_v51, %v5002_v31  ;;  %v842_v59 = vor.u32 %v6476_v37, %v838_v47  ;;  %vm5714_vm8 = vcmp.le.s32.totalorder %v406_v41, 14  ;;  %2909 = vmatpush.bf16.msra.mxu0 %v4695_v27  ;;  %v4717_v27 = vld [vmem:[%s6388_s1 + $0x98] sm:$0xff] }
  0xcd   : > { %2701 = vmatmul.bf16.gmra.mxu3 %v5497_v16  ;;  %3389 = vmatpush.bf16.msra.mxu2 %v4709_v24  ;;  %v846_v24 = vrot.slane %v844_v52, 1  ;;  %vm1574_vm12 = vmpackc.low %vm5029_vm6, %vm1572_vm7 }
  0xce   : > { %vm1156_vm9 = vcmp.ne.s32.totalorder %v4165_v3, %v5005_v32  ;;  %3150 = vmatpush.bf16.msra.mxu1 %v4701_v1  ;;  %vm1007_vm13 = vmpackc.low %vm5714_vm8, %vm5714_vm8  ;;  %v270_v1 = vadd.s32 152, %v4923_v4  ;;  %3628 = vmatpush.bf16.msra.mxu3 %v4717_v27  ;;  %v854_v27 = vrot.slane %v852_v20, 1 }
  0xcf   : > { %v5691_v63 = vpop.f32.mrf.mxu2  ;;  %v847_v52 = vsel %vm779_vm14, %v842_v59, %v846_v24  ;;  %vm1157_vm15 = vmpackc.low %vm1156_vm9, %vm5350_vm10 }
  0xd0   : > { %6473 = vst [vmem:[#allocation11_spill] sm:$0xff] %v5691_v63  ;;  %v5693_v17 = vpop.f32.mrf.mxu3  ;;  %v5695_v55 = vpop.f32.mrf.mxu0  ;;  %v5745_v63 = vsel %vm1157_vm15, %v847_v52, 0  ;;  %v420_v52 = vand.u32 15, %v270_v1 }
  0xd1   : > { %v1943_v25 = vpop.f32.mrf.mxu1  ;;  %6481 = vst [vmem:[#allocation14_spill] sm:$0xff] %v5745_v63 }
  0xd2   : > { %v5702_v53 = vadd.f32 %v1943_v25, %v5560_v43  ;;  %v1291_v43 = vsel %vm1262_vm5, %v5622_v7, %v1290_v14  ;;  %v1039_v14 = vsel %vm1007_vm13, 65537, %v6469_v26  ;;  %v1477_v25 = vunpack.c.l.b16 %v1445_v12 }
  0xd3   : > { %v5739_v7 = vsel %vm1574_vm12, %v1291_v43, 0  ;;  %v1071_v37 = vunpack.c.l.b16 %v1039_v14  ;;  %vm686_vm1 = vcmp.le.s32.totalorder %v420_v52, 14 }
  0xd4   : > { %v4202_v43 = vunpack.i.l.s16 %v1477_v25  ;;  %vm1009_vm4 = vmpackc.low %vm686_vm1, %vm686_vm1 }
  0xd5   : > { %v1041_v39 = vsel %vm1009_vm4, 65537, %v6469_v26 }
  0xd6   : > { %vm1579_vm0 = vcmp.ne.s32.totalorder %v4202_v43, %v5002_v31 }
  0xd7   : > { %v5733_v41 = vpop.f32.mrf.mxu2  ;;  %vm1581_vm3 = vmpackc.low %vm5029_vm6, %vm1579_vm0 }
  0xd8   : > { %6479 = vst [vmem:[#allocation12_spill] sm:$0xff] %v5733_v41  ;;  %v5735_v47 = vpop.f32.mrf.mxu3  ;;  %v5737_v30 = vpop.f32.mrf.mxu0  ;;  %v4167_v41 = vunpack.i.l.s16 %v1071_v37  ;;  %v272_v37 = vadd.s32 168, %v4923_v4 }
  0xd9   : > { %6480 = vst [vmem:[#allocation13_spill] sm:$0xff] %v5735_v47  ;;  %v1946_v3 = vpop.f32.mrf.mxu1 }
  0xda   : > { %v5743_v51 = vadd.f32 %v1946_v3, %v5600_v42  ;;  %v5756_v42 = vld [vmem:[%s4951_s6 + $0x50] sm:$0xff]  ;;  %vm1163_vm2 = vcmp.ne.s32.totalorder %v4167_v41, %v5005_v32  ;;  %v434_v43 = vand.u32 15, %v272_v37 }
  0xdb   : > { %1985 = vmatmul.bf16.gmra.mxu1 %v5739_v7  ;;  %2443 = vmatmul.bf16.gmra.mxu0 %v5386_v61  ;;  %6482 = vst [vmem:[#allocation15_spill] sm:$0xff] %v5756_v42  ;;  %v860_v59 = vshll.u32 %v5756_v42, 16  ;;  %v6484_v42 = vshrl.u32 %v5527_v58, 16  ;;  %vm1164_vm7 = vmpackc.low %vm1163_vm2, %vm5350_vm10 }
  0xdc   : > { %2225 = vmatmul.bf16.gmra.mxu2 %v5745_v63 }
  0xdd   : > { %2706 = vmatmul.bf16.gmra.mxu3 %v5533_v38  ;;  %v1293_v63 = vor.u32 %v5018_v36, %v860_v59  ;;  %v850_v25 = vor.u32 %v6484_v42, %v846_v24  ;;  %v1073_v42 = vunpack.c.l.b16 %v1041_v39  ;;  %v4700_v39 = vld [vmem:[%s6388_s1 + $0x50] sm:$0xff] }
  0xde   : > { %3151 = vmatpush.bf16.msra.mxu1 %v4700_v39  ;;  %v274_v39 = vadd.s32 184, %v4923_v4 }
  0xdf   : > { %v5759_v12 = vpop.f32.mrf.mxu2  ;;  %v1294_v1 = vsel %vm1262_vm5, %v5689_v15, %v1293_v63  ;;  %v4694_v63 = vld [vmem:[%s6388_s1 + $0x1e0] sm:$0xff]  ;;  %vm688_vm5 = vcmp.le.s32.totalorder %v434_v43, 14 }
  0xe0   : > { %6483 = vst [vmem:[#allocation16_spill] sm:$0xff] %v5759_v12  ;;  %v5761_v3 = vpop.f32.mrf.mxu3  ;;  %v5763_v47 = vpop.f32.mrf.mxu0  ;;  %v5786_v24 = vsel %vm1581_vm3, %v1294_v1, 0  ;;  %2910 = vmatpush.bf16.msra.mxu0 %v4694_v63  ;;  %v6486_v63 = vshrl.u32 %v5598_v23, 16  ;;  %vm1011_vm8 = vmpackc.low %vm688_vm5, %vm688_vm5  ;;  %v6489_v12 = vshll.u32 %v4966_v13, 16 }
  0xe1   : > { %v1948_v61 = vpop.f32.mrf.mxu1 }
  0xe2   : > { %v5766_v14 = vadd.f32 %v1948_v61, %v5628_v57  ;;  %v855_v57 = vsel %vm779_vm14, %v850_v25, %v854_v27  ;;  %v4169_v25 = vunpack.i.l.s16 %v1073_v42  ;;  %v858_v37 = vor.u32 %v6486_v63, %v854_v27  ;;  %v4716_v27 = vld [vmem:[%s6388_s1 + $0x90] sm:$0xff]  ;;  %v4693_v63 = vld [vmem:[%s6388_s1 + $0x1d8] sm:$0xff] }
  0xe3   : > { %v5792_v15 = vsel %vm1164_vm7, %v855_v57, 0  ;;  %3629 = vmatpush.bf16.msra.mxu3 %v4716_v27 }
  0xe4   : > { %vm1170_vm6 = vcmp.ne.s32.totalorder %v4169_v25, %v5005_v32  ;;  %2911 = vmatpush.bf16.msra.mxu0 %v4693_v63 }
  0xe5   : > { %vm1171_vm9 = vmpackc.low %vm1170_vm6, %vm5350_vm10 }
  0xe7   : > { %v5780_v31 = vpop.f32.mrf.mxu2 }
  0xe8   : > { %6485 = vst [vmem:[#allocation17_spill] sm:$0xff] %v5780_v31  ;;  %v5782_v36 = vpop.f32.mrf.mxu3  ;;  %v5784_v58 = vpop.f32.mrf.mxu0 }
  0xe9   : > { %v1951_v20 = vpop.f32.mrf.mxu1 }
  0xea   : > { %v5790_v41 = vadd.f32 %v1951_v20, %v5666_v50  ;;  %v4708_v50 = vld [vmem:[%s6388_s1 + $0x210] sm:$0xff] }
  0xeb   : > { %1990 = vmatmul.bf16.gmra.mxu1 %v5786_v24  ;;  %2448 = vmatmul.bf16.gmra.mxu0 %v5423_v60 }
  0xec   : > { %2230 = vmatmul.bf16.gmra.mxu2 %v5792_v15 }
  0xed   : > { %2711 = vmatmul.bf16.gmra.mxu3 %v5604_v34  ;;  %3390 = vmatpush.bf16.msra.mxu2 %v4708_v50  ;;  %v862_v50 = vrot.slane %v860_v59, 1  ;;  %v1043_v59 = vsel %vm1011_vm8, 65537, %v6469_v26 }
  0xef   : > { %v2191_v52 = vpop.f32.mrf.mxu2 }
  0xf0   : > { %v5805_v61 = vpop.f32.mrf.mxu3  ;;  %v5808_v1 = vadd.f32 %v2191_v52, %v5673_v40  ;;  %v5810_v60 = vpop.f32.mrf.mxu0  ;;  %v863_v40 = vsel %vm779_vm14, %v858_v37, %v862_v50 }
  0xf1   : > { %v1953_v57 = vpop.f32.mrf.mxu1  ;;  %v5838_v25 = vsel %vm1171_vm9, %v863_v40, 0 }
  0xf2   : > { %v5813_v20 = vadd.f32 %v1953_v57, %v5695_v55  ;;  %6487 = vst [vmem:[#allocation18_spill] sm:$0xff] %v5838_v25 }
  0xf7   : > { %v2193_v55 = vpop.f32.mrf.mxu2 }
  0xf8   : > { %v5824_v42 = vpop.f32.mrf.mxu3  ;;  %v5827_v52 = vadd.f32 %v2193_v55, %v5702_v53  ;;  %v5829_v57 = vpop.f32.mrf.mxu0  ;;  %v1075_v53 = vunpack.c.l.b16 %v1043_v59 }
  0xf9   : > { %v1956_v23 = vpop.f32.mrf.mxu1 }
  0xfa   : > { %v5836_v43 = vadd.f32 %v1956_v23, %v5737_v30  ;;  %v448_v30 = vand.u32 15, %v274_v39  ;;  %v4171_v55 = vunpack.i.l.s16 %v1075_v53  ;;  %v870_v39 = vrot.slane %v6489_v12, 1 }
  0xfb   : > { %1995 = vmatmul.bf16.gmra.mxu1 %v5064_v48  ;;  %2453 = vmatmul.bf16.gmra.mxu0 %v5455_v49 }
  0xfc   : > { %2235 = vmatmul.bf16.gmra.mxu2 %v5838_v25  ;;  %v6488_v25 = vshrl.u32 %v4980_v19, 16  ;;  %vm690_vm11 = vcmp.le.s32.totalorder %v448_v30, 14  ;;  %vm1177_vm12 = vcmp.ne.s32.totalorder %v4171_v55, %v5005_v32 }
  0xfd   : > { %2716 = vmatmul.bf16.gmra.mxu3 %v5668_v11  ;;  %vm1013_vm13 = vmpackc.low %vm690_vm11, %vm690_vm11 }
  0xfe   : > { %v866_v31 = vor.u32 %v6488_v25, %v862_v50  ;;  %vm1178_vm15 = vmpackc.low %vm1177_vm12, %vm5350_vm10  ;;  %v1045_v12 = vsel %vm1013_vm13, 65537, %v6469_v26 }
  0xff   : > { %v2196_v37 = vpop.f32.mrf.mxu2 }
 0x100   : > { %v5848_v40 = vpop.f32.mrf.mxu3  ;;  %v5851_v23 = vadd.f32 %v2196_v37, %v5743_v51  ;;  %v5853_v27 = vpop.f32.mrf.mxu0  ;;  %v871_v53 = vsel %vm779_vm14, %v866_v31, %v870_v39  ;;  %v276_v31 = vadd.s32 200, %v4923_v4  ;;  %v1077_v37 = vunpack.c.l.b16 %v1045_v12 }
 0x101   : > { %v1958_v49 = vpop.f32.mrf.mxu1  ;;  %v5877_v30 = vsel %vm1178_vm15, %v871_v53, 0 }
 0x102   : > { %v5856_v59 = vadd.f32 %v1958_v49, %v5763_v47  ;;  %6491 = vst [vmem:[#allocation20_spill] sm:$0xff] %v5877_v30  ;;  %v462_v55 = vand.u32 15, %v276_v31  ;;  %v4173_v53 = vunpack.i.l.s16 %v1077_v37  ;;  %v4699_v31 = vld [vmem:[%s6388_s1 + $0x48] sm:$0xff] }
 0x103   : > { %v4715_v37 = vld [vmem:[%s6388_s1 + $0x88] sm:$0xff]  ;;  %3152 = vmatpush.bf16.msra.mxu1 %v4699_v31 }
 0x104   : > { %vm692_vm0 = vcmp.le.s32.totalorder %v462_v55, 14  ;;  %vm1184_vm1 = vcmp.ne.s32.totalorder %v4173_v53, %v5005_v32  ;;  %3630 = vmatpush.bf16.msra.mxu3 %v4715_v37  ;;  %v278_v37 = vadd.s32 216, %v4923_v4 }
 0x105   : > { %vm1015_vm2 = vmpackc.low %vm692_vm0, %vm692_vm0 }
 0x106   : > { %vm1185_vm3 = vmpackc.low %vm1184_vm1, %vm5350_vm10  ;;  %v1047_v53 = vsel %vm1015_vm2, 65537, %v6469_v26  ;;  %vm923_vm2 = vcmask 1047552  }
 0x107   : > { %v2198_v51 = vpop.f32.mrf.mxu2 }
 0x108   : > { %v5866_v63 = vpop.f32.mrf.mxu3  ;;  %v5869_v47 = vadd.f32 %v2198_v51, %v5766_v14  ;;  %v5871_v19 = vpop.f32.mrf.mxu0  ;;  %v4707_v14 = vld [vmem:[%s6388_s1 + $0x208] sm:$0xff] }
 0x109   : > { %6490 = vst [vmem:[#allocation19_spill] sm:$0xff] %v5866_v63  ;;  %v1961_v50 = vpop.f32.mrf.mxu1  ;;  %3391 = vmatpush.bf16.msra.mxu2 %v4707_v14  ;;  %v4692_v63 = vld [vmem:[%s6388_s1 + $0x1d0] sm:$0xff] }
 0x10a   : > { %v5875_v25 = vadd.f32 %v1961_v50, %v5784_v58  ;;  %2912 = vmatpush.bf16.msra.mxu0 %v4692_v63 }
 0x10b   : > { %2000 = vmatmul.bf16.gmra.mxu1 %v5148_v21  ;;  %2458 = vmatmul.bf16.gmra.mxu0 %v5497_v16 }
 0x10c   : > { %2240 = vmatmul.bf16.gmra.mxu2 %v5877_v30 }
 0x10d   : > { %2721 = vmatmul.bf16.gmra.mxu3 %v5739_v7 }
 0x10f   : > { %v2201_v58 = vpop.f32.mrf.mxu2 }
 0x110   : > { %v5887_v49 = vpop.f32.mrf.mxu3  ;;  %v5890_v51 = vadd.f32 %v2201_v58, %v5790_v41  ;;  %v5892_v50 = vpop.f32.mrf.mxu0  ;;  %v6493_v41 = vshrl.u32 %v4966_v13, 16  ;;  %v6494_v58 = vshll.u32 %v5060_v46, 16 }
 0x111   : > { %6492 = vst [vmem:[#allocation21_spill] sm:$0xff] %v5887_v49  ;;  %v1963_v16 = vpop.f32.mrf.mxu1 }
 0x112   : > { %v5895_v12 = vadd.f32 %v1963_v16, %v5810_v60  ;;  %v874_v14 = vor.u32 %v6493_v41, %v870_v39  ;;  %v878_v49 = vrot.slane %v6494_v58, 1  ;;  %v1079_v41 = vunpack.c.l.b16 %v1047_v53 }
 0x113   : > { %v6498_v53 = vshrl.u32 %v5060_v46, 16  ;;  %v4698_v46 = vld [vmem:[%s6388_s1 + $0x40] sm:$0xff] }
 0x114   : > { %v879_v60 = vsel %vm779_vm14, %v874_v14, %v878_v49  ;;  %3153 = vmatpush.bf16.msra.mxu1 %v4698_v46 }
 0x115   : > { %v5925_v31 = vsel %vm1185_vm3, %v879_v60, 0  ;;  %vm924_vm3 = vmand %vm923_vm2, %vm779_vm14 }
 0x116   : > { %6496 = vst [vmem:[#allocation23_spill] sm:$0xff] %v5925_v31 }
 0x117   : > { %v2203_v16 = vpop.f32.mrf.mxu2 }
 0x118   : > { %v5914_v30 = vpop.f32.mrf.mxu3  ;;  %v5917_v13 = vadd.f32 %v2203_v16, %v5813_v20  ;;  %v5919_v39 = vpop.f32.mrf.mxu0  ;;  %v476_v20 = vand.u32 15, %v278_v37  ;;  %v4175_v16 = vunpack.i.l.s16 %v1079_v41  ;;  %v882_v37 = vor.u32 %v6498_v53, %v878_v49 }
 0x119   : > { %6495 = vst [vmem:[#allocation22_spill] sm:$0xff] %v5914_v30  ;;  %v1966_v55 = vpop.f32.mrf.mxu1 }
 0x11a   : > { %v5923_v63 = vadd.f32 %v1966_v55, %v5829_v57  ;;  %vm694_vm4 = vcmp.le.s32.totalorder %v476_v20, 14  ;;  %vm1191_vm7 = vcmp.ne.s32.totalorder %v4175_v16, %v5005_v32 }
 0x11b   : > { %2005 = vmatmul.bf16.gmra.mxu1 %v5242_v6  ;;  %2463 = vmatmul.bf16.gmra.mxu0 %v5533_v38  ;;  %v4691_v38 = vld [vmem:[%s6388_s1 + $0x1c8] sm:$0xff]  ;;  %vm1017_vm5 = vmpackc.low %vm694_vm4, %vm694_vm4 }
 0x11c   : > { %2245 = vmatmul.bf16.gmra.mxu2 %v5925_v31  ;;  %v6499_v31 = vshll.u32 %v5144_v9, 16  ;;  %2913 = vmatpush.bf16.msra.mxu0 %v4691_v38  ;;  %vm1192_vm6 = vmpackc.low %vm1191_vm7, %vm5350_vm10  ;;  %v280_v38 = vadd.s32 232, %v4923_v4 }
 0x11d   : > { %2726 = vmatmul.bf16.gmra.mxu3 %v5786_v24 }
 0x11f   : > { %v2206_v14 = vpop.f32.mrf.mxu2 }
 0x120   : > { %v5932_v58 = vpop.f32.mrf.mxu3  ;;  %v5935_v57 = vadd.f32 %v2206_v14, %v5836_v43  ;;  %v5937_v60 = vpop.f32.mrf.mxu0  ;;  %v1049_v14 = vsel %vm1017_vm5, 65537, %v6469_v26 }
 0x121   : > { %6497 = vst [vmem:[#allocation24_spill] sm:$0xff] %v5932_v58  ;;  %v1968_v55 = vpop.f32.mrf.mxu1  ;;  %v886_v58 = vrot.slane %v6499_v31, 1  ;;  %v1081_v53 = vunpack.c.l.b16 %v1049_v14 }
 0x122   : > { %v5940_v30 = vadd.f32 %v1968_v55, %v5853_v27 }
 0x123   : > { %v887_v43 = vsel %vm779_vm14, %v882_v37, %v886_v58 }
 0x124   : > { %v5967_v55 = vsel %vm1192_vm6, %v887_v43, 0 }
 0x127   : > { %v2208_v27 = vpop.f32.mrf.mxu2 }
 0x128   : > { %v5953_v41 = vpop.f32.mrf.mxu3  ;;  %v5959_v49 = vadd.f32 %v2208_v27, %v5856_v59  ;;  %v5961_v31 = vpop.f32.mrf.mxu0  ;;  %v4706_v59 = vld [vmem:[%s6388_s1 + $0x200] sm:$0xff]  ;;  %v4177_v27 = vunpack.i.l.s16 %v1081_v53 }
 0x129   : > { %6500 = vst [vmem:[#allocation25_spill] sm:$0xff] %v5953_v41  ;;  %v1971_v20 = vpop.f32.mrf.mxu1  ;;  %3392 = vmatpush.bf16.msra.mxu2 %v4706_v59  ;;  %v6503_v41 = vshll.u32 %v5236_v2, 16 }
 0x12a   : > { %v5965_v16 = vadd.f32 %v1971_v20, %v5871_v19  ;;  %v490_v19 = vand.u32 15, %v280_v38  ;;  %v6502_v38 = vshrl.u32 %v5144_v9, 16  ;;  %vm1198_vm9 = vcmp.ne.s32.totalorder %v4177_v27, %v5005_v32 }
 0x12b   : > { %2010 = vmatmul.bf16.gmra.mxu1 %v5323_v35  ;;  %2468 = vmatmul.bf16.gmra.mxu0 %v5604_v34  ;;  %vm1199_vm12 = vmpackc.low %vm1198_vm9, %vm5350_vm10 }
 0x12c   : > { %2250 = vmatmul.bf16.gmra.mxu2 %v5967_v55  ;;  %v890_v59 = vor.u32 %v6502_v38, %v886_v58  ;;  %vm696_vm8 = vcmp.le.s32.totalorder %v490_v19, 14 }
 0x12d   : > { %2731 = vmatmul.bf16.gmra.mxu3 %v5064_v48  ;;  %v4714_v48 = vld [vmem:[%s6388_s1 + $0x80] sm:$0xff]  ;;  %vm1019_vm11 = vmpackc.low %vm696_vm8, %vm696_vm8 }
 0x12e   : > { %3631 = vmatpush.bf16.msra.mxu3 %v4714_v48  ;;  %v282_v48 = vadd.s32 248, %v4923_v4 }
 0x12f   : > { %v2211_v37 = vpop.f32.mrf.mxu2 }
 0x130   : > { %v5977_v43 = vpop.f32.mrf.mxu3  ;;  %v5980_v46 = vadd.f32 %v2211_v37, %v5875_v25  ;;  %v5982_v20 = vpop.f32.mrf.mxu0 }
 0x131   : > { %6501 = vst [vmem:[#allocation26_spill] sm:$0xff] %v5977_v43  ;;  %v1973_v34 = vpop.f32.mrf.mxu1  ;;  %v894_v43 = vrot.slane %v6503_v41, 1  ;;  %v1051_v41 = vsel %vm1019_vm11, 65537, %v6469_v26 }
 0x132   : > { %v5985_v14 = vadd.f32 %v1973_v34, %v5892_v50  ;;  %v4690_v34 = vld [vmem:[%s6388_s1 + $0x1c0] sm:$0xff] }
 0x133   : > { %v895_v25 = vsel %vm779_vm14, %v890_v59, %v894_v43  ;;  %2914 = vmatpush.bf16.msra.mxu0 %v4690_v34 }
 0x134   : > { %v6007_v27 = vsel %vm1199_vm12, %v895_v25, 0 }
 0x135   : > { %6505 = vst [vmem:[#allocation28_spill] sm:$0xff] %v6007_v27 }
 0x137   : > { %v2213_v50 = vpop.f32.mrf.mxu2 }
 0x138   : > { %v5998_v53 = vpop.f32.mrf.mxu3  ;;  %v6001_v37 = vadd.f32 %v2213_v50, %v5895_v12  ;;  %v1768_v9 = vpop.f32.mrf.mxu0  ;;  %v1083_v12 = vunpack.c.l.b16 %v1051_v41 }
 0x139   : > { %6504 = vst [vmem:[#allocation27_spill] sm:$0xff] %v5998_v53  ;;  %v1976_v58 = vpop.f32.mrf.mxu1  ;;  %v6507_v53 = vshll.u32 %v5317_v62, 16 }
 0x13a   : > { %v6005_v19 = vadd.f32 %v1976_v58, %v5919_v39  ;;  %v504_v39 = vand.u32 15, %v282_v48  ;;  %v4179_v25 = vunpack.i.l.s16 %v1083_v12 }
 0x13b   : > { %2015 = vmatmul.bf16.gmra.mxu1 %v5392_v5  ;;  %2473 = vmatmul.bf16.gmra.mxu0 %v5668_v11  ;;  %v6506_v11 = vshrl.u32 %v5236_v2, 16 }
 0x13c   : > { %2255 = vmatmul.bf16.gmra.mxu2 %v6007_v27  ;;  %v902_v27 = vrot.slane %v6507_v53, 1  ;;  %vm698_vm13 = vcmp.le.s32.totalorder %v504_v39, 14  ;;  %vm1205_vm15 = vcmp.ne.s32.totalorder %v4179_v25, %v5005_v32 }
 0x13d   : > { %2736 = vmatmul.bf16.gmra.mxu3 %v5148_v21  ;;  %v898_v41 = vor.u32 %v6506_v11, %v894_v43  ;;  %vm1021_vm0 = vmpackc.low %vm698_vm13, %vm698_vm13 }
 0x13e   : > { %vm1206_vm1 = vmpackc.low %vm1205_vm15, %vm5350_vm10  ;;  %v1053_v53 = vsel %vm1021_vm0, 65537, %v6469_v26 }
 0x13f   : > { %v2216_v38 = vpop.f32.mrf.mxu2  ;;  %v903_v21 = vsel %vm779_vm14, %v898_v41, %v902_v27  ;;  %v1085_v25 = vunpack.c.l.b16 %v1053_v53 }
 0x140   : > { %v6017_v59 = vpop.f32.mrf.mxu3  ;;  %v6020_v50 = vadd.f32 %v2216_v38, %v5923_v63  ;;  %v1770_v58 = vpop.f32.mrf.mxu0  ;;  %v6041_v39 = vsel %vm1206_vm1, %v903_v21, 0  ;;  %v4852_v38 = vld [vmem:[%s4951_s6] sm:$0xff]  ;;  %v6508_v21 = vshrl.u32 %v5317_v62, 16 }
 0x141   : > { %v1978_v4 = vpop.f32.mrf.mxu1  ;;  %v4181_v26 = vunpack.i.l.s16 %v1085_v25 }
 0x142   : > { %v2036_v5 = vadd.f32 %v1978_v4, %v5937_v60 }
 0x143   : > { %vm1212_vm4 = vcmp.ne.s32.totalorder %v4181_v26, %v5005_v32  ;;  %v4853_v32 = vld [vmem:[%s4951_s6 + $0x8] sm:$0xff] }
 0x144   : > { %vm1213_vm7 = vmpackc.low %vm1212_vm4, %vm5350_vm10 }
 0x147   : > { %v2218_v63 = vpop.f32.mrf.mxu2 }
 0x148   : > { %v6031_v34 = vpop.f32.mrf.mxu3  ;;  %v6034_v60 = vadd.f32 %v2218_v63, %v5940_v30  ;;  %v2439_v43 = vpop.f32.mrf.mxu0  ;;  %v906_v63 = vor.u32 %v6508_v21, %v902_v27 }
 0x149   : > { %v1981_v2 = vpop.f32.mrf.mxu1  ;;  %v6039_v12 = vadd.f32 %v2439_v43, %v5808_v1 }
 0x14a   : > { %v2037_v48 = vadd.f32 %v1981_v2, %v5961_v31 }
 0x14b   : > { %2478 = vmatmul.bf16.gmra.mxu0 %v5739_v7  ;;  %3154 = vmatmul.bf16.vlgmr.msra.gmra.mxu1 %v4852_v38 }
 0x14c   : > { %2260 = vmatmul.bf16.gmra.mxu2 %v6041_v39 }
 0x14d   : > { %2741 = vmatmul.bf16.gmra.mxu3 %v5242_v6  ;;  %v925_v6 = vsel %vm924_vm3, %v906_v63, 0  ;;  %v4854_v63 = vld [vmem:[%s4951_s6 + $0x10] sm:$0xff] }
 0x14e   : > { %v6070_v27 = vsel %vm1213_vm7, %v925_v6, 0 }
 0x14f   : > { %v2221_v30 = vpop.f32.mrf.mxu2 }
 0x150   : > { %v6047_v4 = vpop.f32.mrf.mxu3  ;;  %v6050_v31 = vadd.f32 %v2221_v30, %v5965_v16  ;;  %v2441_v11 = vpop.f32.mrf.mxu0 }
 0x151   : > { %v1983_v1 = vpop.f32.mrf.mxu1  ;;  %v6054_v7 = vadd.f32 %v2441_v11, %v5827_v52 }
 0x152   : > { %v2038_v41 = vadd.f32 %v1983_v1, %v5982_v20 }
 0x157   : > { %v2223_v16 = vpop.f32.mrf.mxu2 }
 0x158   : > { %v6062_v2 = vpop.f32.mrf.mxu3  ;;  %v6065_v20 = vadd.f32 %v2223_v16, %v5985_v14  ;;  %v2444_v52 = vpop.f32.mrf.mxu0 }
 0x159   : > { %v1986_v43 = vpop.f32.mrf.mxu1  ;;  %v6068_v62 = vadd.f32 %v2444_v52, %v5851_v23 }
 0x15a   : > { %v2039_v53 = vadd.f32 %v1986_v43, %v1768_v9 }
 0x15b   : > { %2483 = vmatmul.bf16.gmra.mxu0 %v5786_v24  ;;  %3159 = vmatmul.bf16.gmra.mxu1 %v4853_v32 }
 0x15c   : > { %2265 = vmatmul.bf16.gmra.mxu2 %v6070_v27 }
 0x15d   : > { %2746 = vmatmul.bf16.gmra.mxu3 %v5323_v35 }
 0x15f   : > { %v2226_v54 = vpop.f32.mrf.mxu2 }
 0x160   : > { %v6076_v14 = vpop.f32.mrf.mxu3  ;;  %v6079_v38 = vadd.f32 %v2226_v54, %v6005_v19  ;;  %v2446_v23 = vpop.f32.mrf.mxu0 }
 0x161   : > { %v1988_v9 = vpop.f32.mrf.mxu1  ;;  %v6082_v30 = vadd.f32 %v2446_v23, %v5869_v47 }
 0x162   : > { %v2040_v25 = vadd.f32 %v1988_v9, %v1770_v58 }
 0x167   : > { %v2228_v24 = vpop.f32.mrf.mxu2 }
 0x168   : > { %v6084_v26 = vpop.f32.mrf.mxu3  ;;  %v6086_v1 = vadd.f32 %v2228_v24, %v2036_v5  ;;  %v2449_v21 = vpop.f32.mrf.mxu0 }
 0x169   : > { %v1991_v11 = vpop.f32.mrf.mxu1  ;;  %v6089_v35 = vadd.f32 %v2449_v21, %v5890_v51 }
 0x16b   : > { %2915 = vmatmul.bf16.vlgmr.msra.gmra.mxu0 %v4853_v32  ;;  %3164 = vmatmul.bf16.gmra.mxu1 %v4854_v63 }
 0x16c   : > { %3393 = vmatmul.bf16.vlgmr.msra.gmra.mxu2 %v5427_v28 }
 0x16d   : > { %3632 = vmatmul.bf16.vlgmr.msra.gmra.mxu3 %v5390_v0  ;;  %v4855_v0 = vld [vmem:[%s4951_s6 + $0x18] sm:$0xff] }
 0x16f   : > { %v2231_v47 = vpop.f32.mrf.mxu2 }
 0x170   : > { %v6094_v19 = vpop.f32.mrf.mxu3  ;;  %v6096_v58 = vadd.f32 %v2231_v47, %v2037_v48  ;;  %v2451_v6 = vpop.f32.mrf.mxu0 }
 0x171   : > { %6509 = vst [vmem:[#allocation29_spill] sm:$0xff] %v6094_v19  ;;  %v1993_v5 = vpop.f32.mrf.mxu1  ;;  %v6099_v16 = vadd.f32 %v2451_v6, %v5917_v13 }
 0x177   : > { %v2233_v51 = vpop.f32.mrf.mxu2 }
 0x178   : > { %v6101_v43 = vpop.f32.mrf.mxu3  ;;  %v6103_v52 = vadd.f32 %v2233_v51, %v2038_v41  ;;  %v2454_v54 = vpop.f32.mrf.mxu0 }
 0x179   : > { %6510 = vst [vmem:[#allocation30_spill] sm:$0xff] %v6101_v43  ;;  %v1996_v32 = vpop.f32.mrf.mxu1  ;;  %v6106_v9 = vadd.f32 %v2454_v54, %v5935_v57 }
 0x17b   : > { %2920 = vmatmul.bf16.gmra.mxu0 %v4854_v63  ;;  %3169 = vmatmul.bf16.gmra.mxu1 %v4855_v0 }
 0x17c   : > { %3398 = vmatmul.bf16.gmra.mxu2 %v5459_v45 }
 0x17d   : > { %3637 = vmatmul.bf16.gmra.mxu3 %v5427_v28  ;;  %v4856_v28 = vld [vmem:[%s4951_s6 + $0x20] sm:$0xff] }
 0x17f   : > { %v2236_v13 = vpop.f32.mrf.mxu2 }
 0x180   : > { %v6111_v48 = vpop.f32.mrf.mxu3  ;;  %v6113_v23 = vadd.f32 %v2236_v13, %v2039_v53  ;;  %v2456_v24 = vpop.f32.mrf.mxu0 }
 0x181   : > { %6511 = vst [vmem:[#allocation31_spill] sm:$0xff] %v6111_v48  ;;  %v1998_v41 = vpop.f32.mrf.mxu1  ;;  %v6116_v21 = vadd.f32 %v2456_v24, %v5959_v49  ;;  %v2041_v49 = vadd.f32 %v1991_v11, %v5531_v33 }
 0x187   : > { %v2238_v57 = vpop.f32.mrf.mxu2 }
 0x188   : > { %v6118_v47 = vpop.f32.mrf.mxu3  ;;  %v6120_v63 = vadd.f32 %v2238_v57, %v2040_v25  ;;  %v2459_v51 = vpop.f32.mrf.mxu0 }
 0x189   : > { %6512 = vst [vmem:[#allocation32_spill] sm:$0xff] %v6118_v47  ;;  %v2001_v6 = vpop.f32.mrf.mxu1  ;;  %v6123_v54 = vadd.f32 %v2459_v51, %v5980_v46  ;;  %v2042_v51 = vadd.f32 %v1993_v5, %v5562_v8  ;;  %v2043_v8 = vadd.f32 %v1996_v32, %v5602_v29 }
 0x18b   : > { %2925 = vmatmul.bf16.gmra.mxu0 %v4855_v0  ;;  %3174 = vmatmul.bf16.gmra.mxu1 %v4856_v28 }
 0x18c   : > { %3403 = vmatmul.bf16.gmra.mxu2 %v5501_v22 }
 0x18d   : > { %3642 = vmatmul.bf16.gmra.mxu3 %v5459_v45 }
 0x18f   : > { %v2241_v53 = vpop.f32.mrf.mxu2 }
 0x190   : > { %v2722_v13 = vpop.f32.mrf.mxu3  ;;  %v2291_v24 = vadd.f32 %v2241_v53, %v2041_v49  ;;  %v2461_v57 = vpop.f32.mrf.mxu0  ;;  %v4857_v53 = vld [vmem:[%s4951_s6 + $0x28] sm:$0xff] }
 0x191   : > { %v2003_v25 = vpop.f32.mrf.mxu1  ;;  %v6130_v47 = vadd.f32 %v2461_v57, %v6001_v37 }
 0x192   : > { %v2534_v46 = vadd.f32 %v5558_v10, %v2291_v24 }
 0x194   : > { %v6133_v0 = vadd.f32 %v2722_v13, %v2534_v46 }
 0x197   : > { %v2243_v48 = vpop.f32.mrf.mxu2 }
 0x198   : > { %v2724_v43 = vpop.f32.mrf.mxu3  ;;  %v2292_v45 = vadd.f32 %v2243_v48, %v2042_v51  ;;  %v2464_v33 = vpop.f32.mrf.mxu0 }
 0x199   : > { %v2006_v19 = vpop.f32.mrf.mxu1  ;;  %v6137_v11 = vadd.f32 %v2464_v33, %v6020_v50  ;;  %v6514_v33 = vld [vmem:[#allocation9_spill] sm:$0xff] }
 0x19a   : > { %v2535_v49 = vadd.f32 %v5595_v44, %v2292_v45 }
 0x19b   : > { %2930 = vmatmul.bf16.gmra.mxu0 %v4856_v28  ;;  %3179 = vmatmul.bf16.gmra.mxu1 %v4857_v53 }
 0x19c   : > { %v6141_v37 = vadd.f32 %v2724_v43, %v2535_v49  ;;  %3408 = vmatmul.bf16.gmra.mxu2 %v5537_v56  ;;  %v6513_v43 = vld [vmem:[#allocation7_spill] sm:$0xff] }
 0x19d   : > { %3647 = vmatmul.bf16.gmra.mxu3 %v5501_v22  ;;  %v2044_v57 = vadd.f32 %v1998_v41, %v6513_v43  ;;  %v6516_v41 = vld [vmem:[#allocation3_spill] sm:$0xff] }
 0x19f   : > { %v2246_v10 = vpop.f32.mrf.mxu2 }
 0x1a0   : > { %v2727_v5 = vpop.f32.mrf.mxu3  ;;  %v2293_v48 = vadd.f32 %v2246_v10, %v2043_v8  ;;  %v2466_v50 = vpop.f32.mrf.mxu0  ;;  %v4858_v8 = vld [vmem:[%s4951_s6 + $0x30] sm:$0xff]  ;;  %v2045_v10 = vadd.f32 %v2001_v6, %v6516_v41 }
 0x1a1   : > { %v2008_v13 = vpop.f32.mrf.mxu1  ;;  %v6147_v24 = vadd.f32 %v2466_v50, %v6034_v60  ;;  %v6518_v41 = vld [vmem:[#allocation13_spill] sm:$0xff] }
 0x1a2   : > { %v2536_v44 = vadd.f32 %v5626_v18, %v2293_v48  ;;  %v6515_v18 = vld [vmem:[#allocation5_spill] sm:$0xff] }
 0x1a4   : > { %v6150_v28 = vadd.f32 %v2727_v5, %v2536_v44 }
 0x1a7   : > { %v2248_v46 = vpop.f32.mrf.mxu2 }
 0x1a8   : > { %v2729_v51 = vpop.f32.mrf.mxu3  ;;  %v2294_v22 = vadd.f32 %v2248_v46, %v2044_v57  ;;  %v2469_v29 = vpop.f32.mrf.mxu0  ;;  %v6517_v46 = vld [vmem:[#allocation4_spill] sm:$0xff] }
 0x1a9   : > { %v2011_v45 = vpop.f32.mrf.mxu1  ;;  %v6154_v32 = vadd.f32 %v2469_v29, %v6050_v31 }
 0x1aa   : > { %v2537_v49 = vadd.f32 %v6514_v33, %v2294_v22 }
 0x1ab   : > { %2935 = vmatmul.bf16.gmra.mxu0 %v4857_v53  ;;  %3184 = vmatmul.bf16.gmra.mxu1 %v4858_v8 }
 0x1ac   : > { %v6158_v60 = vadd.f32 %v2729_v51, %v2537_v49  ;;  %3413 = vmatmul.bf16.gmra.mxu2 %v6515_v18  ;;  %v2046_v51 = vadd.f32 %v2003_v25, %v6517_v46  ;;  %v6520_v25 = vld [vmem:[#allocation6_spill] sm:$0xff] }
 0x1ad   : > { %3652 = vmatmul.bf16.gmra.mxu3 %v5537_v56 }
 0x1af   : > { %v2251_v5 = vpop.f32.mrf.mxu2 }
 0x1b0   : > { %v2732_v48 = vpop.f32.mrf.mxu3  ;;  %v2295_v50 = vadd.f32 %v2251_v5, %v2045_v10  ;;  %v2471_v31 = vpop.f32.mrf.mxu0  ;;  %v4859_v5 = vld [vmem:[%s4951_s6 + $0x38] sm:$0xff] }
 0x1b1   : > { %v2013_v44 = vpop.f32.mrf.mxu1  ;;  %v6164_v43 = vadd.f32 %v2471_v31, %v6065_v20 }
 0x1b2   : > { %v2538_v53 = vadd.f32 %v5693_v17, %v2295_v50  ;;  %v6519_v17 = vld [vmem:[#allocation10_spill] sm:$0xff] }
 0x1b4   : > { %v6167_v57 = vadd.f32 %v2732_v48, %v2538_v53  ;;  %v2047_v48 = vadd.f32 %v2006_v19, %v6520_v25 }
 0x1b7   : > { %v2253_v22 = vpop.f32.mrf.mxu2 }
 0x1b8   : > { %v2734_v29 = vpop.f32.mrf.mxu3  ;;  %v2296_v56 = vadd.f32 %v2253_v22, %v2046_v51  ;;  %v2474_v6 = vpop.f32.mrf.mxu0 }
 0x1b9   : > { %v2016_v33 = vpop.f32.mrf.mxu1  ;;  %v6171_v49 = vadd.f32 %v2474_v6, %v6079_v38 }
 0x1ba   : > { %v2539_v10 = vadd.f32 %v6518_v41, %v2296_v56 }
 0x1bb   : > { %2940 = vmatmul.bf16.gmra.mxu0 %v4858_v8  ;;  %3189 = vmatmul.bf16.gmra.mxu1 %v4859_v5 }
 0x1bc   : > { %v6175_v20 = vadd.f32 %v2734_v29, %v2539_v10  ;;  %3418 = vmatmul.bf16.gmra.mxu2 %v6519_v17  ;;  %v6521_v29 = vld [vmem:[#allocation8_spill] sm:$0xff] }
 0x1bd   : > { %3657 = vmatmul.bf16.gmra.mxu3 %v6515_v18  ;;  %v2048_v56 = vadd.f32 %v2008_v13, %v6521_v29  ;;  %v6524_v13 = vld [vmem:[#allocation11_spill] sm:$0xff] }
 0x1bf   : > { %v2256_v50 = vpop.f32.mrf.mxu2 }
 0x1c0   : > { %v2737_v31 = vpop.f32.mrf.mxu3  ;;  %v2297_v53 = vadd.f32 %v2256_v50, %v2047_v48  ;;  %v2476_v38 = vpop.f32.mrf.mxu0 }
 0x1c1   : > { %v2018_v46 = vpop.f32.mrf.mxu1  ;;  %v6181_v51 = vadd.f32 %v2476_v38, %v6086_v1  ;;  %v4860_v1 = vld [vmem:[%s4951_s6 + $0x40] sm:$0xff] }
 0x1c2   : > { %v2540_v8 = vadd.f32 %v5761_v3, %v2297_v53  ;;  %v6523_v3 = vld [vmem:[#allocation14_spill] sm:$0xff] }
 0x1c4   : > { %v6184_v22 = vadd.f32 %v2737_v31, %v2540_v8  ;;  %v2049_v31 = vadd.f32 %v2011_v45, %v6524_v13 }
 0x1c7   : > { %v2258_v6 = vpop.f32.mrf.mxu2 }
 0x1c8   : > { %v2739_v41 = vpop.f32.mrf.mxu3  ;;  %v2298_v18 = vadd.f32 %v2258_v6, %v2048_v56  ;;  %v2479_v10 = vpop.f32.mrf.mxu0  ;;  %v6526_v6 = vld [vmem:[#allocation12_spill] sm:$0xff] }
 0x1c9   : > { %v6187_v19 = vpop.f32.mrf.mxu1  ;;  %v6190_v25 = vadd.f32 %v2479_v10, %v6096_v58 }
 0x1ca   : > { %v2541_v48 = vadd.f32 %v5782_v36, %v2298_v18 }
 0x1cb   : > { %2945 = vmatmul.bf16.gmra.mxu0 %v4859_v5  ;;  %3194 = vmatmul.bf16.gmra.mxu1 %v4860_v1 }
 0x1cc   : > { %v6194_v50 = vadd.f32 %v2739_v41, %v2541_v48  ;;  %3423 = vmatmul.bf16.gmra.mxu2 %v6523_v3  ;;  %v2050_v41 = vadd.f32 %v2013_v44, %v6526_v6 }
 0x1cd   : > { %3662 = vmatmul.bf16.gmra.mxu3 %v6519_v17 }
 0x1ce   : > { %6522 = vst [vmem:[#allocation7_spill] sm:$0xff] %v6194_v50 }
 0x1cf   : > { %v2261_v53 = vpop.f32.mrf.mxu2 }
 0x1d0   : > { %v2742_v38 = vpop.f32.mrf.mxu3  ;;  %v2299_v8 = vadd.f32 %v2261_v53, %v2049_v31  ;;  %v2481_v29 = vpop.f32.mrf.mxu0 }
 0x1d1   : > { %v6199_v58 = vpop.f32.mrf.mxu1  ;;  %v6202_v36 = vadd.f32 %v2481_v29, %v6103_v52  ;;  %v4861_v52 = vld [vmem:[%s4951_s6 + $0x48] sm:$0xff] }
 0x1d2   : > { %v2542_v5 = vadd.f32 %v5805_v61, %v2299_v8  ;;  %v6528_v61 = vld [vmem:[#allocation16_spill] sm:$0xff] }
 0x1d3   : > { %v2051_v44 = vadd.f32 %v2016_v33, %v6528_v61  ;;  %v6533_v61 = vld [vmem:[#allocation18_spill] sm:$0xff] }
 0x1d4   : > { %v6205_v56 = vadd.f32 %v2742_v38, %v2542_v5 }
 0x1d6   : > { %6525 = vst [vmem:[#allocation9_spill] sm:$0xff] %v6205_v56 }
 0x1d7   : > { %v2263_v18 = vpop.f32.mrf.mxu2 }
 0x1d8   : > { %v2744_v17 = vpop.f32.mrf.mxu3  ;;  %v2300_v10 = vadd.f32 %v2263_v18, %v2050_v41  ;;  %v2484_v45 = vpop.f32.mrf.mxu0 }
 0x1d9   : > { %v6208_v48 = vpop.f32.mrf.mxu1  ;;  %v6211_v13 = vadd.f32 %v2484_v45, %v6113_v23 }
 0x1da   : > { %v2543_v31 = vadd.f32 %v5824_v42, %v2300_v10 }
 0x1db   : > { %2950 = vmatmul.bf16.gmra.mxu0 %v4860_v1  ;;  %3199 = vmatmul.bf16.gmra.mxu1 %v4861_v52  ;;  %v6530_v1 = vld [vmem:[#allocation17_spill] sm:$0xff] }
 0x1dc   : > { %v6215_v53 = vadd.f32 %v2744_v17, %v2543_v31  ;;  %3428 = vmatmul.bf16.gmra.mxu2 %v5792_v15  ;;  %v2052_v41 = vadd.f32 %v2018_v46, %v6530_v1  ;;  %v6532_v31 = vld [vmem:[#allocation15_spill] sm:$0xff] }
 0x1dd   : > { %3667 = vmatmul.bf16.gmra.mxu3 %v6523_v3 }
 0x1de   : > { %6527 = vst [vmem:[#allocation5_spill] sm:$0xff] %v6215_v53 }
 0x1df   : > { %v2266_v38 = vpop.f32.mrf.mxu2 }
 0x1e0   : > { %v2747_v8 = vpop.f32.mrf.mxu3  ;;  %v2301_v29 = vadd.f32 %v2266_v38, %v2051_v44  ;;  %v2486_v5 = vpop.f32.mrf.mxu0 }
 0x1e1   : > { %v6220_v6 = vpop.f32.mrf.mxu1  ;;  %v6223_v23 = vadd.f32 %v2486_v5, %v6120_v63 }
 0x1e2   : > { %v6225_v42 = vadd.f32 %v2747_v8, %v2301_v29 }
 0x1e4   : > { %6529 = vst [vmem:[#allocation3_spill] sm:$0xff] %v6225_v42  ;;  %v6535_v42 = vld [vmem:[#allocation19_spill] sm:$0xff] }
 0x1e7   : > { %v2268_v18 = vpop.f32.mrf.mxu2 }
 0x1e8   : > { %v2749_v17 = vpop.f32.mrf.mxu3  ;;  %v2302_v10 = vadd.f32 %v2268_v18, %v2052_v41  ;;  %v2916_v45 = vpop.f32.mrf.mxu0  ;;  %v2752_v18 = vadd.f32 %v5848_v40, %v6068_v62  ;;  %v6534_v62 = vld [vmem:[#allocation20_spill] sm:$0xff] }
 0x1e9   : > { %v6228_v3 = vpop.f32.mrf.mxu1  ;;  %v2991_v8 = vadd.f32 %v2916_v45, %v6039_v12 }
 0x1ea   : > { %v6230_v33 = vadd.f32 %v2749_v17, %v2302_v10 }
 0x1eb   : > { %2955 = vmatmul.bf16.gmra.mxu0 %v4861_v52  ;;  %3204 = vmatmul.bf16.gmra.mxu1 %v6532_v31 }
 0x1ec   : > { %6531 = vst [vmem:[#allocation4_spill] sm:$0xff] %v6230_v33  ;;  %3433 = vmatmul.bf16.gmra.mxu2 %v6533_v61 }
 0x1ed   : > { %3672 = vmatmul.bf16.gmra.mxu3 %v5792_v15 }
 0x1ef   : > { %v3394_v63 = vpop.f32.mrf.mxu2 }
 0x1f0   : > { %v3633_v44 = vpop.f32.mrf.mxu3  ;;  %v2918_v38 = vpop.f32.mrf.mxu0  ;;  %v3469_v29 = vadd.f32 %v3394_v63, %v2991_v8 }
 0x1f1   : > { %v6235_v46 = vpop.f32.mrf.mxu1  ;;  %v2992_v5 = vadd.f32 %v2918_v38, %v6054_v7  ;;  %v4862_v38 = vld [vmem:[%s4951_s6 + $0x58] sm:$0xff] }
 0x1f2   : > { %v3902_v15 = vmul.f32 %v3469_v29, %v3469_v29 }
 0x1f7   : > { %v3396_v1 = vpop.f32.mrf.mxu2 }
 0x1f8   : > { %v3635_v52 = vpop.f32.mrf.mxu3  ;;  %v3470_v41 = vadd.f32 %v3396_v1, %v2992_v5  ;;  %v2921_v17 = vpop.f32.mrf.mxu0 }
 0x1f9   : > { %v6241_v10 = vpop.f32.mrf.mxu1  ;;  %v2993_v63 = vadd.f32 %v2921_v17, %v2752_v18 }
 0x1fa   : > { %v4725_v12 = vpack.c.bf16 %v3470_v41, %v3469_v29  ;;  %v3864_v45 = vadd.f32 %v3470_v41, %v3469_v29  ;;  %v3903_v7 = vmul.f32 %v3470_v41, %v3470_v41  ;;  %v2753_v29 = vadd.f32 %v6535_v42, %v6082_v30 }
 0x1fb   : > { %2960 = vmatmul.bf16.gmra.mxu0 %v6532_v31  ;;  %3209 = vmatmul.bf16.gmra.mxu1 %v4862_v38  ;;  %v3230_v8 = vadd.f32 %v6187_v19, %v2993_v63 }
 0x1fc   : > { %4726 = vst [vmem:[%s6248_s9] sm:$0xff] %v4725_v12   ;;  %v3934_v40 = vadd.f32 %v3903_v7, %v3902_v15  ;;  %3438 = vmatmul.bf16.gmra.mxu2 %v6534_v62 }
 0x1fd   : > { %3677 = vmatmul.bf16.gmra.mxu3 %v6533_v61 }
 0x1ff   : > { %v3399_v5 = vpop.f32.mrf.mxu2 }
 0x200   : > { %v3638_v1 = vpop.f32.mrf.mxu3  ;;  %v3471_v33 = vadd.f32 %v3399_v5, %v3230_v8  ;;  %v2923_v41 = vpop.f32.mrf.mxu0  ;;  %v6536_v8 = vld [vmem:[#allocation21_spill] sm:$0xff] }
 0x201   : > { %v6258_v18 = vpop.f32.mrf.mxu1  ;;  %v2994_v17 = vadd.f32 %v2923_v41, %v2753_v29  ;;  %v2754_v5 = vadd.f32 %v6536_v8, %v6089_v35  ;;  %v6537_v29 = vld [vmem:[#allocation23_spill] sm:$0xff] }
 0x202   : > { %v3708_v31 = vadd.f32 %v3633_v44, %v3471_v33  ;;  %v4863_v33 = vld [vmem:[%s4951_s6 + $0x60] sm:$0xff] }
 0x203   : > { %v3231_v53 = vadd.f32 %v6199_v58, %v2994_v17 }
 0x204   : > { %v3865_v12 = vadd.f32 %v3864_v45, %v3708_v31  ;;  %v3904_v15 = vmul.f32 %v3708_v31, %v3708_v31 }
 0x206   : > { %v3935_v7 = vadd.f32 %v3934_v40, %v3904_v15 }
 0x207   : > { %v3401_v61 = vpop.f32.mrf.mxu2 }
 0x208   : > { %v3640_v19 = vpop.f32.mrf.mxu3  ;;  %v3472_v63 = vadd.f32 %v3401_v61, %v3231_v53  ;;  %v2926_v56 = vpop.f32.mrf.mxu0 }
 0x209   : > { %v6263_v30 = vpop.f32.mrf.mxu1  ;;  %v2995_v50 = vadd.f32 %v2926_v56, %v2754_v5  ;;  %v6539_v5 = vld [vmem:[#allocation24_spill] sm:$0xff] }
 0x20a   : > { %v3709_v42 = vadd.f32 %v3635_v52, %v3472_v63  ;;  %v6538_v52 = vld [vmem:[#allocation22_spill] sm:$0xff] }
 0x20b   : > { %2965 = vmatmul.bf16.gmra.mxu0 %v4862_v38  ;;  %3214 = vmatmul.bf16.gmra.mxu1 %v4863_v33  ;;  %v3232_v53 = vadd.f32 %v6208_v48, %v2995_v50  ;;  %v2755_v56 = vadd.f32 %v6538_v52, %v6099_v16 }
 0x20c   : > { %v4730_v44 = vpack.c.bf16 %v3709_v42, %v3708_v31  ;;  %v3866_v45 = vadd.f32 %v3865_v12, %v3709_v42  ;;  %v3905_v40 = vmul.f32 %v3709_v42, %v3709_v42  ;;  %3443 = vmatmul.bf16.gmra.mxu2 %v6537_v29  ;;  %v2756_v42 = vadd.f32 %v6539_v5, %v6106_v9  ;;  %v6541_v5 = vld [vmem:[#allocation26_spill] sm:$0xff] }
 0x20d   : > { %3682 = vmatmul.bf16.gmra.mxu3 %v6534_v62 }
 0x20e   : > { %4802 = vst [vmem:[%s6248_s9 + $0x8] sm:$0xff] %v4730_v44   ;;  %v3936_v58 = vadd.f32 %v3935_v7, %v3905_v40 }
 0x20f   : > { %v3404_v35 = vpop.f32.mrf.mxu2 }
 0x210   : > { %v3643_v41 = vpop.f32.mrf.mxu3  ;;  %v3473_v17 = vadd.f32 %v3404_v35, %v3232_v53  ;;  %v2928_v38 = vpop.f32.mrf.mxu0 }
 0x211   : > { %v6272_v15 = vpop.f32.mrf.mxu1  ;;  %v2996_v12 = vadd.f32 %v2928_v38, %v2755_v56 }
 0x212   : > { %v3710_v31 = vadd.f32 %v3638_v1, %v3473_v17  ;;  %v4864_v1 = vld [vmem:[%s4951_s6 + $0x68] sm:$0xff] }
 0x213   : > { %v3233_v62 = vadd.f32 %v6220_v6, %v2996_v12 }
 0x214   : > { %v3867_v61 = vadd.f32 %v3866_v45, %v3710_v31  ;;  %v3906_v63 = vmul.f32 %v3710_v31, %v3710_v31 }
 0x216   : > { %v3937_v8 = vadd.f32 %v3936_v58, %v3906_v63 }
 0x217   : > { %v3406_v7 = vpop.f32.mrf.mxu2 }
 0x218   : > { %v3645_v50 = vpop.f32.mrf.mxu3  ;;  %v3474_v48 = vadd.f32 %v3406_v7, %v3233_v62  ;;  %v2931_v44 = vpop.f32.mrf.mxu0 }
 0x219   : > { %v6277_v16 = vpop.f32.mrf.mxu1  ;;  %v2997_v53 = vadd.f32 %v2931_v44, %v2756_v42  ;;  %v2758_v42 = vadd.f32 %v6541_v5, %v6123_v54 }
 0x21a   : > { %v3711_v40 = vadd.f32 %v3640_v19, %v3474_v48  ;;  %v6540_v19 = vld [vmem:[#allocation25_spill] sm:$0xff] }
 0x21b   : > { %2970 = vmatmul.bf16.gmra.mxu0 %v4863_v33  ;;  %3219 = vmatmul.bf16.gmra.mxu1 %v4864_v1  ;;  %v3234_v17 = vadd.f32 %v6228_v3, %v2997_v53  ;;  %v2757_v38 = vadd.f32 %v6540_v19, %v6116_v21 }
 0x21c   : > { %v4735_v45 = vpack.c.bf16 %v3711_v40, %v3710_v31  ;;  %v3868_v35 = vadd.f32 %v3867_v61, %v3711_v40  ;;  %v3907_v58 = vmul.f32 %v3711_v40, %v3711_v40  ;;  %3448 = vmatmul.bf16.gmra.mxu2 %v5967_v55 }
 0x21d   : > { %3687 = vmatmul.bf16.gmra.mxu3 %v6537_v29 }
 0x21e   : > { %4803 = vst [vmem:[%s6248_s9 + $0x10] sm:$0xff] %v4735_v45   ;;  %v3938_v6 = vadd.f32 %v3937_v8, %v3907_v58 }
 0x21f   : > { %v3409_v9 = vpop.f32.mrf.mxu2 }
 0x220   : > { %v3648_v52 = vpop.f32.mrf.mxu3  ;;  %v3475_v56 = vadd.f32 %v3409_v9, %v3234_v17  ;;  %v2933_v33 = vpop.f32.mrf.mxu0 }
 0x221   : > { %v6286_v12 = vpop.f32.mrf.mxu1  ;;  %v2998_v61 = vadd.f32 %v2933_v33, %v2757_v38 }
 0x222   : > { %v3712_v31 = vadd.f32 %v3643_v41, %v3475_v56  ;;  %v4865_v41 = vld [vmem:[%s4951_s6 + $0x70] sm:$0xff] }
 0x223   : > { %v3235_v29 = vadd.f32 %v6235_v46, %v2998_v61 }
 0x224   : > { %v3869_v63 = vadd.f32 %v3868_v35, %v3712_v31  ;;  %v3908_v62 = vmul.f32 %v3712_v31, %v3712_v31 }
 0x226   : > { %v3939_v7 = vadd.f32 %v3938_v6, %v3908_v62  ;;  %v6542_v6 = vld [vmem:[#allocation28_spill] sm:$0xff] }
 0x227   : > { %v3411_v8 = vpop.f32.mrf.mxu2 }
 0x228   : > { %v3650_v3 = vpop.f32.mrf.mxu3  ;;  %v3476_v48 = vadd.f32 %v3411_v8, %v3235_v29  ;;  %v2936_v44 = vpop.f32.mrf.mxu0  ;;  %v2760_v8 = vadd.f32 %v6017_v59, %v6137_v11  ;;  %v2761_v11 = vadd.f32 %v6031_v34, %v6147_v24 }
 0x229   : > { %v6291_v21 = vpop.f32.mrf.mxu1  ;;  %v2999_v53 = vadd.f32 %v2936_v44, %v2758_v42 }
 0x22a   : > { %v3713_v40 = vadd.f32 %v3645_v50, %v3476_v48  ;;  %v6543_v50 = vld [vmem:[#allocation27_spill] sm:$0xff] }
 0x22b   : > { %2975 = vmatmul.bf16.gmra.mxu0 %v4864_v1  ;;  %3224 = vmatmul.bf16.gmra.mxu1 %v4865_v41  ;;  %v3236_v17 = vadd.f32 %v6241_v10, %v2999_v53  ;;  %v2759_v19 = vadd.f32 %v6543_v50, %v6130_v47 }
 0x22c   : > { %v4740_v45 = vpack.c.bf16 %v3713_v40, %v3712_v31  ;;  %v3870_v35 = vadd.f32 %v3869_v63, %v3713_v40  ;;  %v3909_v58 = vmul.f32 %v3713_v40, %v3713_v40  ;;  %3453 = vmatmul.bf16.gmra.mxu2 %v6542_v6 }
 0x22d   : > { %3692 = vmatmul.bf16.gmra.mxu3 %v5967_v55 }
 0x22e   : > { %4804 = vst [vmem:[%s6248_s9 + $0x18] sm:$0xff] %v4740_v45   ;;  %v3940_v46 = vadd.f32 %v3939_v7, %v3909_v58 }
 0x22f   : > { %v3414_v54 = vpop.f32.mrf.mxu2 }
 0x230   : > { %v3653_v9 = vpop.f32.mrf.mxu3  ;;  %v3477_v56 = vadd.f32 %v3414_v54, %v3236_v17  ;;  %v2938_v1 = vpop.f32.mrf.mxu0 }
 0x231   : > { %v3000_v33 = vadd.f32 %v2938_v1, %v2759_v19  ;;  %v6300_v31 = vpop.f32.mrf.mxu1  ;;  %v2762_v1 = vadd.f32 %v6047_v4, %v6154_v32  ;;  %v2763_v32 = vadd.f32 %v6062_v2, %v6164_v43 }
 0x232   : > { %v3714_v38 = vadd.f32 %v3648_v52, %v3477_v56 }
 0x233   : > { %v3237_v55 = vadd.f32 %v6258_v18, %v3000_v33  ;;  %v4866_v33 = vld [vmem:[%s4951_s6 + $0x78] sm:$0xff] }
 0x234   : > { %v3871_v61 = vadd.f32 %v3870_v35, %v3714_v38  ;;  %v3910_v63 = vmul.f32 %v3714_v38, %v3714_v38 }
 0x236   : > { %v3941_v62 = vadd.f32 %v3940_v46, %v3910_v63 }
 0x237   : > { %v3416_v7 = vpop.f32.mrf.mxu2 }
 0x238   : > { %v3655_v29 = vpop.f32.mrf.mxu3  ;;  %v3478_v10 = vadd.f32 %v3416_v7, %v3237_v55  ;;  %v2941_v48 = vpop.f32.mrf.mxu0 }
 0x239   : > { %v3001_v47 = vadd.f32 %v2941_v48, %v2760_v8  ;;  %v6305_v40 = vpop.f32.mrf.mxu1 }
 0x23a   : > { %v3715_v5 = vadd.f32 %v3650_v3, %v3478_v10 }
 0x23b   : > { %2980 = vmatmul.bf16.gmra.mxu0 %v4865_v41  ;;  %v3238_v53 = vadd.f32 %v6263_v30, %v3001_v47 }
 0x23c   : > { %v4745_v52 = vpack.c.bf16 %v3715_v5, %v3714_v38  ;;  %v3872_v42 = vadd.f32 %v3871_v61, %v3715_v5  ;;  %v3911_v44 = vmul.f32 %v3715_v5, %v3715_v5  ;;  %3458 = vmatmul.bf16.gmra.mxu2 %v6041_v39 }
 0x23d   : > { %3697 = vmatmul.bf16.gmra.mxu3 %v6542_v6 }
 0x23e   : > { %4805 = vst [vmem:[%s6248_s9 + $0x20] sm:$0xff] %v4745_v52   ;;  %v3942_v18 = vadd.f32 %v3941_v62, %v3911_v44  ;;  %v2764_v44 = vadd.f32 %v6076_v14, %v6171_v49 }
 0x23f   : > { %v3419_v45 = vpop.f32.mrf.mxu2 }
 0x240   : > { %v3658_v35 = vpop.f32.mrf.mxu3  ;;  %v3479_v59 = vadd.f32 %v3419_v45, %v3238_v53  ;;  %v2943_v3 = vpop.f32.mrf.mxu0 }
 0x241   : > { %v3002_v58 = vadd.f32 %v2943_v3, %v2761_v11  ;;  %v6313_v56 = vpop.f32.mrf.mxu1 }
 0x242   : > { %v3716_v41 = vadd.f32 %v3653_v9, %v3479_v59 }
 0x243   : > { %v3239_v6 = vadd.f32 %v6272_v15, %v3002_v58 }
 0x244   : > { %v3873_v46 = vadd.f32 %v3872_v42, %v3716_v41  ;;  %v3912_v17 = vmul.f32 %v3716_v41, %v3716_v41 }
 0x246   : > { %v3943_v54 = vadd.f32 %v3942_v18, %v3912_v17 }
 0x247   : > { %v3421_v50 = vpop.f32.mrf.mxu2 }
 0x248   : > { %v3660_v30 = vpop.f32.mrf.mxu3  ;;  %v3480_v19 = vadd.f32 %v3421_v50, %v3239_v6  ;;  %v2946_v38 = vpop.f32.mrf.mxu0 }
 0x249   : > { %v3003_v24 = vadd.f32 %v2946_v38, %v2762_v1  ;;  %v6323_v10 = vpop.f32.mrf.mxu1 }
 0x24a   : > { %v3717_v34 = vadd.f32 %v3655_v29, %v3480_v19 }
 0x24b   : > { %2985 = vmatmul.bf16.gmra.mxu0 %v4866_v33  ;;  %v3240_v62 = vadd.f32 %v6277_v16, %v3003_v24 }
 0x24c   : > { %v4750_v9 = vpack.c.bf16 %v3717_v34, %v3716_v41  ;;  %v3874_v61 = vadd.f32 %v3873_v46, %v3717_v34  ;;  %v3913_v63 = vmul.f32 %v3717_v34, %v3717_v34  ;;  %3463 = vmatmul.bf16.gmra.mxu2 %v6070_v27  ;;  %v2765_v46 = vadd.f32 %v6084_v26, %v6181_v51  ;;  %v6544_v34 = vld [vmem:[#allocation29_spill] sm:$0xff] }
 0x24d   : > { %3702 = vmatmul.bf16.gmra.mxu3 %v6041_v39  ;;  %v2766_v24 = vadd.f32 %v6544_v34, %v6190_v25 }
 0x24e   : > { %4806 = vst [vmem:[%s6248_s9 + $0x28] sm:$0xff] %v4750_v9   ;;  %v3944_v15 = vadd.f32 %v3943_v54, %v3913_v63 }
 0x24f   : > { %v3424_v55 = vpop.f32.mrf.mxu2 }
 0x250   : > { %v3663_v7 = vpop.f32.mrf.mxu3  ;;  %v3481_v4 = vadd.f32 %v3424_v55, %v3240_v62  ;;  %v2948_v29 = vpop.f32.mrf.mxu0 }
 0x251   : > { %v3004_v48 = vadd.f32 %v2948_v29, %v2763_v32  ;;  %v6330_v53 = vpop.f32.mrf.mxu1  ;;  %v6545_v32 = vld [vmem:[#allocation30_spill] sm:$0xff] }
 0x252   : > { %v3718_v8 = vadd.f32 %v3658_v35, %v3481_v4  ;;  %v2767_v29 = vadd.f32 %v6545_v32, %v6202_v36 }
 0x253   : > { %v3241_v39 = vadd.f32 %v6286_v12, %v3004_v48 }
 0x254   : > { %v3875_v5 = vadd.f32 %v3874_v61, %v3718_v8  ;;  %v3914_v27 = vmul.f32 %v3718_v8, %v3718_v8 }
 0x256   : > { %v3945_v47 = vadd.f32 %v3944_v15, %v3914_v27 }
 0x257   : > { %v3426_v52 = vpop.f32.mrf.mxu2 }
 0x258   : > { %v3665_v42 = vpop.f32.mrf.mxu3  ;;  %v3482_v16 = vadd.f32 %v3426_v52, %v3241_v39  ;;  %v2951_v18 = vpop.f32.mrf.mxu0 }
 0x259   : > { %v3005_v2 = vadd.f32 %v2951_v18, %v2764_v44  ;;  %v6336_v54 = vpop.f32.mrf.mxu1 }
 0x25a   : > { %v3719_v45 = vadd.f32 %v3660_v30, %v3482_v16 }
 0x25b   : > { %v3242_v3 = vadd.f32 %v6291_v21, %v3005_v2 }
 0x25c   : > { %v4755_v43 = vpack.c.bf16 %v3719_v45, %v3718_v8  ;;  %v3876_v35 = vadd.f32 %v3875_v5, %v3719_v45  ;;  %v3915_v59 = vmul.f32 %v3719_v45, %v3719_v45 }
 0x25e   : > { %4807 = vst [vmem:[%s6248_s9 + $0x30] sm:$0xff] %v4755_v43   ;;  %v3946_v11 = vadd.f32 %v3945_v47, %v3915_v59 }
 0x25f   : > { %v3429_v41 = vpop.f32.mrf.mxu2 }
 0x260   : > { %v3668_v12 = vpop.f32.mrf.mxu3  ;;  %v3483_v58 = vadd.f32 %v3429_v41, %v3242_v3  ;;  %v2953_v17 = vpop.f32.mrf.mxu0 }
 0x261   : > { %v3006_v49 = vadd.f32 %v2953_v17, %v2765_v46  ;;  %v6341_v15 = vpop.f32.mrf.mxu1 }
 0x262   : > { %v3720_v14 = vadd.f32 %v3663_v7, %v3483_v58  ;;  %v6547_v58 = vld [vmem:[#allocation32_spill] sm:$0xff] }
 0x263   : > { %v3243_v19 = vadd.f32 %v6300_v31, %v3006_v49  ;;  %v2769_v46 = vadd.f32 %v6547_v58, %v6223_v23 }
 0x264   : > { %v3877_v6 = vadd.f32 %v3876_v35, %v3720_v14  ;;  %v3916_v50 = vmul.f32 %v3720_v14, %v3720_v14 }
 0x266   : > { %v3947_v30 = vadd.f32 %v3946_v11, %v3916_v50 }
 0x267   : > { %v3431_v1 = vpop.f32.mrf.mxu2 }
 0x268   : > { %v3670_v38 = vpop.f32.mrf.mxu3  ;;  %v3484_v21 = vadd.f32 %v3431_v1, %v3243_v19  ;;  %v2956_v33 = vpop.f32.mrf.mxu0 }
 0x269   : > { %v3007_v26 = vadd.f32 %v2956_v33, %v2766_v24  ;;  %v3205_v16 = vpop.f32.mrf.mxu1 }
 0x26a   : > { %v3721_v9 = vadd.f32 %v3665_v42, %v3484_v21 }
 0x26b   : > { %v3244_v55 = vadd.f32 %v6305_v40, %v3007_v26  ;;  %v6546_v40 = vld [vmem:[#allocation31_spill] sm:$0xff] }
 0x26c   : > { %v4760_v51 = vpack.c.bf16 %v3721_v9, %v3720_v14  ;;  %v3878_v61 = vadd.f32 %v3877_v6, %v3721_v9  ;;  %v3917_v63 = vmul.f32 %v3721_v9, %v3721_v9  ;;  %v2768_v18 = vadd.f32 %v6546_v40, %v6211_v13 }
 0x26e   : > { %4808 = vst [vmem:[%s6248_s9 + $0x38] sm:$0xff] %v4760_v51   ;;  %v3948_v62 = vadd.f32 %v3947_v30, %v3917_v63 }
 0x26f   : > { %v3434_v7 = vpop.f32.mrf.mxu2 }
 0x270   : > { %v3673_v31 = vpop.f32.mrf.mxu3  ;;  %v3485_v4 = vadd.f32 %v3434_v7, %v3244_v55  ;;  %v2958_v8 = vpop.f32.mrf.mxu0 }
 0x271   : > { %v3008_v48 = vadd.f32 %v2958_v8, %v2767_v29  ;;  %v3207_v14 = vpop.f32.mrf.mxu1 }
 0x272   : > { %v3722_v25 = vadd.f32 %v3668_v12, %v3485_v4 }
 0x273   : > { %v3245_v39 = vadd.f32 %v6313_v56, %v3008_v48 }
 0x274   : > { %v3879_v5 = vadd.f32 %v3878_v61, %v3722_v25  ;;  %v3918_v27 = vmul.f32 %v3722_v25, %v3722_v25 }
 0x276   : > { %v3949_v47 = vadd.f32 %v3948_v62, %v3918_v27 }
 0x277   : > { %v3436_v52 = vpop.f32.mrf.mxu2 }
 0x278   : > { %v3675_v42 = vpop.f32.mrf.mxu3  ;;  %v3486_v44 = vadd.f32 %v3436_v52, %v3245_v39  ;;  %v2961_v45 = vpop.f32.mrf.mxu0 }
 0x279   : > { %v3009_v43 = vadd.f32 %v2961_v45, %v2768_v18  ;;  %v3210_v33 = vpop.f32.mrf.mxu1 }
 0x27a   : > { %v3723_v2 = vadd.f32 %v3670_v38, %v3486_v44 }
 0x27b   : > { %v3246_v3 = vadd.f32 %v6323_v10, %v3009_v43 }
 0x27c   : > { %v4765_v36 = vpack.c.bf16 %v3723_v2, %v3722_v25  ;;  %v3880_v35 = vadd.f32 %v3879_v5, %v3723_v2  ;;  %v3919_v59 = vmul.f32 %v3723_v2, %v3723_v2 }
 0x27e   : > { %4809 = vst [vmem:[%s6248_s9 + $0x40] sm:$0xff] %v4765_v36   ;;  %v3950_v11 = vadd.f32 %v3949_v47, %v3919_v59 }
 0x27f   : > { %v3439_v41 = vpop.f32.mrf.mxu2 }
 0x280   : > { %v3678_v12 = vpop.f32.mrf.mxu3  ;;  %v3487_v56 = vadd.f32 %v3439_v41, %v3246_v3  ;;  %v2963_v17 = vpop.f32.mrf.mxu0 }
 0x281   : > { %v3010_v13 = vadd.f32 %v2963_v17, %v2769_v46  ;;  %v3212_v29 = vpop.f32.mrf.mxu1 }
 0x282   : > { %v3724_v49 = vadd.f32 %v3673_v31, %v3487_v56 }
 0x283   : > { %v3247_v19 = vadd.f32 %v6330_v53, %v3010_v13 }
 0x284   : > { %v3881_v6 = vadd.f32 %v3880_v35, %v3724_v49  ;;  %v3920_v50 = vmul.f32 %v3724_v49, %v3724_v49 }
 0x286   : > { %v3951_v30 = vadd.f32 %v3950_v11, %v3920_v50 }
 0x287   : > { %v3441_v1 = vpop.f32.mrf.mxu2 }
 0x288   : > { %v3680_v38 = vpop.f32.mrf.mxu3  ;;  %v3488_v21 = vadd.f32 %v3441_v1, %v3247_v19  ;;  %v2966_v10 = vpop.f32.mrf.mxu0 }
 0x289   : > { %v3011_v24 = vadd.f32 %v2966_v10, %v6133_v0  ;;  %v3215_v45 = vpop.f32.mrf.mxu1 }
 0x28a   : > { %v3725_v34 = vadd.f32 %v3675_v42, %v3488_v21 }
 0x28b   : > { %v3248_v61 = vadd.f32 %v6336_v54, %v3011_v24 }
 0x28c   : > { %v4770_v9 = vpack.c.bf16 %v3725_v34, %v3724_v49  ;;  %v3882_v23 = vadd.f32 %v3881_v6, %v3725_v34  ;;  %v3921_v26 = vmul.f32 %v3725_v34, %v3725_v34 }
 0x28e   : > { %4810 = vst [vmem:[%s6248_s9 + $0x48] sm:$0xff] %v4770_v9   ;;  %v3952_v51 = vadd.f32 %v3951_v30, %v3921_v26 }
 0x28f   : > { %v3444_v63 = vpop.f32.mrf.mxu2 }
 0x290   : > { %v3683_v62 = vpop.f32.mrf.mxu3  ;;  %v3489_v55 = vadd.f32 %v3444_v63, %v3248_v61  ;;  %v2968_v7 = vpop.f32.mrf.mxu0 }
 0x291   : > { %v3012_v31 = vadd.f32 %v2968_v7, %v6141_v37  ;;  %v3217_v58 = vpop.f32.mrf.mxu1 }
 0x292   : > { %v3726_v53 = vadd.f32 %v3678_v12, %v3489_v55 }
 0x293   : > { %v3249_v8 = vadd.f32 %v6341_v15, %v3012_v31 }
 0x294   : > { %v3883_v4 = vadd.f32 %v3882_v23, %v3726_v53  ;;  %v3922_v32 = vmul.f32 %v3726_v53, %v3726_v53 }
 0x296   : > { %v3953_v0 = vadd.f32 %v3952_v51, %v3922_v32 }
 0x297   : > { %v3446_v25 = vpop.f32.mrf.mxu2 }
 0x298   : > { %v3685_v48 = vpop.f32.mrf.mxu3  ;;  %v3490_v5 = vadd.f32 %v3446_v25, %v3249_v8  ;;  %v2971_v27 = vpop.f32.mrf.mxu0 }
 0x299   : > { %v3013_v54 = vadd.f32 %v2971_v27, %v6150_v28  ;;  %v3220_v21 = vpop.f32.mrf.mxu1 }
 0x29a   : > { %v3727_v47 = vadd.f32 %v3680_v38, %v3490_v5 }
 0x29b   : > { %v3250_v40 = vadd.f32 %v3205_v16, %v3013_v54 }
 0x29c   : > { %v4775_v39 = vpack.c.bf16 %v3727_v47, %v3726_v53  ;;  %v3884_v52 = vadd.f32 %v3883_v4, %v3727_v47  ;;  %v3923_v42 = vmul.f32 %v3727_v47, %v3727_v47 }
 0x29e   : > { %4811 = vst [vmem:[%s6248_s9 + $0x50] sm:$0xff] %v4775_v39   ;;  %v3954_v44 = vadd.f32 %v3953_v0, %v3923_v42 }
 0x29f   : > { %v3449_v37 = vpop.f32.mrf.mxu2 }
 0x2a0   : > { %v3688_v18 = vpop.f32.mrf.mxu3  ;;  %v3491_v2 = vadd.f32 %v3449_v37, %v3250_v40  ;;  %v2973_v43 = vpop.f32.mrf.mxu0  ;;  %v6549_v40 = vld [vmem:[#allocation9_spill] sm:$0xff] }
 0x2a1   : > { %v3014_v15 = vadd.f32 %v2973_v43, %v6158_v60  ;;  %v3222_v7 = vpop.f32.mrf.mxu1 }
 0x2a2   : > { %v3728_v36 = vadd.f32 %v3683_v62, %v3491_v2 }
 0x2a3   : > { %v3251_v3 = vadd.f32 %v3207_v14, %v3014_v15 }
 0x2a4   : > { %v3885_v35 = vadd.f32 %v3884_v52, %v3728_v36  ;;  %v3924_v59 = vmul.f32 %v3728_v36, %v3728_v36 }
 0x2a6   : > { %v3955_v11 = vadd.f32 %v3954_v44, %v3924_v59 }
 0x2a7   : > { %v3451_v28 = vpop.f32.mrf.mxu2 }
 0x2a8   : > { %v3690_v41 = vpop.f32.mrf.mxu3  ;;  %v3492_v12 = vadd.f32 %v3451_v28, %v3251_v3  ;;  %v2976_v56 = vpop.f32.mrf.mxu0  ;;  %v6550_v28 = vld [vmem:[#allocation5_spill] sm:$0xff] }
 0x2a9   : > { %v3015_v16 = vadd.f32 %v2976_v56, %v6167_v57  ;;  %v3225_v42 = vpop.f32.mrf.mxu1 }
 0x2aa   : > { %v3729_v46 = vadd.f32 %v3685_v48, %v3492_v12 }
 0x2ab   : > { %v3252_v50 = vadd.f32 %v3210_v33, %v3015_v16 }
 0x2ac   : > { %v4780_v17 = vpack.c.bf16 %v3729_v46, %v3728_v36  ;;  %v3886_v49 = vadd.f32 %v3885_v35, %v3729_v46  ;;  %v3925_v13 = vmul.f32 %v3729_v46, %v3729_v46  ;;  %v6551_v46 = vld [vmem:[#allocation3_spill] sm:$0xff] }
 0x2ad   : > { %v3258_v16 = vadd.f32 %v3225_v42, %v6551_v46 }
 0x2ae   : > { %4812 = vst [vmem:[%s6248_s9 + $0x58] sm:$0xff] %v4780_v17   ;;  %v3956_v6 = vadd.f32 %v3955_v11, %v3925_v13  ;;  %v6552_v17 = vld [vmem:[#allocation4_spill] sm:$0xff] }
 0x2af   : > { %v3454_v30 = vpop.f32.mrf.mxu2 }
 0x2b0   : > { %v3693_v60 = vpop.f32.mrf.mxu3  ;;  %v3493_v19 = vadd.f32 %v3454_v30, %v3252_v50  ;;  %v2978_v1 = vpop.f32.mrf.mxu0 }
 0x2b1   : > { %v3016_v14 = vadd.f32 %v2978_v1, %v6175_v20  ;;  %v3227_v12 = vpop.f32.mrf.mxu1 }
 0x2b2   : > { %v3730_v38 = vadd.f32 %v3688_v18, %v3493_v19 }
 0x2b3   : > { %v3253_v9 = vadd.f32 %v3212_v29, %v3016_v14  ;;  %v6548_v29 = vld [vmem:[#allocation7_spill] sm:$0xff] }
 0x2b4   : > { %v3887_v10 = vadd.f32 %v3886_v49, %v3730_v38  ;;  %v3926_v34 = vmul.f32 %v3730_v38, %v3730_v38  ;;  %v3259_v49 = vadd.f32 %v3227_v12, %v6552_v17 }
 0x2b6   : > { %v3957_v24 = vadd.f32 %v3956_v6, %v3926_v34 }
 0x2b7   : > { %v3456_v57 = vpop.f32.mrf.mxu2 }
 0x2b8   : > { %v3695_v23 = vpop.f32.mrf.mxu3  ;;  %v3494_v26 = vadd.f32 %v3456_v57, %v3253_v9  ;;  %v2981_v51 = vpop.f32.mrf.mxu0 }
 0x2b9   : > { %v3017_v33 = vadd.f32 %v2981_v51, %v6184_v22 }
 0x2ba   : > { %v3731_v61 = vadd.f32 %v3690_v41, %v3494_v26 }
 0x2bb   : > { %v3254_v20 = vadd.f32 %v3215_v45, %v3017_v33 }
 0x2bc   : > { %v4785_v63 = vpack.c.bf16 %v3731_v61, %v3730_v38  ;;  %v3888_v62 = vadd.f32 %v3887_v10, %v3731_v61  ;;  %v3927_v55 = vmul.f32 %v3731_v61, %v3731_v61 }
 0x2be   : > { %4813 = vst [vmem:[%s6248_s9 + $0x60] sm:$0xff] %v4785_v63   ;;  %v3958_v53 = vadd.f32 %v3957_v24, %v3927_v55 }
 0x2bf   : > { %v3459_v31 = vpop.f32.mrf.mxu2 }
 0x2c0   : > { %v3698_v4 = vpop.f32.mrf.mxu3  ;;  %v3495_v32 = vadd.f32 %v3459_v31, %v3254_v20  ;;  %v2983_v0 = vpop.f32.mrf.mxu0 }
 0x2c1   : > { %v3018_v25 = vadd.f32 %v2983_v0, %v6548_v29 }
 0x2c2   : > { %v3732_v8 = vadd.f32 %v3693_v60, %v3495_v32 }
 0x2c3   : > { %v3255_v47 = vadd.f32 %v3217_v58, %v3018_v25 }
 0x2c4   : > { %v3889_v48 = vadd.f32 %v3888_v62, %v3732_v8  ;;  %v3928_v5 = vmul.f32 %v3732_v8, %v3732_v8 }
 0x2c6   : > { %v3959_v27 = vadd.f32 %v3958_v53, %v3928_v5 }
 0x2c7   : > { %v3461_v22 = vpop.f32.mrf.mxu2 }
 0x2c8   : > { %v3700_v54 = vpop.f32.mrf.mxu3  ;;  %v3496_v39 = vadd.f32 %v3461_v22, %v3255_v47  ;;  %v2986_v52 = vpop.f32.mrf.mxu0 }
 0x2c9   : > { %v3019_v37 = vadd.f32 %v2986_v52, %v6549_v40 }
 0x2ca   : > { %v3733_v44 = vadd.f32 %v3695_v23, %v3496_v39 }
 0x2cb   : > { %v3256_v36 = vadd.f32 %v3220_v21, %v3019_v37 }
 0x2cc   : > { %v4790_v18 = vpack.c.bf16 %v3733_v44, %v3732_v8  ;;  %v3890_v45 = vadd.f32 %v3889_v48, %v3733_v44  ;;  %v3929_v2 = vmul.f32 %v3733_v44, %v3733_v44 }
 0x2ce   : > { %4814 = vst [vmem:[%s6248_s9 + $0x68] sm:$0xff] %v4790_v18   ;;  %v3960_v43 = vadd.f32 %v3959_v27, %v3929_v2 }
 0x2cf   : > { %v3464_v15 = vpop.f32.mrf.mxu2 }
 0x2d0   : > { %v3703_v35 = vpop.f32.mrf.mxu3  ;;  %v3497_v59 = vadd.f32 %v3464_v15, %v3256_v36  ;;  %v2988_v11 = vpop.f32.mrf.mxu0 }
 0x2d1   : > { %v3020_v41 = vadd.f32 %v2988_v11, %v6550_v28  ;;  %v3736_v60 = vadd.f32 %v3703_v35, %v3258_v16 }
 0x2d2   : > { %v3734_v3 = vadd.f32 %v3698_v4, %v3497_v59 }
 0x2d3   : > { %v3257_v6 = vadd.f32 %v3222_v7, %v3020_v41  ;;  %v3932_v24 = vmul.f32 %v3736_v60, %v3736_v60 }
 0x2d4   : > { %v3891_v56 = vadd.f32 %v3890_v45, %v3734_v3  ;;  %v3930_v58 = vmul.f32 %v3734_v3, %v3734_v3 }
 0x2d6   : > { %v3961_v13 = vadd.f32 %v3960_v43, %v3930_v58 }
 0x2d7   : > { %v3466_v50 = vpop.f32.mrf.mxu2 }
 0x2d8   : > { %v3705_v30 = vpop.f32.mrf.mxu3  ;;  %v3498_v19 = vadd.f32 %v3466_v50, %v3257_v6 }
 0x2d9   : > { %v3737_v1 = vadd.f32 %v3705_v30, %v3259_v49 }
 0x2da   : > { %v3735_v38 = vadd.f32 %v3700_v54, %v3498_v19 }
 0x2db   : > { %v4800_v14 = vpack.c.bf16 %v3737_v1, %v3736_v60  ;;  %v3933_v26 = vmul.f32 %v3737_v1, %v3737_v1 }
 0x2dc   : > { %v4795_v21 = vpack.c.bf16 %v3735_v38, %v3734_v3  ;;  %v3892_v10 = vadd.f32 %v3891_v56, %v3735_v38  ;;  %v3931_v34 = vmul.f32 %v3735_v38, %v3735_v38 }
 0x2dd   : > { %4816 = vst [vmem:[%s6248_s9 + $0x78] sm:$0xff] %v4800_v14  }
 0x2de   : > { %4815 = vst [vmem:[%s6248_s9 + $0x70] sm:$0xff] %v4795_v21   ;;  %v3962_v9 = vadd.f32 %v3961_v13, %v3931_v34  ;;  %v3893_v57 = vadd.f32 %v3892_v10, %v3736_v60 }
 0x2e0   : > { %v3894_v23 = vadd.f32 %v3893_v57, %v3737_v1  ;;  %v3963_v51 = vadd.f32 %v3962_v9, %v3932_v24 }
 0x2e2   : > { %v3895_v61 = vrot.slane %v3894_v23, 4  ;;  %v3964_v33 = vadd.f32 %v3963_v51, %v3933_v26 }
 0x2e4   : > { %v3896_v63 = vadd.f32 %v3895_v61, %v3894_v23  ;;  %v3965_v62 = vrot.slane %v3964_v33, 4 }
 0x2e6   : > { %v3897_v55 = vrot.slane %v3896_v63, 2  ;;  %v3966_v7 = vadd.f32 %v3965_v62, %v3964_v33 }
 0x2e8   : > { %v3898_v53 = vadd.f32 %v3897_v55, %v3896_v63  ;;  %v3967_v20 = vrot.slane %v3966_v7, 2 }
 0x2ea   : > { %v3899_v31 = vrot.slane %v3898_v53, 1  ;;  %v3968_v4 = vadd.f32 %v3967_v20, %v3966_v7 }
 0x2ec   : > { %v3900_v32 = vadd.f32 %v3899_v31, %v3898_v53  ;;  %v3969_v0 = vrot.slane %v3968_v4, 1 }
 0x2ee   : > { %3901 = vst [vmem:[%s211_s10] sm:$0x1] %v3900_v32  ;;  %v3970_v8 = vadd.f32 %v3969_v0, %v3968_v4 }
 0x2f0   : > { %3971 = vst [vmem:[%s214_s13] sm:$0x1] %v3970_v8 }
 0x2f1 PF: > { %s15_s15 = sadd.s32 1, %s4873_s15  }
 0x2f2   : > { %p12_p4 = scmp.ge.s32.totalorder %s15_s15, 4  }
 0x2f4   :  { %14 = sbr.rel (!%p12_p4) target bundleno = 1 (0x1), region = 90 }

// kernel: residual_block.4
= control target key start
LH: loop header
LB: loop body
LE: loop exit
PB: predicated region body
PF: predicated region fallthrough
CT: control target
= control target key end

     0   :  { %s5121_s21 = smov 0   ;;  %s6809_s0 = inlined_call_operand.vmem [shape: bf16[2,256,128], index: 0, kind: input, shape index: {}]   ;;  %s6810_s1 = inlined_call_operand.vmem [shape: f32[1,128], index: 1, kind: input, shape index: {}]   ;;  %s6811_s2 = inlined_call_operand.vmem [shape: f32[1,128], index: 2, kind: input, shape index: {}]   ;;  %s6812_s3 = inlined_call_operand.vmem [shape: bf16[3,3,128,128], index: 3, kind: input, shape index: {}]   ;;  %s6813_s4 = inlined_call_operand.vmem [shape: bf16[2,256,128], index: 4, kind: output, shape index: {0}]   ;;  %s6814_s5 = inlined_call_operand.vmem [shape: f32[2,1,128], index: 5, kind: output, shape index: {1}]   ;;  %s6815_s6 = inlined_call_operand.vmem [shape: f32[2,1,128], index: 6, kind: output, shape index: {2}]  }
   0x1 LB: > { %s4299_s22 = sadd.s32 4294967295, %s5082_s21   ;;  %p4303_p0 = scmp.ge.s32.totalorder %s5082_s21, 1  ;;  %s5082_s21 = sphi %s5121_s21, %s17_s21  }
   0x2   : > { %p217_p1 = scmp.lt.s32.totalorder %s5082_s21, 3 }
   0x4   : > { %p218_p2 = pnand %p4303_p0, %p217_p1 }
   0x6   : > { %221 = sbr.rel (%p218_p2) target bundleno = 753 (0x2f1), region = 36 }
   0xb   : > { %v4799_v0 = vld [vmem:[%s6812_s3 + $0x138] sm:$0xff]  ;;  %p253_p3 = scmp.lt.s32.totalorder %s4299_s22, 1  ;;  %v4798_v2 = vld [vmem:[%s6812_s3 + $0x130] sm:$0xff]  ;;  %v472_v4 = vlaneseq  ;;  %v4797_v5 = vld [vmem:[%s6812_s3 + $0x128] sm:$0xff]  ;;  %vm5084_vm0 = vmmov 1   ;;  %v6828_v37 = vmov 0  }
   0xc   : > { %v5135_v1 = vld [vmem:[%s6812_s3 + $0x1b8] sm:$0xff]  ;;  %1936 = vmatpush.bf16.msra.mxu0 %v4799_v0  ;;  %5038 = vmatpush.bf16.msra.mxu1 %v4799_v0  ;;  %v5146_v3 = vld [vmem:[%s6812_s3 + $0x1b0] sm:$0xff]  ;;  %v5162_v6 = vld [vmem:[%s6812_s3 + $0x1a8] sm:$0xff]  ;;  %v5224_v57 = vunpack.c.h.b16 %v6828_v37  ;;  %vm1484_vm7 = vsmask.f32 256 }
   0xd   : > { %s7044_s22 = smov (!%p253_p3, %s4299_s22), 1  ;;  %5039 = vmatpush.bf16.msra.mxu2 %v4799_v0  ;;  %5054 = vmatpush.bf16.msra.mxu3 %v5135_v1  ;;  %v5169_v10 = vld [vmem:[%s6810_s1] ss:$0 sm:$0xff]  ;;  %v5173_v13 = vshrl.u32 %v472_v4, 7  ;;  %vm5183_vm1 = vmpackc.low %vm5084_vm0, %vm5084_vm0  ;;  %v4795_v41 = vld [vmem:[%s6812_s3 + $0x118] sm:$0xff]  ;;  %vm1548_vm0 = vcmask 1040384  }
   0xe   : > { %s4790_s7 = sshll.u32 %s7044_s22, 7  ;;  %v5181_v21 = vld [vmem:[%s6811_s2] ss:$0 sm:$0xff]  ;;  %v1244_v38 = vsel %vm5183_vm1, 65537, %v6828_v37  ;;  %v5220_v46 = vld [vmem:[%s6812_s3 + $0x198] sm:$0xff]  ;;  %v4794_v60 = vld [vmem:[%s6812_s3 + $0x110] sm:$0xff]  ;;  %s265_s16 = scalar_lea.vmem %s6814_s5, %s7044_s22 }
   0xf   : > { %s5157_s12 = scalar_lea.vmem %s6809_s0, %s4790_s7  ;;  %v4796_v25 = vld [vmem:[%s6812_s3 + $0x120] sm:$0xff]  ;;  %v495_v33 = vadd.s32 176, %v5173_v13  ;;  %v1276_v50 = vunpack.c.l.b16 %v1244_v38  ;;  %v497_v59 = vadd.s32 192, %v5173_v13  ;;  %s6666_s14 = scalar_lea.vmem %s6813_s4, %s4790_s7 }
  0x10   : > { %1937 = vmatpush.bf16.msra.mxu0 %v4798_v2  ;;  %5040 = vmatpush.bf16.msra.mxu1 %v4798_v2  ;;  %v4865_v7 = vld [vmem:[%s5157_s12] sm:$0xff]   ;;  %v5017_v11 = vld [vmem:[%s5157_s12 + $0x50] sm:$0xff]   ;;  %v5018_v18 = vld [vmem:[%s5157_s12 + $0x58] sm:$0xff]   ;;  %s268_s19 = scalar_lea.vmem %s6815_s6, %s7044_s22 }
  0x11   : > { %5041 = vmatpush.bf16.msra.mxu2 %v4798_v2  ;;  %5055 = vmatpush.bf16.msra.mxu3 %v5146_v3  ;;  %v4866_v8 = vunpack.c.l.bf16 %v4865_v7  ;;  %v4867_v9 = vunpack.c.h.bf16 %v4865_v7  ;;  %v5019_v12 = vld [vmem:[%s5157_s12 + $0x60] sm:$0xff]   ;;  %v4906_v14 = vunpack.c.l.bf16 %v5017_v11  ;;  %v4907_v15 = vunpack.c.h.bf16 %v5017_v11  ;;  %v5008_v58 = vld [vmem:[%s5157_s12 + $0x8] sm:$0xff]   ;;  %v5235_v2 = vld [vmem:[%s6812_s3 + $0x190] sm:$0xff] }
  0x12   : > { %v4914_v16 = vunpack.c.l.bf16 %v5019_v12  ;;  %v4915_v17 = vunpack.c.h.bf16 %v5019_v12  ;;  %v4910_v22 = vunpack.c.l.bf16 %v5018_v18  ;;  %v4911_v23 = vunpack.c.h.bf16 %v5018_v18  ;;  %v5197_v29 = vld [vmem:[%s6812_s3 + $0x1a0] sm:$0xff] }
  0x13   : > { %v340_v19 = vmul.f32 %v5169_v10, %v4866_v8  ;;  %v341_v20 = vmul.f32 %v5169_v10, %v4867_v9  ;;  %v360_v26 = vmul.f32 %v5169_v10, %v4906_v14  ;;  %v361_v27 = vmul.f32 %v5169_v10, %v4907_v15  ;;  %v5020_v9 = vld [vmem:[%s5157_s12 + $0x68] sm:$0xff]  }
  0x14   : > { %1938 = vmatpush.bf16.msra.mxu0 %v4797_v5  ;;  %5042 = vmatpush.bf16.msra.mxu1 %v4797_v5  ;;  %v364_v28 = vmul.f32 %v5169_v10, %v4914_v16  ;;  %v365_v32 = vmul.f32 %v5169_v10, %v4915_v17  ;;  %v362_v36 = vmul.f32 %v5169_v10, %v4910_v22  ;;  %v663_v54 = vand.u32 15, %v495_v33 }
  0x15   : > { %5043 = vmatpush.bf16.msra.mxu2 %v4797_v5  ;;  %5056 = vmatpush.bf16.msra.mxu3 %v5162_v6  ;;  %v376_v30 = vadd.f32 %v5181_v21, %v340_v19  ;;  %v377_v31 = vadd.f32 %v5181_v21, %v341_v20  ;;  %v396_v34 = vadd.f32 %v5181_v21, %v360_v26  ;;  %v5237_v8 = vunpack.i.l.s16 %v1276_v50  ;;  %v4793_v19 = vld [vmem:[%s6812_s3 + $0x108] sm:$0xff]  ;;  %v4815_v50 = vld [vmem:[%s6812_s3 + $0x178] sm:$0xff] }
  0x16   : > { %v397_v35 = vadd.f32 %v5181_v21, %v361_v27  ;;  %v400_v39 = vadd.f32 %v5181_v21, %v364_v28  ;;  %v363_v40 = vmul.f32 %v5169_v10, %v4911_v23  ;;  %v401_v44 = vadd.f32 %v5181_v21, %v365_v32 }
  0x17   : > { %v428_v42 = vmax.f32 %v396_v34, 0.0  ;;  %v398_v45 = vadd.f32 %v5181_v21, %v362_v36  ;;  %v408_v47 = vmax.f32 %v376_v30, 0.0  ;;  %v409_v48 = vmax.f32 %v377_v31, 0.0 }
  0x18   : > { %1939 = vmatpush.bf16.msra.mxu0 %v4796_v25  ;;  %5044 = vmatpush.bf16.msra.mxu1 %v4796_v25  ;;  %v429_v43 = vmax.f32 %v397_v35, 0.0  ;;  %v399_v49 = vadd.f32 %v5181_v21, %v363_v40  ;;  %v432_v55 = vmax.f32 %v400_v39, 0.0  ;;  %v433_v63 = vmax.f32 %v401_v44, 0.0  ;;  %v4792_v40 = vld [vmem:[%s6812_s3 + $0x100] sm:$0xff] }
  0x19   : > { %5045 = vmatpush.bf16.msra.mxu2 %v4796_v25  ;;  %5057 = vmatpush.bf16.msra.mxu3 %v5197_v29  ;;  %v460_v51 = vpack.c.bf16 %v428_v42, %v428_v42  ;;  %v430_v53 = vmax.f32 %v398_v45, 0.0  ;;  %v440_v4 = vpack.c.bf16 %v408_v47, %v408_v47  ;;  %v441_v5 = vpack.c.bf16 %v409_v48, %v409_v48  ;;  %v5253_v25 = vld [vmem:[%s6812_s3 + $0x188] sm:$0xff]  ;;  %v5277_v45 = vld [vmem:[%s6812_s3 + $0x180] sm:$0xff] }
  0x1a   : > { %v461_v52 = vpack.c.bf16 %v429_v43, %v429_v43  ;;  %v431_v56 = vmax.f32 %v399_v49, 0.0  ;;  %vm1474_vm2 = vcmp.ge.s32.totalorder %v663_v54, 1  ;;  %v4870_v14 = vunpack.c.l.bf16 %v5008_v58  ;;  %v4829_v49 = vld [vmem:[%s6812_s3 + $0x28] sm:$0xff] }
  0x1b   : > { %v973_v61 = vunpack.c.l.b16 %v460_v51  ;;  %v462_v0 = vpack.c.bf16 %v430_v53, %v430_v53  ;;  %v5243_v16 = vunpack.c.l.b16 %v6828_v37  ;;  %vm1637_vm3 = vmpackc.low %vm1474_vm2, %vm1474_vm2  ;;  %v4871_v17 = vunpack.c.h.bf16 %v5008_v58  ;;  %v4804_v51 = vld [vmem:[%s6812_s3 + $0xe0] sm:$0xff] }
  0x1c   : > { %1940 = vmatpush.bf16.msra.mxu0 %v4795_v41  ;;  %5046 = vmatpush.bf16.msra.mxu1 %v4795_v41  ;;  %v974_v62 = vunpack.c.l.b16 %v461_v52  ;;  %v463_v7 = vpack.c.bf16 %v431_v56, %v431_v56  ;;  %v677_v18 = vand.u32 15, %v497_v59  ;;  %v464_v20 = vpack.c.bf16 %v432_v55, %v432_v55  ;;  %v4807_v52 = vld [vmem:[%s6812_s3 + $0xf8] sm:$0xff]  ;;  %vm5471_vm2 = vmand %vm1548_vm0, %vm1484_vm7 }
  0x1d   : > { %5047 = vmatpush.bf16.msra.mxu2 %v4795_v41  ;;  %5058 = vmatpush.bf16.msra.mxu3 %v5220_v46  ;;  %v975_v12 = vunpack.c.l.b16 %v462_v0  ;;  %v465_v22 = vpack.c.bf16 %v433_v63, %v433_v63  ;;  %v1669_v23 = vsel %vm1637_vm3, 65537, %v6828_v37  ;;  %v4918_v24 = vunpack.c.l.bf16 %v5020_v9  ;;  %v5009_v0 = vld [vmem:[%s5157_s12 + $0x10] sm:$0xff]  }
  0x1e   : > { %v5240_v11 = vpack.c.b16 %v974_v62, %v973_v61  ;;  %v976_v15 = vunpack.c.l.b16 %v463_v7  ;;  %v1701_v28 = vunpack.c.l.b16 %v1669_v23  ;;  %v4919_v30 = vunpack.c.h.bf16 %v5020_v9  ;;  %v4831_v62 = vld [vmem:[%s6812_s3 + $0x38] sm:$0xff]  ;;  %v4814_v7 = vld [vmem:[%s6812_s3 + $0x170] sm:$0xff] }
  0x1f   : > { %v953_v31 = vunpack.c.l.b16 %v440_v4  ;;  %v954_v32 = vunpack.c.l.b16 %v441_v5  ;;  %vm5260_vm4 = vcmp.ne.s32.totalorder %v5237_v8, %v5224_v57  ;;  %v342_v34 = vmul.f32 %v5169_v10, %v4870_v14  ;;  %v4806_v5 = vld [vmem:[%s6812_s3 + $0xf0] sm:$0xff] }
  0x20   : > { %1941 = vmatpush.bf16.msra.mxu0 %v4794_v60  ;;  %5048 = vmatpush.bf16.msra.mxu1 %v4794_v60  ;;  %v5255_v26 = vpack.c.b16 %v976_v15, %v975_v12  ;;  %v6826_v27 = vshrl.u32 %v5240_v11, 16  ;;  %v4362_v38 = vunpack.i.l.s16 %v1701_v28  ;;  %v343_v39 = vmul.f32 %v5169_v10, %v4871_v17  ;;  %v5021_v17 = vld [vmem:[%s5157_s12 + $0x70] sm:$0xff]   ;;  %v4805_v28 = vld [vmem:[%s6812_s3 + $0xe8] sm:$0xff] }
  0x21   : > { %5049 = vmatpush.bf16.msra.mxu2 %v4794_v60  ;;  %5059 = vmatpush.bf16.msra.mxu3 %v5235_v2  ;;  %v977_v41 = vunpack.c.l.b16 %v464_v20  ;;  %v978_v42 = vunpack.c.l.b16 %v465_v22  ;;  %v366_v43 = vmul.f32 %v5169_v10, %v4918_v24  ;;  %v367_v44 = vmul.f32 %v5169_v10, %v4919_v30  ;;  %v4830_v23 = vld [vmem:[%s6812_s3 + $0x30] sm:$0xff]  ;;  %v4813_v30 = vld [vmem:[%s6812_s3 + $0x168] sm:$0xff] }
  0x22   : > { %6868 = vst [vmem:[#allocation3_spill] sm:$0xff] %v5255_v26  ;;  %v6825_v35 = vshll.u32 %v5255_v26, 16  ;;  %v6824_v36 = vshrl.u32 %v5255_v26, 16  ;;  %v5281_v47 = vrot.slane %v6826_v27, 7  ;;  %vm1808_vm5 = vcmp.ne.s32.totalorder %v4362_v38, %v5243_v16 }
  0x23   : > { %vm5288_vm6 = vcmp.ge.s32.totalorder %v677_v18, 1  ;;  %vm5297_vm8 = vmpackc.low %vm5260_vm4, %vm1808_vm5  ;;  %v5304_v53 = vpack.c.b16 %v954_v32, %v953_v31  ;;  %v378_v55 = vadd.f32 %v5181_v21, %v342_v34  ;;  %v379_v56 = vadd.f32 %v5181_v21, %v343_v39 }
  0x24   : > { %1942 = vmatpush.bf16.msra.mxu0 %v4793_v19  ;;  %5050 = vmatpush.bf16.msra.mxu1 %v4793_v19  ;;  %v5285_v48 = vrot.slane %v6824_v36, 7  ;;  %vm1639_vm9 = vmpackc.low %vm5288_vm6, %vm5288_vm6  ;;  %v5314_v58 = vpack.c.b16 %v978_v42, %v977_v41  ;;  %v402_v59 = vadd.f32 %v5181_v21, %v366_v43  ;;  %v403_v60 = vadd.f32 %v5181_v21, %v367_v44 }
  0x25   : > { %5051 = vmatpush.bf16.msra.mxu2 %v4793_v19  ;;  %5060 = vmatpush.bf16.msra.mxu3 %v5253_v25  ;;  %v1671_v63 = vsel %vm1639_vm9, 65537, %v6828_v37  ;;  %v410_v12 = vmax.f32 %v378_v55, 0.0  ;;  %v411_v14 = vmax.f32 %v379_v56, 0.0  ;;  %v4874_v20 = vunpack.c.l.bf16 %v5009_v0 }
  0x26   : > { %v1518_v54 = vor.u32 %v5285_v48, %v6825_v35  ;;  %v6822_v9 = vshrl.u32 %v5314_v58, 16  ;;  %v1703_v15 = vunpack.c.l.b16 %v1671_v63  ;;  %v434_v18 = vmax.f32 %v402_v59, 0.0 }
  0x27   : > { %v435_v19 = vmax.f32 %v403_v60, 0.0  ;;  %v509_v22 = vand.u32 15, %v5173_v13  ;;  %v4875_v24 = vunpack.c.h.bf16 %v5009_v0  ;;  %v6823_v31 = vshll.u32 %v5314_v58, 16 }
  0x28   : > { %1943 = vmatpush.bf16.msra.mxu0 %v4792_v40  ;;  %5052 = vmatpush.bf16.msra.mxu1 %v4792_v40  ;;  %v1519_v61 = vsel %vm1484_vm7, %v5281_v47, %v1518_v54  ;;  %v4922_v32 = vunpack.c.l.bf16 %v5021_v17  ;;  %v4923_v34 = vunpack.c.h.bf16 %v5021_v17  ;;  %v442_v38 = vpack.c.bf16 %v410_v12, %v410_v12 }
  0x29   : > { %5053 = vmatpush.bf16.msra.mxu2 %v4792_v40  ;;  %5061 = vmatpush.bf16.msra.mxu3 %v5277_v45  ;;  %v5328_v4 = vsel %vm5297_vm8, %v1519_v61, 0  ;;  %v443_v39 = vpack.c.bf16 %v411_v14, %v411_v14  ;;  %v4364_v40 = vunpack.i.l.s16 %v1703_v15  ;;  %v466_v41 = vpack.c.bf16 %v434_v18, %v434_v18  ;;  %v4803_v14 = vld [vmem:[%s6812_s3 + $0xd8] sm:$0xff] }
  0x2a   : > { %v467_v42 = vpack.c.bf16 %v435_v19, %v435_v19  ;;  %v344_v43 = vmul.f32 %v5169_v10, %v4874_v20  ;;  %vm5359_vm10 = vcmp.ge.s32.totalorder %v509_v22, 1  ;;  %v368_v54 = vmul.f32 %v5169_v10, %v4922_v32  ;;  %v4827_v32 = vld [vmem:[%s6812_s3 + $0x18] sm:$0xff] }
  0x2b   : > { %1944 = vmatmul.bf16.vlgmr.msra.gmra.mxu0 %v5304_v53  ;;  %1994 = vmatmul.bf16.vlgmr.msra.gmra.mxu1 %v5240_v11  ;;  %v369_v55 = vmul.f32 %v5169_v10, %v4923_v34  ;;  %v955_v56 = vunpack.c.l.b16 %v442_v38  ;;  %v956_v59 = vunpack.c.l.b16 %v443_v39  ;;  %vm1815_vm11 = vcmp.ne.s32.totalorder %v4364_v40, %v5243_v16  ;;  %vm1615_vm12 = vmpackc.low %vm5359_vm10, %vm5359_vm10  ;;  %v4802_v38 = vld [vmem:[%s6812_s3 + $0xd0] sm:$0xff] }
  0x2c   : > { %2154 = vmatpush.bf16.msrb.mxu1 %v4807_v52  ;;  %2004 = vmatmul.bf16.vlgmr.msra.gmra.mxu2 %v5314_v58  ;;  %v499_v60 = vadd.s32 208, %v5173_v13  ;;  %v979_v61 = vunpack.c.l.b16 %v466_v41  ;;  %v380_v63 = vadd.f32 %v5181_v21, %v344_v43  ;;  %vm1817_vm13 = vmpackc.low %vm5260_vm4, %vm1815_vm11  ;;  %v404_v15 = vadd.f32 %v5181_v21, %v368_v54  ;;  %v4810_v43 = vld [vmem:[%s6812_s3 + $0x150] sm:$0xff] }
  0x2d   : > { %2404 = vmatpush.bf16.msrb.mxu2 %v4815_v50  ;;  %2710 = vmatmul.bf16.vlgmr.msra.gmra.mxu3 %v5328_v4  ;;  %v345_v50 = vmul.f32 %v5169_v10, %v4875_v24  ;;  %v405_v17 = vadd.f32 %v5181_v21, %v369_v55  ;;  %v5408_v18 = vpack.c.b16 %v956_v59, %v955_v56  ;;  %v475_v34 = vadd.s32 16, %v5173_v13  ;;  %v5022_v56 = vld [vmem:[%s5157_s12 + $0x78] sm:$0xff]   ;;  %v4826_v59 = vld [vmem:[%s6812_s3 + $0x10] sm:$0xff] }
  0x2e   : > { %2652 = vmatpush.bf16.msrb.mxu0 %v5135_v1  ;;  %2890 = vmatpush.bf16.msrb.mxu3 %v4831_v62  ;;  %v5356_v1 = vrot.slane %v6822_v9, 7  ;;  %v980_v62 = vunpack.c.l.b16 %v467_v42  ;;  %v412_v22 = vmax.f32 %v380_v63, 0.0  ;;  %v436_v39 = vmax.f32 %v404_v15, 0.0 }
  0x2f   : > { %v381_v0 = vadd.f32 %v5181_v21, %v345_v50  ;;  %v437_v40 = vmax.f32 %v405_v17, 0.0  ;;  %v4926_v15 = vunpack.c.l.bf16 %v5022_v56  ;;  %v4927_v17 = vunpack.c.h.bf16 %v5022_v56 }
  0x30   : > { %2155 = vmatpush.bf16.msrb.mxu1 %v4806_v5  ;;  %v1521_v52 = vor.u32 %v5356_v1, %v6823_v31  ;;  %v691_v5 = vand.u32 15, %v499_v60  ;;  %v5414_v20 = vpack.c.b16 %v980_v62, %v979_v61  ;;  %v444_v44 = vpack.c.bf16 %v412_v22, %v412_v22  ;;  %v4801_v60 = vld [vmem:[%s6812_s3 + $0xc8] sm:$0xff] }
  0x31   : > { %2405 = vmatpush.bf16.msrb.mxu2 %v4814_v7  ;;  %v4828_v7 = vld [vmem:[%s6812_s3 + $0x20] sm:$0xff]  ;;  %v468_v61 = vpack.c.bf16 %v436_v39, %v436_v39  ;;  %v469_v62 = vpack.c.bf16 %v437_v40, %v437_v40 }
  0x32   : > { %2891 = vmatpush.bf16.msrb.mxu3 %v4830_v23  ;;  %2653 = vmatpush.bf16.msrb.mxu0 %v5146_v3  ;;  %v4812_v3 = vld [vmem:[%s6812_s3 + $0x160] sm:$0xff]  ;;  %v1522_v12 = vsel %vm1484_vm7, %v5285_v48, %v1521_v52  ;;  %v4811_v48 = vld [vmem:[%s6812_s3 + $0x158] sm:$0xff]  ;;  %vm5410_vm14 = vcmp.ge.s32.totalorder %v691_v5, 1  ;;  %6879 = vst [vmem:[#allocation4_spill] sm:$0xff] %v5414_v20  ;;  %v1003_v23 = vshrl.u32 %v5304_v53, 16  ;;  %v6820_v41 = vshrl.u32 %v5414_v20, 16 }
  0x33   : > { %v5417_v24 = vsel %vm1817_vm13, %v1522_v12, 0  ;;  %vm1641_vm15 = vmpackc.low %vm5410_vm14, %vm5410_vm14  ;;  %v523_v52 = vand.u32 15, %v475_v34  ;;  %v6821_v55 = vshll.u32 %v5414_v20, 16  ;;  %v501_v5 = vadd.s32 224, %v5173_v13  ;;  %v4808_v39 = vld [vmem:[%s6812_s3 + $0x140] sm:$0xff] }
  0x34   : > { %2156 = vmatpush.bf16.msrb.mxu1 %v4805_v28  ;;  %v413_v28 = vmax.f32 %v381_v0, 0.0  ;;  %v1673_v42 = vsel %vm1641_vm15, 65537, %v6828_v37  ;;  %v5442_v50 = vrot.slane %v1003_v23, 7  ;;  %v5456_v63 = vrot.slane %v6820_v41, 7  ;;  %v4809_v0 = vld [vmem:[%s6812_s3 + $0x148] sm:$0xff] }
  0x35   : > { %2406 = vmatpush.bf16.msrb.mxu2 %v4813_v30  ;;  %vm5465_vm1 = vcmp.ge.s32.totalorder %v523_v52, 1  ;;  %v705_v22 = vand.u32 15, %v501_v5  ;;  %v982_v34 = vunpack.c.l.b16 %v469_v62 }
  0x36   : > { %2892 = vmatpush.bf16.msrb.mxu3 %v4829_v49  ;;  %2654 = vmatpush.bf16.msrb.mxu0 %v5162_v6  ;;  %v1647_v6 = vsel %vm1615_vm12, 65537, %v6828_v37  ;;  %v1005_v49 = vshll.u32 %v5304_v53, 16  ;;  %vm1617_vm6 = vmpackc.low %vm5465_vm1, %vm5465_vm1 }
  0x37   : > { %v1679_v30 = vunpack.c.l.b16 %v1647_v6  ;;  %vm5492_vm8 = vcmp.ge.s32.totalorder %v705_v22, 1 }
  0x38   : > { %2157 = vmatpush.bf16.msrb.mxu1 %v4804_v51  ;;  %v5010_v51 = vld [vmem:[%s5157_s12 + $0x18] sm:$0xff]   ;;  %vm1643_vm10 = vmpackc.low %vm5492_vm8, %vm5492_vm8 }
  0x39   : > { %2407 = vmatpush.bf16.msrb.mxu2 %v4812_v3  ;;  %v445_v3 = vpack.c.bf16 %v413_v28, %v413_v28  ;;  %v4340_v54 = vunpack.i.l.s16 %v1679_v30  ;;  %v4879_v12 = vunpack.c.h.bf16 %v5010_v51  ;;  %v4800_v28 = vld [vmem:[%s6812_s3 + $0xc0] sm:$0xff]  ;;  %v1675_v62 = vsel %vm1643_vm10, 65537, %v6828_v37 }
  0x3a   : > { %2893 = vmatpush.bf16.msrb.mxu3 %v4828_v7  ;;  %2655 = vmatpush.bf16.msrb.mxu0 %v5197_v29  ;;  %v1705_v29 = vunpack.c.l.b16 %v1673_v42  ;;  %v1707_v19 = vunpack.c.l.b16 %v1675_v62  ;;  %v476_v62 = vadd.s32 24, %v5173_v13  ;;  %vm1001_vm10 = vsmask.f32 7424 }
  0x3b   : > { %1949 = vmatmul.bf16.gmra.mxu0 %v5408_v18  ;;  %1999 = vmatmul.bf16.gmra.mxu1 %v5255_v26  ;;  %vm1731_vm3 = vcmp.ne.s32.totalorder %v4340_v54, %v5243_v16  ;;  %v958_v30 = vunpack.c.l.b16 %v445_v3  ;;  %v347_v40 = vmul.f32 %v5169_v10, %v4879_v12  ;;  %v1649_v3 = vsel %vm1617_vm6, 65537, %v6828_v37 }
  0x3c   : > { %2158 = vmatpush.bf16.msrb.mxu1 %v4803_v14  ;;  %2009 = vmatmul.bf16.gmra.mxu2 %v5414_v20  ;;  %v4366_v7 = vunpack.i.l.s16 %v1705_v29  ;;  %v1486_v14 = vor.u32 %v5442_v50, %v1005_v49  ;;  %vm1733_vm9 = vmpackc.low %vm5260_vm4, %vm1731_vm3  ;;  %v370_v29 = vmul.f32 %v5169_v10, %v4926_v15  ;;  %v477_v54 = vadd.s32 32, %v5173_v13 }
  0x3d   : > { %2408 = vmatpush.bf16.msrb.mxu2 %v4811_v48  ;;  %2715 = vmatmul.bf16.gmra.mxu3 %v5417_v24  ;;  %v957_v48 = vunpack.c.l.b16 %v444_v44  ;;  %v371_v44 = vmul.f32 %v5169_v10, %v4927_v17 }
  0x3e   : > { %2894 = vmatpush.bf16.msrb.mxu3 %v4827_v32  ;;  %2656 = vmatpush.bf16.msrb.mxu0 %v5220_v46  ;;  %v4878_v46 = vunpack.c.l.bf16 %v5010_v51  ;;  %v981_v32 = vunpack.c.l.b16 %v468_v61  ;;  %vm1822_vm5 = vcmp.ne.s32.totalorder %v4366_v7, %v5243_v16  ;;  %v406_v61 = vadd.f32 %v5181_v21, %v370_v29 }
  0x3f   : > { %v5508_v51 = vpack.c.b16 %v958_v30, %v957_v48  ;;  %vm1824_vm11 = vmpackc.low %vm5260_vm4, %vm1822_vm5  ;;  %v1014_v7 = vshrl.u32 %v5408_v18, 16  ;;  %v537_v15 = vand.u32 15, %v477_v54  ;;  %v1010_v48 = vshll.u32 %v5408_v18, 16  ;;  %v4855_v30 = vld [vmem:[%s6812_s3 + $0x238] sm:$0xff] }
  0x40   : > { %2159 = vmatpush.bf16.msrb.mxu1 %v4802_v38  ;;  %v1524_v38 = vor.u32 %v5456_v63, %v6821_v55  ;;  %v5516_v56 = vpack.c.b16 %v982_v34, %v981_v32  ;;  %v438_v22 = vmax.f32 %v406_v61, 0.0  ;;  %v4825_v32 = vld [vmem:[%s6812_s3 + $0x8] sm:$0xff]  ;;  %v4847_v34 = vld [vmem:[%s6812_s3 + $0x78] sm:$0xff] }
  0x41   : > { %2409 = vmatpush.bf16.msrb.mxu2 %v4810_v43  ;;  %v1550_v43 = vsel %vm5471_vm2, 0, %v1486_v14  ;;  %v5011_v14 = vld [vmem:[%s5157_s12 + $0x20] sm:$0xff]   ;;  %vm5556_vm12 = vcmp.ge.s32.totalorder %v537_v15, 1  ;;  %v4845_v55 = vld [vmem:[%s6812_s3 + $0x68] sm:$0xff] }
  0x42   : > { %2895 = vmatpush.bf16.msrb.mxu3 %v4826_v59  ;;  %2657 = vmatpush.bf16.msrb.mxu0 %v5235_v2  ;;  %v346_v2 = vmul.f32 %v5169_v10, %v4878_v46  ;;  %v1525_v52 = vsel %vm1484_vm7, %v5356_v1, %v1524_v38  ;;  %v5518_v59 = vsel %vm1733_vm9, %v1550_v43, 0  ;;  %v407_v1 = vadd.f32 %v5181_v21, %v371_v44  ;;  %vm1619_vm15 = vmpackc.low %vm5556_vm12, %vm5556_vm12 }
  0x43   : > { %v5526_v5 = vsel %vm1824_vm11, %v1525_v52, 0  ;;  %v1681_v46 = vunpack.c.l.b16 %v1649_v3  ;;  %v6818_v12 = vshrl.u32 %v5516_v56, 16  ;;  %v5548_v38 = vrot.slane %v1014_v7, 7  ;;  %v4824_v52 = vld [vmem:[%s6812_s3] sm:$0xff] }
  0x44   : > { %2160 = vmatpush.bf16.msrb.mxu1 %v4801_v60  ;;  %v383_v60 = vadd.f32 %v5181_v21, %v347_v40  ;;  %v503_v40 = vadd.s32 240, %v5173_v13  ;;  %v6819_v42 = vshll.u32 %v5516_v56, 16  ;;  %v4883_v29 = vunpack.c.h.bf16 %v5011_v14 }
  0x45   : > { %2410 = vmatpush.bf16.msrb.mxu2 %v4809_v0  ;;  %v474_v0 = vadd.s32 8, %v5173_v13  ;;  %v5554_v43 = vrot.slane %v6818_v12, 7  ;;  %v470_v61 = vpack.c.bf16 %v438_v22, %v438_v22  ;;  %vm5645_vm11 = vcmp.ne.s32.totalorder %v5237_v8, %v5243_v16 }
  0x46   : > { %2658 = vmatpush.bf16.msrb.mxu0 %v5253_v25  ;;  %v382_v25 = vadd.f32 %v5181_v21, %v346_v2  ;;  %v415_v6 = vmax.f32 %v383_v60, 0.0  ;;  %v4882_v2 = vunpack.c.l.bf16 %v5011_v14  ;;  %2896 = vmatpush.bf16.msrb.mxu3 %v4825_v32  ;;  %v719_v60 = vand.u32 15, %v503_v40 }
  0x47   : > { %v1527_v14 = vor.u32 %v5554_v43, %v6819_v42  ;;  %v349_v15 = vmul.f32 %v5169_v10, %v4883_v29  ;;  %v983_v22 = vunpack.c.l.b16 %v470_v61 }
  0x48   : > { %2161 = vmatpush.bf16.msrb.mxu1 %v4800_v28  ;;  %v414_v17 = vmax.f32 %v382_v25, 0.0  ;;  %v439_v28 = vmax.f32 %v407_v1, 0.0  ;;  %v447_v54 = vpack.c.bf16 %v415_v6, %v415_v6  ;;  %v4368_v25 = vunpack.i.l.s16 %v1707_v19 }
  0x49   : > { %2411 = vmatpush.bf16.msrb.mxu2 %v4808_v39  ;;  %v4342_v39 = vunpack.i.l.s16 %v1681_v46  ;;  %v348_v46 = vmul.f32 %v5169_v10, %v4882_v2  ;;  %vm5579_vm0 = vcmp.ge.s32.totalorder %v719_v60, 1 }
  0x4a   : > { %2659 = vmatpush.bf16.msrb.mxu0 %v5277_v45  ;;  %v516_v45 = vand.u32 15, %v474_v0  ;;  %v446_v3 = vpack.c.bf16 %v414_v17, %v414_v17  ;;  %v471_v1 = vpack.c.bf16 %v439_v28, %v439_v28  ;;  %v1488_v0 = vor.u32 %v5548_v38, %v1010_v48  ;;  %2897 = vmatpush.bf16.msrb.mxu3 %v4824_v52  ;;  %vm1645_vm5 = vmpackc.low %vm5579_vm0, %vm5579_vm0 }
  0x4b   : > { %1954 = vmatmul.bf16.gmra.mxu0 %v5508_v51  ;;  %2162 = vmatmul.bf16.vlgmr.msrb.gmra.mxu1 %v5518_v59  ;;  %vm1738_vm14 = vcmp.ne.s32.totalorder %v4342_v39, %v5243_v16  ;;  %v960_v19 = vunpack.c.l.b16 %v447_v54  ;;  %vm1829_vm1 = vcmp.ne.s32.totalorder %v4368_v25, %v5243_v16  ;;  %v384_v32 = vadd.f32 %v5181_v21, %v348_v46 }
  0x4c   : > { %2014 = vmatmul.bf16.gmra.mxu2 %v5516_v56  ;;  %3368 = vmatpush.bf16.msra.mxu1 %v4847_v34  ;;  %vm5563_vm13 = vcmp.le.s32.totalorder %v516_v45, 14  ;;  %v959_v6 = vunpack.c.l.b16 %v446_v3  ;;  %v984_v28 = vunpack.c.l.b16 %v471_v1  ;;  %vm1740_vm3 = vmpackc.low %vm5260_vm4, %vm1738_vm14  ;;  %v1651_v45 = vsel %vm1619_vm15, 65537, %v6828_v37 }
  0x4d   : > { %2720 = vmatmul.bf16.gmra.mxu3 %v5526_v5  ;;  %3607 = vmatpush.bf16.msra.mxu2 %v4855_v30  ;;  %vm1213_vm2 = vmpackc.low %vm5563_vm13, %vm5563_vm13  ;;  %v1489_v30 = vsel %vm1484_vm7, %v5442_v50, %v1488_v0  ;;  %v1528_v34 = vsel %vm1484_vm7, %v5456_v63, %v1527_v14  ;;  %v385_v39 = vadd.f32 %v5181_v21, %v349_v15  ;;  %v1683_v29 = vunpack.c.l.b16 %v1651_v45  ;;  %v5012_v15 = vld [vmem:[%s5157_s12 + $0x28] sm:$0xff]  }
  0x4e   : > { %vm1831_vm6 = vmpackc.low %vm5260_vm4, %vm1829_vm1  ;;  %v1245_v2 = vsel %vm1213_vm2, 65537, %v6828_v37  ;;  %v5602_v40 = vpack.c.b16 %v960_v19, %v959_v6  ;;  %v5604_v50 = vpack.c.b16 %v984_v28, %v983_v22  ;;  %v5606_v44 = vsel %vm1740_vm3, %v1489_v30, 0  ;;  %v4863_v6 = vld [vmem:[%s6812_s3 + $0xb8] sm:$0xff] }
  0x4f   : > { %v1677_v52 = vsel %vm1645_vm5, 65537, %v6828_v37  ;;  %v479_v3 = vadd.s32 48, %v5173_v13  ;;  %v5610_v63 = vsel %vm1831_vm6, %v1528_v34, 0  ;;  %v416_v54 = vmax.f32 %v384_v32, 0.0  ;;  %3846 = vmatpush.bf16.msra.mxu3 %v4863_v6 }
  0x50   : > { %v1022_v25 = vshrl.u32 %v5508_v51, 16  ;;  %v1277_v60 = vunpack.c.l.b16 %v1245_v2  ;;  %v417_v61 = vmax.f32 %v385_v39, 0.0  ;;  %v6816_v1 = vshrl.u32 %v5604_v50, 16 }
  0x51   : > { %v4344_v0 = vunpack.i.l.s16 %v1683_v29  ;;  %v1709_v46 = vunpack.c.l.b16 %v1677_v52  ;;  %v1007_v14 = vrot.slane %v1005_v49, 1  ;;  %v551_v17 = vand.u32 15, %v479_v3 }
  0x52   : > { %v448_v19 = vpack.c.bf16 %v416_v54, %v416_v54  ;;  %v1018_v22 = vshll.u32 %v5508_v51, 16  ;;  %v5628_v28 = vrot.slane %v1022_v25, 7  ;;  %v4309_v45 = vunpack.i.l.s16 %v1277_v60 }
  0x53   : > { %v449_v30 = vpack.c.bf16 %v417_v61, %v417_v61  ;;  %v6817_v49 = vshll.u32 %v5604_v50, 16  ;;  %v1529_v32 = vrot.slane %v6816_v1, 7  ;;  %v530_v34 = vand.u32 15, %v476_v62 }
  0x54   : > { %vm1745_vm8 = vcmp.ne.s32.totalorder %v4344_v0, %v5243_v16  ;;  %v4370_v39 = vunpack.i.l.s16 %v1709_v46  ;;  %v4886_v2 = vunpack.c.l.bf16 %v5012_v15  ;;  %v4887_v29 = vunpack.c.h.bf16 %v5012_v15 }
  0x55   : > { %v1008_v52 = vor.u32 %v1007_v14, %v1003_v23  ;;  %vm5636_vm9 = vcmp.ge.s32.totalorder %v551_v17, 1  ;;  %v1491_v54 = vor.u32 %v5628_v28, %v1018_v22  ;;  %vm1329_vm12 = vcmp.ne.s32.totalorder %v4309_v45, %v5224_v57  ;;  %vm5652_vm13 = vmpackc.low %vm5260_vm4, %vm1745_vm8 }
  0x56   : > { %v961_v61 = vunpack.c.l.b16 %v448_v19  ;;  %v1012_v62 = vrot.slane %v1010_v48, 1  ;;  %v1530_v0 = vor.u32 %v1529_v32, %v6817_v49  ;;  %vm5660_vm14 = vcmp.le.s32.totalorder %v530_v34, 14  ;;  %vm1621_vm0 = vmpackc.low %vm5636_vm9, %vm5636_vm9 }
  0x57   : > { %v962_v46 = vunpack.c.l.b16 %v449_v30  ;;  %vm1836_vm15 = vcmp.ne.s32.totalorder %v4370_v39, %v5243_v16  ;;  %v350_v14 = vmul.f32 %v5169_v10, %v4886_v2  ;;  %v351_v15 = vmul.f32 %v5169_v10, %v4887_v29  ;;  %vm1330_vm1 = vmpackc.low %vm1329_vm12, %vm5645_vm11 }
  0x58   : > { %v1492_v48 = vsel %vm1484_vm7, %v5548_v38, %v1491_v54  ;;  %vm1215_vm2 = vmpackc.low %vm5660_vm14, %vm5660_vm14  ;;  %v1013_v17 = vsel %vm1001_vm10, %v1008_v52, %v1012_v62  ;;  %v1531_v6 = vsel %vm1484_vm7, %v5554_v43, %v1530_v0  ;;  %v1653_v19 = vsel %vm1621_vm0, 65537, %v6828_v37  ;;  %v5013_v0 = vld [vmem:[%s5157_s12 + $0x30] sm:$0xff]  }
  0x59   : > { %vm1838_vm3 = vmpackc.low %vm5260_vm4, %vm1836_vm15  ;;  %v5683_v45 = vpack.c.b16 %v962_v46, %v961_v61  ;;  %v386_v30 = vadd.f32 %v5181_v21, %v350_v14  ;;  %v387_v38 = vadd.f32 %v5181_v21, %v351_v15  ;;  %v5689_v32 = vsel %vm5652_vm13, %v1492_v48, 0  ;;  %v4854_v46 = vld [vmem:[%s6812_s3 + $0x230] sm:$0xff] }
  0x5a   : > { %v1247_v34 = vsel %vm1215_vm2, 65537, %v6828_v37  ;;  %v481_v43 = vadd.s32 64, %v5173_v13  ;;  %v5693_v39 = vsel %vm1330_vm1, %v1013_v17, 0  ;;  %v5695_v2 = vsel %vm1838_vm3, %v1531_v6, 0  ;;  %v4846_v14 = vld [vmem:[%s6812_s3 + $0x70] sm:$0xff]  ;;  %3608 = vmatpush.bf16.msra.mxu2 %v4854_v46 }
  0x5b   : > { %1959 = vmatmul.bf16.gmra.mxu0 %v5602_v40  ;;  %2167 = vmatmul.bf16.gmra.mxu1 %v5606_v44  ;;  %v1030_v29 = vshrl.u32 %v5602_v40, 16  ;;  %v1685_v52 = vunpack.c.l.b16 %v1653_v19  ;;  %v478_v3 = vadd.s32 40, %v5173_v13  ;;  %v418_v54 = vmax.f32 %v386_v30, 0.0 }
  0x5c   : > { %2019 = vmatmul.bf16.gmra.mxu2 %v5604_v50  ;;  %v419_v61 = vmax.f32 %v387_v38, 0.0  ;;  %v1279_v23 = vunpack.c.l.b16 %v1247_v34  ;;  %v565_v8 = vand.u32 15, %v481_v43  ;;  %v1026_v15 = vshll.u32 %v5602_v40, 16  ;;  %3369 = vmatpush.bf16.msra.mxu1 %v4846_v14 }
  0x5d   : > { %2725 = vmatmul.bf16.gmra.mxu3 %v5610_v63  ;;  %v5713_v48 = vrot.slane %v1030_v29, 7  ;;  %v4346_v17 = vunpack.i.l.s16 %v1685_v52  ;;  %v4890_v6 = vunpack.c.l.bf16 %v5013_v0  ;;  %v544_v19 = vand.u32 15, %v478_v3 }
  0x5e   : > { %v450_v30 = vpack.c.bf16 %v418_v54, %v418_v54  ;;  %v451_v38 = vpack.c.bf16 %v419_v61, %v419_v61  ;;  %v4311_v34 = vunpack.i.l.s16 %v1279_v23  ;;  %v4891_v43 = vunpack.c.h.bf16 %v5013_v0 }
  0x5f   : > { %vm5715_vm5 = vcmp.ge.s32.totalorder %v565_v8, 1  ;;  %v1494_v49 = vor.u32 %v5713_v48, %v1026_v15  ;;  %vm1752_vm6 = vcmp.ne.s32.totalorder %v4346_v17, %v5243_v16  ;;  %v1016_v52 = vor.u32 %v1014_v7, %v1012_v62 }
  0x60   : > { %v1020_v3 = vrot.slane %v1018_v22, 1  ;;  %v352_v54 = vmul.f32 %v5169_v10, %v4890_v6  ;;  %vm5728_vm8 = vcmp.le.s32.totalorder %v544_v19, 14  ;;  %v963_v23 = vunpack.c.l.b16 %v450_v30  ;;  %vm1623_vm12 = vmpackc.low %vm5715_vm5, %vm5715_vm5  ;;  %3370 = vmatpush.bf16.msra.mxu1 %v4845_v55 }
  0x61   : > { %v964_v0 = vunpack.c.l.b16 %v451_v38  ;;  %vm1336_vm9 = vcmp.ne.s32.totalorder %v4311_v34, %v5224_v57  ;;  %v353_v8 = vmul.f32 %v5169_v10, %v4891_v43  ;;  %vm1754_vm13 = vmpackc.low %vm5260_vm4, %vm1752_vm6  ;;  %v1495_v7 = vsel %vm1484_vm7, %v5628_v28, %v1494_v49  ;;  %v5014_v43 = vld [vmem:[%s5157_s12 + $0x38] sm:$0xff]  }
  0x62   : > { %vm1217_vm14 = vmpackc.low %vm5728_vm8, %vm5728_vm8  ;;  %v1021_v22 = vsel %vm1001_vm10, %v1016_v52, %v1020_v3  ;;  %v388_v10 = vadd.f32 %v5181_v21, %v352_v54  ;;  %v1655_v1 = vsel %vm1623_vm12, 65537, %v6828_v37  ;;  %v5752_v14 = vsel %vm1754_vm13, %v1495_v7, 0  ;;  %v4862_v54 = vld [vmem:[%s6812_s3 + $0xb0] sm:$0xff] }
  0x63   : > { %vm1337_vm15 = vmpackc.low %vm1336_vm9, %vm5645_vm11  ;;  %v5749_v62 = vpack.c.b16 %v964_v0, %v963_v23  ;;  %v389_v46 = vadd.f32 %v5181_v21, %v353_v8  ;;  %v1249_v28 = vsel %vm1217_vm14, 65537, %v6828_v37  ;;  %v483_v49 = vadd.s32 80, %v5173_v13  ;;  %3847 = vmatpush.bf16.msra.mxu3 %v4862_v54 }
  0x64   : > { %v5756_v17 = vsel %vm1337_vm15, %v1021_v22, 0  ;;  %v1038_v6 = vshrl.u32 %v5683_v45, 16  ;;  %v1687_v19 = vunpack.c.l.b16 %v1655_v1  ;;  %v420_v30 = vmax.f32 %v388_v10, 0.0 }
  0x65   : > { %6904 = vst [vmem:[#allocation5_spill] sm:$0xff] %v5749_v62  ;;  %v480_v38 = vadd.s32 56, %v5173_v13  ;;  %v421_v34 = vmax.f32 %v389_v46, 0.0  ;;  %v1281_v21 = vunpack.c.l.b16 %v1249_v28  ;;  %v579_v52 = vand.u32 15, %v483_v49 }
  0x66   : > { %v1034_v61 = vshll.u32 %v5683_v45, 16  ;;  %v5771_v23 = vrot.slane %v1038_v6, 7  ;;  %v4348_v0 = vunpack.i.l.s16 %v1687_v19  ;;  %v452_v8 = vpack.c.bf16 %v420_v30, %v420_v30 }
  0x67   : > { %v558_v7 = vand.u32 15, %v480_v38  ;;  %v453_v22 = vpack.c.bf16 %v421_v34, %v421_v34  ;;  %v4313_v10 = vunpack.i.l.s16 %v1281_v21  ;;  %v4894_v1 = vunpack.c.l.bf16 %v5014_v43  ;;  %v5793_v21 = vld [vmem:[%s6810_s1] ss:$0 sm:$0xff] }
  0x68   : > { %vm5773_vm0 = vcmp.ge.s32.totalorder %v579_v52, 1  ;;  %v1497_v28 = vor.u32 %v5771_v23, %v1034_v61  ;;  %vm1759_vm1 = vcmp.ne.s32.totalorder %v4348_v0, %v5243_v16  ;;  %v965_v49 = vunpack.c.l.b16 %v452_v8  ;;  %v5816_v0 = vld [vmem:[%s6811_s2] ss:$0 sm:$0xff] }
  0x69   : > { %v1024_v19 = vor.u32 %v1022_v25, %v1020_v3  ;;  %v1028_v30 = vrot.slane %v1026_v15, 1  ;;  %vm5785_vm2 = vcmp.le.s32.totalorder %v558_v7, 14  ;;  %v966_v34 = vunpack.c.l.b16 %v453_v22  ;;  %vm1625_vm5 = vmpackc.low %vm5773_vm0, %vm5773_vm0 }
  0x6a   : > { %vm1343_vm3 = vcmp.ne.s32.totalorder %v4313_v10, %v5224_v57  ;;  %vm1761_vm6 = vmpackc.low %vm5260_vm4, %vm1759_vm1  ;;  %v1498_v25 = vsel %vm1484_vm7, %v5713_v48, %v1497_v28  ;;  %v1657_v3 = vsel %vm1625_vm5, 65537, %v6828_v37  ;;  %v485_v10 = vadd.s32 96, %v5173_v13 }
  0x6b   : > { %1964 = vmatmul.bf16.gmra.mxu0 %v5683_v45  ;;  %2172 = vmatmul.bf16.gmra.mxu1 %v5689_v32  ;;  %vm1219_vm8 = vmpackc.low %vm5785_vm2, %vm5785_vm2  ;;  %v1029_v15 = vsel %vm1001_vm10, %v1024_v19, %v1028_v30  ;;  %v5811_v54 = vpack.c.b16 %v966_v34, %v965_v49  ;;  %v5820_v7 = vsel %vm1761_vm6, %v1498_v25, 0  ;;  %v1689_v46 = vunpack.c.l.b16 %v1657_v3  ;;  %v5015_v34 = vld [vmem:[%s5157_s12 + $0x40] sm:$0xff]  }
  0x6c   : > { %2412 = vmatmul.bf16.vlgmr.msrb.gmra.mxu2 %v5693_v39  ;;  %vm1344_vm9 = vmpackc.low %vm1343_vm3, %vm5645_vm11  ;;  %v1251_v22 = vsel %vm1219_vm8, 65537, %v6828_v37  ;;  %v482_v28 = vadd.s32 72, %v5173_v13  ;;  %v1042_v25 = vshll.u32 %v5749_v62, 16  ;;  %v4899_v41 = vunpack.c.h.bf16 %v5015_v34 }
  0x6d   : > { %2730 = vmatmul.bf16.gmra.mxu3 %v5695_v2  ;;  %6909 = vst [vmem:[#allocation6_spill] sm:$0xff] %v5811_v54  ;;  %v1283_v38 = vunpack.c.l.b16 %v1251_v22  ;;  %v4350_v3 = vunpack.i.l.s16 %v1689_v46  ;;  %v1032_v46 = vor.u32 %v1030_v29, %v1028_v30 }
  0x6f   : > { %v4315_v42 = vunpack.i.l.s16 %v1283_v38  ;;  %vm1766_vm13 = vcmp.ne.s32.totalorder %v4350_v3, %v5243_v16  ;;  %v6827_v3 = vshrl.u32 %v5811_v54, 16 }
  0x70   : > { %vm1768_vm1 = vmpackc.low %vm5260_vm4, %vm1766_vm13 }
  0x71   : > { %vm1350_vm15 = vcmp.ne.s32.totalorder %v4315_v42, %v5224_v57 }
  0x72   : > { %vm1351_vm3 = vmpackc.low %vm1350_vm15, %vm5645_vm11 }
  0x7b   : > { %1969 = vmatmul.bf16.gmra.mxu0 %v5749_v62  ;;  %2177 = vmatmul.bf16.gmra.mxu1 %v5752_v14 }
  0x7c   : > { %2417 = vmatmul.bf16.gmra.mxu2 %v5756_v17 }
  0x7d   : > { %2898 = vmatmul.bf16.vlgmr.msrb.gmra.mxu3 %v5518_v59  ;;  %v4895_v59 = vunpack.c.h.bf16 %v5014_v43  ;;  %v354_v43 = vmul.f32 %v5793_v21, %v4894_v1  ;;  %v5824_v1 = vsel %vm1344_vm9, %v1029_v15, 0 }
  0x7f   : > { %v355_v52 = vmul.f32 %v5793_v21, %v4895_v59  ;;  %v390_v48 = vadd.f32 %v5816_v0, %v354_v43  ;;  %v1046_v59 = vshrl.u32 %v5749_v62, 16  ;;  %v593_v43 = vand.u32 15, %v485_v10 }
  0x81   : > { %v391_v8 = vadd.f32 %v5816_v0, %v355_v52  ;;  %v422_v49 = vmax.f32 %v390_v48, 0.0  ;;  %v4853_v52 = vld [vmem:[%s6812_s3 + $0x228] sm:$0xff]  ;;  %v5839_v15 = vrot.slane %v1046_v59, 7  ;;  %v4898_v48 = vunpack.c.l.bf16 %v5015_v34 }
  0x82   : > { %3609 = vmatpush.bf16.msra.mxu2 %v4853_v52  ;;  %vm5841_vm12 = vcmp.ge.s32.totalorder %v593_v43, 1  ;;  %v357_v43 = vmul.f32 %v5793_v21, %v4899_v41 }
  0x83   : > { %v423_v19 = vmax.f32 %v391_v8, 0.0  ;;  %v572_v8 = vand.u32 15, %v482_v28  ;;  %v454_v22 = vpack.c.bf16 %v422_v49, %v422_v49  ;;  %v1500_v9 = vor.u32 %v5839_v15, %v1042_v25  ;;  %vm1627_vm0 = vmpackc.low %vm5841_vm12, %vm5841_vm12 }
  0x84   : > { %v1036_v28 = vrot.slane %v1034_v61, 1  ;;  %v356_v49 = vmul.f32 %v5793_v21, %v4898_v48  ;;  %v393_v61 = vadd.f32 %v5816_v0, %v357_v43  ;;  %v5900_v43 = vrot.slane %v6827_v3, 7 }
  0x85   : > { %v455_v12 = vpack.c.bf16 %v423_v19, %v423_v19  ;;  %vm5857_vm14 = vcmp.le.s32.totalorder %v572_v8, 14  ;;  %v967_v38 = vunpack.c.l.b16 %v454_v22  ;;  %v1501_v29 = vsel %vm1484_vm7, %v5771_v23, %v1500_v9 }
  0x86   : > { %vm1221_vm2 = vmpackc.low %vm5857_vm14, %vm5857_vm14  ;;  %v1037_v55 = vsel %vm1001_vm10, %v1032_v46, %v1036_v28  ;;  %v392_v41 = vadd.f32 %v5816_v0, %v356_v49  ;;  %v5881_v30 = vsel %vm1768_vm1, %v1501_v29, 0  ;;  %v487_v23 = vadd.s32 112, %v5173_v13  ;;  %v5016_v49 = vld [vmem:[%s5157_s12 + $0x48] sm:$0xff]  }
  0x87   : > { %v968_v34 = vunpack.c.l.b16 %v455_v12  ;;  %v1659_v12 = vsel %vm1627_vm0, 65537, %v6828_v37  ;;  %v1253_v9 = vsel %vm1221_vm2, 65537, %v6828_v37  ;;  %v5885_v52 = vsel %vm1351_vm3, %v1037_v55, 0 }
  0x88   : > { %v1691_v48 = vunpack.c.l.b16 %v1659_v12  ;;  %v424_v8 = vmax.f32 %v392_v41, 0.0  ;;  %v484_v22 = vadd.s32 88, %v5173_v13  ;;  %v425_v10 = vmax.f32 %v393_v61, 0.0 }
  0x89   : > { %v5878_v42 = vpack.c.b16 %v968_v34, %v967_v38  ;;  %v1285_v46 = vunpack.c.l.b16 %v1253_v9  ;;  %v607_v19 = vand.u32 15, %v487_v23  ;;  %v4861_v38 = vld [vmem:[%s6812_s3 + $0xa8] sm:$0xff]  ;;  %v1050_v34 = vshll.u32 %v5811_v54, 16 }
  0x8a   : > { %v4352_v29 = vunpack.i.l.s16 %v1691_v48  ;;  %v456_v55 = vpack.c.bf16 %v424_v8, %v424_v8  ;;  %v586_v41 = vand.u32 15, %v484_v22  ;;  %3848 = vmatpush.bf16.msra.mxu3 %v4861_v38  ;;  %v457_v12 = vpack.c.bf16 %v425_v10, %v425_v10  ;;  %v4852_v22 = vld [vmem:[%s6812_s3 + $0x220] sm:$0xff] }
  0x8b   : > { %1974 = vmatmul.bf16.gmra.mxu0 %v5811_v54  ;;  %2182 = vmatmul.bf16.gmra.mxu1 %v5820_v7  ;;  %6914 = vst [vmem:[#allocation7_spill] sm:$0xff] %v5878_v42  ;;  %v4317_v61 = vunpack.i.l.s16 %v1285_v46  ;;  %v4902_v9 = vunpack.c.l.bf16 %v5016_v49  ;;  %v4903_v31 = vunpack.c.h.bf16 %v5016_v49  ;;  %vm5902_vm5 = vcmp.ge.s32.totalorder %v607_v19, 1 }
  0x8c   : > { %2422 = vmatmul.bf16.gmra.mxu2 %v5824_v1  ;;  %v1503_v36 = vor.u32 %v5900_v43, %v1050_v34  ;;  %vm1773_vm6 = vcmp.ne.s32.totalorder %v4352_v29, %v5243_v16  ;;  %v969_v35 = vunpack.c.l.b16 %v456_v55  ;;  %v1040_v48 = vor.u32 %v1038_v6, %v1036_v28  ;;  %vm1629_vm12 = vmpackc.low %vm5902_vm5, %vm5902_vm5 }
  0x8d   : > { %2903 = vmatmul.bf16.gmra.mxu3 %v5606_v44  ;;  %v1044_v8 = vrot.slane %v1042_v25, 1  ;;  %vm5914_vm8 = vcmp.le.s32.totalorder %v586_v41, 14  ;;  %v970_v10 = vunpack.c.l.b16 %v457_v12  ;;  %vm1357_vm9 = vcmp.ne.s32.totalorder %v4317_v61, %v5224_v57  ;;  %vm1775_vm13 = vmpackc.low %vm5260_vm4, %vm1773_vm6  ;;  %3610 = vmatpush.bf16.msra.mxu2 %v4852_v22 }
  0x8e   : > { %v358_v46 = vmul.f32 %v5793_v21, %v4902_v9  ;;  %v359_v49 = vmul.f32 %v5793_v21, %v4903_v31  ;;  %v1504_v6 = vsel %vm1484_vm7, %v5839_v15, %v1503_v36  ;;  %vm1223_vm14 = vmpackc.low %vm5914_vm8, %vm5914_vm8  ;;  %v1661_v31 = vsel %vm1629_vm12, 65537, %v6828_v37 }
  0x8f   : > { %v1045_v25 = vsel %vm1001_vm10, %v1040_v48, %v1044_v8  ;;  %vm1358_vm15 = vmpackc.low %vm1357_vm9, %vm5645_vm11  ;;  %v5935_v21 = vpack.c.b16 %v970_v10, %v969_v35  ;;  %v5943_v15 = vsel %vm1775_vm13, %v1504_v6, 0  ;;  %v1255_v29 = vsel %vm1223_vm14, 65537, %v6828_v37  ;;  %v4839_v10 = vld [vmem:[%s6812_s3 + $0x1f8] sm:$0xff] }
  0x90   : > { %v394_v28 = vadd.f32 %v5816_v0, %v358_v46  ;;  %v395_v19 = vadd.f32 %v5816_v0, %v359_v49  ;;  %v489_v55 = vadd.s32 128, %v5173_v13  ;;  %v5947_v41 = vsel %vm1358_vm15, %v1045_v25, 0  ;;  %3129 = vmatpush.bf16.msra.mxu0 %v4839_v10 }
  0x91   : > { %6919 = vst [vmem:[#allocation8_spill] sm:$0xff] %v5947_v41  ;;  %v6830_v12 = vshrl.u32 %v5878_v42, 16  ;;  %v1693_v35 = vunpack.c.l.b16 %v1661_v31  ;;  %v486_v61 = vadd.s32 104, %v5173_v13  ;;  %v1287_v23 = vunpack.c.l.b16 %v1255_v29 }
  0x92   : > { %v426_v0 = vmax.f32 %v394_v28, 0.0  ;;  %v427_v9 = vmax.f32 %v395_v19, 0.0  ;;  %v621_v48 = vand.u32 15, %v489_v55  ;;  %v6831_v46 = vshll.u32 %v5878_v42, 16 }
  0x93   : > { %v5964_v49 = vrot.slane %v6830_v12, 7  ;;  %v4354_v6 = vunpack.i.l.s16 %v1693_v35  ;;  %v600_v25 = vand.u32 15, %v486_v61  ;;  %v4319_v55 = vunpack.i.l.s16 %v1287_v23  ;;  %v4844_v61 = vld [vmem:[%s6812_s3 + $0x60] sm:$0xff] }
  0x94   : > { %v458_v19 = vpack.c.bf16 %v426_v0, %v426_v0  ;;  %v459_v29 = vpack.c.bf16 %v427_v9, %v427_v9  ;;  %vm5974_vm0 = vcmp.ge.s32.totalorder %v621_v48, 1  ;;  %v1048_v0 = vor.u32 %v1046_v59, %v1044_v8  ;;  %3371 = vmatpush.bf16.msra.mxu1 %v4844_v61 }
  0x95   : > { %v1506_v35 = vor.u32 %v5964_v49, %v6831_v46  ;;  %vm1780_vm1 = vcmp.ne.s32.totalorder %v4354_v6, %v5243_v16  ;;  %v1052_v9 = vrot.slane %v1050_v34, 1  ;;  %vm5989_vm2 = vcmp.le.s32.totalorder %v600_v25, 14  ;;  %vm1631_vm5 = vmpackc.low %vm5974_vm0, %vm5974_vm0 }
  0x96   : > { %v971_v48 = vunpack.c.l.b16 %v458_v19  ;;  %v972_v22 = vunpack.c.l.b16 %v459_v29  ;;  %vm1364_vm3 = vcmp.ne.s32.totalorder %v4319_v55, %v5224_v57  ;;  %vm1782_vm6 = vmpackc.low %vm5260_vm4, %vm1780_vm1  ;;  %v6927_v8 = vmov 0  }
  0x97   : > { %v1507_v59 = vsel %vm1484_vm7, %v5900_v43, %v1506_v35  ;;  %vm1225_vm8 = vmpackc.low %vm5989_vm2, %vm5989_vm2  ;;  %v1053_v34 = vsel %vm1001_vm10, %v1048_v0, %v1052_v9  ;;  %v1663_v37 = vsel %vm1631_vm5, 65537, %v6927_v8  ;;  %v491_v35 = vadd.s32 144, %v5173_v13 }
  0x98   : > { %vm1365_vm9 = vmpackc.low %vm1364_vm3, %vm5645_vm11  ;;  %v6012_v25 = vpack.c.b16 %v972_v22, %v971_v48  ;;  %v6018_v29 = vsel %vm1782_vm6, %v1507_v59, 0  ;;  %v1257_v55 = vsel %vm1225_vm8, 65537, %v6927_v8  ;;  %v6838_v0 = vshrl.u32 %v5935_v21, 16  ;;  %v4860_v59 = vld [vmem:[%s6812_s3 + $0xa0] sm:$0xff] }
  0x99   : > { %v6022_v61 = vsel %vm1365_vm9, %v1053_v34, 0  ;;  %v1695_v23 = vunpack.c.l.b16 %v1663_v37  ;;  %v488_v12 = vadd.s32 120, %v5173_v13  ;;  %v1289_v48 = vunpack.c.l.b16 %v1257_v55  ;;  %3849 = vmatpush.bf16.msra.mxu3 %v4860_v59 }
  0x9a   : > { %6930 = vst [vmem:[#allocation14_spill] sm:$0xff] %v6012_v25  ;;  %v635_v22 = vand.u32 15, %v491_v35  ;;  %v1066_v34 = vshll.u32 %v5935_v21, 16  ;;  %v6036_v37 = vrot.slane %v6838_v0, 7 }
  0x9b   : > { %1979 = vmatmul.bf16.gmra.mxu0 %v5878_v42  ;;  %2187 = vmatmul.bf16.gmra.mxu1 %v5881_v30  ;;  %6932 = vst [vmem:[#allocation16_spill] sm:$0xff] %v6022_v61  ;;  %v4356_v46 = vunpack.i.l.s16 %v1695_v23  ;;  %v6938_v23 = vshrl.u32 %v5811_v54, 16 }
  0x9c   : > { %2427 = vmatmul.bf16.gmra.mxu2 %v5885_v52  ;;  %vm6046_vm12 = vcmp.ge.s32.totalorder %v635_v22, 1  ;;  %v1509_v62 = vor.u32 %v6036_v37, %v1066_v34 }
  0x9d   : > { %2908 = vmatmul.bf16.gmra.mxu3 %v5689_v32  ;;  %vm1787_vm13 = vcmp.ne.s32.totalorder %v4356_v46, %v5243_v16  ;;  %v1056_v59 = vor.u32 %v6938_v23, %v1052_v9  ;;  %vm1633_vm0 = vmpackc.low %vm6046_vm12, %vm6046_vm12 }
  0x9e   : > { %vm1789_vm1 = vmpackc.low %vm5260_vm4, %vm1787_vm13  ;;  %v1510_v46 = vsel %vm1484_vm7, %v5964_v49, %v1509_v62  ;;  %v493_v49 = vadd.s32 160, %v5173_v13 }
  0x9f   : > { %v6084_v23 = vsel %vm1789_vm1, %v1510_v46, 0 }
  0xa8   : > { %v5939_v38 = vpop.f32.mrf.mxu0  ;;  %v5941_v36 = vpop.f32.mrf.mxu1 }
  0xab   : > { %1984 = vmatmul.bf16.gmra.mxu0 %v5935_v21  ;;  %2192 = vmatmul.bf16.gmra.mxu1 %v5943_v15 }
  0xac   : > { %2432 = vmatmul.bf16.gmra.mxu2 %v5947_v41  ;;  %v1665_v41 = vsel %vm1633_vm0, 65537, %v6927_v8 }
  0xad   : > { %2913 = vmatmul.bf16.gmra.mxu3 %v5752_v14  ;;  %v1697_v54 = vunpack.c.l.b16 %v1665_v41 }
  0xaf   : > { %v5966_v31 = vpop.f32.mrf.mxu2 }
  0xb0   : > { %6920 = vst [vmem:[#allocation9_spill] sm:$0xff] %v5966_v31  ;;  %v5968_v28 = vpop.f32.mrf.mxu3  ;;  %v5970_v27 = vpop.f32.mrf.mxu0 }
  0xb1   : > { %6921 = vst [vmem:[#allocation10_spill] sm:$0xff] %v5968_v28  ;;  %v5972_v3 = vpop.f32.mrf.mxu1 }
  0xb2   : > { %6922 = vst [vmem:[#allocation11_spill] sm:$0xff] %v5972_v3 }
  0xb7   : > { %v6008_v10 = vpop.f32.mrf.mxu2 }
  0xb8   : > { %6928 = vst [vmem:[#allocation12_spill] sm:$0xff] %v6008_v10  ;;  %v6010_v6 = vpop.f32.mrf.mxu3  ;;  %v6014_v19 = vpop.f32.mrf.mxu0  ;;  %v614_v10 = vand.u32 15, %v488_v12  ;;  %v4838_v12 = vld [vmem:[%s6812_s3 + $0x1f0] sm:$0xff] }
  0xb9   : > { %6929 = vst [vmem:[#allocation13_spill] sm:$0xff] %v6010_v6  ;;  %v6016_v43 = vpop.f32.mrf.mxu1  ;;  %3130 = vmatpush.bf16.msra.mxu0 %v4838_v12 }
  0xba   : > { %6931 = vst [vmem:[#allocation15_spill] sm:$0xff] %v6016_v43  ;;  %vm6059_vm14 = vcmp.le.s32.totalorder %v614_v10, 14 }
  0xbb   : > { %1989 = vmatmul.bf16.gmra.mxu0 %v6012_v25  ;;  %2197 = vmatmul.bf16.gmra.mxu1 %v6018_v29  ;;  %vm1227_vm2 = vmpackc.low %vm6059_vm14, %vm6059_vm14 }
  0xbc   : > { %2437 = vmatmul.bf16.gmra.mxu2 %v6022_v61  ;;  %v4321_v61 = vunpack.i.l.s16 %v1289_v48  ;;  %v6939_v48 = vshll.u32 %v5878_v42, 16  ;;  %v1259_v62 = vsel %vm1227_vm2, 65537, %v6927_v8 }
  0xbd   : > { %2918 = vmatmul.bf16.gmra.mxu3 %v5820_v7  ;;  %v1291_v46 = vunpack.c.l.b16 %v1259_v62 }
  0xbe   : > { %v1060_v0 = vrot.slane %v6939_v48, 1  ;;  %vm1371_vm15 = vcmp.ne.s32.totalorder %v4321_v61, %v5224_v57  ;;  %v6843_v48 = vshrl.u32 %v6012_v25, 16 }
  0xbf   : > { %v6038_v31 = vpop.f32.mrf.mxu2  ;;  %vm1372_vm3 = vmpackc.low %vm1371_vm15, %vm5645_vm11  ;;  %v4323_v62 = vunpack.i.l.s16 %v1291_v46  ;;  %v6948_v46 = vshrl.u32 %v5878_v42, 16 }
  0xc0   : > { %6933 = vst [vmem:[#allocation17_spill] sm:$0xff] %v6038_v31  ;;  %v6040_v55 = vpop.f32.mrf.mxu3  ;;  %v6042_v43 = vpop.f32.mrf.mxu0  ;;  %v1061_v9 = vsel %vm1001_vm10, %v1056_v59, %v1060_v0  ;;  %v1511_v41 = vrot.slane %v6843_v48, 7 }
  0xc1   : > { %6934 = vst [vmem:[#allocation18_spill] sm:$0xff] %v6040_v55  ;;  %v6044_v35 = vpop.f32.mrf.mxu1  ;;  %v6091_v59 = vsel %vm1372_vm3, %v1061_v9, 0  ;;  %v1074_v9 = vshll.u32 %v6012_v25, 16  ;;  %vm1378_vm9 = vcmp.ne.s32.totalorder %v4323_v62, %v5224_v57 }
  0xc2   : > { %6935 = vst [vmem:[#allocation19_spill] sm:$0xff] %v6044_v35  ;;  %vm1379_vm15 = vmpackc.low %vm1378_vm9, %vm5645_vm11 }
  0xc3   : > { %6944 = vst [vmem:[#allocation22_spill] sm:$0xff] %v6091_v59  ;;  %v1512_v28 = vor.u32 %v1511_v41, %v1074_v9 }
  0xc7   : > { %v6078_v10 = vpop.f32.mrf.mxu2 }
  0xc8   : > { %6942 = vst [vmem:[#allocation20_spill] sm:$0xff] %v6078_v10  ;;  %v6080_v61 = vpop.f32.mrf.mxu3  ;;  %v6082_v22 = vpop.f32.mrf.mxu0  ;;  %v490_v10 = vadd.s32 136, %v5173_v13 }
  0xc9   : > { %6943 = vst [vmem:[#allocation21_spill] sm:$0xff] %v6080_v61  ;;  %v2163_v12 = vpop.f32.mrf.mxu1  ;;  %v649_v61 = vand.u32 15, %v493_v49 }
  0xca   : > { %v6089_v31 = vadd.f32 %v2163_v12, %v5939_v38  ;;  %v4851_v38 = vld [vmem:[%s6812_s3 + $0x218] sm:$0xff]  ;;  %v4358_v12 = vunpack.i.l.s16 %v1697_v54  ;;  %v628_v35 = vand.u32 15, %v490_v10  ;;  %v4837_v54 = vld [vmem:[%s6812_s3 + $0x1e8] sm:$0xff] }
  0xcb   : > { %2202 = vmatmul.bf16.gmra.mxu1 %v6084_v23  ;;  %2660 = vmatmul.bf16.vlgmr.msrb.gmra.mxu0 %v5606_v44  ;;  %vm6111_vm5 = vcmp.ge.s32.totalorder %v649_v61, 1  ;;  %v4843_v10 = vld [vmem:[%s6812_s3 + $0x58] sm:$0xff]  ;;  %v1064_v61 = vor.u32 %v6948_v46, %v1060_v0  ;;  %v492_v46 = vadd.s32 152, %v5173_v13 }
  0xcc   : > { %2442 = vmatmul.bf16.gmra.mxu2 %v6091_v59  ;;  %vm1794_vm6 = vcmp.ne.s32.totalorder %v4358_v12, %v5243_v16  ;;  %vm6127_vm8 = vcmp.le.s32.totalorder %v628_v35, 14  ;;  %vm1635_vm12 = vmpackc.low %vm6111_vm5, %vm6111_vm5  ;;  %3131 = vmatpush.bf16.msra.mxu0 %v4837_v54 }
  0xcd   : > { %2923 = vmatmul.bf16.gmra.mxu3 %v5881_v30  ;;  %3611 = vmatpush.bf16.msra.mxu2 %v4851_v38  ;;  %v1068_v38 = vrot.slane %v1066_v34, 1  ;;  %vm1796_vm13 = vmpackc.low %vm5260_vm4, %vm1794_vm6  ;;  %v1667_v6 = vsel %vm1635_vm12, 65537, %v6927_v8 }
  0xce   : > { %3372 = vmatpush.bf16.msra.mxu1 %v4843_v10  ;;  %vm1229_vm14 = vmpackc.low %vm6127_vm8, %vm6127_vm8  ;;  %v1699_v54 = vunpack.c.l.b16 %v1667_v6  ;;  %v4859_v10 = vld [vmem:[%s6812_s3 + $0x98] sm:$0xff] }
  0xcf   : > { %v6105_v55 = vpop.f32.mrf.mxu2  ;;  %v1069_v0 = vsel %vm1001_vm10, %v1064_v61, %v1068_v38  ;;  %3850 = vmatpush.bf16.msra.mxu3 %v4859_v10  ;;  %v1076_v10 = vrot.slane %v1074_v9, 1 }
  0xd0   : > { %6945 = vst [vmem:[#allocation23_spill] sm:$0xff] %v6105_v55  ;;  %v6107_v44 = vpop.f32.mrf.mxu3  ;;  %v6109_v59 = vpop.f32.mrf.mxu0  ;;  %v6158_v48 = vsel %vm1379_vm15, %v1069_v0, 0  ;;  %v642_v0 = vand.u32 15, %v492_v46 }
  0xd1   : > { %v2165_v49 = vpop.f32.mrf.mxu1  ;;  %6952 = vst [vmem:[#allocation25_spill] sm:$0xff] %v6158_v48 }
  0xd2   : > { %v6116_v3 = vadd.f32 %v2165_v49, %v5970_v27  ;;  %v1513_v27 = vsel %vm1484_vm7, %v6036_v37, %v1512_v28  ;;  %v1261_v28 = vsel %vm1229_vm14, 65537, %v6927_v8  ;;  %vm908_vm1 = vcmp.le.s32.totalorder %v642_v0, 14 }
  0xd3   : > { %v6152_v49 = vsel %vm1796_vm13, %v1513_v27, 0  ;;  %v1293_v61 = vunpack.c.l.b16 %v1261_v28  ;;  %v4360_v27 = vunpack.i.l.s16 %v1699_v54  ;;  %vm1231_vm5 = vmpackc.low %vm908_vm1, %vm908_vm1 }
  0xd4   : > { %v1263_v33 = vsel %vm1231_vm5, 65537, %v6927_v8 }
  0xd5   : > { %vm1801_vm0 = vcmp.ne.s32.totalorder %v4360_v27, %v5243_v16  ;;  %v1295_v27 = vunpack.c.l.b16 %v1263_v33 }
  0xd6   : > { %vm1803_vm3 = vmpackc.low %vm5260_vm4, %vm1801_vm0 }
  0xd7   : > { %v6146_v34 = vpop.f32.mrf.mxu2 }
  0xd8   : > { %6951 = vst [vmem:[#allocation24_spill] sm:$0xff] %v6146_v34  ;;  %v6148_v35 = vpop.f32.mrf.mxu3  ;;  %v6150_v12 = vpop.f32.mrf.mxu0  ;;  %v4325_v34 = vunpack.i.l.s16 %v1293_v61  ;;  %v494_v61 = vadd.s32 168, %v5173_v13 }
  0xd9   : > { %v2168_v62 = vpop.f32.mrf.mxu1 }
  0xda   : > { %v6156_v37 = vadd.f32 %v2168_v62, %v6014_v19  ;;  %v1082_v19 = vshll.u32 %v5240_v11, 16  ;;  %vm1385_vm2 = vcmp.ne.s32.totalorder %v4325_v34, %v5224_v57  ;;  %v656_v0 = vand.u32 15, %v494_v61 }
  0xdb   : > { %2207 = vmatmul.bf16.gmra.mxu1 %v6152_v49  ;;  %2665 = vmatmul.bf16.gmra.mxu0 %v5689_v32  ;;  %vm1386_vm6 = vmpackc.low %vm1385_vm2, %vm5645_vm11 }
  0xdc   : > { %2447 = vmatmul.bf16.gmra.mxu2 %v6158_v48  ;;  %v1515_v28 = vor.u32 %v5281_v47, %v1082_v19  ;;  %v6954_v48 = vshrl.u32 %v5935_v21, 16  ;;  %vm910_vm4 = vcmp.le.s32.totalorder %v656_v0, 14 }
  0xdd   : > { %2928 = vmatmul.bf16.gmra.mxu3 %v5943_v15  ;;  %vm1233_vm8 = vmpackc.low %vm910_vm4, %vm910_vm4 }
  0xde   : > { %v1072_v54 = vor.u32 %v6954_v48, %v1068_v38  ;;  %v1516_v46 = vsel %vm1484_vm7, %v1511_v41, %v1515_v28  ;;  %v4836_v48 = vld [vmem:[%s6812_s3 + $0x1e0] sm:$0xff] }
  0xdf   : > { %v6169_v6 = vpop.f32.mrf.mxu2  ;;  %v6195_v38 = vsel %vm1803_vm3, %v1516_v46, 0  ;;  %3132 = vmatpush.bf16.msra.mxu0 %v4836_v48  ;;  %v4327_v46 = vunpack.i.l.s16 %v1295_v27  ;;  %v6957_v48 = vshrl.u32 %v6012_v25, 16  ;;  %v6961_v25 = vshll.u32 %v5255_v26, 16 }
  0xe0   : > { %6953 = vst [vmem:[#allocation26_spill] sm:$0xff] %v6169_v6  ;;  %v6171_v62 = vpop.f32.mrf.mxu3  ;;  %v6173_v55 = vpop.f32.mrf.mxu0 }
  0xe1   : > { %v2170_v42 = vpop.f32.mrf.mxu1  ;;  %v1080_v61 = vor.u32 %v6957_v48, %v1076_v10  ;;  %vm1392_vm7 = vcmp.ne.s32.totalorder %v4327_v46, %v5224_v57  ;;  %v496_v48 = vadd.s32 184, %v5173_v13 }
  0xe2   : > { %v6176_v32 = vadd.f32 %v2170_v42, %v6042_v43  ;;  %v1077_v42 = vsel %vm1001_vm10, %v1072_v54, %v1076_v10  ;;  %vm1393_vm9 = vmpackc.low %vm1392_vm7, %vm5645_vm11 }
  0xe3   : > { %v6201_v41 = vsel %vm1386_vm6, %v1077_v42, 0 }
  0xe4   : > { %6956 = vst [vmem:[#allocation28_spill] sm:$0xff] %v6201_v41 }
  0xe7   : > { %v6189_v47 = vpop.f32.mrf.mxu2 }
  0xe8   : > { %6955 = vst [vmem:[#allocation27_spill] sm:$0xff] %v6189_v47  ;;  %v6191_v16 = vpop.f32.mrf.mxu3  ;;  %v6193_v43 = vpop.f32.mrf.mxu0  ;;  %v4842_v47 = vld [vmem:[%s6812_s3 + $0x50] sm:$0xff] }
  0xe9   : > { %v2173_v9 = vpop.f32.mrf.mxu1  ;;  %3373 = vmatpush.bf16.msra.mxu1 %v4842_v47  ;;  %v4858_v47 = vld [vmem:[%s6812_s3 + $0x90] sm:$0xff] }
  0xea   : > { %v6199_v34 = vadd.f32 %v2173_v9, %v6082_v22  ;;  %v4850_v22 = vld [vmem:[%s6812_s3 + $0x210] sm:$0xff]  ;;  %3851 = vmatpush.bf16.msra.mxu3 %v4858_v47 }
  0xeb   : > { %2212 = vmatmul.bf16.gmra.mxu1 %v6195_v38  ;;  %2670 = vmatmul.bf16.gmra.mxu0 %v5752_v14 }
  0xec   : > { %2452 = vmatmul.bf16.gmra.mxu2 %v6201_v41 }
  0xed   : > { %2933 = vmatmul.bf16.gmra.mxu3 %v6018_v29  ;;  %3612 = vmatpush.bf16.msra.mxu2 %v4850_v22  ;;  %v1084_v22 = vrot.slane %v1082_v19, 1  ;;  %v1265_v19 = vsel %vm1233_vm8, 65537, %v6927_v8 }
  0xef   : > { %v2413_v28 = vpop.f32.mrf.mxu2 }
  0xf0   : > { %v6214_v54 = vpop.f32.mrf.mxu3  ;;  %v6217_v42 = vadd.f32 %v2413_v28, %v6089_v31  ;;  %v6219_v14 = vpop.f32.mrf.mxu0  ;;  %v1085_v31 = vsel %vm1001_vm10, %v1080_v61, %v1084_v22  ;;  %v4835_v61 = vld [vmem:[%s6812_s3 + $0x1d8] sm:$0xff] }
  0xf1   : > { %v2175_v9 = vpop.f32.mrf.mxu1  ;;  %v6247_v46 = vsel %vm1393_vm9, %v1085_v31, 0  ;;  %3133 = vmatpush.bf16.msra.mxu0 %v4835_v61 }
  0xf2   : > { %v6222_v33 = vadd.f32 %v2175_v9, %v6109_v59  ;;  %6958 = vst [vmem:[#allocation29_spill] sm:$0xff] %v6247_v46 }
  0xf7   : > { %v2415_v59 = vpop.f32.mrf.mxu2 }
  0xf8   : > { %v6233_v27 = vpop.f32.mrf.mxu3  ;;  %v6236_v28 = vadd.f32 %v2415_v59, %v6116_v3  ;;  %v6238_v9 = vpop.f32.mrf.mxu0  ;;  %v1297_v3 = vunpack.c.l.b16 %v1265_v19 }
  0xf9   : > { %v2178_v10 = vpop.f32.mrf.mxu1 }
  0xfa   : > { %v6245_v0 = vadd.f32 %v2178_v10, %v6150_v12  ;;  %v670_v12 = vand.u32 15, %v496_v48  ;;  %v4329_v10 = vunpack.i.l.s16 %v1297_v3  ;;  %v1092_v48 = vrot.slane %v6961_v25, 1 }
  0xfb   : > { %2217 = vmatmul.bf16.gmra.mxu1 %v5328_v4  ;;  %2675 = vmatmul.bf16.gmra.mxu0 %v5820_v7 }
  0xfc   : > { %2457 = vmatmul.bf16.gmra.mxu2 %v6247_v46  ;;  %v6960_v46 = vshrl.u32 %v5240_v11, 16  ;;  %vm912_vm12 = vcmp.le.s32.totalorder %v670_v12, 14  ;;  %vm1399_vm13 = vcmp.ne.s32.totalorder %v4329_v10, %v5224_v57 }
  0xfd   : > { %2938 = vmatmul.bf16.gmra.mxu3 %v6084_v23  ;;  %vm1235_vm14 = vmpackc.low %vm912_vm12, %vm912_vm12 }
  0xfe   : > { %v1088_v41 = vor.u32 %v6960_v46, %v1084_v22  ;;  %vm1400_vm15 = vmpackc.low %vm1399_vm13, %vm5645_vm11  ;;  %v1267_v25 = vsel %vm1235_vm14, 65537, %v6927_v8 }
  0xff   : > { %v2418_v31 = vpop.f32.mrf.mxu2  ;;  %v1299_v10 = vunpack.c.l.b16 %v1267_v25 }
 0x100   : > { %v6257_v59 = vpop.f32.mrf.mxu3  ;;  %v6260_v47 = vadd.f32 %v2418_v31, %v6156_v37  ;;  %v6262_v6 = vpop.f32.mrf.mxu0  ;;  %v1093_v3 = vsel %vm1001_vm10, %v1088_v41, %v1092_v48  ;;  %v498_v41 = vadd.s32 200, %v5173_v13 }
 0x101   : > { %6959 = vst [vmem:[#allocation30_spill] sm:$0xff] %v6257_v59  ;;  %v2180_v7 = vpop.f32.mrf.mxu1  ;;  %v6286_v12 = vsel %vm1400_vm15, %v1093_v3, 0 }
 0x102   : > { %v6265_v19 = vadd.f32 %v2180_v7, %v6173_v55  ;;  %6963 = vst [vmem:[#allocation32_spill] sm:$0xff] %v6286_v12  ;;  %v684_v7 = vand.u32 15, %v498_v41  ;;  %v4841_v41 = vld [vmem:[%s6812_s3 + $0x48] sm:$0xff] }
 0x103   : > { %3374 = vmatpush.bf16.msra.mxu1 %v4841_v41 }
 0x104   : > { %vm914_vm0 = vcmp.le.s32.totalorder %v684_v7, 14 }
 0x105   : > { %vm1237_vm2 = vmpackc.low %vm914_vm0, %vm914_vm0 }
 0x107   : > { %v2420_v37 = vpop.f32.mrf.mxu2 }
 0x108   : > { %v6275_v61 = vpop.f32.mrf.mxu3  ;;  %v6278_v55 = vadd.f32 %v2420_v37, %v6176_v32  ;;  %v6280_v31 = vpop.f32.mrf.mxu0  ;;  %v4849_v32 = vld [vmem:[%s6812_s3 + $0x208] sm:$0xff]  ;;  %v4331_v37 = vunpack.i.l.s16 %v1299_v10 }
 0x109   : > { %6962 = vst [vmem:[#allocation31_spill] sm:$0xff] %v6275_v61  ;;  %v2183_v22 = vpop.f32.mrf.mxu1  ;;  %3613 = vmatpush.bf16.msra.mxu2 %v4849_v32  ;;  %v4857_v10 = vld [vmem:[%s6812_s3 + $0x88] sm:$0xff] }
 0x10a   : > { %v6284_v46 = vadd.f32 %v2183_v22, %v6193_v43  ;;  %vm1406_vm1 = vcmp.ne.s32.totalorder %v4331_v37, %v5224_v57  ;;  %3852 = vmatpush.bf16.msra.mxu3 %v4857_v10  ;;  %v1269_v37 = vsel %vm1237_vm2, 65537, %v6927_v8  ;;  %v500_v10 = vadd.s32 216, %v5173_v13 }
 0x10b   : > { %2222 = vmatmul.bf16.gmra.mxu1 %v5417_v24  ;;  %2680 = vmatmul.bf16.gmra.mxu0 %v5881_v30  ;;  %vm1407_vm3 = vmpackc.low %vm1406_vm1, %vm5645_vm11  ;;  %vm1145_vm2 = vcmask 1047552  }
 0x10c   : > { %2462 = vmatmul.bf16.gmra.mxu2 %v6286_v12  ;;  %v4834_v12 = vld [vmem:[%s6812_s3 + $0x1d0] sm:$0xff] }
 0x10d   : > { %2943 = vmatmul.bf16.gmra.mxu3 %v6152_v49  ;;  %3134 = vmatpush.bf16.msra.mxu0 %v4834_v12 }
 0x10f   : > { %v2423_v43 = vpop.f32.mrf.mxu2 }
 0x110   : > { %v6296_v3 = vpop.f32.mrf.mxu3  ;;  %v6299_v22 = vadd.f32 %v2423_v43, %v6199_v34  ;;  %v6301_v61 = vpop.f32.mrf.mxu0  ;;  %v6965_v34 = vshrl.u32 %v5255_v26, 16  ;;  %v6966_v43 = vshll.u32 %v5314_v58, 16 }
 0x111   : > { %6964 = vst [vmem:[#allocation33_spill] sm:$0xff] %v6296_v3  ;;  %v2185_v30 = vpop.f32.mrf.mxu1 }
 0x112   : > { %v6304_v25 = vadd.f32 %v2185_v30, %v6219_v14  ;;  %v1096_v32 = vor.u32 %v6965_v34, %v1092_v48  ;;  %v1100_v3 = vrot.slane %v6966_v43, 1 }
 0x114   : > { %v1101_v14 = vsel %vm1001_vm10, %v1096_v32, %v1100_v3  ;;  %v1301_v32 = vunpack.c.l.b16 %v1269_v37  ;;  %v6970_v37 = vshrl.u32 %v5314_v58, 16 }
 0x115   : > { %v6334_v41 = vsel %vm1407_vm3, %v1101_v14, 0  ;;  %vm1146_vm3 = vmand %vm1145_vm2, %vm1001_vm10 }
 0x116   : > { %6968 = vst [vmem:[#allocation35_spill] sm:$0xff] %v6334_v41 }
 0x117   : > { %v2425_v30 = vpop.f32.mrf.mxu2 }
 0x118   : > { %v6323_v59 = vpop.f32.mrf.mxu3  ;;  %v6326_v48 = vadd.f32 %v2425_v30, %v6222_v33  ;;  %v6328_v34 = vpop.f32.mrf.mxu0  ;;  %v698_v33 = vand.u32 15, %v500_v10  ;;  %v1104_v10 = vor.u32 %v6970_v37, %v1100_v3  ;;  %v4840_v3 = vld [vmem:[%s6812_s3 + $0x40] sm:$0xff]  ;;  %v502_v37 = vadd.s32 232, %v5173_v13 }
 0x119   : > { %6967 = vst [vmem:[#allocation34_spill] sm:$0xff] %v6323_v59  ;;  %v2188_v7 = vpop.f32.mrf.mxu1  ;;  %v4333_v59 = vunpack.i.l.s16 %v1301_v32  ;;  %3375 = vmatpush.bf16.msra.mxu1 %v4840_v3 }
 0x11a   : > { %v6332_v12 = vadd.f32 %v2188_v7, %v6238_v9  ;;  %vm916_vm5 = vcmp.le.s32.totalorder %v698_v33, 14 }
 0x11b   : > { %2227 = vmatmul.bf16.gmra.mxu1 %v5526_v5  ;;  %2685 = vmatmul.bf16.gmra.mxu0 %v5943_v15  ;;  %v4833_v15 = vld [vmem:[%s6812_s3 + $0x1c8] sm:$0xff]  ;;  %vm1413_vm6 = vcmp.ne.s32.totalorder %v4333_v59, %v5224_v57  ;;  %vm1239_vm4 = vmpackc.low %vm916_vm5, %vm916_vm5 }
 0x11c   : > { %2467 = vmatmul.bf16.gmra.mxu2 %v6334_v41  ;;  %v6971_v41 = vshll.u32 %v5414_v20, 16  ;;  %3135 = vmatpush.bf16.msra.mxu0 %v4833_v15  ;;  %vm1414_vm7 = vmpackc.low %vm1413_vm6, %vm5645_vm11  ;;  %v1271_v33 = vsel %vm1239_vm4, 65537, %v6927_v8 }
 0x11d   : > { %2948 = vmatmul.bf16.gmra.mxu3 %v6195_v38 }
 0x11f   : > { %v2428_v43 = vpop.f32.mrf.mxu2 }
 0x120   : > { %v6341_v30 = vpop.f32.mrf.mxu3  ;;  %v6344_v9 = vadd.f32 %v2428_v43, %v6245_v0  ;;  %v6346_v14 = vpop.f32.mrf.mxu0 }
 0x121   : > { %6969 = vst [vmem:[#allocation36_spill] sm:$0xff] %v6341_v30  ;;  %v2190_v7 = vpop.f32.mrf.mxu1  ;;  %v1108_v30 = vrot.slane %v6971_v41, 1 }
 0x122   : > { %v6349_v26 = vadd.f32 %v2190_v7, %v6262_v6 }
 0x123   : > { %v1109_v0 = vsel %vm1001_vm10, %v1104_v10, %v1108_v30  ;;  %v1303_v10 = vunpack.c.l.b16 %v1271_v33 }
 0x124   : > { %v6376_v15 = vsel %vm1414_vm7, %v1109_v0, 0 }
 0x125   : > { %6973 = vst [vmem:[#allocation38_spill] sm:$0xff] %v6376_v15  ;;  %v4335_v3 = vunpack.i.l.s16 %v1303_v10 }
 0x127   : > { %v2430_v6 = vpop.f32.mrf.mxu2  ;;  %vm1420_vm9 = vcmp.ne.s32.totalorder %v4335_v3, %v5224_v57 }
 0x128   : > { %v6362_v32 = vpop.f32.mrf.mxu3  ;;  %v6368_v43 = vadd.f32 %v2430_v6, %v6265_v19  ;;  %v6370_v41 = vpop.f32.mrf.mxu0  ;;  %v4848_v19 = vld [vmem:[%s6812_s3 + $0x200] sm:$0xff]  ;;  %vm1421_vm13 = vmpackc.low %vm1420_vm9, %vm5645_vm11 }
 0x129   : > { %6972 = vst [vmem:[#allocation37_spill] sm:$0xff] %v6362_v32  ;;  %v2193_v59 = vpop.f32.mrf.mxu1  ;;  %3614 = vmatpush.bf16.msra.mxu2 %v4848_v19 }
 0x12a   : > { %v6374_v7 = vadd.f32 %v2193_v59, %v6280_v31  ;;  %v712_v31 = vand.u32 15, %v502_v37  ;;  %v6975_v37 = vshrl.u32 %v5414_v20, 16 }
 0x12b   : > { %2232 = vmatmul.bf16.gmra.mxu1 %v5610_v63  ;;  %2690 = vmatmul.bf16.gmra.mxu0 %v6018_v29 }
 0x12c   : > { %2472 = vmatmul.bf16.gmra.mxu2 %v6376_v15  ;;  %v1112_v19 = vor.u32 %v6975_v37, %v1108_v30  ;;  %v6976_v15 = vshll.u32 %v5516_v56, 16  ;;  %vm918_vm8 = vcmp.le.s32.totalorder %v712_v31, 14  ;;  %v504_v37 = vadd.s32 248, %v5173_v13 }
 0x12d   : > { %2953 = vmatmul.bf16.gmra.mxu3 %v5328_v4  ;;  %v4856_v4 = vld [vmem:[%s6812_s3 + $0x80] sm:$0xff]  ;;  %vm1241_vm12 = vmpackc.low %vm918_vm8, %vm918_vm8 }
 0x12e   : > { %3853 = vmatpush.bf16.msra.mxu3 %v4856_v4  ;;  %v4832_v4 = vld [vmem:[%s6812_s3 + $0x1c0] sm:$0xff] }
 0x12f   : > { %v2433_v0 = vpop.f32.mrf.mxu2  ;;  %3136 = vmatpush.bf16.msra.mxu0 %v4832_v4 }
 0x130   : > { %v6386_v6 = vpop.f32.mrf.mxu3  ;;  %v6389_v59 = vadd.f32 %v2433_v0, %v6284_v46  ;;  %v6391_v32 = vpop.f32.mrf.mxu0 }
 0x131   : > { %6974 = vst [vmem:[#allocation39_spill] sm:$0xff] %v6386_v6  ;;  %v2195_v29 = vpop.f32.mrf.mxu1  ;;  %v1116_v6 = vrot.slane %v6976_v15, 1  ;;  %v1273_v15 = vsel %vm1241_vm12, 65537, %v6927_v8 }
 0x132   : > { %v6394_v33 = vadd.f32 %v2195_v29, %v6301_v61 }
 0x133   : > { %v1117_v46 = vsel %vm1001_vm10, %v1112_v19, %v1116_v6 }
 0x134   : > { %v6416_v3 = vsel %vm1421_vm13, %v1117_v46, 0 }
 0x135   : > { %6978 = vst [vmem:[#allocation41_spill] sm:$0xff] %v6416_v3 }
 0x137   : > { %v2435_v61 = vpop.f32.mrf.mxu2 }
 0x138   : > { %v6407_v10 = vpop.f32.mrf.mxu3  ;;  %v6410_v0 = vadd.f32 %v2435_v61, %v6304_v25  ;;  %v1990_v30 = vpop.f32.mrf.mxu0  ;;  %v1305_v25 = vunpack.c.l.b16 %v1273_v15 }
 0x139   : > { %6977 = vst [vmem:[#allocation40_spill] sm:$0xff] %v6407_v10  ;;  %v2198_v29 = vpop.f32.mrf.mxu1 }
 0x13a   : > { %v6414_v31 = vadd.f32 %v2198_v29, %v6328_v34  ;;  %v726_v34 = vand.u32 15, %v504_v37  ;;  %v4337_v61 = vunpack.i.l.s16 %v1305_v25 }
 0x13b   : > { %2237 = vmatmul.bf16.gmra.mxu1 %v5695_v2  ;;  %2695 = vmatmul.bf16.gmra.mxu0 %v6084_v23  ;;  %v6979_v23 = vshrl.u32 %v5516_v56, 16 }
 0x13c   : > { %2477 = vmatmul.bf16.gmra.mxu2 %v6416_v3  ;;  %v6980_v3 = vshll.u32 %v5604_v50, 16  ;;  %vm920_vm14 = vcmp.le.s32.totalorder %v726_v34, 14  ;;  %vm1427_vm15 = vcmp.ne.s32.totalorder %v4337_v61, %v5224_v57 }
 0x13d   : > { %2958 = vmatmul.bf16.gmra.mxu3 %v5417_v24  ;;  %v1120_v15 = vor.u32 %v6979_v23, %v1116_v6  ;;  %vm1243_vm0 = vmpackc.low %vm920_vm14, %vm920_vm14 }
 0x13e   : > { %v1124_v20 = vrot.slane %v6980_v3, 1  ;;  %vm1428_vm1 = vmpackc.low %vm1427_vm15, %vm5645_vm11  ;;  %v1275_v25 = vsel %vm1243_vm0, 65537, %v6927_v8 }
 0x13f   : > { %v2438_v19 = vpop.f32.mrf.mxu2  ;;  %v1307_v61 = vunpack.c.l.b16 %v1275_v25 }
 0x140   : > { %v6426_v46 = vpop.f32.mrf.mxu3  ;;  %v6429_v29 = vadd.f32 %v2438_v19, %v6332_v12  ;;  %v1992_v10 = vpop.f32.mrf.mxu0  ;;  %v1125_v24 = vsel %vm1001_vm10, %v1120_v15, %v1124_v20 }
 0x141   : > { %v2200_v13 = vpop.f32.mrf.mxu1  ;;  %v6450_v19 = vsel %vm1428_vm1, %v1125_v24, 0  ;;  %v4339_v8 = vunpack.i.l.s16 %v1307_v61 }
 0x142   : > { %v2258_v2 = vadd.f32 %v2200_v13, %v6346_v14 }
 0x143   : > { %vm1434_vm5 = vcmp.ne.s32.totalorder %v4339_v8, %v5224_v57 }
 0x144   : > { %vm1435_vm6 = vmpackc.low %vm1434_vm5, %vm5645_vm11 }
 0x147   : > { %v2440_v12 = vpop.f32.mrf.mxu2 }
 0x148   : > { %v6440_v4 = vpop.f32.mrf.mxu3  ;;  %v6443_v14 = vadd.f32 %v2440_v12, %v6349_v26  ;;  %v2661_v6 = vpop.f32.mrf.mxu0 }
 0x149   : > { %v2203_v37 = vpop.f32.mrf.mxu1  ;;  %v6448_v34 = vadd.f32 %v2661_v6, %v6217_v42 }
 0x14a   : > { %v2259_v3 = vadd.f32 %v2203_v37, %v6370_v41 }
 0x14b   : > { %2700 = vmatmul.bf16.gmra.mxu0 %v6152_v49  ;;  %3376 = vmatmul.bf16.vlgmr.msra.gmra.mxu1 %v5304_v53  ;;  %v6981_v53 = vshrl.u32 %v5604_v50, 16 }
 0x14c   : > { %2482 = vmatmul.bf16.gmra.mxu2 %v6450_v19 }
 0x14d   : > { %2963 = vmatmul.bf16.gmra.mxu3 %v5526_v5  ;;  %v1128_v24 = vor.u32 %v6981_v53, %v1124_v20 }
 0x14f   : > { %v2443_v26 = vpop.f32.mrf.mxu2  ;;  %v1147_v5 = vsel %vm1146_vm3, %v1128_v24, 0 }
 0x150   : > { %v6456_v13 = vpop.f32.mrf.mxu3  ;;  %v6459_v41 = vadd.f32 %v2443_v26, %v6374_v7  ;;  %v2663_v23 = vpop.f32.mrf.mxu0  ;;  %v6479_v20 = vsel %vm1435_vm6, %v1147_v5, 0 }
 0x151   : > { %v2205_v42 = vpop.f32.mrf.mxu1  ;;  %v6463_v49 = vadd.f32 %v2663_v23, %v6236_v28 }
 0x152   : > { %v2260_v15 = vadd.f32 %v2205_v42, %v6391_v32 }
 0x157   : > { %v2445_v7 = vpop.f32.mrf.mxu2 }
 0x158   : > { %v6471_v12 = vpop.f32.mrf.mxu3  ;;  %v6474_v37 = vadd.f32 %v2445_v7, %v6394_v33  ;;  %v2666_v28 = vpop.f32.mrf.mxu0 }
 0x159   : > { %v2208_v32 = vpop.f32.mrf.mxu1  ;;  %v6477_v25 = vadd.f32 %v2666_v28, %v6260_v47 }
 0x15a   : > { %v2261_v6 = vadd.f32 %v2208_v32, %v1990_v30 }
 0x15b   : > { %2705 = vmatmul.bf16.gmra.mxu0 %v6195_v38  ;;  %3381 = vmatmul.bf16.gmra.mxu1 %v5408_v18 }
 0x15c   : > { %2487 = vmatmul.bf16.gmra.mxu2 %v6479_v20 }
 0x15d   : > { %2968 = vmatmul.bf16.gmra.mxu3 %v5610_v63 }
 0x15f   : > { %v2448_v57 = vpop.f32.mrf.mxu2 }
 0x160   : > { %v6485_v60 = vpop.f32.mrf.mxu3  ;;  %v6488_v33 = vadd.f32 %v2448_v57, %v6414_v31  ;;  %v2668_v61 = vpop.f32.mrf.mxu0 }
 0x161   : > { %v2210_v30 = vpop.f32.mrf.mxu1  ;;  %v6491_v26 = vadd.f32 %v2668_v61, %v6278_v55 }
 0x162   : > { %v2262_v47 = vadd.f32 %v2210_v30, %v1992_v10 }
 0x167   : > { %v2450_v8 = vpop.f32.mrf.mxu2 }
 0x168   : > { %v6493_v38 = vpop.f32.mrf.mxu3  ;;  %v6495_v42 = vadd.f32 %v2450_v8, %v2258_v2  ;;  %v2671_v53 = vpop.f32.mrf.mxu0 }
 0x169   : > { %v2213_v23 = vpop.f32.mrf.mxu1  ;;  %v6498_v63 = vadd.f32 %v2671_v53, %v6299_v22 }
 0x16b   : > { %3137 = vmatmul.bf16.vlgmr.msra.gmra.mxu0 %v5408_v18  ;;  %3386 = vmatmul.bf16.gmra.mxu1 %v5508_v51 }
 0x16c   : > { %3615 = vmatmul.bf16.vlgmr.msra.gmra.mxu2 %v5756_v17 }
 0x16d   : > { %3854 = vmatmul.bf16.vlgmr.msra.gmra.mxu3 %v5693_v39 }
 0x16f   : > { %v2453_v55 = vpop.f32.mrf.mxu2 }
 0x170   : > { %v6504_v10 = vpop.f32.mrf.mxu3  ;;  %v6506_v31 = vadd.f32 %v2453_v55, %v2259_v3  ;;  %v2673_v24 = vpop.f32.mrf.mxu0 }
 0x171   : > { %6982 = vst [vmem:[#allocation42_spill] sm:$0xff] %v6504_v10  ;;  %v2215_v2 = vpop.f32.mrf.mxu1  ;;  %v6509_v5 = vadd.f32 %v2673_v24, %v6326_v48 }
 0x177   : > { %v2455_v22 = vpop.f32.mrf.mxu2 }
 0x178   : > { %v6511_v7 = vpop.f32.mrf.mxu3  ;;  %v6513_v18 = vadd.f32 %v2455_v22, %v2260_v15  ;;  %v2676_v28 = vpop.f32.mrf.mxu0 }
 0x179   : > { %6983 = vst [vmem:[#allocation43_spill] sm:$0xff] %v6511_v7  ;;  %v2218_v32 = vpop.f32.mrf.mxu1  ;;  %v6516_v57 = vadd.f32 %v2676_v28, %v6344_v9 }
 0x17b   : > { %3142 = vmatmul.bf16.gmra.mxu0 %v5508_v51  ;;  %3391 = vmatmul.bf16.gmra.mxu1 %v5602_v40 }
 0x17c   : > { %3620 = vmatmul.bf16.gmra.mxu2 %v5824_v1 }
 0x17d   : > { %3859 = vmatmul.bf16.gmra.mxu3 %v5756_v17  ;;  %v2263_v17 = vadd.f32 %v2213_v23, %v5941_v36  ;;  %v6989_v23 = vld [vmem:[#allocation13_spill] sm:$0xff] }
 0x17f   : > { %v2458_v39 = vpop.f32.mrf.mxu2 }
 0x180   : > { %v6522_v48 = vpop.f32.mrf.mxu3  ;;  %v6524_v3 = vadd.f32 %v2458_v39, %v2261_v6  ;;  %v2678_v30 = vpop.f32.mrf.mxu0 }
 0x181   : > { %6984 = vst [vmem:[#allocation44_spill] sm:$0xff] %v6522_v48  ;;  %v2220_v15 = vpop.f32.mrf.mxu1  ;;  %v6527_v61 = vadd.f32 %v2678_v30, %v6368_v43 }
 0x187   : > { %v2460_v9 = vpop.f32.mrf.mxu2 }
 0x188   : > { %v6529_v8 = vpop.f32.mrf.mxu3  ;;  %v6531_v51 = vadd.f32 %v2460_v9, %v2262_v47  ;;  %v2681_v55 = vpop.f32.mrf.mxu0 }
 0x189   : > { %6985 = vst [vmem:[#allocation45_spill] sm:$0xff] %v6529_v8  ;;  %v2223_v53 = vpop.f32.mrf.mxu1  ;;  %v6534_v24 = vadd.f32 %v2681_v55, %v6389_v59  ;;  %v6986_v59 = vld [vmem:[#allocation10_spill] sm:$0xff] }
 0x18b   : > { %3147 = vmatmul.bf16.gmra.mxu0 %v5602_v40  ;;  %3396 = vmatmul.bf16.gmra.mxu1 %v5683_v45  ;;  %v6988_v40 = vld [vmem:[#allocation11_spill] sm:$0xff] }
 0x18c   : > { %3625 = vmatmul.bf16.gmra.mxu2 %v5885_v52  ;;  %v2264_v55 = vadd.f32 %v2215_v2, %v6988_v40  ;;  %v6993_v2 = vld [vmem:[#allocation15_spill] sm:$0xff] }
 0x18d   : > { %3864 = vmatmul.bf16.gmra.mxu3 %v5824_v1 }
 0x18f   : > { %v2463_v43 = vpop.f32.mrf.mxu2 }
 0x190   : > { %v2944_v6 = vpop.f32.mrf.mxu3  ;;  %v2513_v22 = vadd.f32 %v2463_v43, %v2263_v17  ;;  %v2683_v28 = vpop.f32.mrf.mxu0 }
 0x191   : > { %v2225_v47 = vpop.f32.mrf.mxu1  ;;  %v6542_v39 = vadd.f32 %v2683_v28, %v6410_v0  ;;  %v6990_v0 = vld [vmem:[#allocation5_spill] sm:$0xff] }
 0x192   : > { %v2756_v30 = vadd.f32 %v6986_v59, %v2513_v22  ;;  %v2265_v22 = vadd.f32 %v2218_v32, %v6993_v2  ;;  %v6996_v2 = vld [vmem:[#allocation21_spill] sm:$0xff] }
 0x194   : > { %v6545_v9 = vadd.f32 %v2944_v6, %v2756_v30  ;;  %v6992_v6 = vld [vmem:[#allocation8_spill] sm:$0xff] }
 0x196   : > { %6987 = vst [vmem:[#allocation10_spill] sm:$0xff] %v6545_v9 }
 0x197   : > { %v2465_v8 = vpop.f32.mrf.mxu2 }
 0x198   : > { %v2946_v48 = vpop.f32.mrf.mxu3  ;;  %v2514_v7 = vadd.f32 %v2465_v8, %v2264_v55  ;;  %v2686_v10 = vpop.f32.mrf.mxu0 }
 0x199   : > { %v2228_v1 = vpop.f32.mrf.mxu1  ;;  %v6549_v36 = vadd.f32 %v2686_v10, %v6429_v29 }
 0x19a   : > { %v2757_v17 = vadd.f32 %v6989_v23, %v2514_v7  ;;  %v6994_v7 = vld [vmem:[#allocation18_spill] sm:$0xff] }
 0x19b   : > { %3152 = vmatmul.bf16.gmra.mxu0 %v5683_v45  ;;  %3401 = vmatmul.bf16.gmra.mxu1 %v6990_v0 }
 0x19c   : > { %v6554_v43 = vadd.f32 %v2946_v48, %v2757_v17  ;;  %3630 = vmatmul.bf16.gmra.mxu2 %v6992_v6  ;;  %v6995_v48 = vld [vmem:[#allocation19_spill] sm:$0xff] }
 0x19d   : > { %3869 = vmatmul.bf16.gmra.mxu3 %v5885_v52  ;;  %v2266_v55 = vadd.f32 %v2220_v15, %v6995_v48  ;;  %v7000_v15 = vld [vmem:[#allocation9_spill] sm:$0xff] }
 0x19e   : > { %6991 = vst [vmem:[#allocation11_spill] sm:$0xff] %v6554_v43 }
 0x19f   : > { %v2468_v8 = vpop.f32.mrf.mxu2 }
 0x1a0   : > { %v2949_v28 = vpop.f32.mrf.mxu3  ;;  %v2515_v59 = vadd.f32 %v2468_v8, %v2265_v22  ;;  %v2688_v29 = vpop.f32.mrf.mxu0 }
 0x1a1   : > { %v2230_v30 = vpop.f32.mrf.mxu1  ;;  %v6560_v10 = vadd.f32 %v2688_v29, %v6443_v14  ;;  %v6997_v14 = vld [vmem:[#allocation6_spill] sm:$0xff] }
 0x1a2   : > { %v2758_v45 = vadd.f32 %v6994_v7, %v2515_v59  ;;  %v2267_v59 = vadd.f32 %v2223_v53, %v7000_v15 }
 0x1a4   : > { %v6563_v40 = vadd.f32 %v2949_v28, %v2758_v45  ;;  %v6999_v28 = vld [vmem:[#allocation16_spill] sm:$0xff] }
 0x1a7   : > { %v2470_v23 = vpop.f32.mrf.mxu2 }
 0x1a8   : > { %v2951_v17 = vpop.f32.mrf.mxu3  ;;  %v2516_v43 = vadd.f32 %v2470_v23, %v2266_v55  ;;  %v2691_v9 = vpop.f32.mrf.mxu0  ;;  %v7001_v55 = vld [vmem:[#allocation12_spill] sm:$0xff] }
 0x1a9   : > { %v2233_v52 = vpop.f32.mrf.mxu1  ;;  %v6567_v32 = vadd.f32 %v2691_v9, %v6459_v41  ;;  %v2268_v23 = vadd.f32 %v2225_v47, %v7001_v55  ;;  %v7004_v47 = vld [vmem:[#allocation17_spill] sm:$0xff]  ;;  %v7005_v55 = vld [vmem:[#allocation20_spill] sm:$0xff] }
 0x1aa   : > { %v2759_v22 = vadd.f32 %v6996_v2, %v2516_v43 }
 0x1ab   : > { %3157 = vmatmul.bf16.gmra.mxu0 %v6990_v0  ;;  %3406 = vmatmul.bf16.gmra.mxu1 %v6997_v14 }
 0x1ac   : > { %v6572_v8 = vadd.f32 %v2951_v17, %v2759_v22  ;;  %3635 = vmatmul.bf16.gmra.mxu2 %v6999_v28 }
 0x1ad   : > { %3874 = vmatmul.bf16.gmra.mxu3 %v6992_v6 }
 0x1ae   : > { %6998 = vst [vmem:[#allocation13_spill] sm:$0xff] %v6572_v8 }
 0x1af   : > { %v2473_v29 = vpop.f32.mrf.mxu2 }
 0x1b0   : > { %v2954_v7 = vpop.f32.mrf.mxu3  ;;  %v2517_v45 = vadd.f32 %v2473_v29, %v2267_v59  ;;  %v2693_v41 = vpop.f32.mrf.mxu0  ;;  %v2269_v29 = vadd.f32 %v2228_v1, %v7004_v47 }
 0x1b1   : > { %v2235_v48 = vpop.f32.mrf.mxu1  ;;  %v6578_v9 = vadd.f32 %v2693_v41, %v6474_v37  ;;  %v7002_v37 = vld [vmem:[#allocation7_spill] sm:$0xff] }
 0x1b2   : > { %v2760_v0 = vadd.f32 %v6107_v44, %v2517_v45  ;;  %v7003_v44 = vld [vmem:[#allocation22_spill] sm:$0xff] }
 0x1b4   : > { %v6581_v43 = vadd.f32 %v2954_v7, %v2760_v0 }
 0x1b7   : > { %v2475_v17 = vpop.f32.mrf.mxu2 }
 0x1b8   : > { %v2956_v2 = vpop.f32.mrf.mxu3  ;;  %v2518_v22 = vadd.f32 %v2475_v17, %v2268_v23  ;;  %v2696_v8 = vpop.f32.mrf.mxu0  ;;  %v2270_v23 = vadd.f32 %v2230_v30, %v7005_v55  ;;  %v7007_v30 = vld [vmem:[#allocation23_spill] sm:$0xff]  ;;  %v7009_v55 = vld [vmem:[#allocation24_spill] sm:$0xff] }
 0x1b9   : > { %v2238_v6 = vpop.f32.mrf.mxu1  ;;  %v6585_v53 = vadd.f32 %v2696_v8, %v6488_v33 }
 0x1ba   : > { %v2761_v15 = vadd.f32 %v6148_v35, %v2518_v22 }
 0x1bb   : > { %3162 = vmatmul.bf16.gmra.mxu0 %v6997_v14  ;;  %3411 = vmatmul.bf16.gmra.mxu1 %v7002_v37 }
 0x1bc   : > { %v6590_v59 = vadd.f32 %v2956_v2, %v2761_v15  ;;  %3640 = vmatmul.bf16.gmra.mxu2 %v7003_v44 }
 0x1bd   : > { %3879 = vmatmul.bf16.gmra.mxu3 %v6999_v28 }
 0x1bf   : > { %v2478_v7 = vpop.f32.mrf.mxu2 }
 0x1c0   : > { %v2959_v45 = vpop.f32.mrf.mxu3  ;;  %v2519_v41 = vadd.f32 %v2478_v7, %v2269_v29  ;;  %v2698_v33 = vpop.f32.mrf.mxu0  ;;  %v2271_v29 = vadd.f32 %v2233_v52, %v7007_v30  ;;  %v7012_v30 = vld [vmem:[#allocation28_spill] sm:$0xff] }
 0x1c1   : > { %v2240_v0 = vpop.f32.mrf.mxu1  ;;  %v6596_v8 = vadd.f32 %v2698_v33, %v6495_v42  ;;  %v7006_v42 = vld [vmem:[#allocation25_spill] sm:$0xff] }
 0x1c2   : > { %v2762_v35 = vadd.f32 %v6171_v62, %v2519_v41 }
 0x1c4   : > { %v6599_v14 = vadd.f32 %v2959_v45, %v2762_v35 }
 0x1c7   : > { %v2480_v17 = vpop.f32.mrf.mxu2 }
 0x1c8   : > { %v2961_v2 = vpop.f32.mrf.mxu3  ;;  %v2520_v22 = vadd.f32 %v2480_v17, %v2270_v23  ;;  %v2701_v28 = vpop.f32.mrf.mxu0  ;;  %v2272_v23 = vadd.f32 %v2235_v48, %v7009_v55  ;;  %v7013_v48 = vld [vmem:[#allocation26_spill] sm:$0xff] }
 0x1c9   : > { %v6602_v15 = vpop.f32.mrf.mxu1  ;;  %v6605_v1 = vadd.f32 %v2701_v28, %v6506_v31 }
 0x1ca   : > { %v2763_v47 = vadd.f32 %v6191_v16, %v2520_v22 }
 0x1cb   : > { %3167 = vmatmul.bf16.gmra.mxu0 %v7002_v37  ;;  %3416 = vmatmul.bf16.gmra.mxu1 %v5935_v21 }
 0x1cc   : > { %v6610_v62 = vadd.f32 %v2961_v2, %v2763_v47  ;;  %3645 = vmatmul.bf16.gmra.mxu2 %v7006_v42 }
 0x1cd   : > { %3884 = vmatmul.bf16.gmra.mxu3 %v7003_v44 }
 0x1cf   : > { %v2483_v7 = vpop.f32.mrf.mxu2 }
 0x1d0   : > { %v2964_v45 = vpop.f32.mrf.mxu3  ;;  %v2521_v41 = vadd.f32 %v2483_v7, %v2271_v29  ;;  %v2703_v33 = vpop.f32.mrf.mxu0  ;;  %v2273_v29 = vadd.f32 %v2238_v6, %v7013_v48 }
 0x1d1   : > { %v6615_v31 = vpop.f32.mrf.mxu1  ;;  %v6618_v16 = vadd.f32 %v2703_v33, %v6513_v18  ;;  %v7010_v18 = vld [vmem:[#allocation14_spill] sm:$0xff] }
 0x1d2   : > { %v2764_v37 = vadd.f32 %v6214_v54, %v2521_v41 }
 0x1d4   : > { %v6621_v35 = vadd.f32 %v2964_v45, %v2764_v37  ;;  %v7015_v37 = vld [vmem:[#allocation27_spill] sm:$0xff] }
 0x1d5   : > { %v2274_v55 = vadd.f32 %v2240_v0, %v7015_v37  ;;  %v7018_v37 = vld [vmem:[#allocation30_spill] sm:$0xff] }
 0x1d6   : > { %7008 = vst [vmem:[#allocation5_spill] sm:$0xff] %v6621_v35 }
 0x1d7   : > { %v2485_v17 = vpop.f32.mrf.mxu2 }
 0x1d8   : > { %v2966_v2 = vpop.f32.mrf.mxu3  ;;  %v2522_v44 = vadd.f32 %v2485_v17, %v2272_v23  ;;  %v2706_v22 = vpop.f32.mrf.mxu0 }
 0x1d9   : > { %v6624_v52 = vpop.f32.mrf.mxu1  ;;  %v6627_v28 = vadd.f32 %v2706_v22, %v6524_v3  ;;  %v7017_v22 = vld [vmem:[#allocation29_spill] sm:$0xff] }
 0x1da   : > { %v2765_v47 = vadd.f32 %v6233_v27, %v2522_v44 }
 0x1db   : > { %3172 = vmatmul.bf16.gmra.mxu0 %v5935_v21  ;;  %3421 = vmatmul.bf16.gmra.mxu1 %v7010_v18 }
 0x1dc   : > { %v6632_v54 = vadd.f32 %v2966_v2, %v2765_v47  ;;  %3650 = vmatmul.bf16.gmra.mxu2 %v7012_v30 }
 0x1dd   : > { %3889 = vmatmul.bf16.gmra.mxu3 %v7006_v42 }
 0x1de   : > { %7011 = vst [vmem:[#allocation8_spill] sm:$0xff] %v6632_v54 }
 0x1df   : > { %v2488_v7 = vpop.f32.mrf.mxu2 }
 0x1e0   : > { %v2969_v45 = vpop.f32.mrf.mxu3  ;;  %v2523_v41 = vadd.f32 %v2488_v7, %v2273_v29  ;;  %v2708_v33 = vpop.f32.mrf.mxu0 }
 0x1e1   : > { %v6637_v3 = vpop.f32.mrf.mxu1  ;;  %v6640_v27 = vadd.f32 %v2708_v33, %v6531_v51 }
 0x1e2   : > { %v6642_v21 = vadd.f32 %v2969_v45, %v2523_v41 }
 0x1e4   : > { %7014 = vst [vmem:[#allocation15_spill] sm:$0xff] %v6642_v21 }
 0x1e7   : > { %v2490_v23 = vpop.f32.mrf.mxu2 }
 0x1e8   : > { %v2971_v17 = vpop.f32.mrf.mxu3  ;;  %v2524_v2 = vadd.f32 %v2490_v23, %v2274_v55  ;;  %v3138_v44 = vpop.f32.mrf.mxu0  ;;  %v2974_v55 = vadd.f32 %v7018_v37, %v6477_v25 }
 0x1e9   : > { %v6645_v42 = vpop.f32.mrf.mxu1  ;;  %v3213_v29 = vadd.f32 %v3138_v44, %v6448_v34 }
 0x1ea   : > { %v6647_v6 = vadd.f32 %v2971_v17, %v2524_v2 }
 0x1eb   : > { %3177 = vmatmul.bf16.gmra.mxu0 %v7010_v18  ;;  %3426 = vmatmul.bf16.gmra.mxu1 %v5240_v11 }
 0x1ec   : > { %7016 = vst [vmem:[#allocation18_spill] sm:$0xff] %v6647_v6  ;;  %3655 = vmatmul.bf16.gmra.mxu2 %v7017_v22  ;;  %v7021_v6 = vld [vmem:[#allocation31_spill] sm:$0xff] }
 0x1ed   : > { %3894 = vmatmul.bf16.gmra.mxu3 %v7012_v30 }
 0x1ef   : > { %v3616_v51 = vpop.f32.mrf.mxu2 }
 0x1f0   : > { %v3855_v47 = vpop.f32.mrf.mxu3  ;;  %v3140_v0 = vpop.f32.mrf.mxu0  ;;  %v3691_v7 = vadd.f32 %v3616_v51, %v3213_v29  ;;  %v7019_v51 = vld [vmem:[#allocation3_spill] sm:$0xff] }
 0x1f1   : > { %v6653_v48 = vpop.f32.mrf.mxu1  ;;  %v3214_v45 = vadd.f32 %v3140_v0, %v6463_v49  ;;  %v7020_v0 = vld [vmem:[#allocation32_spill] sm:$0xff] }
 0x1f2   : > { %v4124_v30 = vmul.f32 %v3691_v7, %v3691_v7 }
 0x1f7   : > { %v3618_v41 = vpop.f32.mrf.mxu2 }
 0x1f8   : > { %v3857_v33 = vpop.f32.mrf.mxu3  ;;  %v3692_v18 = vadd.f32 %v3618_v41, %v3214_v45  ;;  %v3143_v23 = vpop.f32.mrf.mxu0 }
 0x1f9   : > { %v6659_v17 = vpop.f32.mrf.mxu1  ;;  %v3215_v44 = vadd.f32 %v3143_v23, %v2974_v55 }
 0x1fa   : > { %v4931_v34 = vpack.c.bf16 %v3692_v18, %v3691_v7  ;;  %v4086_v2 = vadd.f32 %v3692_v18, %v3691_v7  ;;  %v4125_v49 = vmul.f32 %v3692_v18, %v3692_v18  ;;  %v2975_v7 = vadd.f32 %v7021_v6, %v6491_v26 }
 0x1fb   : > { %3182 = vmatmul.bf16.gmra.mxu0 %v5240_v11  ;;  %3431 = vmatmul.bf16.gmra.mxu1 %v7019_v51  ;;  %v3452_v29 = vadd.f32 %v6602_v15, %v3215_v44  ;;  %v7022_v44 = vld [vmem:[#allocation33_spill] sm:$0xff] }
 0x1fc   : > { %4932 = vst [vmem:[%s6666_s14] sm:$0xff] %v4931_v34   ;;  %v4156_v25 = vadd.f32 %v4125_v49, %v4124_v30  ;;  %3660 = vmatmul.bf16.gmra.mxu2 %v7020_v0 }
 0x1fd   : > { %3899 = vmatmul.bf16.gmra.mxu3 %v7017_v22 }
 0x1ff   : > { %v3621_v45 = vpop.f32.mrf.mxu2 }
 0x200   : > { %v3860_v41 = vpop.f32.mrf.mxu3  ;;  %v3693_v37 = vadd.f32 %v3621_v45, %v3452_v29  ;;  %v3145_v18 = vpop.f32.mrf.mxu0  ;;  %v2976_v29 = vadd.f32 %v7022_v44, %v6498_v63 }
 0x201   : > { %v6676_v55 = vpop.f32.mrf.mxu1  ;;  %v3216_v23 = vadd.f32 %v3145_v18, %v2975_v7 }
 0x202   : > { %v3930_v11 = vadd.f32 %v3855_v47, %v3693_v37 }
 0x203   : > { %v3453_v49 = vadd.f32 %v6615_v31, %v3216_v23  ;;  %v7023_v31 = vld [vmem:[#allocation35_spill] sm:$0xff] }
 0x204   : > { %v4087_v21 = vadd.f32 %v4086_v2, %v3930_v11  ;;  %v4126_v34 = vmul.f32 %v3930_v11, %v3930_v11 }
 0x206   : > { %v4157_v30 = vadd.f32 %v4156_v25, %v4126_v34 }
 0x207   : > { %v3623_v22 = vpop.f32.mrf.mxu2 }
 0x208   : > { %v3862_v54 = vpop.f32.mrf.mxu3  ;;  %v3694_v15 = vadd.f32 %v3623_v22, %v3453_v49  ;;  %v3148_v45 = vpop.f32.mrf.mxu0 }
 0x209   : > { %v6681_v35 = vpop.f32.mrf.mxu1  ;;  %v3217_v6 = vadd.f32 %v3148_v45, %v2976_v29  ;;  %v7025_v45 = vld [vmem:[#allocation36_spill] sm:$0xff] }
 0x20a   : > { %v3931_v26 = vadd.f32 %v3857_v33, %v3694_v15  ;;  %v7024_v33 = vld [vmem:[#allocation34_spill] sm:$0xff] }
 0x20b   : > { %3187 = vmatmul.bf16.gmra.mxu0 %v7019_v51  ;;  %3436 = vmatmul.bf16.gmra.mxu1 %v5314_v58  ;;  %v3454_v63 = vadd.f32 %v6624_v52, %v3217_v6  ;;  %v2977_v34 = vadd.f32 %v7024_v33, %v6509_v5 }
 0x20c   : > { %v4936_v47 = vpack.c.bf16 %v3931_v26, %v3930_v11  ;;  %v4088_v2 = vadd.f32 %v4087_v21, %v3931_v26  ;;  %v4127_v25 = vmul.f32 %v3931_v26, %v3931_v26  ;;  %3665 = vmatmul.bf16.gmra.mxu2 %v7023_v31  ;;  %v2978_v26 = vadd.f32 %v7025_v45, %v6516_v57  ;;  %v7029_v45 = vld [vmem:[#allocation39_spill] sm:$0xff] }
 0x20d   : > { %3904 = vmatmul.bf16.gmra.mxu3 %v7020_v0 }
 0x20e   : > { %5023 = vst [vmem:[%s6666_s14 + $0x8] sm:$0xff] %v4936_v47   ;;  %v4158_v37 = vadd.f32 %v4157_v30, %v4127_v25 }
 0x20f   : > { %v3626_v7 = vpop.f32.mrf.mxu2 }
 0x210   : > { %v3865_v18 = vpop.f32.mrf.mxu3  ;;  %v3695_v23 = vadd.f32 %v3626_v7, %v3454_v63  ;;  %v3150_v51 = vpop.f32.mrf.mxu0 }
 0x211   : > { %v6691_v49 = vpop.f32.mrf.mxu1  ;;  %v3218_v21 = vadd.f32 %v3150_v51, %v2977_v34 }
 0x212   : > { %v3932_v11 = vadd.f32 %v3860_v41, %v3695_v23  ;;  %v7026_v41 = vld [vmem:[#allocation4_spill] sm:$0xff] }
 0x213   : > { %v3455_v0 = vadd.f32 %v6637_v3, %v3218_v21  ;;  %v7027_v3 = vld [vmem:[#allocation38_spill] sm:$0xff] }
 0x214   : > { %v4089_v22 = vadd.f32 %v4088_v2, %v3932_v11  ;;  %v4128_v15 = vmul.f32 %v3932_v11, %v3932_v11 }
 0x216   : > { %v4159_v44 = vadd.f32 %v4158_v37, %v4128_v15 }
 0x217   : > { %v3628_v30 = vpop.f32.mrf.mxu2 }
 0x218   : > { %v3867_v29 = vpop.f32.mrf.mxu3  ;;  %v3696_v52 = vadd.f32 %v3628_v30, %v3455_v0  ;;  %v3153_v6 = vpop.f32.mrf.mxu0 }
 0x219   : > { %v6696_v47 = vpop.f32.mrf.mxu1  ;;  %v3219_v25 = vadd.f32 %v3153_v6, %v2978_v26  ;;  %v2980_v26 = vadd.f32 %v7029_v45, %v6534_v24 }
 0x21a   : > { %v3933_v5 = vadd.f32 %v3862_v54, %v3696_v52  ;;  %v7028_v54 = vld [vmem:[#allocation37_spill] sm:$0xff] }
 0x21b   : > { %3192 = vmatmul.bf16.gmra.mxu0 %v5314_v58  ;;  %3441 = vmatmul.bf16.gmra.mxu1 %v7026_v41  ;;  %v3456_v57 = vadd.f32 %v6645_v42, %v3219_v25  ;;  %v2979_v51 = vadd.f32 %v7028_v54, %v6527_v61 }
 0x21c   : > { %v4941_v2 = vpack.c.bf16 %v3933_v5, %v3932_v11  ;;  %v4090_v37 = vadd.f32 %v4089_v22, %v3933_v5  ;;  %v4129_v63 = vmul.f32 %v3933_v5, %v3933_v5  ;;  %3670 = vmatmul.bf16.gmra.mxu2 %v7027_v3 }
 0x21d   : > { %3909 = vmatmul.bf16.gmra.mxu3 %v7023_v31 }
 0x21e   : > { %5024 = vst [vmem:[%s6666_s14 + $0x10] sm:$0xff] %v4941_v2   ;;  %v4160_v7 = vadd.f32 %v4159_v44, %v4129_v63 }
 0x21f   : > { %v3631_v23 = vpop.f32.mrf.mxu2 }
 0x220   : > { %v3870_v33 = vpop.f32.mrf.mxu3  ;;  %v3697_v34 = vadd.f32 %v3631_v23, %v3456_v57  ;;  %v3155_v58 = vpop.f32.mrf.mxu0 }
 0x221   : > { %v6706_v21 = vpop.f32.mrf.mxu1  ;;  %v3220_v22 = vadd.f32 %v3155_v58, %v2979_v51 }
 0x222   : > { %v3934_v11 = vadd.f32 %v3865_v18, %v3697_v34 }
 0x223   : > { %v3457_v31 = vadd.f32 %v6653_v48, %v3220_v22  ;;  %v7030_v48 = vld [vmem:[#allocation41_spill] sm:$0xff] }
 0x224   : > { %v4091_v15 = vadd.f32 %v4090_v37, %v3934_v11  ;;  %v4130_v0 = vmul.f32 %v3934_v11, %v3934_v11 }
 0x226   : > { %v4161_v30 = vadd.f32 %v4160_v7, %v4130_v0 }
 0x227   : > { %v3633_v44 = vpop.f32.mrf.mxu2 }
 0x228   : > { %v3872_v52 = vpop.f32.mrf.mxu3  ;;  %v3698_v42 = vadd.f32 %v3633_v44, %v3457_v31  ;;  %v3158_v6 = vpop.f32.mrf.mxu0  ;;  %v2982_v31 = vadd.f32 %v6426_v46, %v6549_v36 }
 0x229   : > { %v6711_v5 = vpop.f32.mrf.mxu1  ;;  %v3221_v25 = vadd.f32 %v3158_v6, %v2980_v26 }
 0x22a   : > { %v3935_v61 = vadd.f32 %v3867_v29, %v3698_v42  ;;  %v7031_v29 = vld [vmem:[#allocation40_spill] sm:$0xff] }
 0x22b   : > { %3197 = vmatmul.bf16.gmra.mxu0 %v7026_v41  ;;  %3446 = vmatmul.bf16.gmra.mxu1 %v5516_v56  ;;  %v3458_v24 = vadd.f32 %v6659_v17, %v3221_v25  ;;  %v2981_v34 = vadd.f32 %v7031_v29, %v6542_v39 }
 0x22c   : > { %v4946_v18 = vpack.c.bf16 %v3935_v61, %v3934_v11  ;;  %v4092_v2 = vadd.f32 %v4091_v15, %v3935_v61  ;;  %v4131_v37 = vmul.f32 %v3935_v61, %v3935_v61  ;;  %3675 = vmatmul.bf16.gmra.mxu2 %v7030_v48 }
 0x22d   : > { %3914 = vmatmul.bf16.gmra.mxu3 %v7027_v3 }
 0x22e   : > { %5025 = vst [vmem:[%s6666_s14 + $0x18] sm:$0xff] %v4946_v18   ;;  %v4162_v63 = vadd.f32 %v4161_v30, %v4131_v37 }
 0x22f   : > { %v3636_v7 = vpop.f32.mrf.mxu2 }
 0x230   : > { %v3875_v57 = vpop.f32.mrf.mxu3  ;;  %v3699_v23 = vadd.f32 %v3636_v7, %v3458_v24  ;;  %v3160_v41 = vpop.f32.mrf.mxu0 }
 0x231   : > { %v3222_v51 = vadd.f32 %v3160_v41, %v2981_v34  ;;  %v6721_v58 = vpop.f32.mrf.mxu1  ;;  %v2984_v34 = vadd.f32 %v6456_v13, %v6567_v32  ;;  %v2985_v32 = vadd.f32 %v6471_v12, %v6578_v9 }
 0x232   : > { %v3936_v54 = vadd.f32 %v3870_v33, %v3699_v23 }
 0x233   : > { %v3459_v3 = vadd.f32 %v6676_v55, %v3222_v51 }
 0x234   : > { %v4093_v11 = vadd.f32 %v4092_v2, %v3936_v54  ;;  %v4132_v22 = vmul.f32 %v3936_v54, %v3936_v54 }
 0x236   : > { %v4163_v15 = vadd.f32 %v4162_v63, %v4132_v22 }
 0x237   : > { %v3638_v0 = vpop.f32.mrf.mxu2 }
 0x238   : > { %v3877_v30 = vpop.f32.mrf.mxu3  ;;  %v3700_v17 = vadd.f32 %v3638_v0, %v3459_v3  ;;  %v3163_v44 = vpop.f32.mrf.mxu0 }
 0x239   : > { %v3223_v39 = vadd.f32 %v3163_v44, %v2982_v31  ;;  %v6727_v6 = vpop.f32.mrf.mxu1 }
 0x23a   : > { %v3937_v42 = vadd.f32 %v3872_v52, %v3700_v17  ;;  %v2983_v52 = vadd.f32 %v6440_v4, %v6560_v10 }
 0x23b   : > { %3202 = vmatmul.bf16.gmra.mxu0 %v5516_v56  ;;  %v3460_v61 = vadd.f32 %v6681_v35, %v3223_v39  ;;  %v2986_v39 = vadd.f32 %v6485_v60, %v6585_v53 }
 0x23c   : > { %v4951_v33 = vpack.c.bf16 %v3937_v42, %v3936_v54  ;;  %v4094_v45 = vadd.f32 %v4093_v11, %v3937_v42  ;;  %v4133_v26 = vmul.f32 %v3937_v42, %v3937_v42  ;;  %3680 = vmatmul.bf16.gmra.mxu2 %v6450_v19 }
 0x23d   : > { %3919 = vmatmul.bf16.gmra.mxu3 %v7030_v48 }
 0x23e   : > { %5026 = vst [vmem:[%s6666_s14 + $0x20] sm:$0xff] %v4951_v33   ;;  %v4164_v55 = vadd.f32 %v4163_v15, %v4133_v26 }
 0x23f   : > { %v3641_v25 = vpop.f32.mrf.mxu2 }
 0x240   : > { %v3880_v46 = vpop.f32.mrf.mxu3  ;;  %v3701_v36 = vadd.f32 %v3641_v25, %v3460_v61  ;;  %v3165_v56 = vpop.f32.mrf.mxu0 }
 0x241   : > { %v3224_v2 = vadd.f32 %v3165_v56, %v2983_v52  ;;  %v6735_v7 = vpop.f32.mrf.mxu1  ;;  %v2987_v56 = vadd.f32 %v6493_v38, %v6596_v8 }
 0x242   : > { %v3938_v18 = vadd.f32 %v3875_v57, %v3701_v36 }
 0x243   : > { %v3461_v48 = vadd.f32 %v6691_v49, %v3224_v2 }
 0x244   : > { %v4095_v37 = vadd.f32 %v4094_v45, %v3938_v18  ;;  %v4134_v63 = vmul.f32 %v3938_v18, %v3938_v18 }
 0x246   : > { %v4165_v24 = vadd.f32 %v4164_v55, %v4134_v63 }
 0x247   : > { %v3643_v23 = vpop.f32.mrf.mxu2 }
 0x248   : > { %v3882_v29 = vpop.f32.mrf.mxu3  ;;  %v3702_v35 = vadd.f32 %v3643_v23, %v3461_v48  ;;  %v3168_v41 = vpop.f32.mrf.mxu0 }
 0x249   : > { %v3225_v4 = vadd.f32 %v3168_v41, %v2984_v34  ;;  %v6745_v3 = vpop.f32.mrf.mxu1 }
 0x24a   : > { %v3939_v54 = vadd.f32 %v3877_v30, %v3702_v35  ;;  %v7032_v35 = vld [vmem:[#allocation42_spill] sm:$0xff] }
 0x24b   : > { %3207 = vmatmul.bf16.gmra.mxu0 %v5604_v50  ;;  %v3462_v11 = vadd.f32 %v6696_v47, %v3225_v4  ;;  %v2988_v34 = vadd.f32 %v7032_v35, %v6605_v1 }
 0x24c   : > { %v4956_v10 = vpack.c.bf16 %v3939_v54, %v3938_v18  ;;  %v4096_v57 = vadd.f32 %v4095_v37, %v3939_v54  ;;  %v4135_v51 = vmul.f32 %v3939_v54, %v3939_v54  ;;  %3685 = vmatmul.bf16.gmra.mxu2 %v6479_v20 }
 0x24d   : > { %3924 = vmatmul.bf16.gmra.mxu3 %v6450_v19 }
 0x24e   : > { %5027 = vst [vmem:[%s6666_s14 + $0x28] sm:$0xff] %v4956_v10   ;;  %v4166_v49 = vadd.f32 %v4165_v24, %v4135_v51 }
 0x24f   : > { %v3646_v22 = vpop.f32.mrf.mxu2 }
 0x250   : > { %v3885_v15 = vpop.f32.mrf.mxu3  ;;  %v3703_v13 = vadd.f32 %v3646_v22, %v3462_v11  ;;  %v3170_v50 = vpop.f32.mrf.mxu0 }
 0x251   : > { %v3226_v30 = vadd.f32 %v3170_v50, %v2985_v32  ;;  %v6752_v45 = vpop.f32.mrf.mxu1 }
 0x252   : > { %v3940_v0 = vadd.f32 %v3880_v46, %v3703_v13 }
 0x253   : > { %v3463_v19 = vadd.f32 %v6706_v21, %v3226_v30 }
 0x254   : > { %v4097_v17 = vadd.f32 %v4096_v57, %v3940_v0  ;;  %v4136_v20 = vmul.f32 %v3940_v0, %v3940_v0 }
 0x256   : > { %v4167_v31 = vadd.f32 %v4166_v49, %v4136_v20 }
 0x257   : > { %v3648_v44 = vpop.f32.mrf.mxu2 }
 0x258   : > { %v3887_v42 = vpop.f32.mrf.mxu3  ;;  %v3704_v47 = vadd.f32 %v3648_v44, %v3463_v19  ;;  %v3173_v33 = vpop.f32.mrf.mxu0 }
 0x259   : > { %v3227_v12 = vadd.f32 %v3173_v33, %v2986_v39  ;;  %v6758_v2 = vpop.f32.mrf.mxu1 }
 0x25a   : > { %v3941_v26 = vadd.f32 %v3882_v29, %v3704_v47 }
 0x25b   : > { %v3464_v46 = vadd.f32 %v6711_v5, %v3227_v12 }
 0x25c   : > { %v4961_v9 = vpack.c.bf16 %v3941_v26, %v3940_v0  ;;  %v4098_v55 = vadd.f32 %v4097_v17, %v3941_v26  ;;  %v4137_v61 = vmul.f32 %v3941_v26, %v3941_v26 }
 0x25e   : > { %5028 = vst [vmem:[%s6666_s14 + $0x30] sm:$0xff] %v4961_v9   ;;  %v4168_v25 = vadd.f32 %v4167_v31, %v4137_v61 }
 0x25f   : > { %v3651_v36 = vpop.f32.mrf.mxu2 }
 0x260   : > { %v3890_v21 = vpop.f32.mrf.mxu3  ;;  %v3705_v52 = vadd.f32 %v3651_v36, %v3464_v46  ;;  %v3175_v18 = vpop.f32.mrf.mxu0  ;;  %v7035_v36 = vld [vmem:[#allocation45_spill] sm:$0xff] }
 0x261   : > { %v3228_v53 = vadd.f32 %v3175_v18, %v2987_v56  ;;  %v6763_v57 = vpop.f32.mrf.mxu1 }
 0x262   : > { %v3942_v60 = vadd.f32 %v3885_v15, %v3705_v52  ;;  %v7033_v15 = vld [vmem:[#allocation43_spill] sm:$0xff] }
 0x263   : > { %v3465_v48 = vadd.f32 %v6721_v58, %v3228_v53  ;;  %v2989_v13 = vadd.f32 %v7033_v15, %v6618_v16 }
 0x264   : > { %v4099_v37 = vadd.f32 %v4098_v55, %v3942_v60  ;;  %v4138_v63 = vmul.f32 %v3942_v60, %v3942_v60 }
 0x266   : > { %v4169_v24 = vadd.f32 %v4168_v25, %v4138_v63 }
 0x267   : > { %v3653_v23 = vpop.f32.mrf.mxu2 }
 0x268   : > { %v3892_v29 = vpop.f32.mrf.mxu3  ;;  %v3706_v5 = vadd.f32 %v3653_v23, %v3465_v48  ;;  %v3178_v41 = vpop.f32.mrf.mxu0 }
 0x269   : > { %v3229_v38 = vadd.f32 %v3178_v41, %v2988_v34  ;;  %v3427_v44 = vpop.f32.mrf.mxu1 }
 0x26a   : > { %v3943_v54 = vadd.f32 %v3887_v42, %v3706_v5  ;;  %v7036_v5 = vld [vmem:[#allocation10_spill] sm:$0xff] }
 0x26b   : > { %v3466_v49 = vadd.f32 %v6727_v6, %v3229_v38  ;;  %v7034_v6 = vld [vmem:[#allocation44_spill] sm:$0xff] }
 0x26c   : > { %v4966_v8 = vpack.c.bf16 %v3943_v54, %v3942_v60  ;;  %v4100_v4 = vadd.f32 %v4099_v37, %v3943_v54  ;;  %v4139_v10 = vmul.f32 %v3943_v54, %v3943_v54  ;;  %v2990_v47 = vadd.f32 %v7034_v6, %v6627_v28 }
 0x26e   : > { %5029 = vst [vmem:[%s6666_s14 + $0x38] sm:$0xff] %v4966_v8   ;;  %v4170_v51 = vadd.f32 %v4169_v24, %v4139_v10 }
 0x26f   : > { %v3656_v11 = vpop.f32.mrf.mxu2 }
 0x270   : > { %v3895_v58 = vpop.f32.mrf.mxu3  ;;  %v3707_v22 = vadd.f32 %v3656_v11, %v3466_v49  ;;  %v3180_v32 = vpop.f32.mrf.mxu0  ;;  %v7037_v11 = vld [vmem:[#allocation11_spill] sm:$0xff] }
 0x271   : > { %v3230_v50 = vadd.f32 %v3180_v32, %v2989_v13  ;;  %v3429_v56 = vpop.f32.mrf.mxu1 }
 0x272   : > { %v3944_v1 = vadd.f32 %v3890_v21, %v3707_v22  ;;  %v2991_v21 = vadd.f32 %v7035_v36, %v6640_v27 }
 0x273   : > { %v3467_v20 = vadd.f32 %v6735_v7, %v3230_v50 }
 0x274   : > { %v4101_v0 = vadd.f32 %v4100_v4, %v3944_v1  ;;  %v4140_v30 = vmul.f32 %v3944_v1, %v3944_v1 }
 0x276   : > { %v4171_v17 = vadd.f32 %v4170_v51, %v4140_v30 }
 0x277   : > { %v3658_v31 = vpop.f32.mrf.mxu2 }
 0x278   : > { %v3897_v19 = vpop.f32.mrf.mxu3  ;;  %v3708_v42 = vadd.f32 %v3658_v31, %v3467_v20  ;;  %v3183_v39 = vpop.f32.mrf.mxu0 }
 0x279   : > { %v3231_v26 = vadd.f32 %v3183_v39, %v2990_v47  ;;  %v3432_v34 = vpop.f32.mrf.mxu1 }
 0x27a   : > { %v3945_v33 = vadd.f32 %v3892_v29, %v3708_v42 }
 0x27b   : > { %v3468_v61 = vadd.f32 %v6745_v3, %v3231_v26 }
 0x27c   : > { %v4971_v16 = vpack.c.bf16 %v3945_v33, %v3944_v1  ;;  %v4102_v12 = vadd.f32 %v4101_v0, %v3945_v33  ;;  %v4141_v9 = vmul.f32 %v3945_v33, %v3945_v33 }
 0x27e   : > { %5030 = vst [vmem:[%s6666_s14 + $0x40] sm:$0xff] %v4971_v16   ;;  %v4172_v55 = vadd.f32 %v4171_v17, %v4141_v9 }
 0x27f   : > { %v3661_v25 = vpop.f32.mrf.mxu2 }
 0x280   : > { %v3900_v46 = vpop.f32.mrf.mxu3  ;;  %v3709_v7 = vadd.f32 %v3661_v25, %v3468_v61  ;;  %v3185_v52 = vpop.f32.mrf.mxu0 }
 0x281   : > { %v3232_v28 = vadd.f32 %v3185_v52, %v2991_v21  ;;  %v3434_v13 = vpop.f32.mrf.mxu1 }
 0x282   : > { %v3946_v18 = vadd.f32 %v3895_v58, %v3709_v7 }
 0x283   : > { %v3469_v63 = vadd.f32 %v6752_v45, %v3232_v28 }
 0x284   : > { %v4103_v60 = vadd.f32 %v4102_v12, %v3946_v18  ;;  %v4142_v53 = vmul.f32 %v3946_v18, %v3946_v18 }
 0x286   : > { %v4173_v37 = vadd.f32 %v4172_v55, %v4142_v53 }
 0x287   : > { %v3663_v24 = vpop.f32.mrf.mxu2 }
 0x288   : > { %v3902_v48 = vpop.f32.mrf.mxu3  ;;  %v3710_v23 = vadd.f32 %v3663_v24, %v3469_v63  ;;  %v3188_v3 = vpop.f32.mrf.mxu0 }
 0x289   : > { %v3233_v35 = vadd.f32 %v3188_v3, %v7036_v5  ;;  %v3437_v26 = vpop.f32.mrf.mxu1 }
 0x28a   : > { %v3947_v29 = vadd.f32 %v3897_v19, %v3710_v23 }
 0x28b   : > { %v3470_v8 = vadd.f32 %v6758_v2, %v3233_v35 }
 0x28c   : > { %v4976_v41 = vpack.c.bf16 %v3947_v29, %v3946_v18  ;;  %v4104_v27 = vadd.f32 %v4103_v60, %v3947_v29  ;;  %v4143_v54 = vmul.f32 %v3947_v29, %v3947_v29 }
 0x28e   : > { %5031 = vst [vmem:[%s6666_s14 + $0x48] sm:$0xff] %v4976_v41   ;;  %v4174_v38 = vadd.f32 %v4173_v37, %v4143_v54 }
 0x28f   : > { %v3666_v4 = vpop.f32.mrf.mxu2 }
 0x290   : > { %v3905_v10 = vpop.f32.mrf.mxu3  ;;  %v3711_v51 = vadd.f32 %v3666_v4, %v3470_v8  ;;  %v3190_v49 = vpop.f32.mrf.mxu0 }
 0x291   : > { %v3234_v58 = vadd.f32 %v3190_v49, %v7037_v11  ;;  %v3439_v18 = vpop.f32.mrf.mxu1 }
 0x292   : > { %v3948_v45 = vadd.f32 %v3900_v46, %v3711_v51 }
 0x293   : > { %v3471_v1 = vadd.f32 %v6763_v57, %v3234_v58  ;;  %v7038_v57 = vld [vmem:[#allocation13_spill] sm:$0xff] }
 0x294   : > { %v4105_v22 = vadd.f32 %v4104_v27, %v3948_v45  ;;  %v4144_v15 = vmul.f32 %v3948_v45, %v3948_v45 }
 0x296   : > { %v4175_v32 = vadd.f32 %v4174_v38, %v4144_v15 }
 0x297   : > { %v3668_v50 = vpop.f32.mrf.mxu2 }
 0x298   : > { %v3907_v0 = vpop.f32.mrf.mxu3  ;;  %v3712_v30 = vadd.f32 %v3668_v50, %v3471_v1  ;;  %v3193_v17 = vpop.f32.mrf.mxu0 }
 0x299   : > { %v3235_v2 = vadd.f32 %v3193_v17, %v6563_v40  ;;  %v3442_v35 = vpop.f32.mrf.mxu1 }
 0x29a   : > { %v3949_v20 = vadd.f32 %v3902_v48, %v3712_v30 }
 0x29b   : > { %v3472_v47 = vadd.f32 %v3427_v44, %v3235_v2 }
 0x29c   : > { %v4981_v31 = vpack.c.bf16 %v3949_v20, %v3948_v45  ;;  %v4106_v19 = vadd.f32 %v4105_v22, %v3949_v20  ;;  %v4145_v42 = vmul.f32 %v3949_v20, %v3949_v20 }
 0x29e   : > { %5032 = vst [vmem:[%s6666_s14 + $0x50] sm:$0xff] %v4981_v31   ;;  %v4176_v6 = vadd.f32 %v4175_v32, %v4145_v42 }
 0x29f   : > { %v3671_v39 = vpop.f32.mrf.mxu2 }
 0x2a0   : > { %v3910_v33 = vpop.f32.mrf.mxu3  ;;  %v3713_v16 = vadd.f32 %v3671_v39, %v3472_v47  ;;  %v3195_v12 = vpop.f32.mrf.mxu0  ;;  %v7039_v39 = vld [vmem:[#allocation5_spill] sm:$0xff] }
 0x2a1   : > { %v3236_v55 = vadd.f32 %v3195_v12, %v7038_v57  ;;  %v3444_v58 = vpop.f32.mrf.mxu1 }
 0x2a2   : > { %v3950_v9 = vadd.f32 %v3905_v10, %v3713_v16 }
 0x2a3   : > { %v3473_v7 = vadd.f32 %v3429_v56, %v3236_v55 }
 0x2a4   : > { %v4107_v61 = vadd.f32 %v4106_v19, %v3950_v9  ;;  %v4146_v25 = vmul.f32 %v3950_v9, %v3950_v9 }
 0x2a6   : > { %v4177_v46 = vadd.f32 %v4176_v6, %v4146_v25 }
 0x2a7   : > { %v3673_v40 = vpop.f32.mrf.mxu2 }
 0x2a8   : > { %v3912_v36 = vpop.f32.mrf.mxu3  ;;  %v3714_v21 = vadd.f32 %v3673_v40, %v3473_v7  ;;  %v3198_v52 = vpop.f32.mrf.mxu0  ;;  %v7040_v7 = vld [vmem:[#allocation8_spill] sm:$0xff] }
 0x2a9   : > { %v3237_v44 = vadd.f32 %v3198_v52, %v6581_v43  ;;  %v3447_v6 = vpop.f32.mrf.mxu1 }
 0x2aa   : > { %v3951_v28 = vadd.f32 %v3907_v0, %v3714_v21 }
 0x2ab   : > { %v3474_v24 = vadd.f32 %v3432_v34, %v3237_v44  ;;  %v7042_v44 = vld [vmem:[#allocation18_spill] sm:$0xff] }
 0x2ac   : > { %v4986_v60 = vpack.c.bf16 %v3951_v28, %v3950_v9  ;;  %v4108_v53 = vadd.f32 %v4107_v61, %v3951_v28  ;;  %v4147_v37 = vmul.f32 %v3951_v28, %v3951_v28 }
 0x2ae   : > { %5033 = vst [vmem:[%s6666_s14 + $0x58] sm:$0xff] %v4986_v60   ;;  %v4178_v63 = vadd.f32 %v4177_v46, %v4147_v37 }
 0x2af   : > { %v3676_v48 = vpop.f32.mrf.mxu2 }
 0x2b0   : > { %v3915_v23 = vpop.f32.mrf.mxu3  ;;  %v3715_v3 = vadd.f32 %v3676_v48, %v3474_v24  ;;  %v3200_v29 = vpop.f32.mrf.mxu0 }
 0x2b1   : > { %v3238_v56 = vadd.f32 %v3200_v29, %v6590_v59 }
 0x2b2   : > { %v3952_v5 = vadd.f32 %v3910_v33, %v3715_v3 }
 0x2b3   : > { %v3475_v38 = vadd.f32 %v3434_v13, %v3238_v56 }
 0x2b4   : > { %v4109_v41 = vadd.f32 %v4108_v53, %v3952_v5  ;;  %v4148_v27 = vmul.f32 %v3952_v5, %v3952_v5 }
 0x2b6   : > { %v4179_v54 = vadd.f32 %v4178_v63, %v4148_v27 }
 0x2b7   : > { %v3678_v43 = vpop.f32.mrf.mxu2 }
 0x2b8   : > { %v3917_v8 = vpop.f32.mrf.mxu3  ;;  %v3716_v4 = vadd.f32 %v3678_v43, %v3475_v38  ;;  %v3203_v10 = vpop.f32.mrf.mxu0 }
 0x2b9   : > { %v3239_v34 = vadd.f32 %v3203_v10, %v6599_v14 }
 0x2ba   : > { %v3953_v51 = vadd.f32 %v3912_v36, %v3716_v4  ;;  %v3449_v36 = vpop.f32.mrf.mxu1 }
 0x2bb   : > { %v3476_v59 = vadd.f32 %v3437_v26, %v3239_v34  ;;  %v3481_v60 = vadd.f32 %v3449_v36, %v7042_v44 }
 0x2bc   : > { %v4991_v49 = vpack.c.bf16 %v3953_v51, %v3952_v5  ;;  %v4110_v45 = vadd.f32 %v4109_v41, %v3953_v51  ;;  %v4149_v11 = vmul.f32 %v3953_v51, %v3953_v51 }
 0x2be   : > { %5034 = vst [vmem:[%s6666_s14 + $0x60] sm:$0xff] %v4991_v49   ;;  %v4180_v22 = vadd.f32 %v4179_v54, %v4149_v11 }
 0x2bf   : > { %v3681_v15 = vpop.f32.mrf.mxu2 }
 0x2c0   : > { %v3920_v32 = vpop.f32.mrf.mxu3  ;;  %v3717_v1 = vadd.f32 %v3681_v15, %v3476_v59  ;;  %v3205_v50 = vpop.f32.mrf.mxu0 }
 0x2c1   : > { %v3240_v13 = vadd.f32 %v3205_v50, %v6610_v62 }
 0x2c2   : > { %v3954_v0 = vadd.f32 %v3915_v23, %v3717_v1 }
 0x2c3   : > { %v3477_v2 = vadd.f32 %v3439_v18, %v3240_v13  ;;  %v7041_v18 = vld [vmem:[#allocation15_spill] sm:$0xff] }
 0x2c4   : > { %v4111_v30 = vadd.f32 %v4110_v45, %v3954_v0  ;;  %v4150_v17 = vmul.f32 %v3954_v0, %v3954_v0  ;;  %v3480_v28 = vadd.f32 %v3447_v6, %v7041_v18 }
 0x2c6   : > { %v4181_v20 = vadd.f32 %v4180_v22, %v4150_v17 }
 0x2c7   : > { %v3683_v14 = vpop.f32.mrf.mxu2 }
 0x2c8   : > { %v3922_v31 = vpop.f32.mrf.mxu3  ;;  %v3718_v19 = vadd.f32 %v3683_v14, %v3477_v2  ;;  %v3208_v42 = vpop.f32.mrf.mxu0 }
 0x2c9   : > { %v3241_v33 = vadd.f32 %v3208_v42, %v7039_v39 }
 0x2ca   : > { %v3955_v47 = vadd.f32 %v3917_v8, %v3718_v19 }
 0x2cb   : > { %v3478_v57 = vadd.f32 %v3442_v35, %v3241_v33 }
 0x2cc   : > { %v4996_v26 = vpack.c.bf16 %v3955_v47, %v3954_v0  ;;  %v4112_v16 = vadd.f32 %v4111_v30, %v3955_v47  ;;  %v4151_v12 = vmul.f32 %v3955_v47, %v3955_v47 }
 0x2ce   : > { %5035 = vst [vmem:[%s6666_s14 + $0x68] sm:$0xff] %v4996_v26   ;;  %v4182_v9 = vadd.f32 %v4181_v20, %v4151_v12 }
 0x2cf   : > { %v3686_v55 = vpop.f32.mrf.mxu2 }
 0x2d0   : > { %v3925_v62 = vpop.f32.mrf.mxu3  ;;  %v3719_v61 = vadd.f32 %v3686_v55, %v3478_v57  ;;  %v3210_v25 = vpop.f32.mrf.mxu0 }
 0x2d1   : > { %v3242_v40 = vadd.f32 %v3210_v25, %v7040_v7  ;;  %v3958_v48 = vadd.f32 %v3925_v62, %v3480_v28 }
 0x2d2   : > { %v3956_v46 = vadd.f32 %v3920_v32, %v3719_v61 }
 0x2d3   : > { %v3479_v37 = vadd.f32 %v3444_v58, %v3242_v40  ;;  %v4154_v27 = vmul.f32 %v3958_v48, %v3958_v48 }
 0x2d4   : > { %v4113_v21 = vadd.f32 %v4112_v16, %v3956_v46  ;;  %v4152_v52 = vmul.f32 %v3956_v46, %v3956_v46 }
 0x2d6   : > { %v4183_v53 = vadd.f32 %v4182_v9, %v4152_v52 }
 0x2d7   : > { %v3688_v63 = vpop.f32.mrf.mxu2 }
 0x2d8   : > { %v3927_v24 = vpop.f32.mrf.mxu3  ;;  %v3720_v23 = vadd.f32 %v3688_v63, %v3479_v37 }
 0x2d9   : > { %v3959_v3 = vadd.f32 %v3927_v24, %v3481_v60 }
 0x2da   : > { %v3957_v29 = vadd.f32 %v3922_v31, %v3720_v23 }
 0x2db   : > { %v5006_v5 = vpack.c.bf16 %v3959_v3, %v3958_v48  ;;  %v4155_v8 = vmul.f32 %v3959_v3, %v3959_v3 }
 0x2dc   : > { %v5001_v56 = vpack.c.bf16 %v3957_v29, %v3956_v46  ;;  %v4114_v35 = vadd.f32 %v4113_v21, %v3957_v29  ;;  %v4153_v41 = vmul.f32 %v3957_v29, %v3957_v29 }
 0x2dd   : > { %5037 = vst [vmem:[%s6666_s14 + $0x78] sm:$0xff] %v5006_v5  }
 0x2de   : > { %5036 = vst [vmem:[%s6666_s14 + $0x70] sm:$0xff] %v5001_v56   ;;  %v4184_v54 = vadd.f32 %v4183_v53, %v4153_v41  ;;  %v4115_v38 = vadd.f32 %v4114_v35, %v3958_v48 }
 0x2e0   : > { %v4116_v43 = vadd.f32 %v4115_v38, %v3959_v3  ;;  %v4185_v4 = vadd.f32 %v4184_v54, %v4154_v27 }
 0x2e2   : > { %v4117_v10 = vrot.slane %v4116_v43, 4  ;;  %v4186_v51 = vadd.f32 %v4185_v4, %v4155_v8 }
 0x2e4   : > { %v4118_v34 = vadd.f32 %v4117_v10, %v4116_v43  ;;  %v4187_v49 = vrot.slane %v4186_v51, 4 }
 0x2e6   : > { %v4119_v45 = vrot.slane %v4118_v34, 2  ;;  %v4188_v11 = vadd.f32 %v4187_v49, %v4186_v51 }
 0x2e8   : > { %v4120_v58 = vadd.f32 %v4119_v45, %v4118_v34  ;;  %v4189_v22 = vrot.slane %v4188_v11, 2 }
 0x2ea   : > { %v4121_v59 = vrot.slane %v4120_v58, 1  ;;  %v4190_v15 = vadd.f32 %v4189_v22, %v4188_v11 }
 0x2ec   : > { %v4122_v32 = vadd.f32 %v4121_v59, %v4120_v58  ;;  %v4191_v1 = vrot.slane %v4190_v15, 1 }
 0x2ee   : > { %4123 = vst [vmem:[%s265_s16] sm:$0x1] %v4122_v32  ;;  %v4192_v50 = vadd.f32 %v4191_v1, %v4190_v15 }
 0x2f0   : > { %4193 = vst [vmem:[%s268_s19] sm:$0x1] %v4192_v50 }
 0x2f1 PF: > { %s17_s21 = sadd.s32 1, %s5082_s21  }
 0x2f2   : > { %p14_p4 = scmp.ge.s32.totalorder %s17_s21, 4  }
 0x2f4   :  { %16 = sbr.rel (!%p14_p4) target bundleno = 1 (0x1), region = 98 }

</bundles_post_ra>
